<compile_context>
chip_gen: v6e
topology: v6e:2x2x1
jax: 0.10.0
libtpu: 0.0.40
codegen_flags: <defaults>
</compile_context>

<pallas_src>
import functools

import jax
import jax.numpy as jnp
from jax.experimental import pallas as pl
from jax.experimental.pallas import tpu as pltpu


# ---------------------------------------------------------------------------
# Pallas kernels
# ---------------------------------------------------------------------------
def _conv_s1_kernel(x_ref, w_ref, b_ref, o_ref, acc_ref, *, Do, Ho, Wo, K):
    """Stride-1 3-D conv as implicit GEMM; grid = (batch, kd), kd = reduction.

    x_ref : (1, Dp, Ho, Wo, K)  H/W-unfolded bf16 activation (K = k*k*Cin)
    w_ref : (1, K, Cout)        bf16 weight slab for the current kd
    b_ref : (1, Cout)           f32 bias
    o_ref : (1, M, Cout)        bf16 output, M = Do*Ho*Wo
    acc_ref: (M, Cout)          f32 VMEM accumulator (persists across kd steps)
    """
    kd = pl.program_id(1)

    @pl.when(kd == 0)
    def _init():
        acc_ref[...] = jnp.zeros_like(acc_ref)

    M = Do * Ho * Wo
    win = x_ref[0, pl.ds(kd, Do)]                       # (Do, Ho, Wo, K); major-dim slice
    acc_ref[...] += jnp.dot(win.reshape(M, K), w_ref[0],
                            preferred_element_type=jnp.float32)

    @pl.when(kd == pl.num_programs(1) - 1)
    def _finalize():
        y = acc_ref[...] + b_ref[...]                   # f32 bias add
        o_ref[0] = jnp.maximum(y, 0.0).astype(o_ref.dtype)   # fused ReLU


def _fc_fused_kernel(x_ref, w1_ref, b1_ref, w2_ref, b2_ref, o_ref):
    """fc1 + ReLU + fc2 fused in one kernel (dropout is identity at inference)."""
    h = jnp.dot(x_ref[...], w1_ref[...], preferred_element_type=jnp.float32)
    h = jnp.maximum(h + b1_ref[...], 0.0).astype(jnp.bfloat16)
    o = jnp.dot(h, w2_ref[...], preferred_element_type=jnp.float32)
    o_ref[...] = (o + b2_ref[...]).astype(o_ref.dtype)


# ---------------------------------------------------------------------------
# Pallas-call wrappers
# ---------------------------------------------------------------------------
def conv3d_s1_relu(x, w, b, *, pad):
    """Stride-1 Conv3d + bias + ReLU via the implicit-GEMM Pallas kernel.

    x: (N, D, H, W, Cin);  w: (k, k*k*Cin, Cout) bf16;  b: (1, Cout) f32.
    """
    N, D, H, W, Cin = x.shape
    k, K, Cout = w.shape
    assert K == k * k * Cin
    if pad:
        x = jnp.pad(x, ((0, 0), (pad, pad), (pad, pad), (pad, pad), (0, 0)))
    Dp, Hp, Wp = D + 2 * pad, H + 2 * pad, W + 2 * pad
    Do, Ho, Wo = Dp - k + 1, Hp - k + 1, Wp - k + 1
    M = Do * Ho * Wo
    x = x.astype(jnp.bfloat16)
    # Unfold the two innermost spatial axes: xu[..., ho, wo, (kh*k+kw)*Cin + c]
    # = x[..., ho+kh, wo+kw, c].  ~k^2 x the raw activation (< 2 MiB here), which
    # lets each kd grid step be a single wide (M, K) x (K, Cout) MXU dot.
    xu = jnp.concatenate(
        [x[:, :, kh:kh + Ho, kw:kw + Wo, :] for kh in range(k) for kw in range(k)],
        axis=4)                                          # (N, Dp, Ho, Wo, K)

    kernel = functools.partial(_conv_s1_kernel, Do=Do, Ho=Ho, Wo=Wo, K=K)
    out = pl.pallas_call(
        kernel,
        out_shape=jax.ShapeDtypeStruct((N, M, Cout), jnp.bfloat16),
        grid_spec=pltpu.PrefetchScalarGridSpec(
            num_scalar_prefetch=0,
            grid=(N, k),                                 # (parallel batch, kd reduction)
            in_specs=[
                pl.BlockSpec((1, Dp, Ho, Wo, K), lambda bi, i: (bi, 0, 0, 0, 0)),
                pl.BlockSpec((1, K, Cout), lambda bi, i: (i, 0, 0)),
                pl.BlockSpec((1, Cout), lambda bi, i: (0, 0)),
            ],
            out_specs=pl.BlockSpec((1, M, Cout), lambda bi, i: (bi, 0, 0)),
            scratch_shapes=[pltpu.VMEM((M, Cout), jnp.float32)],
        ),
        compiler_params=pltpu.CompilerParams(
            dimension_semantics=("parallel", "arbitrary")),
    )(xu, w, b)
    return out.reshape(N, Do, Ho, Wo, Cout)


def fc1_fc2_fused(x, w1, b1, w2, b2):
    """relu(x @ w1 + b1) @ w2 + b2 in one pallas_call (tiny M; single grid step)."""
    Nb, Kin = x.shape
    Hd = w1.shape[1]
    Out = w2.shape[1]
    return pl.pallas_call(
        _fc_fused_kernel,
        out_shape=jax.ShapeDtypeStruct((Nb, Out), jnp.float32),
        grid_spec=pltpu.PrefetchScalarGridSpec(
            num_scalar_prefetch=0,
            grid=(1,),
            in_specs=[
                pl.BlockSpec((Nb, Kin), lambda i: (0, 0)),
                pl.BlockSpec((Kin, Hd), lambda i: (0, 0)),
                pl.BlockSpec((1, Hd), lambda i: (0, 0)),
                pl.BlockSpec((Hd, Out), lambda i: (0, 0)),
                pl.BlockSpec((1, Out), lambda i: (0, 0)),
            ],
            out_specs=pl.BlockSpec((Nb, Out), lambda i: (0, 0)),
        ),
        compiler_params=pltpu.CompilerParams(
            dimension_semantics=("arbitrary",)),
    )(x, w1, b1, w2, b2)


# ---------------------------------------------------------------------------
# Layout plumbing (plain JAX, trace-time / tiny data)
# ---------------------------------------------------------------------------
def _space_to_depth2(x):
    """(N, D, H, W, C), even spatial dims -> (N, D/2, H/2, W/2, 8*C)."""
    N, D, H, W, C = x.shape
    x = x.reshape(N, D // 2, 2, H // 2, 2, W // 2, 2, C)
    x = x.transpose(0, 1, 3, 5, 2, 4, 6, 7)
    return x.reshape(N, D // 2, H // 2, W // 2, 8 * C)


def _space_to_depth2_weight(w):
    """Conv weight (k,k,k,Cin,Cout), odd k, stride-2 conv -> stride-1 weight
    (kp,kp,kp,8*Cin,Cout) matching _space_to_depth2 channel ordering."""
    k, _, _, cin, cout = w.shape
    kp = (k + 1) // 2
    w = jnp.pad(w, ((0, 1), (0, 1), (0, 1), (0, 0), (0, 0)))     # k -> 2*kp
    w = w.reshape(kp, 2, kp, 2, kp, 2, cin, cout)
    w = w.transpose(0, 2, 4, 1, 3, 5, 6, 7)                      # (od,oh,ow,pd,ph,pw,ci,co)
    return w.reshape(kp, kp, kp, 8 * cin, cout)


def _to_kernel_conv_weight(w):
    """(k, k, k, Cin, Cout) -> (k, k*k*Cin, Cout); contraction ordered (kh, kw, Cin)."""
    k, _, _, cin, cout = w.shape
    return w.reshape(k, k * k * cin, cout)


# ---------------------------------------------------------------------------
# Parameters + forward
# ---------------------------------------------------------------------------
def init_params(key, num_classes=24, input_shape=(16, 16, 16)):
    ks = jax.random.split(key, 5)

    def rnd(k, shape, scale):
        return jax.random.normal(k, shape, jnp.float32) * scale

    w1 = rnd(ks[0], (7, 7, 7, 1, 32), 0.08)     # block_1: Conv3d(1->32, k7, s2, p3)
    w2 = rnd(ks[1], (5, 5, 5, 32, 32), 0.03)    # block_2: Conv3d(32->32, k5, s1, p2)
    w3 = rnd(ks[2], (3, 3, 3, 32, 64), 0.05)    # block_3: Conv3d(32->64, k3, s1, p1)
    inshape = 64 * (input_shape[0] // 4) ** 3   # == flattened pooled features
    fc1 = rnd(ks[3], (inshape, 128), 0.02)
    fc2 = rnd(ks[4], (128, num_classes), 0.05)

    return {
        # conv1 pre-transformed to its stride-1 / space-to-depth form.
        "w1": _to_kernel_conv_weight(_space_to_depth2_weight(w1)).astype(jnp.bfloat16),
        "b1": jnp.zeros((1, 32), jnp.float32),
        "w2": _to_kernel_conv_weight(w2).astype(jnp.bfloat16),
        "b2": jnp.zeros((1, 32), jnp.float32),
        "w3": _to_kernel_conv_weight(w3).astype(jnp.bfloat16),
        "b3": jnp.zeros((1, 64), jnp.float32),
        # fc1 rows ordered by the channels-last (d,h,w,c) flatten of the pooled
        # activation (a PyTorch checkpoint would be row-permuted from (c,d,h,w)).
        "fc1_w": fc1.astype(jnp.bfloat16),
        "fc1_b": jnp.zeros((1, 128), jnp.float32),
        "fc2_w": fc2.astype(jnp.bfloat16),
        "fc2_b": jnp.zeros((1, num_classes), jnp.float32),
    }


def baseline_net_forward(params, x_ncdhw):
    # x: (N, 1, D, H, W) PyTorch NCDHW -> channels-last (N, D, H, W, 1).
    x = jnp.transpose(x_ncdhw, (0, 2, 3, 4, 1)).astype(jnp.float32)
    N, D, H, W, _ = x.shape
    assert D % 4 == 0 and H % 4 == 0 and W % 4 == 0, "spatial dims must be /4"

    # block_1: Conv3d(1->32, k=7, s=2, p=3) + ReLU, expressed as a stride-1 conv
    # (k=4, Cin=8) on a space-to-depth input so it shares the same kernel.
    xp = jnp.pad(x, ((0, 0), (3, 3), (3, 3), (3, 3), (0, 0)))
    xs = _space_to_depth2(xp)
    x = conv3d_s1_relu(xs, params["w1"], params["b1"], pad=0)    # (N, D/2, H/2, W/2, 32)
    # block_2 / block_3
    x = conv3d_s1_relu(x, params["w2"], params["b2"], pad=2)     # (N, D/2, ..., 32)
    x = conv3d_s1_relu(x, params["w3"], params["b3"], pad=1)     # (N, D/2, ..., 64)

    # MaxPool3d(kernel=2, stride=2) + flatten: plain-JAX reshape + max on a tiny
    # (N, 8, 8, 8, 64) bf16 tensor (no extra kernel launch / HBM round trip).
    n, d, h, w, c = x.shape
    x = x.reshape(n, d // 2, 2, h // 2, 2, w // 2, 2, c).max(axis=(2, 4, 6))
    x = x.reshape(n, -1).astype(jnp.bfloat16)                    # (N, 4096)

    # Dropout(p=0.2) is identity at inference.
    # TODO(synk): training-mode dropout masking not implemented (eval semantics).
    return fc1_fc2_fused(x, params["fc1_w"], params["fc1_b"],
                         params["fc2_w"], params["fc2_b"])        # (N, num_classes)


if __name__ == "__main__":
    key = jax.random.PRNGKey(0)
    kp, kx = jax.random.split(key)
    input_shape = (16, 16, 16)          # small but stride/pool-consistent (div by 4)
    params = init_params(kp, num_classes=24, input_shape=input_shape)
    x = jax.random.normal(kx, (2, 1) + input_shape, jnp.float32)
    out = jax.jit(baseline_net_forward)(params, x)
    out = jax.block_until_ready(out)
    assert out.shape == (2, 24), out.shape
    assert bool(jnp.all(jnp.isfinite(out)))
    print("KERNEL_OK")
</pallas_src>

<mosaic_0001>
module attributes {stable_mosaic.version = 11 : i64} {
  func.func @_conv_s1_kernel(%arg0: i32, %arg1: i32, %arg2: memref<1x11x8x8x128xbf16, #tpu.memory_space<vmem>>, %arg3: memref<1x128x32xbf16, #tpu.memory_space<vmem>>, %arg4: memref<1x32xf32, #tpu.memory_space<vmem>>, %arg5: memref<1x512x32xbf16, #tpu.memory_space<vmem>>, %arg6: memref<512x32xf32, #tpu.memory_space<vmem>>) attributes {dimension_semantics = [#tpu.dimension_semantics<parallel>, #tpu.dimension_semantics<arbitrary>], iteration_bounds = array<i64: 2, 4>, scalar_prefetch = 0 : i64, scratch_operands = 1 : i64, tpu.core_type = #tpu.core_type<tc>, window_params = [{transform_indices = @transform_0, window_bounds = array<i64: 1, 11, 8, 8, 128>}, {transform_indices = @transform_1, window_bounds = array<i64: 1, 128, 32>}, {pipeline_mode = #tpu.pipeline_mode<synchronous>, transform_indices = @transform_2, window_bounds = array<i64: 1, 32>}, {transform_indices = @transform_3, window_bounds = array<i64: 1, 512, 32>}]} {
    %c0_i32 = arith.constant 0 : i32
    %0 = arith.cmpi eq, %arg1, %c0_i32 : i32
    %1 = arith.extui %0 : i1 to i32
    %c0_i32_0 = arith.constant 0 : i32
    %2 = arith.cmpi ne, %1, %c0_i32_0 : i32
    scf.if %2 {
      %cst_12 = arith.constant 0.000000e+00 : f32
      %16 = vector.broadcast %cst_12 : f32 to vector<512x32xf32>
      %c0_13 = arith.constant 0 : index
      %c0_14 = arith.constant 0 : index
      %17 = vector.load %arg6[%c0_13, %c0_14] : memref<512x32xf32, #tpu.memory_space<vmem>>, vector<512x32xf32>
      tpu.vector_store %arg6[%c0_13, %c0_14], %16 {strides = array<i32>} : memref<512x32xf32, #tpu.memory_space<vmem>>, vector<512x32xf32>,
    } else {
    }
    %c0 = arith.constant 0 : index
    %3 = arith.index_cast %arg1 : i32 to index
    %c0_1 = arith.constant 0 : index
    %c0_2 = arith.constant 0 : index
    %c0_3 = arith.constant 0 : index
    %4 = vector.load %arg2[%c0, %3, %c0_1, %c0_2, %c0_3] : memref<1x11x8x8x128xbf16, #tpu.memory_space<vmem>>, vector<1x8x8x8x128xbf16>
    %5 = vector.shape_cast %4 : vector<1x8x8x8x128xbf16> to vector<8x8x8x128xbf16>
    %c0_4 = arith.constant 0 : index
    %c0_5 = arith.constant 0 : index
    %6 = vector.load %arg6[%c0_4, %c0_5] : memref<512x32xf32, #tpu.memory_space<vmem>>, vector<512x32xf32>
    %7 = vector.shape_cast %5 : vector<8x8x8x128xbf16> to vector<512x128xbf16>
    %c0_6 = arith.constant 0 : index
    %c0_7 = arith.constant 0 : index
    %c0_8 = arith.constant 0 : index
    %8 = vector.load %arg3[%c0_6, %c0_7, %c0_8] : memref<1x128x32xbf16, #tpu.memory_space<vmem>>, vector<1x128x32xbf16>
    %9 = vector.shape_cast %8 : vector<1x128x32xbf16> to vector<128x32xbf16>
    %cst = arith.constant dense<0.000000e+00> : vector<512x32xf32>
    %10 = tpu.matmul %7, %9, %cst {dimension_numbers = #tpu.dot_dimension_numbers<[1], [0], [0], [1], [0, 0, 1, 1], [], []>} : vector<512x128xbf16>, vector<128x32xbf16>, vector<512x32xf32> -> vector<512x32xf32>
    %11 = arith.addf %6, %10 : vector<512x32xf32>
    %c0_9 = arith.constant 0 : index
    %c0_10 = arith.constant 0 : index
    %12 = vector.load %arg6[%c0_9, %c0_10] : memref<512x32xf32, #tpu.memory_space<vmem>>, vector<512x32xf32>
    tpu.vector_store %arg6[%c0_9, %c0_10], %11 {strides = array<i32>} : memref<512x32xf32, #tpu.memory_space<vmem>>, vector<512x32xf32>,
    %c3_i32 = arith.constant 3 : i32
    %13 = arith.cmpi eq, %arg1, %c3_i32 : i32
    %14 = arith.extui %13 : i1 to i32
    %c0_i32_11 = arith.constant 0 : i32
    %15 = arith.cmpi ne, %14, %c0_i32_11 : i32
    scf.if %15 {
      %c0_12 = arith.constant 0 : index
      %c0_13 = arith.constant 0 : index
      %16 = vector.load %arg6[%c0_12, %c0_13] : memref<512x32xf32, #tpu.memory_space<vmem>>, vector<512x32xf32>
      %c0_14 = arith.constant 0 : index
      %c0_15 = arith.constant 0 : index
      %17 = vector.load %arg4[%c0_14, %c0_15] : memref<1x32xf32, #tpu.memory_space<vmem>>, vector<1x32xf32>
      %18 = vector.broadcast %17 : vector<1x32xf32> to vector<512x32xf32>
      %19 = arith.addf %16, %18 : vector<512x32xf32>
      %cst_16 = arith.constant 0.000000e+00 : f32
      %20 = vector.broadcast %cst_16 : f32 to vector<512x32xf32>
      %21 = arith.maximumf %19, %20 : vector<512x32xf32>
      %22 = arith.truncf %21 : vector<512x32xf32> to vector<512x32xbf16>
      %c0_17 = arith.constant 0 : index
      %c0_18 = arith.constant 0 : index
      %c0_19 = arith.constant 0 : index
      %23 = vector.load %arg5[%c0_17, %c0_18, %c0_19] : memref<1x512x32xbf16, #tpu.memory_space<vmem>>, vector<1x512x32xbf16>
      %24 = vector.shape_cast %23 : vector<1x512x32xbf16> to vector<512x32xbf16>
      %25 = vector.shape_cast %22 : vector<512x32xbf16> to vector<1x512x32xbf16>
      tpu.vector_store %arg5[%c0_17, %c0_18, %c0_19], %25 {strides = array<i32>} : memref<1x512x32xbf16, #tpu.memory_space<vmem>>, vector<1x512x32xbf16>,
    } else {
    }
    return
  }
  func.func @transform_0(%arg0: i32, %arg1: i32) -> (i32, i32, i32, i32, i32) {
    %c0_i32 = arith.constant 0 : i32
    %c0_i32_0 = arith.constant 0 : i32
    %c0_i32_1 = arith.constant 0 : i32
    %c0_i32_2 = arith.constant 0 : i32
    %c0_i32_3 = arith.constant 0 : i32
    return %arg0, %c0_i32, %c0_i32_0, %c0_i32_1, %c0_i32_2 : i32, i32, i32, i32, i32
  }
  func.func @transform_1(%arg0: i32, %arg1: i32) -> (i32, i32, i32) {
    %c0_i32 = arith.constant 0 : i32
    %c0_i32_0 = arith.constant 0 : i32
    %c0_i32_1 = arith.constant 0 : i32
    return %arg1, %c0_i32, %c0_i32_0 : i32, i32, i32
  }
  func.func @transform_2(%arg0: i32, %arg1: i32) -> (i32, i32) {
    %c0_i32 = arith.constant 0 : i32
    %c0_i32_0 = arith.constant 0 : i32
    %c0_i32_1 = arith.constant 0 : i32
    return %c0_i32, %c0_i32_0 : i32, i32
  }
  func.func @transform_3(%arg0: i32, %arg1: i32) -> (i32, i32, i32) {
    %c0_i32 = arith.constant 0 : i32
    %c0_i32_0 = arith.constant 0 : i32
    %c0_i32_1 = arith.constant 0 : i32
    return %arg0, %c0_i32, %c0_i32_0 : i32, i32, i32
  }
}

module attributes {stable_mosaic.version = 11 : i64} {
  func.func @_conv_s1_kernel(%arg0: i32, %arg1: i32, %arg2: memref<1x12x8x8x800xbf16, #tpu.memory_space<vmem>>, %arg3: memref<1x800x32xbf16, #tpu.memory_space<vmem>>, %arg4: memref<1x32xf32, #tpu.memory_space<vmem>>, %arg5: memref<1x512x32xbf16, #tpu.memory_space<vmem>>, %arg6: memref<512x32xf32, #tpu.memory_space<vmem>>) attributes {dimension_semantics = [#tpu.dimension_semantics<parallel>, #tpu.dimension_semantics<arbitrary>], iteration_bounds = array<i64: 2, 5>, scalar_prefetch = 0 : i64, scratch_operands = 1 : i64, tpu.core_type = #tpu.core_type<tc>, window_params = [{transform_indices = @transform_0, window_bounds = array<i64: 1, 12, 8, 8, 800>}, {transform_indices = @transform_1, window_bounds = array<i64: 1, 800, 32>}, {pipeline_mode = #tpu.pipeline_mode<synchronous>, transform_indices = @transform_2, window_bounds = array<i64: 1, 32>}, {transform_indices = @transform_3, window_bounds = array<i64: 1, 512, 32>}]} {
    %c0_i32 = arith.constant 0 : i32
    %0 = arith.cmpi eq, %arg1, %c0_i32 : i32
    %1 = arith.extui %0 : i1 to i32
    %c0_i32_0 = arith.constant 0 : i32
    %2 = arith.cmpi ne, %1, %c0_i32_0 : i32
    scf.if %2 {
      %cst_12 = arith.constant 0.000000e+00 : f32
      %16 = vector.broadcast %cst_12 : f32 to vector<512x32xf32>
      %c0_13 = arith.constant 0 : index
      %c0_14 = arith.constant 0 : index
      %17 = vector.load %arg6[%c0_13, %c0_14] : memref<512x32xf32, #tpu.memory_space<vmem>>, vector<512x32xf32>
      tpu.vector_store %arg6[%c0_13, %c0_14], %16 {strides = array<i32>} : memref<512x32xf32, #tpu.memory_space<vmem>>, vector<512x32xf32>,
    } else {
    }
    %c0 = arith.constant 0 : index
    %3 = arith.index_cast %arg1 : i32 to index
    %c0_1 = arith.constant 0 : index
    %c0_2 = arith.constant 0 : index
    %c0_3 = arith.constant 0 : index
    %4 = vector.load %arg2[%c0, %3, %c0_1, %c0_2, %c0_3] : memref<1x12x8x8x800xbf16, #tpu.memory_space<vmem>>, vector<1x8x8x8x800xbf16>
    %5 = vector.shape_cast %4 : vector<1x8x8x8x800xbf16> to vector<8x8x8x800xbf16>
    %c0_4 = arith.constant 0 : index
    %c0_5 = arith.constant 0 : index
    %6 = vector.load %arg6[%c0_4, %c0_5] : memref<512x32xf32, #tpu.memory_space<vmem>>, vector<512x32xf32>
    %7 = vector.shape_cast %5 : vector<8x8x8x800xbf16> to vector<512x800xbf16>
    %c0_6 = arith.constant 0 : index
    %c0_7 = arith.constant 0 : index
    %c0_8 = arith.constant 0 : index
    %8 = vector.load %arg3[%c0_6, %c0_7, %c0_8] : memref<1x800x32xbf16, #tpu.memory_space<vmem>>, vector<1x800x32xbf16>
    %9 = vector.shape_cast %8 : vector<1x800x32xbf16> to vector<800x32xbf16>
    %cst = arith.constant dense<0.000000e+00> : vector<512x32xf32>
    %10 = tpu.matmul %7, %9, %cst {dimension_numbers = #tpu.dot_dimension_numbers<[1], [0], [0], [1], [0, 0, 1, 1], [], []>} : vector<512x800xbf16>, vector<800x32xbf16>, vector<512x32xf32> -> vector<512x32xf32>
    %11 = arith.addf %6, %10 : vector<512x32xf32>
    %c0_9 = arith.constant 0 : index
    %c0_10 = arith.constant 0 : index
    %12 = vector.load %arg6[%c0_9, %c0_10] : memref<512x32xf32, #tpu.memory_space<vmem>>, vector<512x32xf32>
    tpu.vector_store %arg6[%c0_9, %c0_10], %11 {strides = array<i32>} : memref<512x32xf32, #tpu.memory_space<vmem>>, vector<512x32xf32>,
    %c4_i32 = arith.constant 4 : i32
    %13 = arith.cmpi eq, %arg1, %c4_i32 : i32
    %14 = arith.extui %13 : i1 to i32
    %c0_i32_11 = arith.constant 0 : i32
    %15 = arith.cmpi ne, %14, %c0_i32_11 : i32
    scf.if %15 {
      %c0_12 = arith.constant 0 : index
      %c0_13 = arith.constant 0 : index
      %16 = vector.load %arg6[%c0_12, %c0_13] : memref<512x32xf32, #tpu.memory_space<vmem>>, vector<512x32xf32>
      %c0_14 = arith.constant 0 : index
      %c0_15 = arith.constant 0 : index
      %17 = vector.load %arg4[%c0_14, %c0_15] : memref<1x32xf32, #tpu.memory_space<vmem>>, vector<1x32xf32>
      %18 = vector.broadcast %17 : vector<1x32xf32> to vector<512x32xf32>
      %19 = arith.addf %16, %18 : vector<512x32xf32>
      %cst_16 = arith.constant 0.000000e+00 : f32
      %20 = vector.broadcast %cst_16 : f32 to vector<512x32xf32>
      %21 = arith.maximumf %19, %20 : vector<512x32xf32>
      %22 = arith.truncf %21 : vector<512x32xf32> to vector<512x32xbf16>
      %c0_17 = arith.constant 0 : index
      %c0_18 = arith.constant 0 : index
      %c0_19 = arith.constant 0 : index
      %23 = vector.load %arg5[%c0_17, %c0_18, %c0_19] : memref<1x512x32xbf16, #tpu.memory_space<vmem>>, vector<1x512x32xbf16>
      %24 = vector.shape_cast %23 : vector<1x512x32xbf16> to vector<512x32xbf16>
      %25 = vector.shape_cast %22 : vector<512x32xbf16> to vector<1x512x32xbf16>
      tpu.vector_store %arg5[%c0_17, %c0_18, %c0_19], %25 {strides = array<i32>} : memref<1x512x32xbf16, #tpu.memory_space<vmem>>, vector<1x512x32xbf16>,
    } else {
    }
    return
  }
  func.func @transform_0(%arg0: i32, %arg1: i32) -> (i32, i32, i32, i32, i32) {
    %c0_i32 = arith.constant 0 : i32
    %c0_i32_0 = arith.constant 0 : i32
    %c0_i32_1 = arith.constant 0 : i32
    %c0_i32_2 = arith.constant 0 : i32
    %c0_i32_3 = arith.constant 0 : i32
    return %arg0, %c0_i32, %c0_i32_0, %c0_i32_1, %c0_i32_2 : i32, i32, i32, i32, i32
  }
  func.func @transform_1(%arg0: i32, %arg1: i32) -> (i32, i32, i32) {
    %c0_i32 = arith.constant 0 : i32
    %c0_i32_0 = arith.constant 0 : i32
    %c0_i32_1 = arith.constant 0 : i32
    return %arg1, %c0_i32, %c0_i32_0 : i32, i32, i32
  }
  func.func @transform_2(%arg0: i32, %arg1: i32) -> (i32, i32) {
    %c0_i32 = arith.constant 0 : i32
    %c0_i32_0 = arith.constant 0 : i32
    %c0_i32_1 = arith.constant 0 : i32
    return %c0_i32, %c0_i32_0 : i32, i32
  }
  func.func @transform_3(%arg0: i32, %arg1: i32) -> (i32, i32, i32) {
    %c0_i32 = arith.constant 0 : i32
    %c0_i32_0 = arith.constant 0 : i32
    %c0_i32_1 = arith.constant 0 : i32
    return %arg0, %c0_i32, %c0_i32_0 : i32, i32, i32
  }
}

module attributes {stable_mosaic.version = 11 : i64} {
  func.func @_conv_s1_kernel(%arg0: i32, %arg1: i32, %arg2: memref<1x10x8x8x288xbf16, #tpu.memory_space<vmem>>, %arg3: memref<1x288x64xbf16, #tpu.memory_space<vmem>>, %arg4: memref<1x64xf32, #tpu.memory_space<vmem>>, %arg5: memref<1x512x64xbf16, #tpu.memory_space<vmem>>, %arg6: memref<512x64xf32, #tpu.memory_space<vmem>>) attributes {dimension_semantics = [#tpu.dimension_semantics<parallel>, #tpu.dimension_semantics<arbitrary>], iteration_bounds = array<i64: 2, 3>, scalar_prefetch = 0 : i64, scratch_operands = 1 : i64, tpu.core_type = #tpu.core_type<tc>, window_params = [{transform_indices = @transform_0, window_bounds = array<i64: 1, 10, 8, 8, 288>}, {transform_indices = @transform_1, window_bounds = array<i64: 1, 288, 64>}, {pipeline_mode = #tpu.pipeline_mode<synchronous>, transform_indices = @transform_2, window_bounds = array<i64: 1, 64>}, {transform_indices = @transform_3, window_bounds = array<i64: 1, 512, 64>}]} {
    %c0_i32 = arith.constant 0 : i32
    %0 = arith.cmpi eq, %arg1, %c0_i32 : i32
    %1 = arith.extui %0 : i1 to i32
    %c0_i32_0 = arith.constant 0 : i32
    %2 = arith.cmpi ne, %1, %c0_i32_0 : i32
    scf.if %2 {
      %cst_12 = arith.constant 0.000000e+00 : f32
      %16 = vector.broadcast %cst_12 : f32 to vector<512x64xf32>
      %c0_13 = arith.constant 0 : index
      %c0_14 = arith.constant 0 : index
      %17 = vector.load %arg6[%c0_13, %c0_14] : memref<512x64xf32, #tpu.memory_space<vmem>>, vector<512x64xf32>
      tpu.vector_store %arg6[%c0_13, %c0_14], %16 {strides = array<i32>} : memref<512x64xf32, #tpu.memory_space<vmem>>, vector<512x64xf32>,
    } else {
    }
    %c0 = arith.constant 0 : index
    %3 = arith.index_cast %arg1 : i32 to index
    %c0_1 = arith.constant 0 : index
    %c0_2 = arith.constant 0 : index
    %c0_3 = arith.constant 0 : index
    %4 = vector.load %arg2[%c0, %3, %c0_1, %c0_2, %c0_3] : memref<1x10x8x8x288xbf16, #tpu.memory_space<vmem>>, vector<1x8x8x8x288xbf16>
    %5 = vector.shape_cast %4 : vector<1x8x8x8x288xbf16> to vector<8x8x8x288xbf16>
    %c0_4 = arith.constant 0 : index
    %c0_5 = arith.constant 0 : index
    %6 = vector.load %arg6[%c0_4, %c0_5] : memref<512x64xf32, #tpu.memory_space<vmem>>, vector<512x64xf32>
    %7 = vector.shape_cast %5 : vector<8x8x8x288xbf16> to vector<512x288xbf16>
    %c0_6 = arith.constant 0 : index
    %c0_7 = arith.constant 0 : index
    %c0_8 = arith.constant 0 : index
    %8 = vector.load %arg3[%c0_6, %c0_7, %c0_8] : memref<1x288x64xbf16, #tpu.memory_space<vmem>>, vector<1x288x64xbf16>
    %9 = vector.shape_cast %8 : vector<1x288x64xbf16> to vector<288x64xbf16>
    %cst = arith.constant dense<0.000000e+00> : vector<512x64xf32>
    %10 = tpu.matmul %7, %9, %cst {dimension_numbers = #tpu.dot_dimension_numbers<[1], [0], [0], [1], [0, 0, 1, 1], [], []>} : vector<512x288xbf16>, vector<288x64xbf16>, vector<512x64xf32> -> vector<512x64xf32>
    %11 = arith.addf %6, %10 : vector<512x64xf32>
    %c0_9 = arith.constant 0 : index
    %c0_10 = arith.constant 0 : index
    %12 = vector.load %arg6[%c0_9, %c0_10] : memref<512x64xf32, #tpu.memory_space<vmem>>, vector<512x64xf32>
    tpu.vector_store %arg6[%c0_9, %c0_10], %11 {strides = array<i32>} : memref<512x64xf32, #tpu.memory_space<vmem>>, vector<512x64xf32>,
    %c2_i32 = arith.constant 2 : i32
    %13 = arith.cmpi eq, %arg1, %c2_i32 : i32
    %14 = arith.extui %13 : i1 to i32
    %c0_i32_11 = arith.constant 0 : i32
    %15 = arith.cmpi ne, %14, %c0_i32_11 : i32
    scf.if %15 {
      %c0_12 = arith.constant 0 : index
      %c0_13 = arith.constant 0 : index
      %16 = vector.load %arg6[%c0_12, %c0_13] : memref<512x64xf32, #tpu.memory_space<vmem>>, vector<512x64xf32>
      %c0_14 = arith.constant 0 : index
      %c0_15 = arith.constant 0 : index
      %17 = vector.load %arg4[%c0_14, %c0_15] : memref<1x64xf32, #tpu.memory_space<vmem>>, vector<1x64xf32>
      %18 = vector.broadcast %17 : vector<1x64xf32> to vector<512x64xf32>
      %19 = arith.addf %16, %18 : vector<512x64xf32>
      %cst_16 = arith.constant 0.000000e+00 : f32
      %20 = vector.broadcast %cst_16 : f32 to vector<512x64xf32>
      %21 = arith.maximumf %19, %20 : vector<512x64xf32>
      %22 = arith.truncf %21 : vector<512x64xf32> to vector<512x64xbf16>
      %c0_17 = arith.constant 0 : index
      %c0_18 = arith.constant 0 : index
      %c0_19 = arith.constant 0 : index
      %23 = vector.load %arg5[%c0_17, %c0_18, %c0_19] : memref<1x512x64xbf16, #tpu.memory_space<vmem>>, vector<1x512x64xbf16>
      %24 = vector.shape_cast %23 : vector<1x512x64xbf16> to vector<512x64xbf16>
      %25 = vector.shape_cast %22 : vector<512x64xbf16> to vector<1x512x64xbf16>
      tpu.vector_store %arg5[%c0_17, %c0_18, %c0_19], %25 {strides = array<i32>} : memref<1x512x64xbf16, #tpu.memory_space<vmem>>, vector<1x512x64xbf16>,
    } else {
    }
    return
  }
  func.func @transform_0(%arg0: i32, %arg1: i32) -> (i32, i32, i32, i32, i32) {
    %c0_i32 = arith.constant 0 : i32
    %c0_i32_0 = arith.constant 0 : i32
    %c0_i32_1 = arith.constant 0 : i32
    %c0_i32_2 = arith.constant 0 : i32
    %c0_i32_3 = arith.constant 0 : i32
    return %arg0, %c0_i32, %c0_i32_0, %c0_i32_1, %c0_i32_2 : i32, i32, i32, i32, i32
  }
  func.func @transform_1(%arg0: i32, %arg1: i32) -> (i32, i32, i32) {
    %c0_i32 = arith.constant 0 : i32
    %c0_i32_0 = arith.constant 0 : i32
    %c0_i32_1 = arith.constant 0 : i32
    return %arg1, %c0_i32, %c0_i32_0 : i32, i32, i32
  }
  func.func @transform_2(%arg0: i32, %arg1: i32) -> (i32, i32) {
    %c0_i32 = arith.constant 0 : i32
    %c0_i32_0 = arith.constant 0 : i32
    %c0_i32_1 = arith.constant 0 : i32
    return %c0_i32, %c0_i32_0 : i32, i32
  }
  func.func @transform_3(%arg0: i32, %arg1: i32) -> (i32, i32, i32) {
    %c0_i32 = arith.constant 0 : i32
    %c0_i32_0 = arith.constant 0 : i32
    %c0_i32_1 = arith.constant 0 : i32
    return %arg0, %c0_i32, %c0_i32_0 : i32, i32, i32
  }
}

module attributes {stable_mosaic.version = 11 : i64} {
  func.func @_fc_fused_kernel(%arg0: i32, %arg1: memref<2x4096xbf16, #tpu.memory_space<vmem>>, %arg2: memref<4096x128xbf16, #tpu.memory_space<vmem>>, %arg3: memref<1x128xf32, #tpu.memory_space<vmem>>, %arg4: memref<128x24xbf16, #tpu.memory_space<vmem>>, %arg5: memref<1x24xf32, #tpu.memory_space<vmem>>, %arg6: memref<2x24xf32, #tpu.memory_space<vmem>>) attributes {dimension_semantics = [#tpu.dimension_semantics<arbitrary>], iteration_bounds = array<i64: 1>, scalar_prefetch = 0 : i64, scratch_operands = 0 : i64, tpu.core_type = #tpu.core_type<tc>, window_params = [{pipeline_mode = #tpu.pipeline_mode<synchronous>, transform_indices = @transform_0, window_bounds = array<i64: 2, 4096>}, {pipeline_mode = #tpu.pipeline_mode<synchronous>, transform_indices = @transform_1, window_bounds = array<i64: 4096, 128>}, {pipeline_mode = #tpu.pipeline_mode<synchronous>, transform_indices = @transform_2, window_bounds = array<i64: 1, 128>}, {pipeline_mode = #tpu.pipeline_mode<synchronous>, transform_indices = @transform_3, window_bounds = array<i64: 128, 24>}, {pipeline_mode = #tpu.pipeline_mode<synchronous>, transform_indices = @transform_4, window_bounds = array<i64: 1, 24>}, {pipeline_mode = #tpu.pipeline_mode<synchronous>, transform_indices = @transform_5, window_bounds = array<i64: 2, 24>}]} {
    %c0 = arith.constant 0 : index
    %c0_0 = arith.constant 0 : index
    %0 = vector.load %arg1[%c0, %c0_0] : memref<2x4096xbf16, #tpu.memory_space<vmem>>, vector<2x4096xbf16>
    %c0_1 = arith.constant 0 : index
    %c0_2 = arith.constant 0 : index
    %1 = vector.load %arg2[%c0_1, %c0_2] : memref<4096x128xbf16, #tpu.memory_space<vmem>>, vector<4096x128xbf16>
    %cst = arith.constant dense<0.000000e+00> : vector<2x128xf32>
    %2 = tpu.matmul %0, %1, %cst {dimension_numbers = #tpu.dot_dimension_numbers<[1], [0], [0], [1], [0, 0, 1, 1], [], []>} : vector<2x4096xbf16>, vector<4096x128xbf16>, vector<2x128xf32> -> vector<2x128xf32>
    %c0_3 = arith.constant 0 : index
    %c0_4 = arith.constant 0 : index
    %3 = vector.load %arg3[%c0_3, %c0_4] : memref<1x128xf32, #tpu.memory_space<vmem>>, vector<1x128xf32>
    %4 = vector.broadcast %3 : vector<1x128xf32> to vector<2x128xf32>
    %5 = arith.addf %2, %4 : vector<2x128xf32>
    %cst_5 = arith.constant 0.000000e+00 : f32
    %6 = vector.broadcast %cst_5 : f32 to vector<2x128xf32>
    %7 = arith.maximumf %5, %6 : vector<2x128xf32>
    %8 = arith.truncf %7 : vector<2x128xf32> to vector<2x128xbf16>
    %c0_6 = arith.constant 0 : index
    %c0_7 = arith.constant 0 : index
    %9 = vector.load %arg4[%c0_6, %c0_7] : memref<128x24xbf16, #tpu.memory_space<vmem>>, vector<128x24xbf16>
    %cst_8 = arith.constant dense<0.000000e+00> : vector<2x24xf32>
    %10 = tpu.matmul %8, %9, %cst_8 {dimension_numbers = #tpu.dot_dimension_numbers<[1], [0], [0], [1], [0, 0, 1, 1], [], []>} : vector<2x128xbf16>, vector<128x24xbf16>, vector<2x24xf32> -> vector<2x24xf32>
    %c0_9 = arith.constant 0 : index
    %c0_10 = arith.constant 0 : index
    %11 = vector.load %arg5[%c0_9, %c0_10] : memref<1x24xf32, #tpu.memory_space<vmem>>, vector<1x24xf32>
    %12 = vector.broadcast %11 : vector<1x24xf32> to vector<2x24xf32>
    %13 = arith.addf %10, %12 : vector<2x24xf32>
    %c0_11 = arith.constant 0 : index
    %c0_12 = arith.constant 0 : index
    %14 = vector.load %arg6[%c0_11, %c0_12] : memref<2x24xf32, #tpu.memory_space<vmem>>, vector<2x24xf32>
    tpu.vector_store %arg6[%c0_11, %c0_12], %13 {strides = array<i32>} : memref<2x24xf32, #tpu.memory_space<vmem>>, vector<2x24xf32>,
    return
  }
  func.func @transform_0(%arg0: i32) -> (i32, i32) {
    %c0_i32 = arith.constant 0 : i32
    %c0_i32_0 = arith.constant 0 : i32
    %c0_i32_1 = arith.constant 0 : i32
    return %c0_i32, %c0_i32_0 : i32, i32
  }
  func.func @transform_1(%arg0: i32) -> (i32, i32) {
    %c0_i32 = arith.constant 0 : i32
    %c0_i32_0 = arith.constant 0 : i32
    %c0_i32_1 = arith.constant 0 : i32
    return %c0_i32, %c0_i32_0 : i32, i32
  }
  func.func @transform_2(%arg0: i32) -> (i32, i32) {
    %c0_i32 = arith.constant 0 : i32
    %c0_i32_0 = arith.constant 0 : i32
    %c0_i32_1 = arith.constant 0 : i32
    return %c0_i32, %c0_i32_0 : i32, i32
  }
  func.func @transform_3(%arg0: i32) -> (i32, i32) {
    %c0_i32 = arith.constant 0 : i32
    %c0_i32_0 = arith.constant 0 : i32
    %c0_i32_1 = arith.constant 0 : i32
    return %c0_i32, %c0_i32_0 : i32, i32
  }
  func.func @transform_4(%arg0: i32) -> (i32, i32) {
    %c0_i32 = arith.constant 0 : i32
    %c0_i32_0 = arith.constant 0 : i32
    %c0_i32_1 = arith.constant 0 : i32
    return %c0_i32, %c0_i32_0 : i32, i32
  }
  func.func @transform_5(%arg0: i32) -> (i32, i32) {
    %c0_i32 = arith.constant 0 : i32
    %c0_i32_0 = arith.constant 0 : i32
    %c0_i32_1 = arith.constant 0 : i32
    return %c0_i32, %c0_i32_0 : i32, i32
  }
}

</mosaic_0001>

<bundles_post_ra>
// kernel: baseline_net_forward.4
= control target key start
LH: loop header
LB: loop body
LE: loop exit
PB: predicated region body
PF: predicated region fallthrough
CT: control target
= control target key end

     0   :  { %s2149_s12 = smov 0   ;;  %s2151_s13 = smov 0   ;;  %s2648_s0 = inlined_call_operand.vmem [shape: bf16[2,11,8,8,128], index: 0, kind: input, shape index: {}]   ;;  %s2649_s1 = inlined_call_operand.vmem [shape: bf16[4,128,32], index: 1, kind: input, shape index: {}]   ;;  %s2650_s2 = inlined_call_operand.vmem [shape: f32[1,32], index: 2, kind: input, shape index: {}]   ;;  %s2651_s3 = inlined_call_operand.vmem [shape: bf16[2,512,32], index: 3, kind: output, shape index: {}]  }
   0x1   :  { %s2153_s14 = smov 0   ;;  %s2155_s15 = smov 0  }
   0x2   :  { %s2157_s16 = smov 0  }
   0x3 LB: > { %s22_s17 = sadd.s32 1, %s2118_s14  ;;  %s25_s18 = sadd.s32 1, %s2122_s15  ;;  %s2126_s16 = sphi %s2157_s16, %s13_s16   ;;  %s2122_s15 = sphi %s2155_s15, %s2655_s15   ;;  %s2118_s14 = sphi %s2153_s14, %s2654_s14   ;;  %s2114_s13 = sphi %s2151_s13, %s2653_s13   ;;  %s2110_s12 = sphi %s2149_s12, %s2652_s12  }
   0x4   : > { %p23_p0 = scmp.ge.s32.totalorder %s22_s17, 4  ;;  %p1686_p1 = scmp.ge.s32.totalorder %s2126_s16, 1 }
   0x5   : > { %p159_p2 = scmp.lt.s32.totalorder %s2126_s16, 9 }
   0x6   : > { %s2657_s17 = smov (%p23_p0, %s22_s17), 0  ;;  %s2659_s18 = smov (!%p23_p0, %s25_s18), %s2122_s15 }
   0x7   : > { %p160_p3 = pnand %p1686_p1, %p159_p2  ;;  %p27_p4 = scmp.ge.s32.totalorder %s2659_s18, 2 }
   0x8   : > { %p188_p5 = scmp.lt.s32.totalorder (!%p160_p3), %s2114_s13, 1  ;;  %p193_p6 = scmp.lt.s32.totalorder (!%p160_p3), %s2110_s12, 3 }
   0x9   : > { %s2661_s18 = smov (%p27_p4, %s2659_s18), 0  ;;  %163 = sbr.rel (%p160_p3) target bundleno = 397 (0x18d), region = 32 }
   0xa   : > { %p1692_p7 = scmp.ne.s32.totalorder (!%p160_p3), %s2110_s12, 0 }
   0xe   : > { %s2663_s13 = smov (!%p188_p5, %s2114_s13), 1  ;;  %207 = sbr.rel (%p1692_p7) target bundleno = 52 (0x34), region = 36 }
   0xf   : > { %s194_s19 = scalar_select %p193_p6, %s2110_s12, 3 }
  0x10   : > { %s2006_s20 = smul.u32 352, %s2663_s13  ;;  %s1804_s21 = sshll.u32 %s2663_s13, 8 }
  0x11   : > { %s1803_s22 = sshll.u32 %s194_s19, 6  ;;  %s2186_s25 = scalar_lea.vmem %s2651_s3, %s1804_s21 }
  0x12   : > { %s2191_s28 = scalar_lea.vmem %s2648_s0, %s2006_s20  ;;  %s2196_s4 = scalar_lea.vmem %s2649_s1, %s1803_s22 }
  0x13   : > { %vm208_vm0 = vcmask 261120   ;;  %v2128_v0 = vmov 0.0  }
  0x14   : > { %209 = vst.msk [vmem:[#allocation2] sm:$0xff] %vm208_vm0, %v2128_v0  ;;  %210 = vst.msk [vmem:[#allocation2 + $0x8] sm:$0xff] %vm208_vm0, %v2128_v0 }
  0x15   : > { %211 = vst.msk [vmem:[#allocation2 + $0x10] sm:$0xff] %vm208_vm0, %v2128_v0  ;;  %212 = vst.msk [vmem:[#allocation2 + $0x18] sm:$0xff] %vm208_vm0, %v2128_v0 }
  0x16   : > { %213 = vst.msk [vmem:[#allocation2 + $0x20] sm:$0xff] %vm208_vm0, %v2128_v0  ;;  %214 = vst.msk [vmem:[#allocation2 + $0x28] sm:$0xff] %vm208_vm0, %v2128_v0 }
  0x17   : > { %215 = vst.msk [vmem:[#allocation2 + $0x30] sm:$0xff] %vm208_vm0, %v2128_v0  ;;  %216 = vst.msk [vmem:[#allocation2 + $0x38] sm:$0xff] %vm208_vm0, %v2128_v0 }
  0x18   : > { %217 = vst.msk [vmem:[#allocation2 + $0x40] sm:$0xff] %vm208_vm0, %v2128_v0  ;;  %218 = vst.msk [vmem:[#allocation2 + $0x48] sm:$0xff] %vm208_vm0, %v2128_v0 }
  0x19   : > { %219 = vst.msk [vmem:[#allocation2 + $0x50] sm:$0xff] %vm208_vm0, %v2128_v0  ;;  %220 = vst.msk [vmem:[#allocation2 + $0x58] sm:$0xff] %vm208_vm0, %v2128_v0 }
  0x1a   : > { %221 = vst.msk [vmem:[#allocation2 + $0x60] sm:$0xff] %vm208_vm0, %v2128_v0  ;;  %222 = vst.msk [vmem:[#allocation2 + $0x68] sm:$0xff] %vm208_vm0, %v2128_v0 }
  0x1b   : > { %223 = vst.msk [vmem:[#allocation2 + $0x70] sm:$0xff] %vm208_vm0, %v2128_v0  ;;  %224 = vst.msk [vmem:[#allocation2 + $0x78] sm:$0xff] %vm208_vm0, %v2128_v0 }
  0x1c   : > { %225 = vst.msk [vmem:[#allocation2 + $0x80] sm:$0xff] %vm208_vm0, %v2128_v0  ;;  %226 = vst.msk [vmem:[#allocation2 + $0x88] sm:$0xff] %vm208_vm0, %v2128_v0 }
  0x1d   : > { %227 = vst.msk [vmem:[#allocation2 + $0x90] sm:$0xff] %vm208_vm0, %v2128_v0  ;;  %228 = vst.msk [vmem:[#allocation2 + $0x98] sm:$0xff] %vm208_vm0, %v2128_v0 }
  0x1e   : > { %229 = vst.msk [vmem:[#allocation2 + $0xa0] sm:$0xff] %vm208_vm0, %v2128_v0  ;;  %230 = vst.msk [vmem:[#allocation2 + $0xa8] sm:$0xff] %vm208_vm0, %v2128_v0 }
  0x1f   : > { %231 = vst.msk [vmem:[#allocation2 + $0xb0] sm:$0xff] %vm208_vm0, %v2128_v0  ;;  %232 = vst.msk [vmem:[#allocation2 + $0xb8] sm:$0xff] %vm208_vm0, %v2128_v0 }
  0x20   : > { %233 = vst.msk [vmem:[#allocation2 + $0xc0] sm:$0xff] %vm208_vm0, %v2128_v0  ;;  %234 = vst.msk [vmem:[#allocation2 + $0xc8] sm:$0xff] %vm208_vm0, %v2128_v0 }
  0x21   : > { %235 = vst.msk [vmem:[#allocation2 + $0xd0] sm:$0xff] %vm208_vm0, %v2128_v0  ;;  %236 = vst.msk [vmem:[#allocation2 + $0xd8] sm:$0xff] %vm208_vm0, %v2128_v0 }
  0x22   : > { %237 = vst.msk [vmem:[#allocation2 + $0xe0] sm:$0xff] %vm208_vm0, %v2128_v0  ;;  %238 = vst.msk [vmem:[#allocation2 + $0xe8] sm:$0xff] %vm208_vm0, %v2128_v0 }
  0x23   : > { %239 = vst.msk [vmem:[#allocation2 + $0xf0] sm:$0xff] %vm208_vm0, %v2128_v0  ;;  %240 = vst.msk [vmem:[#allocation2 + $0xf8] sm:$0xff] %vm208_vm0, %v2128_v0 }
  0x24   : > { %241 = vst.msk [vmem:[#allocation2 + $0x100] sm:$0xff] %vm208_vm0, %v2128_v0  ;;  %242 = vst.msk [vmem:[#allocation2 + $0x108] sm:$0xff] %vm208_vm0, %v2128_v0 }
  0x25   : > { %243 = vst.msk [vmem:[#allocation2 + $0x110] sm:$0xff] %vm208_vm0, %v2128_v0  ;;  %244 = vst.msk [vmem:[#allocation2 + $0x118] sm:$0xff] %vm208_vm0, %v2128_v0 }
  0x26   : > { %245 = vst.msk [vmem:[#allocation2 + $0x120] sm:$0xff] %vm208_vm0, %v2128_v0  ;;  %246 = vst.msk [vmem:[#allocation2 + $0x128] sm:$0xff] %vm208_vm0, %v2128_v0 }
  0x27   : > { %247 = vst.msk [vmem:[#allocation2 + $0x130] sm:$0xff] %vm208_vm0, %v2128_v0  ;;  %248 = vst.msk [vmem:[#allocation2 + $0x138] sm:$0xff] %vm208_vm0, %v2128_v0 }
  0x28   : > { %249 = vst.msk [vmem:[#allocation2 + $0x140] sm:$0xff] %vm208_vm0, %v2128_v0  ;;  %250 = vst.msk [vmem:[#allocation2 + $0x148] sm:$0xff] %vm208_vm0, %v2128_v0 }
  0x29   : > { %251 = vst.msk [vmem:[#allocation2 + $0x150] sm:$0xff] %vm208_vm0, %v2128_v0  ;;  %252 = vst.msk [vmem:[#allocation2 + $0x158] sm:$0xff] %vm208_vm0, %v2128_v0 }
  0x2a   : > { %253 = vst.msk [vmem:[#allocation2 + $0x160] sm:$0xff] %vm208_vm0, %v2128_v0  ;;  %254 = vst.msk [vmem:[#allocation2 + $0x168] sm:$0xff] %vm208_vm0, %v2128_v0 }
  0x2b   : > { %255 = vst.msk [vmem:[#allocation2 + $0x170] sm:$0xff] %vm208_vm0, %v2128_v0  ;;  %256 = vst.msk [vmem:[#allocation2 + $0x178] sm:$0xff] %vm208_vm0, %v2128_v0 }
  0x2c   : > { %257 = vst.msk [vmem:[#allocation2 + $0x180] sm:$0xff] %vm208_vm0, %v2128_v0  ;;  %258 = vst.msk [vmem:[#allocation2 + $0x188] sm:$0xff] %vm208_vm0, %v2128_v0 }
  0x2d   : > { %259 = vst.msk [vmem:[#allocation2 + $0x190] sm:$0xff] %vm208_vm0, %v2128_v0  ;;  %260 = vst.msk [vmem:[#allocation2 + $0x198] sm:$0xff] %vm208_vm0, %v2128_v0 }
  0x2e   : > { %261 = vst.msk [vmem:[#allocation2 + $0x1a0] sm:$0xff] %vm208_vm0, %v2128_v0  ;;  %262 = vst.msk [vmem:[#allocation2 + $0x1a8] sm:$0xff] %vm208_vm0, %v2128_v0 }
  0x2f   : > { %263 = vst.msk [vmem:[#allocation2 + $0x1b0] sm:$0xff] %vm208_vm0, %v2128_v0  ;;  %264 = vst.msk [vmem:[#allocation2 + $0x1b8] sm:$0xff] %vm208_vm0, %v2128_v0 }
  0x30   : > { %265 = vst.msk [vmem:[#allocation2 + $0x1c0] sm:$0xff] %vm208_vm0, %v2128_v0  ;;  %266 = vst.msk [vmem:[#allocation2 + $0x1c8] sm:$0xff] %vm208_vm0, %v2128_v0 }
  0x31   : > { %267 = vst.msk [vmem:[#allocation2 + $0x1d0] sm:$0xff] %vm208_vm0, %v2128_v0  ;;  %268 = vst.msk [vmem:[#allocation2 + $0x1d8] sm:$0xff] %vm208_vm0, %v2128_v0 }
  0x32   : > { %269 = vst.msk [vmem:[#allocation2 + $0x1e0] sm:$0xff] %vm208_vm0, %v2128_v0  ;;  %270 = vst.msk [vmem:[#allocation2 + $0x1e8] sm:$0xff] %vm208_vm0, %v2128_v0 }
  0x33   : > { %271 = vst.msk [vmem:[#allocation2 + $0x1f0] sm:$0xff] %vm208_vm0, %v2128_v0  ;;  %272 = vst.msk [vmem:[#allocation2 + $0x1f8] sm:$0xff] %vm208_vm0, %v2128_v0 }
  0x34 PF: > { %v2048_v1 = vld [vmem:[%s2196_s4 + $0x38] sm:$0xff]   ;;  %v2049_v2 = vld [vmem:[%s2196_s4 + $0x30] sm:$0xff]   ;;  %s1805_s5 = sshll.u32 %s2110_s12, 5  ;;  %v2050_v3 = vld [vmem:[%s2196_s4 + $0x28] sm:$0xff]   ;;  %vm1013_vm1 = vcmask 261120   ;;  %p1735_p8 = scmp.ne.s32.totalorder %s2110_s12, 3 }
  0x35   : > { %1910 = vmatprep.subr.bf16.mxu0 %v2048_v1  ;;  %1990 = vmatprep.subr.bf16.mxu1 %v2048_v1  ;;  %s2332_s6 = scalar_lea.vmem %s2191_s28, %s1805_s5  ;;  %v2051_v4 = vld [vmem:[%s2196_s4 + $0x20] sm:$0xff]   ;;  %v2052_v7 = vld [vmem:[%s2196_s4 + $0x18] sm:$0xff]   ;;  %v2053_v8 = vld [vmem:[%s2196_s4 + $0x10] sm:$0xff]  }
  0x36   : > { %1911 = vmatpush3.bf16.msra.mxu0 %v2048_v1  ;;  %1998 = vmatpush3.bf16.msra.mxu1 %v2048_v1  ;;  %v2056_v5 = vld [vmem:[%s2332_s6] sm:$0xff]   ;;  %v2054_v9 = vld [vmem:[%s2196_s4 + $0x8] sm:$0xff]   ;;  %v2060_v13 = vld [vmem:[%s2332_s6 + $0x10] sm:$0xff]  }
  0x37   : > { %1912 = vmatprep.subr.bf16.mxu0 %v2049_v2  ;;  %1991 = vmatprep.subr.bf16.mxu1 %v2049_v2  ;;  %v2057_v6 = vld [vmem:[%s2332_s6 + $0x80] sm:$0xff]   ;;  %v2058_v11 = vld [vmem:[%s2332_s6 + $0x8] sm:$0xff]   ;;  %v2061_v14 = vld [vmem:[%s2332_s6 + $0x90] sm:$0xff]  }
  0x38   : > { %1926 = vmatprep.mubr.bf16.mxu0 %v2056_v5  ;;  %1958 = vmatprep.mubr.bf16.mxu1 %v2057_v6  ;;  %v2055_v10 = vld [vmem:[%s2196_s4] sm:$0xff]   ;;  %v2059_v12 = vld [vmem:[%s2332_s6 + $0x88] sm:$0xff]   ;;  %v2062_v15 = vld [vmem:[%s2332_s6 + $0x18] sm:$0xff]  }
  0x39   : > { %v2063_v16 = vld [vmem:[%s2332_s6 + $0x98] sm:$0xff]   ;;  %v2064_v17 = vld [vmem:[%s2332_s6 + $0x20] sm:$0xff]   ;;  %v2066_v19 = vld [vmem:[%s2332_s6 + $0x28] sm:$0xff]  }
  0x3a   : > { %1913 = vmatpush3.bf16.msra.mxu0 %v2049_v2  ;;  %1999 = vmatpush3.bf16.msra.mxu1 %v2049_v2  ;;  %v2065_v18 = vld [vmem:[%s2332_s6 + $0xa0] sm:$0xff]   ;;  %v2067_v20 = vld [vmem:[%s2332_s6 + $0xa8] sm:$0xff]   ;;  %v2068_v21 = vld [vmem:[%s2332_s6 + $0x30] sm:$0xff]  }
  0x3b   : > { %1914 = vmatprep.subr.bf16.mxu0 %v2050_v3  ;;  %1992 = vmatprep.subr.bf16.mxu1 %v2050_v3  ;;  %v2069_v22 = vld [vmem:[%s2332_s6 + $0xb0] sm:$0xff]   ;;  %v2070_v23 = vld [vmem:[%s2332_s6 + $0x38] sm:$0xff]   ;;  %v2072_v25 = vld [vmem:[%s2332_s6 + $0x40] sm:$0xff]  }
  0x3c   : > { %v2071_v24 = vld [vmem:[%s2332_s6 + $0xb8] sm:$0xff]   ;;  %v2073_v26 = vld [vmem:[%s2332_s6 + $0xc0] sm:$0xff]   ;;  %v2074_v27 = vld [vmem:[%s2332_s6 + $0x48] sm:$0xff]  }
  0x3d   : > { %v2075_v28 = vld [vmem:[%s2332_s6 + $0xc8] sm:$0xff]   ;;  %v2076_v29 = vld [vmem:[%s2332_s6 + $0x50] sm:$0xff]   ;;  %v2078_v31 = vld [vmem:[%s2332_s6 + $0x58] sm:$0xff]  }
  0x3e   : > { %1915 = vmatpush3.bf16.msra.mxu0 %v2050_v3  ;;  %2000 = vmatpush3.bf16.msra.mxu1 %v2050_v3  ;;  %v2077_v30 = vld [vmem:[%s2332_s6 + $0xd0] sm:$0xff]   ;;  %v2079_v32 = vld [vmem:[%s2332_s6 + $0xd8] sm:$0xff]   ;;  %v2080_v33 = vld [vmem:[%s2332_s6 + $0x60] sm:$0xff]  }
  0x3f   : > { %1916 = vmatprep.subr.bf16.mxu0 %v2051_v4  ;;  %1993 = vmatprep.subr.bf16.mxu1 %v2051_v4  ;;  %v2081_v34 = vld [vmem:[%s2332_s6 + $0xe0] sm:$0xff]   ;;  %v2082_v35 = vld [vmem:[%s2332_s6 + $0x68] sm:$0xff]   ;;  %v2084_v37 = vld [vmem:[%s2332_s6 + $0x70] sm:$0xff]  }
  0x40   : > { %v2083_v36 = vld [vmem:[%s2332_s6 + $0xe8] sm:$0xff]   ;;  %v2085_v38 = vld [vmem:[%s2332_s6 + $0xf0] sm:$0xff]   ;;  %v2086_v39 = vld [vmem:[%s2332_s6 + $0x78] sm:$0xff]  }
  0x41   : > { %v2087_v40 = vld [vmem:[%s2332_s6 + $0xf8] sm:$0xff]   ;;  %v342_v41 = vld [vmem:[#allocation2 + $0x10] sm:$0xff]  ;;  %v340_v45 = vld [vmem:[#allocation2] sm:$0xff] }
  0x42   : > { %1917 = vmatpush3.bf16.msra.mxu0 %v2051_v4  ;;  %2001 = vmatpush3.bf16.msra.mxu1 %v2051_v4  ;;  %v374_v42 = vld [vmem:[#allocation2 + $0x110] sm:$0xff]  ;;  %v372_v46 = vld [vmem:[#allocation2 + $0x100] sm:$0xff]  ;;  %v343_v51 = vld [vmem:[#allocation2 + $0x18] sm:$0xff] }
  0x43   : > { %1918 = vmatprep.subr.bf16.mxu0 %v2052_v7  ;;  %1994 = vmatprep.subr.bf16.mxu1 %v2052_v7  ;;  %v375_v52 = vld [vmem:[#allocation2 + $0x118] sm:$0xff]  ;;  %v341_v57 = vld [vmem:[#allocation2 + $0x8] sm:$0xff]  ;;  %v346_v63 = vld [vmem:[#allocation2 + $0x30] sm:$0xff] }
  0x44   : > { %v373_v58 = vld [vmem:[#allocation2 + $0x108] sm:$0xff]  ;;  %v378_v0 = vld [vmem:[#allocation2 + $0x130] sm:$0xff]  ;;  %v344_v5 = vld [vmem:[#allocation2 + $0x20] sm:$0xff] }
  0x45   : > { %v376_v6 = vld [vmem:[#allocation2 + $0x120] sm:$0xff] }
  0x46   : > { %1919 = vmatpush3.bf16.msra.mxu0 %v2052_v7  ;;  %2002 = vmatpush3.bf16.msra.mxu1 %v2052_v7 }
  0x47   : > { %1920 = vmatprep.subr.bf16.mxu0 %v2053_v8  ;;  %1995 = vmatprep.subr.bf16.mxu1 %v2053_v8 }
  0x4a   : > { %1921 = vmatpush3.bf16.msra.mxu0 %v2053_v8  ;;  %2003 = vmatpush3.bf16.msra.mxu1 %v2053_v8 }
  0x4b   : > { %1922 = vmatprep.subr.bf16.mxu0 %v2054_v9  ;;  %1996 = vmatprep.subr.bf16.mxu1 %v2054_v9 }
  0x4e   : > { %1923 = vmatpush3.bf16.msra.mxu0 %v2054_v9  ;;  %2004 = vmatpush3.bf16.msra.mxu1 %v2054_v9 }
  0x4f   : > { %1924 = vmatprep.subr.bf16.mxu0 %v2055_v10  ;;  %1997 = vmatprep.subr.bf16.mxu1 %v2055_v10 }
  0x52   : > { %1925 = vmatpush3.bf16.msra.mxu0 %v2055_v10  ;;  %2005 = vmatpush3.bf16.msra.mxu1 %v2055_v10 }
  0x55   : > { %1927 = vmatmul.mubr.bf16.vlgmr.msra.gmra.mxu0 %v2058_v11  ;;  %1959 = vmatmul.mubr.bf16.vlgmr.msra.gmra.mxu1 %v2059_v12  ;;  %v347_v11 = vld [vmem:[#allocation2 + $0x38] sm:$0xff] }
  0x56   : > { %1930 = vmatprep.mubr.bf16.mxu0 %v2060_v13  ;;  %1962 = vmatprep.mubr.bf16.mxu1 %v2061_v14  ;;  %v379_v12 = vld [vmem:[#allocation2 + $0x138] sm:$0xff] }
  0x5d   : > { %1931 = vmatmul.mubr.bf16.gmra.mxu0 %v2062_v15  ;;  %1963 = vmatmul.mubr.bf16.gmra.mxu1 %v2063_v16 }
  0x5e   : > { %1934 = vmatprep.mubr.bf16.mxu0 %v2064_v17  ;;  %1966 = vmatprep.mubr.bf16.mxu1 %v2065_v18  ;;  %v345_v17 = vld [vmem:[#allocation2 + $0x28] sm:$0xff] }
  0x5f   : > { %v377_v18 = vld [vmem:[#allocation2 + $0x128] sm:$0xff] }
  0x65   : > { %1935 = vmatmul.mubr.bf16.gmra.mxu0 %v2066_v19  ;;  %1967 = vmatmul.mubr.bf16.gmra.mxu1 %v2067_v20 }
  0x66   : > { %1938 = vmatprep.mubr.bf16.mxu0 %v2068_v21  ;;  %1970 = vmatprep.mubr.bf16.mxu1 %v2069_v22 }
  0x6d   : > { %1939 = vmatmul.mubr.bf16.gmra.mxu0 %v2070_v23  ;;  %1971 = vmatmul.mubr.bf16.gmra.mxu1 %v2071_v24  ;;  %v350_v23 = vld [vmem:[#allocation2 + $0x50] sm:$0xff] }
  0x6e   : > { %1942 = vmatprep.mubr.bf16.mxu0 %v2072_v25  ;;  %1974 = vmatprep.mubr.bf16.mxu1 %v2073_v26  ;;  %v382_v24 = vld [vmem:[#allocation2 + $0x150] sm:$0xff] }
  0x75   : > { %1943 = vmatmul.mubr.bf16.gmra.mxu0 %v2074_v27  ;;  %1975 = vmatmul.mubr.bf16.gmra.mxu1 %v2075_v28 }
  0x76   : > { %1946 = vmatprep.mubr.bf16.mxu0 %v2076_v29  ;;  %1978 = vmatprep.mubr.bf16.mxu1 %v2077_v30  ;;  %v348_v29 = vld [vmem:[#allocation2 + $0x40] sm:$0xff] }
  0x77   : > { %v380_v30 = vld [vmem:[#allocation2 + $0x140] sm:$0xff] }
  0x7d   : > { %1947 = vmatmul.mubr.bf16.gmra.mxu0 %v2078_v31  ;;  %1979 = vmatmul.mubr.bf16.gmra.mxu1 %v2079_v32 }
  0x7e   : > { %1950 = vmatprep.mubr.bf16.mxu0 %v2080_v33  ;;  %1982 = vmatprep.mubr.bf16.mxu1 %v2081_v34 }
  0x85   : > { %1951 = vmatmul.mubr.bf16.gmra.mxu0 %v2082_v35  ;;  %1983 = vmatmul.mubr.bf16.gmra.mxu1 %v2083_v36  ;;  %v351_v35 = vld [vmem:[#allocation2 + $0x58] sm:$0xff] }
  0x86   : > { %1954 = vmatprep.mubr.bf16.mxu0 %v2084_v37  ;;  %1986 = vmatprep.mubr.bf16.mxu1 %v2085_v38  ;;  %v383_v36 = vld [vmem:[#allocation2 + $0x158] sm:$0xff] }
  0x8d   : > { %1955 = vmatmul.mubr.bf16.gmra.mxu0 %v2086_v39  ;;  %1987 = vmatmul.mubr.bf16.gmra.mxu1 %v2087_v40 }
 0x115   : > { %v1928_v43 = vpop.f32.mrf.mxu0  ;;  %v1960_v44 = vpop.f32.mrf.mxu1 }
 0x116   : > { %v951_v47 = vadd.f32 %v1928_v43, %v342_v41  ;;  %v983_v48 = vadd.f32 %v1960_v44, %v374_v42  ;;  %v349_v41 = vld [vmem:[#allocation2 + $0x48] sm:$0xff] }
 0x117   : > { %v694_v49 = vpop.f32.mrf.mxu0  ;;  %v822_v50 = vpop.f32.mrf.mxu1  ;;  %v381_v42 = vld [vmem:[#allocation2 + $0x148] sm:$0xff] }
 0x118   : > { %1016 = vst.msk [vmem:[#allocation2 + $0x10] sm:$0xff] %vm1013_vm1, %v951_v47  ;;  %1048 = vst.msk [vmem:[#allocation2 + $0x110] sm:$0xff] %vm1013_vm1, %v983_v48  ;;  %v949_v53 = vadd.f32 %v694_v49, %v340_v45  ;;  %v981_v54 = vadd.f32 %v822_v50, %v372_v46  ;;  %v354_v47 = vld [vmem:[#allocation2 + $0x70] sm:$0xff] }
 0x119   : > { %v1929_v55 = vpop.f32.mrf.mxu0  ;;  %v1961_v56 = vpop.f32.mrf.mxu1  ;;  %v386_v48 = vld [vmem:[#allocation2 + $0x170] sm:$0xff] }
 0x11a   : > { %1014 = vst.msk [vmem:[#allocation2] sm:$0xff] %vm1013_vm1, %v949_v53  ;;  %1046 = vst.msk [vmem:[#allocation2 + $0x100] sm:$0xff] %vm1013_vm1, %v981_v54  ;;  %v952_v59 = vadd.f32 %v1929_v55, %v343_v51  ;;  %v984_v60 = vadd.f32 %v1961_v56, %v375_v52  ;;  %v352_v53 = vld [vmem:[#allocation2 + $0x60] sm:$0xff] }
 0x11b   : > { %v697_v61 = vpop.f32.mrf.mxu0  ;;  %v825_v62 = vpop.f32.mrf.mxu1  ;;  %v384_v54 = vld [vmem:[#allocation2 + $0x160] sm:$0xff] }
 0x11c   : > { %1017 = vst.msk [vmem:[#allocation2 + $0x18] sm:$0xff] %vm1013_vm1, %v952_v59  ;;  %1049 = vst.msk [vmem:[#allocation2 + $0x118] sm:$0xff] %vm1013_vm1, %v984_v60  ;;  %v950_v1 = vadd.f32 %v697_v61, %v341_v57  ;;  %v982_v2 = vadd.f32 %v825_v62, %v373_v58  ;;  %v355_v59 = vld [vmem:[#allocation2 + $0x78] sm:$0xff] }
 0x11d   : > { %v1932_v3 = vpop.f32.mrf.mxu0  ;;  %v1964_v4 = vpop.f32.mrf.mxu1  ;;  %v387_v60 = vld [vmem:[#allocation2 + $0x178] sm:$0xff] }
 0x11e   : > { %1015 = vst.msk [vmem:[#allocation2 + $0x8] sm:$0xff] %vm1013_vm1, %v950_v1  ;;  %1047 = vst.msk [vmem:[#allocation2 + $0x108] sm:$0xff] %vm1013_vm1, %v982_v2  ;;  %v955_v7 = vadd.f32 %v1932_v3, %v346_v63  ;;  %v987_v8 = vadd.f32 %v1964_v4, %v378_v0  ;;  %v353_v1 = vld [vmem:[#allocation2 + $0x68] sm:$0xff] }
 0x11f   : > { %v710_v9 = vpop.f32.mrf.mxu0  ;;  %v838_v10 = vpop.f32.mrf.mxu1  ;;  %v385_v2 = vld [vmem:[#allocation2 + $0x168] sm:$0xff] }
 0x120   : > { %1020 = vst.msk [vmem:[#allocation2 + $0x30] sm:$0xff] %vm1013_vm1, %v955_v7  ;;  %1052 = vst.msk [vmem:[#allocation2 + $0x130] sm:$0xff] %vm1013_vm1, %v987_v8  ;;  %v953_v13 = vadd.f32 %v710_v9, %v344_v5  ;;  %v985_v14 = vadd.f32 %v838_v10, %v376_v6  ;;  %v358_v7 = vld [vmem:[#allocation2 + $0x90] sm:$0xff] }
 0x121   : > { %v1933_v15 = vpop.f32.mrf.mxu0  ;;  %v1965_v16 = vpop.f32.mrf.mxu1  ;;  %v390_v8 = vld [vmem:[#allocation2 + $0x190] sm:$0xff] }
 0x122   : > { %1018 = vst.msk [vmem:[#allocation2 + $0x20] sm:$0xff] %vm1013_vm1, %v953_v13  ;;  %1050 = vst.msk [vmem:[#allocation2 + $0x120] sm:$0xff] %vm1013_vm1, %v985_v14  ;;  %v956_v19 = vadd.f32 %v1933_v15, %v347_v11  ;;  %v988_v20 = vadd.f32 %v1965_v16, %v379_v12  ;;  %v356_v13 = vld [vmem:[#allocation2 + $0x80] sm:$0xff] }
 0x123   : > { %v713_v21 = vpop.f32.mrf.mxu0  ;;  %v841_v22 = vpop.f32.mrf.mxu1  ;;  %v388_v14 = vld [vmem:[#allocation2 + $0x180] sm:$0xff] }
 0x124   : > { %1021 = vst.msk [vmem:[#allocation2 + $0x38] sm:$0xff] %vm1013_vm1, %v956_v19  ;;  %1053 = vst.msk [vmem:[#allocation2 + $0x138] sm:$0xff] %vm1013_vm1, %v988_v20  ;;  %v954_v25 = vadd.f32 %v713_v21, %v345_v17  ;;  %v986_v26 = vadd.f32 %v841_v22, %v377_v18  ;;  %v359_v19 = vld [vmem:[#allocation2 + $0x98] sm:$0xff] }
 0x125   : > { %v1936_v27 = vpop.f32.mrf.mxu0  ;;  %v1968_v28 = vpop.f32.mrf.mxu1  ;;  %v391_v20 = vld [vmem:[#allocation2 + $0x198] sm:$0xff] }
 0x126   : > { %1019 = vst.msk [vmem:[#allocation2 + $0x28] sm:$0xff] %vm1013_vm1, %v954_v25  ;;  %1051 = vst.msk [vmem:[#allocation2 + $0x128] sm:$0xff] %vm1013_vm1, %v986_v26  ;;  %v959_v31 = vadd.f32 %v1936_v27, %v350_v23  ;;  %v991_v32 = vadd.f32 %v1968_v28, %v382_v24  ;;  %v357_v25 = vld [vmem:[#allocation2 + $0x88] sm:$0xff] }
 0x127   : > { %v726_v33 = vpop.f32.mrf.mxu0  ;;  %v854_v34 = vpop.f32.mrf.mxu1  ;;  %v389_v26 = vld [vmem:[#allocation2 + $0x188] sm:$0xff] }
 0x128   : > { %1024 = vst.msk [vmem:[#allocation2 + $0x50] sm:$0xff] %vm1013_vm1, %v959_v31  ;;  %1056 = vst.msk [vmem:[#allocation2 + $0x150] sm:$0xff] %vm1013_vm1, %v991_v32  ;;  %v957_v37 = vadd.f32 %v726_v33, %v348_v29  ;;  %v989_v38 = vadd.f32 %v854_v34, %v380_v30  ;;  %v362_v31 = vld [vmem:[#allocation2 + $0xb0] sm:$0xff] }
 0x129   : > { %v1937_v39 = vpop.f32.mrf.mxu0  ;;  %v1969_v40 = vpop.f32.mrf.mxu1  ;;  %v394_v32 = vld [vmem:[#allocation2 + $0x1b0] sm:$0xff] }
 0x12a   : > { %1022 = vst.msk [vmem:[#allocation2 + $0x40] sm:$0xff] %vm1013_vm1, %v957_v37  ;;  %1054 = vst.msk [vmem:[#allocation2 + $0x140] sm:$0xff] %vm1013_vm1, %v989_v38  ;;  %v960_v43 = vadd.f32 %v1937_v39, %v351_v35  ;;  %v992_v44 = vadd.f32 %v1969_v40, %v383_v36  ;;  %v360_v37 = vld [vmem:[#allocation2 + $0xa0] sm:$0xff] }
 0x12b   : > { %v729_v45 = vpop.f32.mrf.mxu0  ;;  %v857_v46 = vpop.f32.mrf.mxu1  ;;  %v392_v38 = vld [vmem:[#allocation2 + $0x1a0] sm:$0xff] }
 0x12c   : > { %1025 = vst.msk [vmem:[#allocation2 + $0x58] sm:$0xff] %vm1013_vm1, %v960_v43  ;;  %1057 = vst.msk [vmem:[#allocation2 + $0x158] sm:$0xff] %vm1013_vm1, %v992_v44  ;;  %v958_v49 = vadd.f32 %v729_v45, %v349_v41  ;;  %v990_v50 = vadd.f32 %v857_v46, %v381_v42  ;;  %v363_v43 = vld [vmem:[#allocation2 + $0xb8] sm:$0xff] }
 0x12d   : > { %v1940_v51 = vpop.f32.mrf.mxu0  ;;  %v1972_v52 = vpop.f32.mrf.mxu1  ;;  %v395_v44 = vld [vmem:[#allocation2 + $0x1b8] sm:$0xff] }
 0x12e   : > { %1023 = vst.msk [vmem:[#allocation2 + $0x48] sm:$0xff] %vm1013_vm1, %v958_v49  ;;  %1055 = vst.msk [vmem:[#allocation2 + $0x148] sm:$0xff] %vm1013_vm1, %v990_v50  ;;  %v963_v55 = vadd.f32 %v1940_v51, %v354_v47  ;;  %v995_v56 = vadd.f32 %v1972_v52, %v386_v48  ;;  %v361_v49 = vld [vmem:[#allocation2 + $0xa8] sm:$0xff] }
 0x12f   : > { %v742_v57 = vpop.f32.mrf.mxu0  ;;  %v870_v58 = vpop.f32.mrf.mxu1  ;;  %v393_v50 = vld [vmem:[#allocation2 + $0x1a8] sm:$0xff] }
 0x130   : > { %1028 = vst.msk [vmem:[#allocation2 + $0x70] sm:$0xff] %vm1013_vm1, %v963_v55  ;;  %1060 = vst.msk [vmem:[#allocation2 + $0x170] sm:$0xff] %vm1013_vm1, %v995_v56  ;;  %v961_v61 = vadd.f32 %v742_v57, %v352_v53  ;;  %v993_v62 = vadd.f32 %v870_v58, %v384_v54  ;;  %v366_v55 = vld [vmem:[#allocation2 + $0xd0] sm:$0xff] }
 0x131   : > { %v1941_v63 = vpop.f32.mrf.mxu0  ;;  %v1973_v0 = vpop.f32.mrf.mxu1  ;;  %v398_v56 = vld [vmem:[#allocation2 + $0x1d0] sm:$0xff] }
 0x132   : > { %1026 = vst.msk [vmem:[#allocation2 + $0x60] sm:$0xff] %vm1013_vm1, %v961_v61  ;;  %1058 = vst.msk [vmem:[#allocation2 + $0x160] sm:$0xff] %vm1013_vm1, %v993_v62  ;;  %v964_v3 = vadd.f32 %v1941_v63, %v355_v59  ;;  %v996_v4 = vadd.f32 %v1973_v0, %v387_v60  ;;  %v364_v61 = vld [vmem:[#allocation2 + $0xc0] sm:$0xff] }
 0x133   : > { %v745_v5 = vpop.f32.mrf.mxu0  ;;  %v873_v6 = vpop.f32.mrf.mxu1  ;;  %v396_v62 = vld [vmem:[#allocation2 + $0x1c0] sm:$0xff] }
 0x134   : > { %1029 = vst.msk [vmem:[#allocation2 + $0x78] sm:$0xff] %vm1013_vm1, %v964_v3  ;;  %1061 = vst.msk [vmem:[#allocation2 + $0x178] sm:$0xff] %vm1013_vm1, %v996_v4  ;;  %v962_v9 = vadd.f32 %v745_v5, %v353_v1  ;;  %v994_v10 = vadd.f32 %v873_v6, %v385_v2  ;;  %v367_v3 = vld [vmem:[#allocation2 + $0xd8] sm:$0xff] }
 0x135   : > { %v1944_v11 = vpop.f32.mrf.mxu0  ;;  %v1976_v12 = vpop.f32.mrf.mxu1  ;;  %v399_v4 = vld [vmem:[#allocation2 + $0x1d8] sm:$0xff] }
 0x136   : > { %1027 = vst.msk [vmem:[#allocation2 + $0x68] sm:$0xff] %vm1013_vm1, %v962_v9  ;;  %1059 = vst.msk [vmem:[#allocation2 + $0x168] sm:$0xff] %vm1013_vm1, %v994_v10  ;;  %v967_v15 = vadd.f32 %v1944_v11, %v358_v7  ;;  %v999_v16 = vadd.f32 %v1976_v12, %v390_v8  ;;  %v365_v9 = vld [vmem:[#allocation2 + $0xc8] sm:$0xff] }
 0x137   : > { %v758_v17 = vpop.f32.mrf.mxu0  ;;  %v886_v18 = vpop.f32.mrf.mxu1  ;;  %v397_v10 = vld [vmem:[#allocation2 + $0x1c8] sm:$0xff] }
 0x138   : > { %1032 = vst.msk [vmem:[#allocation2 + $0x90] sm:$0xff] %vm1013_vm1, %v967_v15  ;;  %1064 = vst.msk [vmem:[#allocation2 + $0x190] sm:$0xff] %vm1013_vm1, %v999_v16  ;;  %v965_v21 = vadd.f32 %v758_v17, %v356_v13  ;;  %v997_v22 = vadd.f32 %v886_v18, %v388_v14  ;;  %v370_v15 = vld [vmem:[#allocation2 + $0xf0] sm:$0xff] }
 0x139   : > { %v1945_v23 = vpop.f32.mrf.mxu0  ;;  %v1977_v24 = vpop.f32.mrf.mxu1  ;;  %v402_v16 = vld [vmem:[#allocation2 + $0x1f0] sm:$0xff] }
 0x13a   : > { %1030 = vst.msk [vmem:[#allocation2 + $0x80] sm:$0xff] %vm1013_vm1, %v965_v21  ;;  %1062 = vst.msk [vmem:[#allocation2 + $0x180] sm:$0xff] %vm1013_vm1, %v997_v22  ;;  %v968_v27 = vadd.f32 %v1945_v23, %v359_v19  ;;  %v1000_v28 = vadd.f32 %v1977_v24, %v391_v20  ;;  %v368_v21 = vld [vmem:[#allocation2 + $0xe0] sm:$0xff] }
 0x13b   : > { %v761_v29 = vpop.f32.mrf.mxu0  ;;  %v889_v30 = vpop.f32.mrf.mxu1  ;;  %v400_v22 = vld [vmem:[#allocation2 + $0x1e0] sm:$0xff] }
 0x13c   : > { %1033 = vst.msk [vmem:[#allocation2 + $0x98] sm:$0xff] %vm1013_vm1, %v968_v27  ;;  %1065 = vst.msk [vmem:[#allocation2 + $0x198] sm:$0xff] %vm1013_vm1, %v1000_v28  ;;  %v966_v33 = vadd.f32 %v761_v29, %v357_v25  ;;  %v998_v34 = vadd.f32 %v889_v30, %v389_v26  ;;  %v371_v27 = vld [vmem:[#allocation2 + $0xf8] sm:$0xff] }
 0x13d   : > { %v1948_v35 = vpop.f32.mrf.mxu0  ;;  %v1980_v36 = vpop.f32.mrf.mxu1  ;;  %v403_v28 = vld [vmem:[#allocation2 + $0x1f8] sm:$0xff] }
 0x13e   : > { %1031 = vst.msk [vmem:[#allocation2 + $0x88] sm:$0xff] %vm1013_vm1, %v966_v33  ;;  %1063 = vst.msk [vmem:[#allocation2 + $0x188] sm:$0xff] %vm1013_vm1, %v998_v34  ;;  %v971_v39 = vadd.f32 %v1948_v35, %v362_v31  ;;  %v1003_v40 = vadd.f32 %v1980_v36, %v394_v32  ;;  %v369_v33 = vld [vmem:[#allocation2 + $0xe8] sm:$0xff] }
 0x13f   : > { %v774_v41 = vpop.f32.mrf.mxu0  ;;  %v902_v42 = vpop.f32.mrf.mxu1  ;;  %v401_v34 = vld [vmem:[#allocation2 + $0x1e8] sm:$0xff] }
 0x140   : > { %1036 = vst.msk [vmem:[#allocation2 + $0xb0] sm:$0xff] %vm1013_vm1, %v971_v39  ;;  %1068 = vst.msk [vmem:[#allocation2 + $0x1b0] sm:$0xff] %vm1013_vm1, %v1003_v40  ;;  %v969_v45 = vadd.f32 %v774_v41, %v360_v37  ;;  %v1001_v46 = vadd.f32 %v902_v42, %v392_v38 }
 0x141   : > { %v1949_v47 = vpop.f32.mrf.mxu0  ;;  %v1981_v48 = vpop.f32.mrf.mxu1 }
 0x142   : > { %1034 = vst.msk [vmem:[#allocation2 + $0xa0] sm:$0xff] %vm1013_vm1, %v969_v45  ;;  %1066 = vst.msk [vmem:[#allocation2 + $0x1a0] sm:$0xff] %vm1013_vm1, %v1001_v46  ;;  %v972_v51 = vadd.f32 %v1949_v47, %v363_v43  ;;  %v1004_v52 = vadd.f32 %v1981_v48, %v395_v44 }
 0x143   : > { %v777_v53 = vpop.f32.mrf.mxu0  ;;  %v905_v54 = vpop.f32.mrf.mxu1 }
 0x144   : > { %1037 = vst.msk [vmem:[#allocation2 + $0xb8] sm:$0xff] %vm1013_vm1, %v972_v51  ;;  %1069 = vst.msk [vmem:[#allocation2 + $0x1b8] sm:$0xff] %vm1013_vm1, %v1004_v52  ;;  %v970_v57 = vadd.f32 %v777_v53, %v361_v49  ;;  %v1002_v58 = vadd.f32 %v905_v54, %v393_v50 }
 0x145   : > { %v1952_v59 = vpop.f32.mrf.mxu0  ;;  %v1984_v60 = vpop.f32.mrf.mxu1 }
 0x146   : > { %1035 = vst.msk [vmem:[#allocation2 + $0xa8] sm:$0xff] %vm1013_vm1, %v970_v57  ;;  %1067 = vst.msk [vmem:[#allocation2 + $0x1a8] sm:$0xff] %vm1013_vm1, %v1002_v58  ;;  %v975_v63 = vadd.f32 %v1952_v59, %v366_v55  ;;  %v1007_v0 = vadd.f32 %v1984_v60, %v398_v56 }
 0x147   : > { %v790_v1 = vpop.f32.mrf.mxu0  ;;  %v918_v2 = vpop.f32.mrf.mxu1 }
 0x148   : > { %1040 = vst.msk [vmem:[#allocation2 + $0xd0] sm:$0xff] %vm1013_vm1, %v975_v63  ;;  %1072 = vst.msk [vmem:[#allocation2 + $0x1d0] sm:$0xff] %vm1013_vm1, %v1007_v0  ;;  %v973_v5 = vadd.f32 %v790_v1, %v364_v61  ;;  %v1005_v6 = vadd.f32 %v918_v2, %v396_v62 }
 0x149   : > { %v1953_v7 = vpop.f32.mrf.mxu0  ;;  %v1985_v8 = vpop.f32.mrf.mxu1 }
 0x14a   : > { %1038 = vst.msk [vmem:[#allocation2 + $0xc0] sm:$0xff] %vm1013_vm1, %v973_v5  ;;  %1070 = vst.msk [vmem:[#allocation2 + $0x1c0] sm:$0xff] %vm1013_vm1, %v1005_v6  ;;  %v976_v11 = vadd.f32 %v1953_v7, %v367_v3  ;;  %v1008_v12 = vadd.f32 %v1985_v8, %v399_v4 }
 0x14b   : > { %v793_v13 = vpop.f32.mrf.mxu0  ;;  %v921_v14 = vpop.f32.mrf.mxu1 }
 0x14c   : > { %1041 = vst.msk [vmem:[#allocation2 + $0xd8] sm:$0xff] %vm1013_vm1, %v976_v11  ;;  %1073 = vst.msk [vmem:[#allocation2 + $0x1d8] sm:$0xff] %vm1013_vm1, %v1008_v12  ;;  %v974_v17 = vadd.f32 %v793_v13, %v365_v9  ;;  %v1006_v18 = vadd.f32 %v921_v14, %v397_v10 }
 0x14d   : > { %v1956_v19 = vpop.f32.mrf.mxu0  ;;  %v1988_v20 = vpop.f32.mrf.mxu1 }
 0x14e   : > { %1039 = vst.msk [vmem:[#allocation2 + $0xc8] sm:$0xff] %vm1013_vm1, %v974_v17  ;;  %1071 = vst.msk [vmem:[#allocation2 + $0x1c8] sm:$0xff] %vm1013_vm1, %v1006_v18  ;;  %v979_v23 = vadd.f32 %v1956_v19, %v370_v15  ;;  %v1011_v24 = vadd.f32 %v1988_v20, %v402_v16 }
 0x14f   : > { %v806_v25 = vpop.f32.mrf.mxu0  ;;  %v934_v26 = vpop.f32.mrf.mxu1 }
 0x150   : > { %1044 = vst.msk [vmem:[#allocation2 + $0xf0] sm:$0xff] %vm1013_vm1, %v979_v23  ;;  %1076 = vst.msk [vmem:[#allocation2 + $0x1f0] sm:$0xff] %vm1013_vm1, %v1011_v24  ;;  %v977_v29 = vadd.f32 %v806_v25, %v368_v21  ;;  %v1009_v30 = vadd.f32 %v934_v26, %v400_v22 }
 0x151   : > { %v1957_v31 = vpop.f32.mrf.mxu0  ;;  %v1989_v32 = vpop.f32.mrf.mxu1 }
 0x152   : > { %1042 = vst.msk [vmem:[#allocation2 + $0xe0] sm:$0xff] %vm1013_vm1, %v977_v29  ;;  %1074 = vst.msk [vmem:[#allocation2 + $0x1e0] sm:$0xff] %vm1013_vm1, %v1009_v30  ;;  %v980_v35 = vadd.f32 %v1957_v31, %v371_v27  ;;  %v1012_v36 = vadd.f32 %v1989_v32, %v403_v28  ;;  %1081 = sbr.rel (%p1735_p8) target bundleno = 397 (0x18d), region = 40 }
 0x153   : > { %v809_v37 = vpop.f32.mrf.mxu0  ;;  %v937_v38 = vpop.f32.mrf.mxu1 }
 0x154   : > { %1045 = vst.msk [vmem:[#allocation2 + $0xf8] sm:$0xff] %vm1013_vm1, %v980_v35  ;;  %1077 = vst.msk [vmem:[#allocation2 + $0x1f8] sm:$0xff] %vm1013_vm1, %v1012_v36  ;;  %v978_v39 = vadd.f32 %v809_v37, %v369_v33  ;;  %v1010_v40 = vadd.f32 %v937_v38, %v401_v34 }
 0x156   : > { %1043 = vst.msk [vmem:[#allocation2 + $0xe8] sm:$0xff] %vm1013_vm1, %v978_v39  ;;  %1075 = vst.msk [vmem:[#allocation2 + $0x1e8] sm:$0xff] %vm1013_vm1, %v1010_v40 }
 0x157   : > { %v1082_v41 = vld [vmem:[#allocation2] sm:$0xff]  ;;  %v1083_v43 = vld [vmem:[#allocation2 + $0x8] sm:$0xff]  ;;  %v1084_v46 = vld [vmem:[#allocation2 + $0x10] sm:$0xff]  ;;  %vm1537_vm2 = vcmask 257024  }
 0x158   : > { %v2439_v42 = vld [vmem:[%s2650_s2] ss:$0 sm:$0xff]  ;;  %v1085_v47 = vld [vmem:[#allocation2 + $0x18] sm:$0xff]  ;;  %v1087_v52 = vld [vmem:[#allocation2 + $0x28] sm:$0xff] }
 0x159   : > { %v1153_v44 = vadd.f32 %v2439_v42, %v1082_v41  ;;  %v1154_v45 = vadd.f32 %v2439_v42, %v1083_v43  ;;  %v1086_v48 = vld [vmem:[#allocation2 + $0x20] sm:$0xff]  ;;  %v1155_v49 = vadd.f32 %v2439_v42, %v1084_v46  ;;  %v1156_v50 = vadd.f32 %v2439_v42, %v1085_v47  ;;  %v1088_v53 = vld [vmem:[#allocation2 + $0x30] sm:$0xff]  ;;  %v1089_v54 = vld [vmem:[#allocation2 + $0x38] sm:$0xff] }
 0x15a   : > { %v1157_v51 = vadd.f32 %v2439_v42, %v1086_v48  ;;  %v1158_v57 = vadd.f32 %v2439_v42, %v1087_v52  ;;  %v1159_v58 = vadd.f32 %v2439_v42, %v1088_v53  ;;  %v1160_v62 = vadd.f32 %v2439_v42, %v1089_v54  ;;  %v1090_v63 = vld [vmem:[#allocation2 + $0x40] sm:$0xff]  ;;  %v1091_v0 = vld [vmem:[#allocation2 + $0x48] sm:$0xff]  ;;  %v1092_v5 = vld [vmem:[#allocation2 + $0x50] sm:$0xff] }
 0x15b   : > { %v1217_v55 = vmax.f32 %v1153_v44, 0.0  ;;  %v1218_v56 = vmax.f32 %v1154_v45, 0.0  ;;  %v1219_v59 = vmax.f32 %v1155_v49, 0.0  ;;  %v1220_v60 = vmax.f32 %v1156_v50, 0.0  ;;  %v1093_v6 = vld [vmem:[#allocation2 + $0x58] sm:$0xff]  ;;  %v1094_v7 = vld [vmem:[#allocation2 + $0x60] sm:$0xff] }
 0x15c   : > { %v1221_v61 = vmax.f32 %v1157_v51, 0.0  ;;  %v1222_v3 = vmax.f32 %v1158_v57, 0.0  ;;  %v1223_v4 = vmax.f32 %v1159_v58, 0.0  ;;  %v1224_v11 = vmax.f32 %v1160_v62, 0.0  ;;  %v1095_v12 = vld [vmem:[#allocation2 + $0x68] sm:$0xff]  ;;  %v1096_v13 = vld [vmem:[#allocation2 + $0x70] sm:$0xff] }
 0x15d   : > { %v1806_v1 = vpack.c.bf16 %v1217_v55, %v1217_v55  ;;  %v1807_v2 = vpack.c.bf16 %v1218_v56, %v1218_v56  ;;  %v1808_v8 = vpack.c.bf16 %v1219_v59, %v1219_v59  ;;  %v1809_v9 = vpack.c.bf16 %v1220_v60, %v1220_v60  ;;  %v1097_v18 = vld [vmem:[#allocation2 + $0x78] sm:$0xff]  ;;  %v1098_v31 = vld [vmem:[#allocation2 + $0x80] sm:$0xff]  ;;  %v1099_v32 = vld [vmem:[#allocation2 + $0x88] sm:$0xff] }
 0x15e   : > { %v1810_v10 = vpack.c.bf16 %v1221_v61, %v1221_v61  ;;  %v1811_v14 = vpack.c.bf16 %v1222_v3, %v1222_v3  ;;  %v1812_v15 = vpack.c.bf16 %v1223_v4, %v1223_v4  ;;  %v1161_v16 = vadd.f32 %v2439_v42, %v1090_v63  ;;  %v1100_v37 = vld [vmem:[#allocation2 + $0x90] sm:$0xff]  ;;  %v1101_v38 = vld [vmem:[#allocation2 + $0x98] sm:$0xff]  ;;  %v1102_v39 = vld [vmem:[#allocation2 + $0xa0] sm:$0xff] }
 0x15f   : > { %1538 = vst.msk [vmem:[%s2186_s25] sm:$0xf] %vm1537_vm2, %v1806_v1  ;;  %1539 = vst.msk [vmem:[%s2186_s25 + $0x4] sm:$0xf] %vm1537_vm2, %v1807_v2  ;;  %v1162_v17 = vadd.f32 %v2439_v42, %v1091_v0  ;;  %v1813_v19 = vpack.c.bf16 %v1224_v11, %v1224_v11  ;;  %v1163_v20 = vadd.f32 %v2439_v42, %v1092_v5  ;;  %v1103_v45 = vld [vmem:[#allocation2 + $0xa8] sm:$0xff]  ;;  %v1104_v46 = vld [vmem:[#allocation2 + $0xb0] sm:$0xff] }
 0x160   : > { %1540 = vst.msk [vmem:[%s2186_s25 + $0x8] sm:$0xf] %vm1537_vm2, %v1808_v8  ;;  %1541 = vst.msk [vmem:[%s2186_s25 + $0xc] sm:$0xf] %vm1537_vm2, %v1809_v9  ;;  %v1164_v21 = vadd.f32 %v2439_v42, %v1093_v6  ;;  %v1165_v22 = vadd.f32 %v2439_v42, %v1094_v7  ;;  %v1225_v23 = vmax.f32 %v1161_v16, 0.0  ;;  %v1166_v25 = vadd.f32 %v2439_v42, %v1095_v12  ;;  %v1105_v51 = vld [vmem:[#allocation2 + $0xb8] sm:$0xff] }
 0x161   : > { %1542 = vst.msk [vmem:[%s2186_s25 + $0x10] sm:$0xf] %vm1537_vm2, %v1810_v10  ;;  %1543 = vst.msk [vmem:[%s2186_s25 + $0x14] sm:$0xf] %vm1537_vm2, %v1811_v14  ;;  %v1226_v24 = vmax.f32 %v1162_v17, 0.0  ;;  %v1167_v26 = vadd.f32 %v2439_v42, %v1096_v13  ;;  %v1227_v27 = vmax.f32 %v1163_v20, 0.0  ;;  %v1168_v30 = vadd.f32 %v2439_v42, %v1097_v18 }
 0x162   : > { %1544 = vst.msk [vmem:[%s2186_s25 + $0x18] sm:$0xf] %vm1537_vm2, %v1812_v15  ;;  %1545 = vst.msk [vmem:[%s2186_s25 + $0x1c] sm:$0xf] %vm1537_vm2, %v1813_v19  ;;  %v1228_v28 = vmax.f32 %v1164_v21, 0.0  ;;  %v1229_v29 = vmax.f32 %v1165_v22, 0.0  ;;  %v1814_v33 = vpack.c.bf16 %v1225_v23, %v1225_v23  ;;  %v1169_v49 = vadd.f32 %v2439_v42, %v1098_v31 }
 0x163   : > { %v1815_v34 = vpack.c.bf16 %v1226_v24, %v1226_v24  ;;  %v1230_v35 = vmax.f32 %v1166_v25, 0.0  ;;  %v1231_v36 = vmax.f32 %v1167_v26, 0.0  ;;  %v1816_v40 = vpack.c.bf16 %v1227_v27, %v1227_v27  ;;  %v1106_v0 = vld [vmem:[#allocation2 + $0xc0] sm:$0xff]  ;;  %v1107_v1 = vld [vmem:[#allocation2 + $0xc8] sm:$0xff]  ;;  %v1108_v6 = vld [vmem:[#allocation2 + $0xd0] sm:$0xff] }
 0x164   : > { %v1817_v41 = vpack.c.bf16 %v1228_v28, %v1228_v28  ;;  %v1818_v43 = vpack.c.bf16 %v1229_v29, %v1229_v29  ;;  %v1232_v44 = vmax.f32 %v1168_v30, 0.0  ;;  %1546 = vst.msk [vmem:[%s2186_s25 + $0x20] sm:$0xf] %vm1537_vm2, %v1814_v33  ;;  %v1170_v50 = vadd.f32 %v2439_v42, %v1099_v32  ;;  %v1109_v7 = vld [vmem:[#allocation2 + $0xd8] sm:$0xff]  ;;  %v1110_v8 = vld [vmem:[#allocation2 + $0xe0] sm:$0xff]  ;;  %v1111_v13 = vld [vmem:[#allocation2 + $0xe8] sm:$0xff] }
 0x165   : > { %1547 = vst.msk [vmem:[%s2186_s25 + $0x24] sm:$0xf] %vm1537_vm2, %v1815_v34  ;;  %v1819_v47 = vpack.c.bf16 %v1230_v35, %v1230_v35  ;;  %v1820_v48 = vpack.c.bf16 %v1231_v36, %v1231_v36  ;;  %1548 = vst.msk [vmem:[%s2186_s25 + $0x28] sm:$0xf] %vm1537_vm2, %v1816_v40  ;;  %v1171_v53 = vadd.f32 %v2439_v42, %v1100_v37  ;;  %v1233_v56 = vmax.f32 %v1169_v49, 0.0  ;;  %v1112_v14 = vld [vmem:[#allocation2 + $0xf0] sm:$0xff] }
 0x166   : > { %1549 = vst.msk [vmem:[%s2186_s25 + $0x2c] sm:$0xf] %vm1537_vm2, %v1817_v41  ;;  %1550 = vst.msk [vmem:[%s2186_s25 + $0x30] sm:$0xf] %vm1537_vm2, %v1818_v43  ;;  %v1821_v52 = vpack.c.bf16 %v1232_v44, %v1232_v44  ;;  %v1172_v54 = vadd.f32 %v2439_v42, %v1101_v38  ;;  %v1173_v55 = vadd.f32 %v2439_v42, %v1102_v39  ;;  %v1234_v57 = vmax.f32 %v1170_v50, 0.0  ;;  %v1113_v19 = vld [vmem:[#allocation2 + $0xf8] sm:$0xff] }
 0x167   : > { %1551 = vst.msk [vmem:[%s2186_s25 + $0x34] sm:$0xf] %vm1537_vm2, %v1819_v47  ;;  %1552 = vst.msk [vmem:[%s2186_s25 + $0x38] sm:$0xf] %vm1537_vm2, %v1820_v48  ;;  %v1174_v58 = vadd.f32 %v2439_v42, %v1103_v45  ;;  %v1175_v59 = vadd.f32 %v2439_v42, %v1104_v46  ;;  %v1235_v60 = vmax.f32 %v1171_v53, 0.0  ;;  %v1176_v63 = vadd.f32 %v2439_v42, %v1105_v51  ;;  %v1114_v32 = vld [vmem:[#allocation2 + $0x100] sm:$0xff] }
 0x168   : > { %1553 = vst.msk [vmem:[%s2186_s25 + $0x3c] sm:$0xf] %vm1537_vm2, %v1821_v52  ;;  %v1236_v61 = vmax.f32 %v1172_v54, 0.0  ;;  %v1237_v62 = vmax.f32 %v1173_v55, 0.0  ;;  %v1822_v2 = vpack.c.bf16 %v1233_v56, %v1233_v56  ;;  %v1823_v3 = vpack.c.bf16 %v1234_v57, %v1234_v57  ;;  %v1115_v33 = vld [vmem:[#allocation2 + $0x108] sm:$0xff]  ;;  %v1116_v38 = vld [vmem:[#allocation2 + $0x110] sm:$0xff] }
 0x169   : > { %v1238_v4 = vmax.f32 %v1174_v58, 0.0  ;;  %v1239_v5 = vmax.f32 %v1175_v59, 0.0  ;;  %v1824_v9 = vpack.c.bf16 %v1235_v60, %v1235_v60  ;;  %v1240_v12 = vmax.f32 %v1176_v63, 0.0  ;;  %v1117_v39 = vld [vmem:[#allocation2 + $0x118] sm:$0xff]  ;;  %v1118_v40 = vld [vmem:[#allocation2 + $0x120] sm:$0xff]  ;;  %v1119_v46 = vld [vmem:[#allocation2 + $0x128] sm:$0xff] }
 0x16a   : > { %v1825_v10 = vpack.c.bf16 %v1236_v61, %v1236_v61  ;;  %v1826_v11 = vpack.c.bf16 %v1237_v62, %v1237_v62  ;;  %1554 = vst.msk [vmem:[%s2186_s25 + $0x40] sm:$0xf] %vm1537_vm2, %v1822_v2  ;;  %1555 = vst.msk [vmem:[%s2186_s25 + $0x44] sm:$0xf] %vm1537_vm2, %v1823_v3  ;;  %v1177_v17 = vadd.f32 %v2439_v42, %v1106_v0  ;;  %v1120_v47 = vld [vmem:[#allocation2 + $0x130] sm:$0xff]  ;;  %v1121_v52 = vld [vmem:[#allocation2 + $0x138] sm:$0xff] }
 0x16b   : > { %v1827_v15 = vpack.c.bf16 %v1238_v4, %v1238_v4  ;;  %v1828_v16 = vpack.c.bf16 %v1239_v5, %v1239_v5  ;;  %v1178_v18 = vadd.f32 %v2439_v42, %v1107_v1  ;;  %1556 = vst.msk [vmem:[%s2186_s25 + $0x48] sm:$0xf] %vm1537_vm2, %v1824_v9  ;;  %v1829_v20 = vpack.c.bf16 %v1240_v12, %v1240_v12  ;;  %v1122_v1 = vld [vmem:[#allocation2 + $0x140] sm:$0xff]  ;;  %v1123_v2 = vld [vmem:[#allocation2 + $0x148] sm:$0xff] }
 0x16c   : > { %1557 = vst.msk [vmem:[%s2186_s25 + $0x4c] sm:$0xf] %vm1537_vm2, %v1825_v10  ;;  %1558 = vst.msk [vmem:[%s2186_s25 + $0x50] sm:$0xf] %vm1537_vm2, %v1826_v11  ;;  %v1179_v21 = vadd.f32 %v2439_v42, %v1108_v6  ;;  %v1180_v22 = vadd.f32 %v2439_v42, %v1109_v7  ;;  %v1181_v23 = vadd.f32 %v2439_v42, %v1110_v8  ;;  %v1241_v24 = vmax.f32 %v1177_v17, 0.0  ;;  %v1124_v7 = vld [vmem:[#allocation2 + $0x150] sm:$0xff] }
 0x16d   : > { %1559 = vst.msk [vmem:[%s2186_s25 + $0x54] sm:$0xf] %vm1537_vm2, %v1827_v15  ;;  %1560 = vst.msk [vmem:[%s2186_s25 + $0x58] sm:$0xf] %vm1537_vm2, %v1828_v16  ;;  %v1242_v25 = vmax.f32 %v1178_v18, 0.0  ;;  %v1182_v26 = vadd.f32 %v2439_v42, %v1111_v13  ;;  %v1183_v27 = vadd.f32 %v2439_v42, %v1112_v14  ;;  %v1184_v31 = vadd.f32 %v2439_v42, %v1113_v19  ;;  %v1125_v8 = vld [vmem:[#allocation2 + $0x158] sm:$0xff] }
 0x16e   : > { %1561 = vst.msk [vmem:[%s2186_s25 + $0x5c] sm:$0xf] %vm1537_vm2, %v1829_v20  ;;  %v1243_v28 = vmax.f32 %v1179_v21, 0.0  ;;  %v1244_v29 = vmax.f32 %v1180_v22, 0.0  ;;  %v1245_v30 = vmax.f32 %v1181_v23, 0.0  ;;  %v1830_v34 = vpack.c.bf16 %v1241_v24, %v1241_v24  ;;  %v1126_v9 = vld [vmem:[#allocation2 + $0x160] sm:$0xff] }
 0x16f   : > { %v1831_v35 = vpack.c.bf16 %v1242_v25, %v1242_v25  ;;  %v1246_v36 = vmax.f32 %v1182_v26, 0.0  ;;  %v1247_v37 = vmax.f32 %v1183_v27, 0.0  ;;  %v1248_v45 = vmax.f32 %v1184_v31, 0.0  ;;  %v1127_v14 = vld [vmem:[#allocation2 + $0x168] sm:$0xff]  ;;  %v1128_v15 = vld [vmem:[#allocation2 + $0x170] sm:$0xff]  ;;  %v1129_v20 = vld [vmem:[#allocation2 + $0x178] sm:$0xff] }
 0x170   : > { %v1832_v41 = vpack.c.bf16 %v1243_v28, %v1243_v28  ;;  %v1833_v43 = vpack.c.bf16 %v1244_v29, %v1244_v29  ;;  %v1834_v44 = vpack.c.bf16 %v1245_v30, %v1245_v30  ;;  %1562 = vst.msk [vmem:[%s2186_s25 + $0x60] sm:$0xf] %vm1537_vm2, %v1830_v34  ;;  %v1185_v50 = vadd.f32 %v2439_v42, %v1114_v32  ;;  %v1131_v34 = vld [vmem:[#allocation2 + $0x188] sm:$0xff] }
 0x171   : > { %1563 = vst.msk [vmem:[%s2186_s25 + $0x64] sm:$0xf] %vm1537_vm2, %v1831_v35  ;;  %v1835_v48 = vpack.c.bf16 %v1246_v36, %v1246_v36  ;;  %v1836_v49 = vpack.c.bf16 %v1247_v37, %v1247_v37  ;;  %v1186_v51 = vadd.f32 %v2439_v42, %v1115_v33  ;;  %v1837_v53 = vpack.c.bf16 %v1248_v45, %v1248_v45  ;;  %v1130_v33 = vld [vmem:[#allocation2 + $0x180] sm:$0xff] }
 0x172   : > { %1564 = vst.msk [vmem:[%s2186_s25 + $0x68] sm:$0xf] %vm1537_vm2, %v1832_v41  ;;  %1565 = vst.msk [vmem:[%s2186_s25 + $0x6c] sm:$0xf] %vm1537_vm2, %v1833_v43  ;;  %v1187_v54 = vadd.f32 %v2439_v42, %v1116_v38  ;;  %v1188_v55 = vadd.f32 %v2439_v42, %v1117_v39  ;;  %v1189_v56 = vadd.f32 %v2439_v42, %v1118_v40  ;;  %v1249_v57 = vmax.f32 %v1185_v50, 0.0  ;;  %v1132_v39 = vld [vmem:[#allocation2 + $0x190] sm:$0xff] }
 0x173   : > { %1566 = vst.msk [vmem:[%s2186_s25 + $0x70] sm:$0xf] %vm1537_vm2, %v1834_v44  ;;  %1567 = vst.msk [vmem:[%s2186_s25 + $0x74] sm:$0xf] %vm1537_vm2, %v1835_v48  ;;  %v1250_v58 = vmax.f32 %v1186_v51, 0.0  ;;  %v1190_v59 = vadd.f32 %v2439_v42, %v1119_v46  ;;  %v1191_v60 = vadd.f32 %v2439_v42, %v1120_v47  ;;  %v1192_v0 = vadd.f32 %v2439_v42, %v1121_v52  ;;  %v1133_v40 = vld [vmem:[#allocation2 + $0x198] sm:$0xff] }
 0x174   : > { %1568 = vst.msk [vmem:[%s2186_s25 + $0x78] sm:$0xf] %vm1537_vm2, %v1836_v49  ;;  %1569 = vst.msk [vmem:[%s2186_s25 + $0x7c] sm:$0xf] %vm1537_vm2, %v1837_v53  ;;  %v1251_v61 = vmax.f32 %v1187_v54, 0.0  ;;  %v1252_v62 = vmax.f32 %v1188_v55, 0.0  ;;  %v1838_v3 = vpack.c.bf16 %v1249_v57, %v1249_v57  ;;  %v1193_v18 = vadd.f32 %v2439_v42, %v1122_v1 }
 0x175   : > { %v1253_v63 = vmax.f32 %v1189_v56, 0.0  ;;  %v1839_v4 = vpack.c.bf16 %v1250_v58, %v1250_v58  ;;  %v1254_v5 = vmax.f32 %v1190_v59, 0.0  ;;  %v1255_v6 = vmax.f32 %v1191_v60, 0.0  ;;  %v1134_v41 = vld [vmem:[#allocation2 + $0x1a0] sm:$0xff]  ;;  %v1135_v47 = vld [vmem:[#allocation2 + $0x1a8] sm:$0xff]  ;;  %v1136_v48 = vld [vmem:[#allocation2 + $0x1b0] sm:$0xff] }
 0x176   : > { %v1840_v10 = vpack.c.bf16 %v1251_v61, %v1251_v61  ;;  %v1841_v11 = vpack.c.bf16 %v1252_v62, %v1252_v62  ;;  %v1256_v13 = vmax.f32 %v1192_v0, 0.0  ;;  %1570 = vst.msk [vmem:[%s2186_s25 + $0x80] sm:$0xf] %vm1537_vm2, %v1838_v3  ;;  %v1194_v19 = vadd.f32 %v2439_v42, %v1123_v2  ;;  %v1137_v53 = vld [vmem:[#allocation2 + $0x1b8] sm:$0xff]  ;;  %v1138_v2 = vld [vmem:[#allocation2 + $0x1c0] sm:$0xff]  ;;  %v1139_v3 = vld [vmem:[#allocation2 + $0x1c8] sm:$0xff] }
 0x177   : > { %v1842_v12 = vpack.c.bf16 %v1253_v63, %v1253_v63  ;;  %1571 = vst.msk [vmem:[%s2186_s25 + $0x84] sm:$0xf] %vm1537_vm2, %v1839_v4  ;;  %v1843_v16 = vpack.c.bf16 %v1254_v5, %v1254_v5  ;;  %v1844_v17 = vpack.c.bf16 %v1255_v6, %v1255_v6  ;;  %v1195_v22 = vadd.f32 %v2439_v42, %v1124_v7 }
 0x178   : > { %1572 = vst.msk [vmem:[%s2186_s25 + $0x88] sm:$0xf] %vm1537_vm2, %v1840_v10  ;;  %1573 = vst.msk [vmem:[%s2186_s25 + $0x8c] sm:$0xf] %vm1537_vm2, %v1841_v11  ;;  %v1845_v21 = vpack.c.bf16 %v1256_v13, %v1256_v13  ;;  %v1196_v23 = vadd.f32 %v2439_v42, %v1125_v8  ;;  %v1197_v24 = vadd.f32 %v2439_v42, %v1126_v9  ;;  %v1257_v25 = vmax.f32 %v1193_v18, 0.0  ;;  %v1140_v8 = vld [vmem:[#allocation2 + $0x1d0] sm:$0xff] }
 0x179   : > { %1574 = vst.msk [vmem:[%s2186_s25 + $0x90] sm:$0xf] %vm1537_vm2, %v1842_v12  ;;  %1575 = vst.msk [vmem:[%s2186_s25 + $0x94] sm:$0xf] %vm1537_vm2, %v1843_v16  ;;  %v1258_v26 = vmax.f32 %v1194_v19, 0.0  ;;  %v1198_v27 = vadd.f32 %v2439_v42, %v1127_v14  ;;  %v1199_v28 = vadd.f32 %v2439_v42, %v1128_v15  ;;  %v1259_v29 = vmax.f32 %v1195_v22, 0.0 }
 0x17a   : > { %1576 = vst.msk [vmem:[%s2186_s25 + $0x98] sm:$0xf] %vm1537_vm2, %v1844_v17  ;;  %1577 = vst.msk [vmem:[%s2186_s25 + $0x9c] sm:$0xf] %vm1537_vm2, %v1845_v21  ;;  %v1260_v30 = vmax.f32 %v1196_v23, 0.0  ;;  %v1261_v31 = vmax.f32 %v1197_v24, 0.0  ;;  %v1200_v32 = vadd.f32 %v2439_v42, %v1129_v20  ;;  %v1846_v35 = vpack.c.bf16 %v1257_v25, %v1257_v25 }
 0x17b   : > { %v1847_v36 = vpack.c.bf16 %v1258_v26, %v1258_v26  ;;  %v1262_v37 = vmax.f32 %v1198_v27, 0.0  ;;  %v1263_v38 = vmax.f32 %v1199_v28, 0.0  ;;  %v1848_v43 = vpack.c.bf16 %v1259_v29, %v1259_v29  ;;  %v1141_v9 = vld [vmem:[#allocation2 + $0x1d8] sm:$0xff]  ;;  %v1142_v10 = vld [vmem:[#allocation2 + $0x1e0] sm:$0xff]  ;;  %v1143_v15 = vld [vmem:[#allocation2 + $0x1e8] sm:$0xff] }
 0x17c   : > { %v1849_v44 = vpack.c.bf16 %v1260_v30, %v1260_v30  ;;  %v1850_v45 = vpack.c.bf16 %v1261_v31, %v1261_v31  ;;  %v1264_v46 = vmax.f32 %v1200_v32, 0.0  ;;  %1578 = vst.msk [vmem:[%s2186_s25 + $0xa0] sm:$0xf] %vm1537_vm2, %v1846_v35  ;;  %v1201_v51 = vadd.f32 %v2439_v42, %v1130_v33  ;;  %v1144_v16 = vld [vmem:[#allocation2 + $0x1f0] sm:$0xff]  ;;  %v1145_v21 = vld [vmem:[#allocation2 + $0x1f8] sm:$0xff] }
 0x17d   : > { %1579 = vst.msk [vmem:[%s2186_s25 + $0xa4] sm:$0xf] %vm1537_vm2, %v1847_v36  ;;  %v1851_v49 = vpack.c.bf16 %v1262_v37, %v1262_v37  ;;  %v1852_v50 = vpack.c.bf16 %v1263_v38, %v1263_v38  ;;  %v1202_v52 = vadd.f32 %v2439_v42, %v1131_v34  ;;  %1580 = vst.msk [vmem:[%s2186_s25 + $0xa8] sm:$0xf] %vm1537_vm2, %v1848_v43 }
 0x17e   : > { %1581 = vst.msk [vmem:[%s2186_s25 + $0xac] sm:$0xf] %vm1537_vm2, %v1849_v44  ;;  %1582 = vst.msk [vmem:[%s2186_s25 + $0xb0] sm:$0xf] %vm1537_vm2, %v1850_v45  ;;  %v1853_v54 = vpack.c.bf16 %v1264_v46, %v1264_v46  ;;  %v1203_v55 = vadd.f32 %v2439_v42, %v1132_v39  ;;  %v1204_v56 = vadd.f32 %v2439_v42, %v1133_v40  ;;  %v1265_v58 = vmax.f32 %v1201_v51, 0.0 }
 0x17f   : > { %v1205_v57 = vadd.f32 %v2439_v42, %v1134_v41  ;;  %1583 = vst.msk [vmem:[%s2186_s25 + $0xb4] sm:$0xf] %vm1537_vm2, %v1851_v49  ;;  %1584 = vst.msk [vmem:[%s2186_s25 + $0xb8] sm:$0xf] %vm1537_vm2, %v1852_v50  ;;  %v1266_v59 = vmax.f32 %v1202_v52, 0.0  ;;  %v1206_v60 = vadd.f32 %v2439_v42, %v1135_v47  ;;  %v1207_v61 = vadd.f32 %v2439_v42, %v1136_v48 }
 0x180   : > { %1585 = vst.msk [vmem:[%s2186_s25 + $0xbc] sm:$0xf] %vm1537_vm2, %v1853_v54  ;;  %v1267_v62 = vmax.f32 %v1203_v55, 0.0  ;;  %v1268_v63 = vmax.f32 %v1204_v56, 0.0  ;;  %v1208_v1 = vadd.f32 %v2439_v42, %v1137_v53  ;;  %v1854_v4 = vpack.c.bf16 %v1265_v58, %v1265_v58 }
 0x181   : > { %v1269_v0 = vmax.f32 %v1205_v57, 0.0  ;;  %v1855_v5 = vpack.c.bf16 %v1266_v59, %v1266_v59  ;;  %v1270_v6 = vmax.f32 %v1206_v60, 0.0  ;;  %v1271_v7 = vmax.f32 %v1207_v61, 0.0 }
 0x182   : > { %v1856_v11 = vpack.c.bf16 %v1267_v62, %v1267_v62  ;;  %v1857_v12 = vpack.c.bf16 %v1268_v63, %v1268_v63  ;;  %v1272_v14 = vmax.f32 %v1208_v1, 0.0  ;;  %1586 = vst.msk [vmem:[%s2186_s25 + $0xc0] sm:$0xf] %vm1537_vm2, %v1854_v4  ;;  %v1209_v19 = vadd.f32 %v2439_v42, %v1138_v2 }
 0x183   : > { %v1858_v13 = vpack.c.bf16 %v1269_v0, %v1269_v0  ;;  %1587 = vst.msk [vmem:[%s2186_s25 + $0xc4] sm:$0xf] %vm1537_vm2, %v1855_v5  ;;  %v1859_v17 = vpack.c.bf16 %v1270_v6, %v1270_v6  ;;  %v1860_v18 = vpack.c.bf16 %v1271_v7, %v1271_v7  ;;  %v1210_v20 = vadd.f32 %v2439_v42, %v1139_v3 }
 0x184   : > { %1588 = vst.msk [vmem:[%s2186_s25 + $0xc8] sm:$0xf] %vm1537_vm2, %v1856_v11  ;;  %1589 = vst.msk [vmem:[%s2186_s25 + $0xcc] sm:$0xf] %vm1537_vm2, %v1857_v12  ;;  %v1861_v22 = vpack.c.bf16 %v1272_v14, %v1272_v14  ;;  %v1211_v23 = vadd.f32 %v2439_v42, %v1140_v8  ;;  %v1212_v24 = vadd.f32 %v2439_v42, %v1141_v9  ;;  %v1273_v26 = vmax.f32 %v1209_v19, 0.0 }
 0x185   : > { %1590 = vst.msk [vmem:[%s2186_s25 + $0xd0] sm:$0xf] %vm1537_vm2, %v1858_v13  ;;  %v1213_v25 = vadd.f32 %v2439_v42, %v1142_v10  ;;  %1591 = vst.msk [vmem:[%s2186_s25 + $0xd4] sm:$0xf] %vm1537_vm2, %v1859_v17  ;;  %v1274_v27 = vmax.f32 %v1210_v20, 0.0  ;;  %v1214_v28 = vadd.f32 %v2439_v42, %v1143_v15  ;;  %v1215_v29 = vadd.f32 %v2439_v42, %v1144_v16 }
 0x186   : > { %1592 = vst.msk [vmem:[%s2186_s25 + $0xd8] sm:$0xf] %vm1537_vm2, %v1860_v18  ;;  %1593 = vst.msk [vmem:[%s2186_s25 + $0xdc] sm:$0xf] %vm1537_vm2, %v1861_v22  ;;  %v1275_v30 = vmax.f32 %v1211_v23, 0.0  ;;  %v1276_v31 = vmax.f32 %v1212_v24, 0.0  ;;  %v1216_v33 = vadd.f32 %v2439_v42, %v1145_v21  ;;  %v1862_v34 = vpack.c.bf16 %v1273_v26, %v1273_v26 }
 0x187   : > { %v1277_v32 = vmax.f32 %v1213_v25, 0.0  ;;  %v1863_v35 = vpack.c.bf16 %v1274_v27, %v1274_v27  ;;  %v1278_v36 = vmax.f32 %v1214_v28, 0.0  ;;  %v1279_v37 = vmax.f32 %v1215_v29, 0.0 }
 0x188   : > { %v1864_v38 = vpack.c.bf16 %v1275_v30, %v1275_v30  ;;  %v1865_v39 = vpack.c.bf16 %v1276_v31, %v1276_v31  ;;  %v1280_v41 = vmax.f32 %v1216_v33, 0.0  ;;  %1594 = vst.msk [vmem:[%s2186_s25 + $0xe0] sm:$0xf] %vm1537_vm2, %v1862_v34 }
 0x189   : > { %v1866_v40 = vpack.c.bf16 %v1277_v32, %v1277_v32  ;;  %1595 = vst.msk [vmem:[%s2186_s25 + $0xe4] sm:$0xf] %vm1537_vm2, %v1863_v35  ;;  %v1867_v43 = vpack.c.bf16 %v1278_v36, %v1278_v36  ;;  %v1868_v44 = vpack.c.bf16 %v1279_v37, %v1279_v37 }
 0x18a   : > { %1596 = vst.msk [vmem:[%s2186_s25 + $0xe8] sm:$0xf] %vm1537_vm2, %v1864_v38  ;;  %1597 = vst.msk [vmem:[%s2186_s25 + $0xec] sm:$0xf] %vm1537_vm2, %v1865_v39  ;;  %v1869_v42 = vpack.c.bf16 %v1280_v41, %v1280_v41 }
 0x18b   : > { %1598 = vst.msk [vmem:[%s2186_s25 + $0xf0] sm:$0xf] %vm1537_vm2, %v1866_v40  ;;  %1599 = vst.msk [vmem:[%s2186_s25 + $0xf4] sm:$0xf] %vm1537_vm2, %v1867_v43 }
 0x18c   : > { %1600 = vst.msk [vmem:[%s2186_s25 + $0xf8] sm:$0xf] %vm1537_vm2, %v1868_v44  ;;  %1601 = vst.msk [vmem:[%s2186_s25 + $0xfc] sm:$0xf] %vm1537_vm2, %v1869_v42 }
 0x18d PF: > { %s13_s16 = sadd.s32 1, %s2126_s16   ;;  %s2652_s12 = smov %s2118_s14 }
 0x18e   : > { %p10_p9 = scmp.ge.s32.totalorder %s13_s16, 10   ;;  %s2653_s13 = smov %s2122_s15 }
 0x18f   : > { %s2654_s14 = smov %s2657_s17  ;;  %s2655_s15 = smov %s2661_s18 }
 0x190   :  { %12 = sbr.rel (!%p10_p9) target bundleno = 3 (0x3), region = 74 }

// kernel: baseline_net_forward.5
= control target key start
LH: loop header
LB: loop body
LE: loop exit
PB: predicated region body
PF: predicated region fallthrough
CT: control target
= control target key end

     0   :  { %s5162_s12 = smov 0   ;;  %s5164_s13 = smov 0   ;;  %s6543_s0 = inlined_call_operand.vmem [shape: bf16[2,12,8,8,800], index: 0, kind: input, shape index: {}]   ;;  %s6544_s1 = inlined_call_operand.vmem [shape: bf16[5,800,32], index: 1, kind: input, shape index: {}]   ;;  %s6545_s2 = inlined_call_operand.vmem [shape: f32[1,32], index: 2, kind: input, shape index: {}]   ;;  %s6546_s3 = inlined_call_operand.vmem [shape: bf16[2,512,32], index: 3, kind: output, shape index: {}]  }
   0x1   :  { %s5166_s14 = smov 0   ;;  %s5168_s15 = smov 0  }
   0x2   :  { %s5170_s16 = smov 0  }
   0x3 LB: > { %s22_s17 = sadd.s32 1, %s5130_s14  ;;  %s25_s18 = sadd.s32 1, %s5134_s15  ;;  %s5138_s16 = sphi %s5170_s16, %s13_s16   ;;  %s5134_s15 = sphi %s5168_s15, %s6618_s15   ;;  %s5130_s14 = sphi %s5166_s14, %s6617_s14   ;;  %s5126_s13 = sphi %s5164_s13, %s6616_s13   ;;  %s5122_s12 = sphi %s5162_s12, %s6615_s12  }
   0x4   : > { %p23_p0 = scmp.ge.s32.totalorder %s22_s17, 5  ;;  %p4105_p1 = scmp.ge.s32.totalorder %s5138_s16, 1 }
   0x5   : > { %p159_p2 = scmp.lt.s32.totalorder %s5138_s16, 11 }
   0x6   : > { %s6620_s17 = smov (%p23_p0, %s22_s17), 0  ;;  %s6622_s18 = smov (!%p23_p0, %s25_s18), %s5134_s15 }
   0x7   : > { %p160_p3 = pnand %p4105_p1, %p159_p2  ;;  %p27_p4 = scmp.ge.s32.totalorder %s6622_s18, 2 }
   0x9   : > { %s6624_s18 = smov (%p27_p4, %s6622_s18), 0  ;;  %163 = sbr.rel (%p160_p3) target bundleno = 821 (0x335), region = 32 }
   0xe   : > { %p188_p5 = scmp.lt.s32.totalorder %s5126_s13, 1  ;;  %p193_p6 = scmp.lt.s32.totalorder %s5122_s12, 4 }
   0xf   : > { %p4110_p7 = scmp.ne.s32.totalorder %s5122_s12, 0 }
  0x10   : > { %s6626_s13 = smov (!%p188_p5, %s5126_s13), 1 }
  0x11   : > { %s194_s19 = scalar_select %p193_p6, %s5122_s12, 4 }
  0x12   : > { %s4686_s20 = smul.u32 2688, %s6626_s13  ;;  %s4486_s21 = sshll.u32 %s6626_s13, 8 }
  0x13   : > { %s4687_s22 = smul.u32 400, %s194_s19  ;;  %s5199_s25 = scalar_lea.vmem %s6546_s3, %s4486_s21 }
  0x14   : > { %s5204_s28 = scalar_lea.vmem %s6543_s0, %s4686_s20  ;;  %207 = sbr.rel (%p4110_p7) target bundleno = 58 (0x3a), region = 36 }
  0x15   : > { %s5209_s4 = scalar_lea.vmem %s6544_s1, %s4687_s22 }
  0x19   : > { %vm208_vm0 = vcmask 261120   ;;  %v5140_v0 = vmov 0.0  }
  0x1a   : > { %209 = vst.msk [vmem:[#allocation2] sm:$0xff] %vm208_vm0, %v5140_v0  ;;  %210 = vst.msk [vmem:[#allocation2 + $0x8] sm:$0xff] %vm208_vm0, %v5140_v0 }
  0x1b   : > { %211 = vst.msk [vmem:[#allocation2 + $0x10] sm:$0xff] %vm208_vm0, %v5140_v0  ;;  %212 = vst.msk [vmem:[#allocation2 + $0x18] sm:$0xff] %vm208_vm0, %v5140_v0 }
  0x1c   : > { %213 = vst.msk [vmem:[#allocation2 + $0x20] sm:$0xff] %vm208_vm0, %v5140_v0  ;;  %214 = vst.msk [vmem:[#allocation2 + $0x28] sm:$0xff] %vm208_vm0, %v5140_v0 }
  0x1d   : > { %215 = vst.msk [vmem:[#allocation2 + $0x30] sm:$0xff] %vm208_vm0, %v5140_v0  ;;  %216 = vst.msk [vmem:[#allocation2 + $0x38] sm:$0xff] %vm208_vm0, %v5140_v0 }
  0x1e   : > { %217 = vst.msk [vmem:[#allocation2 + $0x40] sm:$0xff] %vm208_vm0, %v5140_v0  ;;  %218 = vst.msk [vmem:[#allocation2 + $0x48] sm:$0xff] %vm208_vm0, %v5140_v0 }
  0x1f   : > { %219 = vst.msk [vmem:[#allocation2 + $0x50] sm:$0xff] %vm208_vm0, %v5140_v0  ;;  %220 = vst.msk [vmem:[#allocation2 + $0x58] sm:$0xff] %vm208_vm0, %v5140_v0 }
  0x20   : > { %221 = vst.msk [vmem:[#allocation2 + $0x60] sm:$0xff] %vm208_vm0, %v5140_v0  ;;  %222 = vst.msk [vmem:[#allocation2 + $0x68] sm:$0xff] %vm208_vm0, %v5140_v0 }
  0x21   : > { %223 = vst.msk [vmem:[#allocation2 + $0x70] sm:$0xff] %vm208_vm0, %v5140_v0  ;;  %224 = vst.msk [vmem:[#allocation2 + $0x78] sm:$0xff] %vm208_vm0, %v5140_v0 }
  0x22   : > { %225 = vst.msk [vmem:[#allocation2 + $0x80] sm:$0xff] %vm208_vm0, %v5140_v0  ;;  %226 = vst.msk [vmem:[#allocation2 + $0x88] sm:$0xff] %vm208_vm0, %v5140_v0 }
  0x23   : > { %227 = vst.msk [vmem:[#allocation2 + $0x90] sm:$0xff] %vm208_vm0, %v5140_v0  ;;  %228 = vst.msk [vmem:[#allocation2 + $0x98] sm:$0xff] %vm208_vm0, %v5140_v0 }
  0x24   : > { %229 = vst.msk [vmem:[#allocation2 + $0xa0] sm:$0xff] %vm208_vm0, %v5140_v0  ;;  %230 = vst.msk [vmem:[#allocation2 + $0xa8] sm:$0xff] %vm208_vm0, %v5140_v0 }
  0x25   : > { %231 = vst.msk [vmem:[#allocation2 + $0xb0] sm:$0xff] %vm208_vm0, %v5140_v0  ;;  %232 = vst.msk [vmem:[#allocation2 + $0xb8] sm:$0xff] %vm208_vm0, %v5140_v0 }
  0x26   : > { %233 = vst.msk [vmem:[#allocation2 + $0xc0] sm:$0xff] %vm208_vm0, %v5140_v0  ;;  %234 = vst.msk [vmem:[#allocation2 + $0xc8] sm:$0xff] %vm208_vm0, %v5140_v0 }
  0x27   : > { %235 = vst.msk [vmem:[#allocation2 + $0xd0] sm:$0xff] %vm208_vm0, %v5140_v0  ;;  %236 = vst.msk [vmem:[#allocation2 + $0xd8] sm:$0xff] %vm208_vm0, %v5140_v0 }
  0x28   : > { %237 = vst.msk [vmem:[#allocation2 + $0xe0] sm:$0xff] %vm208_vm0, %v5140_v0  ;;  %238 = vst.msk [vmem:[#allocation2 + $0xe8] sm:$0xff] %vm208_vm0, %v5140_v0 }
  0x29   : > { %239 = vst.msk [vmem:[#allocation2 + $0xf0] sm:$0xff] %vm208_vm0, %v5140_v0  ;;  %240 = vst.msk [vmem:[#allocation2 + $0xf8] sm:$0xff] %vm208_vm0, %v5140_v0 }
  0x2a   : > { %241 = vst.msk [vmem:[#allocation2 + $0x100] sm:$0xff] %vm208_vm0, %v5140_v0  ;;  %242 = vst.msk [vmem:[#allocation2 + $0x108] sm:$0xff] %vm208_vm0, %v5140_v0 }
  0x2b   : > { %243 = vst.msk [vmem:[#allocation2 + $0x110] sm:$0xff] %vm208_vm0, %v5140_v0  ;;  %244 = vst.msk [vmem:[#allocation2 + $0x118] sm:$0xff] %vm208_vm0, %v5140_v0 }
  0x2c   : > { %245 = vst.msk [vmem:[#allocation2 + $0x120] sm:$0xff] %vm208_vm0, %v5140_v0  ;;  %246 = vst.msk [vmem:[#allocation2 + $0x128] sm:$0xff] %vm208_vm0, %v5140_v0 }
  0x2d   : > { %247 = vst.msk [vmem:[#allocation2 + $0x130] sm:$0xff] %vm208_vm0, %v5140_v0  ;;  %248 = vst.msk [vmem:[#allocation2 + $0x138] sm:$0xff] %vm208_vm0, %v5140_v0 }
  0x2e   : > { %249 = vst.msk [vmem:[#allocation2 + $0x140] sm:$0xff] %vm208_vm0, %v5140_v0  ;;  %250 = vst.msk [vmem:[#allocation2 + $0x148] sm:$0xff] %vm208_vm0, %v5140_v0 }
  0x2f   : > { %251 = vst.msk [vmem:[#allocation2 + $0x150] sm:$0xff] %vm208_vm0, %v5140_v0  ;;  %252 = vst.msk [vmem:[#allocation2 + $0x158] sm:$0xff] %vm208_vm0, %v5140_v0 }
  0x30   : > { %253 = vst.msk [vmem:[#allocation2 + $0x160] sm:$0xff] %vm208_vm0, %v5140_v0  ;;  %254 = vst.msk [vmem:[#allocation2 + $0x168] sm:$0xff] %vm208_vm0, %v5140_v0 }
  0x31   : > { %255 = vst.msk [vmem:[#allocation2 + $0x170] sm:$0xff] %vm208_vm0, %v5140_v0  ;;  %256 = vst.msk [vmem:[#allocation2 + $0x178] sm:$0xff] %vm208_vm0, %v5140_v0 }
  0x32   : > { %257 = vst.msk [vmem:[#allocation2 + $0x180] sm:$0xff] %vm208_vm0, %v5140_v0  ;;  %258 = vst.msk [vmem:[#allocation2 + $0x188] sm:$0xff] %vm208_vm0, %v5140_v0 }
  0x33   : > { %259 = vst.msk [vmem:[#allocation2 + $0x190] sm:$0xff] %vm208_vm0, %v5140_v0  ;;  %260 = vst.msk [vmem:[#allocation2 + $0x198] sm:$0xff] %vm208_vm0, %v5140_v0 }
  0x34   : > { %261 = vst.msk [vmem:[#allocation2 + $0x1a0] sm:$0xff] %vm208_vm0, %v5140_v0  ;;  %262 = vst.msk [vmem:[#allocation2 + $0x1a8] sm:$0xff] %vm208_vm0, %v5140_v0 }
  0x35   : > { %263 = vst.msk [vmem:[#allocation2 + $0x1b0] sm:$0xff] %vm208_vm0, %v5140_v0  ;;  %264 = vst.msk [vmem:[#allocation2 + $0x1b8] sm:$0xff] %vm208_vm0, %v5140_v0 }
  0x36   : > { %265 = vst.msk [vmem:[#allocation2 + $0x1c0] sm:$0xff] %vm208_vm0, %v5140_v0  ;;  %266 = vst.msk [vmem:[#allocation2 + $0x1c8] sm:$0xff] %vm208_vm0, %v5140_v0 }
  0x37   : > { %267 = vst.msk [vmem:[#allocation2 + $0x1d0] sm:$0xff] %vm208_vm0, %v5140_v0  ;;  %268 = vst.msk [vmem:[#allocation2 + $0x1d8] sm:$0xff] %vm208_vm0, %v5140_v0 }
  0x38   : > { %269 = vst.msk [vmem:[#allocation2 + $0x1e0] sm:$0xff] %vm208_vm0, %v5140_v0  ;;  %270 = vst.msk [vmem:[#allocation2 + $0x1e8] sm:$0xff] %vm208_vm0, %v5140_v0 }
  0x39   : > { %271 = vst.msk [vmem:[#allocation2 + $0x1f0] sm:$0xff] %vm208_vm0, %v5140_v0  ;;  %272 = vst.msk [vmem:[#allocation2 + $0x1f8] sm:$0xff] %vm208_vm0, %v5140_v0 }
  0x3a PF: > { %v4730_v1 = vld [vmem:[%s5209_s4 + $0x38] sm:$0xff]   ;;  %v5141_v2 = vmov 0   ;;  %v4731_v3 = vld [vmem:[%s5209_s4 + $0x30] sm:$0xff]   ;;  %v4732_v4 = vld [vmem:[%s5209_s4 + $0x28] sm:$0xff]   ;;  %s4487_s5 = smul.u32 224, %s5122_s12  ;;  %vm2116_vm1 = vcmask 261120  }
  0x3b   : > { %2213 = vmatprep.subr.bf16.mxu0 %v5141_v2  ;;  %4654 = vmatprep.subr.bf16.mxu1 %v5141_v2  ;;  %v4733_v5 = vld [vmem:[%s5209_s4 + $0x20] sm:$0xff]   ;;  %v4734_v6 = vld [vmem:[%s5209_s4 + $0x18] sm:$0xff]   ;;  %v4735_v8 = vld [vmem:[%s5209_s4 + $0x10] sm:$0xff]   ;;  %p4418_p8 = scmp.ne.s32.totalorder %s5122_s12, 4 }
  0x3c   : > { %2214 = vmatpush1.bf16.msra.mxu0 %v4730_v1  ;;  %4670 = vmatpush1.bf16.msra.mxu1 %v4730_v1  ;;  %s5355_s6 = scalar_lea.vmem %s5204_s28, %s4487_s5  ;;  %v4736_v10 = vld [vmem:[%s5209_s4 + $0x8] sm:$0xff]   ;;  %v4737_v11 = vld [vmem:[%s5209_s4] sm:$0xff]   ;;  %v4738_v12 = vld [vmem:[%s5209_s4 + $0x78] sm:$0xff]  }
  0x3d   : > { %2215 = vmatprep.subr.bf16.mxu0 %v5141_v2  ;;  %4655 = vmatprep.subr.bf16.mxu1 %v5141_v2  ;;  %v4748_v7 = vld [vmem:[%s5355_s6 + $0x4] ss:$28 sps:$4 sm:$0xff]   ;;  %v4739_v13 = vld [vmem:[%s5209_s4 + $0x70] sm:$0xff]   ;;  %v4740_v14 = vld [vmem:[%s5209_s4 + $0x68] sm:$0xff]  }
  0x3e   : > { %v4751_v9 = vld [vmem:[%s5355_s6 + $0x544] ss:$28 sps:$4 sm:$0xff]   ;;  %2245 = vmatprep.mubr.bf16.mxu0 %v4748_v7  ;;  %v4742_v16 = vld [vmem:[%s5209_s4 + $0x58] sm:$0xff]   ;;  %v4743_v17 = vld [vmem:[%s5209_s4 + $0x50] sm:$0xff]  }
  0x3f   : > { %2437 = vmatprep.mubr.bf16.mxu1 %v4751_v9  ;;  %v4741_v15 = vld [vmem:[%s5209_s4 + $0x60] sm:$0xff]   ;;  %v4744_v18 = vld [vmem:[%s5209_s4 + $0x48] sm:$0xff]   ;;  %v4752_v22 = vld [vmem:[%s5209_s4 + $0xb8] sm:$0xff]  }
  0x40   : > { %2216 = vmatpush1.bf16.msra.mxu0 %v4731_v3  ;;  %4671 = vmatpush1.bf16.msra.mxu1 %v4731_v3  ;;  %v4745_v19 = vld [vmem:[%s5209_s4 + $0x40] sm:$0xff]   ;;  %v4753_v23 = vld [vmem:[%s5209_s4 + $0x138] sm:$0xff]   ;;  %v4754_v26 = vld [vmem:[%s5209_s4 + $0xb0] sm:$0xff]  }
  0x41   : > { %2217 = vmatprep.subr.bf16.mxu0 %v5141_v2  ;;  %4656 = vmatprep.subr.bf16.mxu1 %v5141_v2  ;;  %v4746_v20 = vld [vmem:[%s5355_s6] ss:$28 sps:$4 sm:$0xff]   ;;  %v4763_v27 = vld [vmem:[%s5209_s4 + $0x130] sm:$0xff]   ;;  %v4761_v30 = vld [vmem:[%s5209_s4 + $0xa8] sm:$0xff]  }
  0x42   : > { %v4749_v21 = vld [vmem:[%s5355_s6 + $0x540] ss:$28 sps:$4 sm:$0xff]   ;;  %v4759_v28 = vld [vmem:[%s5355_s6 + $0x38] ss:$28 sps:$4 sm:$0xff]   ;;  %v4779_v33 = vld [vmem:[%s5209_s4 + $0x128] sm:$0xff]  }
  0x43   : > { %v4755_v24 = vld [vmem:[%s5355_s6 + $0x3c] ss:$28 sps:$4 sm:$0xff]   ;;  %v4764_v31 = vld [vmem:[%s5355_s6 + $0x74] ss:$28 sps:$4 sm:$0xff]   ;;  %v4762_v34 = vld [vmem:[%s5209_s4 + $0xa0] sm:$0xff]  }
  0x44   : > { %2218 = vmatpush1.bf16.msra.mxu0 %v4732_v4  ;;  %4672 = vmatpush1.bf16.msra.mxu1 %v4732_v4  ;;  %v4757_v25 = vld [vmem:[%s5355_s6 + $0x57c] ss:$28 sps:$4 sm:$0xff]   ;;  %v4766_v32 = vld [vmem:[%s5355_s6 + $0x5b4] ss:$28 sps:$4 sm:$0xff]   ;;  %v4789_v36 = vld [vmem:[%s5209_s4 + $0x120] sm:$0xff]  }
  0x45   : > { %2219 = vmatprep.subr.bf16.mxu0 %v5141_v2  ;;  %4657 = vmatprep.subr.bf16.mxu1 %v5141_v2  ;;  %v4760_v29 = vld [vmem:[%s5355_s6 + $0x578] ss:$28 sps:$4 sm:$0xff]   ;;  %v4768_v35 = vld [vmem:[%s5355_s6 + $0x70] ss:$28 sps:$4 sm:$0xff]   ;;  %v4776_v43 = vld [vmem:[%s5355_s6 + $0xa8] ss:$28 sps:$4 sm:$0xff]  }
  0x46   : > { %v4769_v37 = vld [vmem:[%s5355_s6 + $0x5b0] ss:$28 sps:$4 sm:$0xff]   ;;  %v4770_v38 = vld [vmem:[%s5209_s4 + $0x98] sm:$0xff]   ;;  %v4777_v44 = vld [vmem:[%s5355_s6 + $0x5e8] ss:$28 sps:$4 sm:$0xff]  }
  0x47   : > { %v4772_v39 = vld [vmem:[%s5355_s6 + $0xac] ss:$28 sps:$4 sm:$0xff]   ;;  %v4805_v41 = vld [vmem:[%s5209_s4 + $0x118] sm:$0xff]   ;;  %v4771_v42 = vld [vmem:[%s5209_s4 + $0x90] sm:$0xff]  }
  0x48   : > { %2220 = vmatpush1.bf16.msra.mxu0 %v4733_v5  ;;  %4673 = vmatpush1.bf16.msra.mxu1 %v4733_v5  ;;  %v4774_v40 = vld [vmem:[%s5355_s6 + $0x5ec] ss:$28 sps:$4 sm:$0xff]   ;;  %v4781_v46 = vld [vmem:[%s5355_s6 + $0xe4] ss:$28 sps:$4 sm:$0xff]   ;;  %v4815_v48 = vld [vmem:[%s5209_s4 + $0x110] sm:$0xff]  }
  0x49   : > { %2221 = vmatprep.subr.bf16.mxu0 %v5141_v2  ;;  %4658 = vmatprep.subr.bf16.mxu1 %v5141_v2  ;;  %v4778_v45 = vld [vmem:[%s5209_s4 + $0x88] sm:$0xff]   ;;  %v4783_v47 = vld [vmem:[%s5355_s6 + $0x624] ss:$28 sps:$4 sm:$0xff]   ;;  %v4787_v53 = vld [vmem:[%s5209_s4 + $0xf8] sm:$0xff]  }
  0x4a   : > { %v4780_v49 = vld [vmem:[%s5209_s4 + $0x80] sm:$0xff]   ;;  %v4829_v52 = vld [vmem:[%s5209_s4 + $0x108] sm:$0xff]   ;;  %v4790_v54 = vld [vmem:[%s5355_s6 + $0x11c] ss:$28 sps:$4 sm:$0xff]  }
  0x4b   : > { %v4785_v50 = vld [vmem:[%s5355_s6 + $0xe0] ss:$28 sps:$4 sm:$0xff]   ;;  %v4788_v57 = vld [vmem:[%s5209_s4 + $0xf0] sm:$0xff]   ;;  %v4796_v60 = vld [vmem:[%s5209_s4 + $0xe8] sm:$0xff]  }
  0x4c   : > { %2222 = vmatpush1.bf16.msra.mxu0 %v4734_v6  ;;  %4674 = vmatpush1.bf16.msra.mxu1 %v4734_v6  ;;  %v4786_v51 = vld [vmem:[%s5355_s6 + $0x620] ss:$28 sps:$4 sm:$0xff]   ;;  %v4794_v58 = vld [vmem:[%s5355_s6 + $0x118] ss:$28 sps:$4 sm:$0xff]   ;;  %v4802_v1 = vld [vmem:[%s5355_s6 + $0x150] ss:$28 sps:$4 sm:$0xff]  }
  0x4d   : > { %2223 = vmatprep.subr.bf16.mxu0 %v5141_v2  ;;  %4659 = vmatprep.subr.bf16.mxu1 %v5141_v2  ;;  %v4792_v55 = vld [vmem:[%s5355_s6 + $0x65c] ss:$28 sps:$4 sm:$0xff]   ;;  %v4836_v56 = vld [vmem:[%s5209_s4 + $0x100] sm:$0xff]   ;;  %v4798_v61 = vld [vmem:[%s5355_s6 + $0x154] ss:$28 sps:$4 sm:$0xff]  }
  0x4e   : > { %v4795_v59 = vld [vmem:[%s5355_s6 + $0x658] ss:$28 sps:$4 sm:$0xff]   ;;  %v4797_v0 = vld [vmem:[%s5209_s4 + $0xe0] sm:$0xff]   ;;  %v4803_v3 = vld [vmem:[%s5355_s6 + $0x690] ss:$28 sps:$4 sm:$0xff]  }
  0x4f   : > { %v4800_v62 = vld [vmem:[%s5355_s6 + $0x694] ss:$28 sps:$4 sm:$0xff]   ;;  %v4849_v63 = vld [vmem:[%s5209_s4 + $0x178] sm:$0xff]   ;;  %v4807_v5 = vld [vmem:[%s5355_s6 + $0x18c] ss:$28 sps:$4 sm:$0xff]  }
  0x50   : > { %2224 = vmatpush1.bf16.msra.mxu0 %v4735_v8  ;;  %4675 = vmatpush1.bf16.msra.mxu1 %v4735_v8  ;;  %v4804_v4 = vld [vmem:[%s5209_s4 + $0xd8] sm:$0xff]   ;;  %v4856_v6 = vld [vmem:[%s5209_s4 + $0x170] sm:$0xff]   ;;  %v4809_v7 = vld [vmem:[%s5355_s6 + $0x6cc] ss:$28 sps:$4 sm:$0xff]  }
  0x51   : > { %2225 = vmatprep.subr.bf16.mxu0 %v5141_v2  ;;  %4660 = vmatprep.subr.bf16.mxu1 %v5141_v2  ;;  %v4869_v8 = vld [vmem:[%s5209_s4 + $0x168] sm:$0xff]   ;;  %v4806_v9 = vld [vmem:[%s5209_s4 + $0xd0] sm:$0xff]  }
  0x54   : > { %2226 = vmatpush1.bf16.msra.mxu0 %v4736_v10  ;;  %4676 = vmatpush1.bf16.msra.mxu1 %v4736_v10  ;;  %v4811_v10 = vld [vmem:[%s5355_s6 + $0x188] ss:$28 sps:$4 sm:$0xff]  }
  0x55   : > { %2227 = vmatprep.subr.bf16.mxu0 %v5141_v2  ;;  %4661 = vmatprep.subr.bf16.mxu1 %v5141_v2 }
  0x58   : > { %2228 = vmatpush1.bf16.msra.mxu0 %v4737_v11  ;;  %4677 = vmatpush1.bf16.msra.mxu1 %v4737_v11  ;;  %v4812_v11 = vld [vmem:[%s5355_s6 + $0x6c8] ss:$28 sps:$4 sm:$0xff]  }
  0x59   : > { %2229 = vmatprep.subr.bf16.mxu0 %v5141_v2  ;;  %4662 = vmatprep.subr.bf16.mxu1 %v5141_v2 }
  0x5c   : > { %2230 = vmatpush2.bf16.msra.mxu0 %v4738_v12  ;;  %4678 = vmatpush2.bf16.msra.mxu1 %v4738_v12  ;;  %v4813_v12 = vld [vmem:[%s5209_s4 + $0xc8] sm:$0xff]  }
  0x5d   : > { %2231 = vmatprep.subr.bf16.mxu0 %v5141_v2  ;;  %4663 = vmatprep.subr.bf16.mxu1 %v5141_v2 }
  0x60   : > { %2232 = vmatpush2.bf16.msra.mxu0 %v4739_v13  ;;  %4679 = vmatpush2.bf16.msra.mxu1 %v4739_v13  ;;  %v4816_v13 = vld [vmem:[%s5355_s6 + $0x1c4] ss:$28 sps:$4 sm:$0xff]  }
  0x61   : > { %2233 = vmatprep.subr.bf16.mxu0 %v5141_v2  ;;  %4664 = vmatprep.subr.bf16.mxu1 %v5141_v2 }
  0x64   : > { %2234 = vmatpush2.bf16.msra.mxu0 %v4740_v14  ;;  %4680 = vmatpush2.bf16.msra.mxu1 %v4740_v14  ;;  %v4820_v14 = vld [vmem:[%s5355_s6 + $0xc] ss:$28 sps:$4 sm:$0xff]  }
  0x65   : > { %2235 = vmatprep.subr.bf16.mxu0 %v5141_v2  ;;  %4665 = vmatprep.subr.bf16.mxu1 %v5141_v2 }
  0x68   : > { %2236 = vmatpush2.bf16.msra.mxu0 %v4741_v15  ;;  %4681 = vmatpush2.bf16.msra.mxu1 %v4741_v15  ;;  %v4876_v15 = vld [vmem:[%s5209_s4 + $0x160] sm:$0xff]  }
  0x69   : > { %2237 = vmatprep.subr.bf16.mxu0 %v5141_v2  ;;  %4666 = vmatprep.subr.bf16.mxu1 %v5141_v2 }
  0x6c   : > { %2238 = vmatpush2.bf16.msra.mxu0 %v4742_v16  ;;  %4682 = vmatpush2.bf16.msra.mxu1 %v4742_v16  ;;  %v4814_v16 = vld [vmem:[%s5209_s4 + $0xc0] sm:$0xff]  }
  0x6d   : > { %2239 = vmatprep.subr.bf16.mxu0 %v5141_v2  ;;  %4667 = vmatprep.subr.bf16.mxu1 %v5141_v2 }
  0x70   : > { %2240 = vmatpush2.bf16.msra.mxu0 %v4743_v17  ;;  %4683 = vmatpush2.bf16.msra.mxu1 %v4743_v17  ;;  %v4822_v17 = vld [vmem:[%s5209_s4 + $0x188] sm:$0xff]  }
  0x71   : > { %2241 = vmatprep.subr.bf16.mxu0 %v5141_v2  ;;  %4668 = vmatprep.subr.bf16.mxu1 %v5141_v2 }
  0x74   : > { %2242 = vmatpush2.bf16.msra.mxu0 %v4744_v18  ;;  %4684 = vmatpush2.bf16.msra.mxu1 %v4744_v18  ;;  %v4889_v18 = vld [vmem:[%s5209_s4 + $0x158] sm:$0xff]  }
  0x75   : > { %2243 = vmatprep.subr.bf16.mxu0 %v5141_v2  ;;  %4669 = vmatprep.subr.bf16.mxu1 %v5141_v2 }
  0x78   : > { %2244 = vmatpush2.bf16.msra.mxu0 %v4745_v19  ;;  %4685 = vmatpush2.bf16.msra.mxu1 %v4745_v19  ;;  %v4818_v19 = vld [vmem:[%s5355_s6 + $0x8] ss:$28 sps:$4 sm:$0xff]  }
  0x79   : > { %2502 = vmatprep.subr.bf16.mxu1 %v5141_v2  ;;  %2791 = vmatprep.subr.bf16.mxu0 %v5141_v2 }
  0x7b   : > { %2246 = vmatmul.mubr.bf16.vlgmr.msra.gmra.mxu0 %v4746_v20  ;;  %2438 = vmatmul.mubr.bf16.vlgmr.msra.gmra.mxu1 %v4749_v21  ;;  %v4821_v20 = vld [vmem:[%s5355_s6 + $0x1c0] ss:$28 sps:$4 sm:$0xff]  }
  0x7c   : > { %2503 = vmatpush1.bf16.msra.mxu1 %v4752_v22  ;;  %2792 = vmatpush1.bf16.msra.mxu0 %v4753_v23  ;;  %v4823_v21 = vld [vmem:[%s5355_s6 + $0x1fc] ss:$28 sps:$4 sm:$0xff]   ;;  %v4825_v22 = vld [vmem:[%s5355_s6 + $0x44] ss:$28 sps:$4 sm:$0xff]   ;;  %v4896_v23 = vld [vmem:[%s5209_s4 + $0x150] sm:$0xff]  }
  0x7d   : > { %2504 = vmatprep.subr.bf16.mxu1 %v5141_v2  ;;  %2253 = vmatprep.mubr.bf16.mxu0 %v4755_v24  ;;  %v4929_v24 = vld [vmem:[%s5209_s4 + $0x180] sm:$0xff]  }
  0x7e   : > { %2445 = vmatprep.mubr.bf16.mxu1 %v4757_v25  ;;  %2793 = vmatprep.subr.bf16.mxu0 %v5141_v2  ;;  %v4909_v25 = vld [vmem:[%s5209_s4 + $0x148] sm:$0xff]  }
  0x80   : > { %2505 = vmatpush1.bf16.msra.mxu1 %v4754_v26  ;;  %2794 = vmatpush1.bf16.msra.mxu0 %v4763_v27  ;;  %v4827_v26 = vld [vmem:[%s5355_s6 + $0x1f8] ss:$28 sps:$4 sm:$0xff]   ;;  %v4828_v27 = vld [vmem:[%s5355_s6 + $0x40] ss:$28 sps:$4 sm:$0xff]  }
  0x81   : > { %2506 = vmatprep.subr.bf16.mxu1 %v5141_v2  ;;  %2795 = vmatprep.subr.bf16.mxu0 %v5141_v2 }
  0x83   : > { %2254 = vmatmul.mubr.bf16.gmra.mxu0 %v4759_v28  ;;  %2446 = vmatmul.mubr.bf16.gmra.mxu1 %v4760_v29  ;;  %v4830_v28 = vld [vmem:[%s5355_s6 + $0x234] ss:$28 sps:$4 sm:$0xff]   ;;  %v4832_v29 = vld [vmem:[%s5355_s6 + $0x7c] ss:$28 sps:$4 sm:$0xff]  }
  0x84   : > { %2507 = vmatpush1.bf16.msra.mxu1 %v4761_v30  ;;  %2261 = vmatprep.mubr.bf16.mxu0 %v4764_v31  ;;  %v4916_v30 = vld [vmem:[%s5209_s4 + $0x140] sm:$0xff]   ;;  %v4834_v31 = vld [vmem:[%s5355_s6 + $0x230] ss:$28 sps:$4 sm:$0xff]  }
  0x85   : > { %2508 = vmatprep.subr.bf16.mxu1 %v5141_v2  ;;  %2453 = vmatprep.mubr.bf16.mxu1 %v4766_v32  ;;  %v4835_v32 = vld [vmem:[%s5355_s6 + $0x78] ss:$28 sps:$4 sm:$0xff]  }
  0x86   : > { %2796 = vmatpush1.bf16.msra.mxu0 %v4779_v33  ;;  %v4837_v33 = vld [vmem:[%s5355_s6 + $0x26c] ss:$28 sps:$4 sm:$0xff]  }
  0x87   : > { %2797 = vmatprep.subr.bf16.mxu0 %v5141_v2 }
  0x88   : > { %2509 = vmatpush1.bf16.msra.mxu1 %v4762_v34  ;;  %v4839_v34 = vld [vmem:[%s5355_s6 + $0xb4] ss:$28 sps:$4 sm:$0xff]  }
  0x89   : > { %2510 = vmatprep.subr.bf16.mxu1 %v5141_v2 }
  0x8a   : > { %2798 = vmatpush1.bf16.msra.mxu0 %v4789_v36  ;;  %v4842_v36 = vld [vmem:[%s5355_s6 + $0xb0] ss:$28 sps:$4 sm:$0xff]  }
  0x8b   : > { %2262 = vmatmul.mubr.bf16.gmra.mxu0 %v4768_v35  ;;  %2454 = vmatmul.mubr.bf16.gmra.mxu1 %v4769_v37  ;;  %v4841_v35 = vld [vmem:[%s5355_s6 + $0x268] ss:$28 sps:$4 sm:$0xff]  }
  0x8c   : > { %2511 = vmatpush1.bf16.msra.mxu1 %v4770_v38  ;;  %2269 = vmatprep.mubr.bf16.mxu0 %v4772_v39  ;;  %v4843_v37 = vld [vmem:[%s5355_s6 + $0x2a4] ss:$28 sps:$4 sm:$0xff]   ;;  %v4845_v38 = vld [vmem:[%s5355_s6 + $0xec] ss:$28 sps:$4 sm:$0xff]  }
  0x8d   : > { %2512 = vmatprep.subr.bf16.mxu1 %v5141_v2  ;;  %2461 = vmatprep.mubr.bf16.mxu1 %v4774_v40  ;;  %v4848_v39 = vld [vmem:[%s5355_s6 + $0xe8] ss:$28 sps:$4 sm:$0xff]   ;;  %v4850_v40 = vld [vmem:[%s5355_s6 + $0x2dc] ss:$28 sps:$4 sm:$0xff]  }
  0x8e   : > { %2799 = vmatprep.subr.bf16.mxu0 %v5141_v2 }
  0x8f   : > { %2800 = vmatpush1.bf16.msra.mxu0 %v4805_v41  ;;  %v4852_v41 = vld [vmem:[%s5355_s6 + $0x124] ss:$28 sps:$4 sm:$0xff]  }
  0x90   : > { %2513 = vmatpush1.bf16.msra.mxu1 %v4771_v42  ;;  %2801 = vmatprep.subr.bf16.mxu0 %v5141_v2  ;;  %v4854_v42 = vld [vmem:[%s5355_s6 + $0x2d8] ss:$28 sps:$4 sm:$0xff]  }
  0x91   : > { %2514 = vmatprep.subr.bf16.mxu1 %v5141_v2 }
  0x93   : > { %2270 = vmatmul.mubr.bf16.gmra.mxu0 %v4776_v43  ;;  %2462 = vmatmul.mubr.bf16.gmra.mxu1 %v4777_v44  ;;  %v4855_v43 = vld [vmem:[%s5355_s6 + $0x120] ss:$28 sps:$4 sm:$0xff]   ;;  %v4857_v44 = vld [vmem:[%s5355_s6 + $0x314] ss:$28 sps:$4 sm:$0xff]  }
  0x94   : > { %2515 = vmatpush1.bf16.msra.mxu1 %v4778_v45  ;;  %2277 = vmatprep.mubr.bf16.mxu0 %v4781_v46  ;;  %v4859_v45 = vld [vmem:[%s5355_s6 + $0x15c] ss:$28 sps:$4 sm:$0xff]   ;;  %v4861_v46 = vld [vmem:[%s5355_s6 + $0x310] ss:$28 sps:$4 sm:$0xff]  }
  0x95   : > { %2516 = vmatprep.subr.bf16.mxu1 %v5141_v2  ;;  %2469 = vmatprep.mubr.bf16.mxu1 %v4783_v47  ;;  %v4862_v47 = vld [vmem:[%s5355_s6 + $0x158] ss:$28 sps:$4 sm:$0xff]  }
  0x96   : > { %2802 = vmatpush1.bf16.msra.mxu0 %v4815_v48  ;;  %v4863_v48 = vld [vmem:[%s5355_s6 + $0x34c] ss:$28 sps:$4 sm:$0xff]  }
  0x97   : > { %2803 = vmatprep.subr.bf16.mxu0 %v5141_v2 }
  0x98   : > { %2517 = vmatpush1.bf16.msra.mxu1 %v4780_v49  ;;  %v4865_v49 = vld [vmem:[%s5355_s6 + $0x194] ss:$28 sps:$4 sm:$0xff]  }
  0x99   : > { %2518 = vmatprep.subr.bf16.mxu1 %v5141_v2 }
  0x9a   : > { %2804 = vmatpush1.bf16.msra.mxu0 %v4829_v52  ;;  %v4870_v52 = vld [vmem:[%s5355_s6 + $0x384] ss:$28 sps:$4 sm:$0xff]  }
  0x9b   : > { %2278 = vmatmul.mubr.bf16.gmra.mxu0 %v4785_v50  ;;  %2470 = vmatmul.mubr.bf16.gmra.mxu1 %v4786_v51  ;;  %v4867_v50 = vld [vmem:[%s5355_s6 + $0x348] ss:$28 sps:$4 sm:$0xff]   ;;  %v4868_v51 = vld [vmem:[%s5355_s6 + $0x190] ss:$28 sps:$4 sm:$0xff]  }
  0x9c   : > { %2519 = vmatpush2.bf16.msra.mxu1 %v4787_v53  ;;  %2285 = vmatprep.mubr.bf16.mxu0 %v4790_v54  ;;  %v4872_v53 = vld [vmem:[%s5355_s6 + $0x1cc] ss:$28 sps:$4 sm:$0xff]   ;;  %v4874_v54 = vld [vmem:[%s5355_s6 + $0x380] ss:$28 sps:$4 sm:$0xff]  }
  0x9d   : > { %2520 = vmatprep.subr.bf16.mxu1 %v5141_v2  ;;  %2477 = vmatprep.mubr.bf16.mxu1 %v4792_v55  ;;  %v4875_v55 = vld [vmem:[%s5355_s6 + $0x1c8] ss:$28 sps:$4 sm:$0xff]  }
  0x9e   : > { %2805 = vmatprep.subr.bf16.mxu0 %v5141_v2 }
  0x9f   : > { %2806 = vmatpush1.bf16.msra.mxu0 %v4836_v56  ;;  %v4877_v56 = vld [vmem:[%s5355_s6 + $0x3bc] ss:$28 sps:$4 sm:$0xff]  }
  0xa0   : > { %2521 = vmatpush2.bf16.msra.mxu1 %v4788_v57  ;;  %2807 = vmatprep.subr.bf16.mxu0 %v5141_v2  ;;  %v4879_v57 = vld [vmem:[%s5355_s6 + $0x204] ss:$28 sps:$4 sm:$0xff]  }
  0xa1   : > { %2522 = vmatprep.subr.bf16.mxu1 %v5141_v2 }
  0xa3   : > { %2286 = vmatmul.mubr.bf16.gmra.mxu0 %v4794_v58  ;;  %2478 = vmatmul.mubr.bf16.gmra.mxu1 %v4795_v59  ;;  %v4881_v58 = vld [vmem:[%s5355_s6 + $0x3b8] ss:$28 sps:$4 sm:$0xff]   ;;  %v4882_v59 = vld [vmem:[%s5355_s6 + $0x200] ss:$28 sps:$4 sm:$0xff]  }
  0xa4   : > { %2523 = vmatpush2.bf16.msra.mxu1 %v4796_v60  ;;  %2293 = vmatprep.mubr.bf16.mxu0 %v4798_v61  ;;  %v4883_v60 = vld [vmem:[%s5355_s6 + $0x3f4] ss:$28 sps:$4 sm:$0xff]   ;;  %v4885_v61 = vld [vmem:[%s5355_s6 + $0x23c] ss:$28 sps:$4 sm:$0xff]  }
  0xa5   : > { %2524 = vmatprep.subr.bf16.mxu1 %v5141_v2  ;;  %2485 = vmatprep.mubr.bf16.mxu1 %v4800_v62  ;;  %v4887_v62 = vld [vmem:[%s5355_s6 + $0x3f0] ss:$28 sps:$4 sm:$0xff]  }
  0xa6   : > { %2808 = vmatpush2.bf16.msra.mxu0 %v4849_v63  ;;  %v4888_v63 = vld [vmem:[%s5355_s6 + $0x238] ss:$28 sps:$4 sm:$0xff]  }
  0xa7   : > { %2809 = vmatprep.subr.bf16.mxu0 %v5141_v2 }
  0xa8   : > { %2525 = vmatpush2.bf16.msra.mxu1 %v4797_v0  ;;  %v4890_v0 = vld [vmem:[%s5355_s6 + $0x42c] ss:$28 sps:$4 sm:$0xff]  }
  0xa9   : > { %2526 = vmatprep.subr.bf16.mxu1 %v5141_v2 }
  0xaa   : > { %2810 = vmatpush2.bf16.msra.mxu0 %v4856_v6  ;;  %v4899_v6 = vld [vmem:[%s5355_s6 + $0x2ac] ss:$28 sps:$4 sm:$0xff]  }
  0xab   : > { %2294 = vmatmul.mubr.bf16.gmra.mxu0 %v4802_v1  ;;  %2486 = vmatmul.mubr.bf16.gmra.mxu1 %v4803_v3  ;;  %v4892_v1 = vld [vmem:[%s5355_s6 + $0x274] ss:$28 sps:$4 sm:$0xff]   ;;  %v4894_v3 = vld [vmem:[%s5355_s6 + $0x428] ss:$28 sps:$4 sm:$0xff]  }
  0xac   : > { %2527 = vmatpush2.bf16.msra.mxu1 %v4804_v4  ;;  %2301 = vmatprep.mubr.bf16.mxu0 %v4807_v5  ;;  %v4895_v4 = vld [vmem:[%s5355_s6 + $0x270] ss:$28 sps:$4 sm:$0xff]   ;;  %v4897_v5 = vld [vmem:[%s5355_s6 + $0x464] ss:$28 sps:$4 sm:$0xff]  }
  0xad   : > { %2528 = vmatprep.subr.bf16.mxu1 %v5141_v2  ;;  %2493 = vmatprep.mubr.bf16.mxu1 %v4809_v7  ;;  %v4901_v7 = vld [vmem:[%s5355_s6 + $0x460] ss:$28 sps:$4 sm:$0xff]  }
  0xae   : > { %2811 = vmatprep.subr.bf16.mxu0 %v5141_v2 }
  0xaf   : > { %2812 = vmatpush2.bf16.msra.mxu0 %v4869_v8  ;;  %v4902_v8 = vld [vmem:[%s5355_s6 + $0x2a8] ss:$28 sps:$4 sm:$0xff]  }
  0xb0   : > { %2529 = vmatpush2.bf16.msra.mxu1 %v4806_v9  ;;  %2813 = vmatprep.subr.bf16.mxu0 %v5141_v2  ;;  %v4903_v9 = vld [vmem:[%s5355_s6 + $0x49c] ss:$28 sps:$4 sm:$0xff]  }
  0xb1   : > { %2530 = vmatprep.subr.bf16.mxu1 %v5141_v2 }
  0xb3   : > { %2302 = vmatmul.mubr.bf16.gmra.mxu0 %v4811_v10  ;;  %2494 = vmatmul.mubr.bf16.gmra.mxu1 %v4812_v11  ;;  %v4905_v10 = vld [vmem:[%s5355_s6 + $0x2e4] ss:$28 sps:$4 sm:$0xff]   ;;  %v4907_v11 = vld [vmem:[%s5355_s6 + $0x498] ss:$28 sps:$4 sm:$0xff]  }
  0xb4   : > { %2531 = vmatpush2.bf16.msra.mxu1 %v4813_v12  ;;  %2309 = vmatprep.mubr.bf16.mxu0 %v4816_v13  ;;  %v4908_v12 = vld [vmem:[%s5355_s6 + $0x2e0] ss:$28 sps:$4 sm:$0xff]   ;;  %v4910_v13 = vld [vmem:[%s5355_s6 + $0x4d4] ss:$28 sps:$4 sm:$0xff]  }
  0xb5   : > { %2532 = vmatprep.subr.bf16.mxu1 %v5141_v2  ;;  %2534 = vmatprep.mubr.bf16.mxu1 %v4820_v14  ;;  %v4912_v14 = vld [vmem:[%s5355_s6 + $0x31c] ss:$28 sps:$4 sm:$0xff]  }
  0xb6   : > { %2814 = vmatpush2.bf16.msra.mxu0 %v4876_v15  ;;  %v4914_v15 = vld [vmem:[%s5355_s6 + $0x4d0] ss:$28 sps:$4 sm:$0xff]  }
  0xb7   : > { %2815 = vmatprep.subr.bf16.mxu0 %v5141_v2 }
  0xb8   : > { %2533 = vmatpush2.bf16.msra.mxu1 %v4814_v16  ;;  %v4915_v16 = vld [vmem:[%s5355_s6 + $0x318] ss:$28 sps:$4 sm:$0xff]  }
  0xb9   : > { %4586 = vmatprep.subr.bf16.mxu1 %v4822_v17 }
  0xba   : > { %2816 = vmatpush2.bf16.msra.mxu0 %v4889_v18  ;;  %v4919_v18 = vld [vmem:[%s5355_s6 + $0x354] ss:$28 sps:$4 sm:$0xff]  }
  0xbb   : > { %2310 = vmatmul.mubr.bf16.gmra.mxu0 %v4821_v20  ;;  %2535 = vmatmul.mubr.bf16.vlgmr.msra.gmra.mxu1 %v4818_v19  ;;  %v4921_v19 = vld [vmem:[%s5355_s6 + $0x508] ss:$28 sps:$4 sm:$0xff]   ;;  %v4922_v20 = vld [vmem:[%s5355_s6 + $0x350] ss:$28 sps:$4 sm:$0xff]  }
  0xbc   : > { %4587 = vmatpush3.bf16.msra.mxu1 %v4822_v17  ;;  %2317 = vmatprep.mubr.bf16.mxu0 %v4823_v21  ;;  %v4917_v17 = vld [vmem:[%s5355_s6 + $0x50c] ss:$28 sps:$4 sm:$0xff]  }
  0xbd   : > { %2542 = vmatprep.mubr.bf16.mxu1 %v4825_v22  ;;  %2817 = vmatprep.subr.bf16.mxu0 %v5141_v2  ;;  %v4923_v21 = vld [vmem:[%s5355_s6 + $0x38c] ss:$28 sps:$4 sm:$0xff]   ;;  %v4927_v22 = vld [vmem:[%s5355_s6 + $0x14] ss:$28 sps:$4 sm:$0xff]  }
  0xbe   : > { %2818 = vmatpush2.bf16.msra.mxu0 %v4896_v23  ;;  %4588 = vmatprep.subr.bf16.mxu1 %v4929_v24  ;;  %v4925_v23 = vld [vmem:[%s5355_s6 + $0x10] ss:$28 sps:$4 sm:$0xff]  }
  0xbf   : > { %2819 = vmatprep.subr.bf16.mxu0 %v5141_v2 }
  0xc0   : > { %4589 = vmatpush3.bf16.msra.mxu1 %v4929_v24  ;;  %v4928_v24 = vld [vmem:[%s5355_s6 + $0x388] ss:$28 sps:$4 sm:$0xff]  }
  0xc2   : > { %2820 = vmatpush2.bf16.msra.mxu0 %v4909_v25  ;;  %v4930_v25 = vld [vmem:[%s5355_s6 + $0x3c4] ss:$28 sps:$4 sm:$0xff]  }
  0xc3   : > { %2318 = vmatmul.mubr.bf16.gmra.mxu0 %v4827_v26  ;;  %2543 = vmatmul.mubr.bf16.gmra.mxu1 %v4828_v27  ;;  %v4932_v26 = vld [vmem:[%s5355_s6 + $0x4c] ss:$28 sps:$4 sm:$0xff]  }
  0xc4   : > { %2325 = vmatprep.mubr.bf16.mxu0 %v4830_v28  ;;  %2550 = vmatprep.mubr.bf16.mxu1 %v4832_v29 }
  0xc5   : > { %2821 = vmatprep.subr.bf16.mxu0 %v5141_v2  ;;  %v4847_v2 = vld [vmem:[%s5355_s6 + $0x2a0] ss:$28 sps:$4 sm:$0xff]  }
  0xc6   : > { %2822 = vmatpush2.bf16.msra.mxu0 %v4916_v30 }
  0xcb   : > { %2326 = vmatmul.mubr.bf16.gmra.mxu0 %v4834_v31  ;;  %2551 = vmatmul.mubr.bf16.gmra.mxu1 %v4835_v32 }
  0xcc   : > { %2333 = vmatprep.mubr.bf16.mxu0 %v4837_v33  ;;  %2558 = vmatprep.mubr.bf16.mxu1 %v4839_v34  ;;  %v4934_v33 = vld [vmem:[%s5355_s6 + $0x3c0] ss:$28 sps:$4 sm:$0xff]   ;;  %v4935_v34 = vld [vmem:[%s5355_s6 + $0x48] ss:$28 sps:$4 sm:$0xff]  }
  0xd3   : > { %2334 = vmatmul.mubr.bf16.gmra.mxu0 %v4841_v35  ;;  %2559 = vmatmul.mubr.bf16.gmra.mxu1 %v4842_v36  ;;  %v4936_v35 = vld [vmem:[%s5355_s6 + $0x3fc] ss:$28 sps:$4 sm:$0xff]   ;;  %v4938_v36 = vld [vmem:[%s5355_s6 + $0x84] ss:$28 sps:$4 sm:$0xff]  }
  0xd4   : > { %2341 = vmatprep.mubr.bf16.mxu0 %v4843_v37  ;;  %2566 = vmatprep.mubr.bf16.mxu1 %v4845_v38 }
  0xdb   : > { %2342 = vmatmul.mubr.bf16.gmra.mxu0 %v4847_v2  ;;  %2567 = vmatmul.mubr.bf16.gmra.mxu1 %v4848_v39 }
  0xdc   : > { %2349 = vmatprep.mubr.bf16.mxu0 %v4850_v40  ;;  %2574 = vmatprep.mubr.bf16.mxu1 %v4852_v41 }
  0xe3   : > { %2350 = vmatmul.mubr.bf16.gmra.mxu0 %v4854_v42  ;;  %2575 = vmatmul.mubr.bf16.gmra.mxu1 %v4855_v43 }
  0xe4   : > { %2357 = vmatprep.mubr.bf16.mxu0 %v4857_v44  ;;  %2582 = vmatprep.mubr.bf16.mxu1 %v4859_v45  ;;  %v4940_v44 = vld [vmem:[%s5355_s6 + $0x3f8] ss:$28 sps:$4 sm:$0xff]   ;;  %v4941_v45 = vld [vmem:[%s5355_s6 + $0x80] ss:$28 sps:$4 sm:$0xff]  }
  0xeb   : > { %2358 = vmatmul.mubr.bf16.gmra.mxu0 %v4861_v46  ;;  %2583 = vmatmul.mubr.bf16.gmra.mxu1 %v4862_v47  ;;  %v4942_v46 = vld [vmem:[%s5355_s6 + $0x434] ss:$28 sps:$4 sm:$0xff]   ;;  %v4944_v47 = vld [vmem:[%s5355_s6 + $0xbc] ss:$28 sps:$4 sm:$0xff]  }
  0xec   : > { %2365 = vmatprep.mubr.bf16.mxu0 %v4863_v48  ;;  %2590 = vmatprep.mubr.bf16.mxu1 %v4865_v49 }
  0xf3   : > { %2366 = vmatmul.mubr.bf16.gmra.mxu0 %v4867_v50  ;;  %2591 = vmatmul.mubr.bf16.gmra.mxu1 %v4868_v51 }
  0xf4   : > { %2373 = vmatprep.mubr.bf16.mxu0 %v4870_v52  ;;  %2598 = vmatprep.mubr.bf16.mxu1 %v4872_v53 }
  0xfb   : > { %2374 = vmatmul.mubr.bf16.gmra.mxu0 %v4874_v54  ;;  %2599 = vmatmul.mubr.bf16.gmra.mxu1 %v4875_v55 }
  0xfc   : > { %2381 = vmatprep.mubr.bf16.mxu0 %v4877_v56  ;;  %2606 = vmatprep.mubr.bf16.mxu1 %v4879_v57  ;;  %v4946_v56 = vld [vmem:[%s5355_s6 + $0x430] ss:$28 sps:$4 sm:$0xff]   ;;  %v4947_v57 = vld [vmem:[%s5355_s6 + $0xb8] ss:$28 sps:$4 sm:$0xff]  }
 0x103   : > { %2382 = vmatmul.mubr.bf16.gmra.mxu0 %v4881_v58  ;;  %2607 = vmatmul.mubr.bf16.gmra.mxu1 %v4882_v59  ;;  %v4950_v58 = vld [vmem:[%s5355_s6 + $0x46c] ss:$28 sps:$4 sm:$0xff]   ;;  %v4953_v59 = vld [vmem:[%s5355_s6 + $0xf4] ss:$28 sps:$4 sm:$0xff]  }
 0x104   : > { %2389 = vmatprep.mubr.bf16.mxu0 %v4883_v60  ;;  %2614 = vmatprep.mubr.bf16.mxu1 %v4885_v61 }
 0x10b   : > { %2390 = vmatmul.mubr.bf16.gmra.mxu0 %v4887_v62  ;;  %2615 = vmatmul.mubr.bf16.gmra.mxu1 %v4888_v63 }
 0x10c   : > { %2397 = vmatprep.mubr.bf16.mxu0 %v4890_v0  ;;  %2622 = vmatprep.mubr.bf16.mxu1 %v4892_v1 }
 0x113   : > { %2398 = vmatmul.mubr.bf16.gmra.mxu0 %v4894_v3  ;;  %2623 = vmatmul.mubr.bf16.gmra.mxu1 %v4895_v4 }
 0x114   : > { %2405 = vmatprep.mubr.bf16.mxu0 %v4897_v5  ;;  %2630 = vmatprep.mubr.bf16.mxu1 %v4899_v6  ;;  %v4948_v5 = vld [vmem:[%s5355_s6 + $0x468] ss:$28 sps:$4 sm:$0xff]   ;;  %v4951_v6 = vld [vmem:[%s5355_s6 + $0xf0] ss:$28 sps:$4 sm:$0xff]  }
 0x11b   : > { %2406 = vmatmul.mubr.bf16.gmra.mxu0 %v4901_v7  ;;  %2631 = vmatmul.mubr.bf16.gmra.mxu1 %v4902_v8  ;;  %v4956_v7 = vld [vmem:[%s5355_s6 + $0x4a4] ss:$28 sps:$4 sm:$0xff]   ;;  %v4959_v8 = vld [vmem:[%s5355_s6 + $0x12c] ss:$28 sps:$4 sm:$0xff]  }
 0x11c   : > { %2413 = vmatprep.mubr.bf16.mxu0 %v4903_v9  ;;  %2638 = vmatprep.mubr.bf16.mxu1 %v4905_v10 }
 0x123   : > { %2414 = vmatmul.mubr.bf16.gmra.mxu0 %v4907_v11  ;;  %2639 = vmatmul.mubr.bf16.gmra.mxu1 %v4908_v12 }
 0x124   : > { %2421 = vmatprep.mubr.bf16.mxu0 %v4910_v13  ;;  %2646 = vmatprep.mubr.bf16.mxu1 %v4912_v14 }
 0x12b   : > { %2422 = vmatmul.mubr.bf16.gmra.mxu0 %v4914_v15  ;;  %2647 = vmatmul.mubr.bf16.gmra.mxu1 %v4915_v16 }
 0x12c   : > { %2429 = vmatprep.mubr.bf16.mxu0 %v4917_v17  ;;  %2654 = vmatprep.mubr.bf16.mxu1 %v4919_v18  ;;  %v4954_v17 = vld [vmem:[%s5355_s6 + $0x4a0] ss:$28 sps:$4 sm:$0xff]   ;;  %v4957_v18 = vld [vmem:[%s5355_s6 + $0x128] ss:$28 sps:$4 sm:$0xff]  }
 0x133   : > { %2430 = vmatmul.mubr.bf16.gmra.mxu0 %v4921_v19  ;;  %2655 = vmatmul.mubr.bf16.gmra.mxu1 %v4922_v20  ;;  %v4962_v19 = vld [vmem:[%s5355_s6 + $0x4dc] ss:$28 sps:$4 sm:$0xff]   ;;  %v4965_v20 = vld [vmem:[%s5355_s6 + $0x164] ss:$28 sps:$4 sm:$0xff]  }
 0x134   : > { %2662 = vmatprep.mubr.bf16.mxu1 %v4923_v21  ;;  %2823 = vmatprep.mubr.bf16.mxu0 %v4927_v22 }
 0x13b   : > { %v5560_v27 = vpop.f32.mrf.mxu0  ;;  %v5562_v28 = vpop.f32.mrf.mxu1  ;;  %2663 = vmatmul.mubr.bf16.gmra.mxu1 %v4928_v24  ;;  %2824 = vmatmul.mubr.bf16.vlgmr.msra.gmra.mxu0 %v4925_v23 }
 0x13c   : > { %6547 = vst [vmem:[#allocation3_spill] sm:$0xff] %v5562_v28  ;;  %2670 = vmatprep.mubr.bf16.mxu1 %v4930_v25  ;;  %2831 = vmatprep.mubr.bf16.mxu0 %v4932_v26 }
 0x13d   : > { %v2249_v29 = vpop.f32.mrf.mxu0  ;;  %v2441_v30 = vpop.f32.mrf.mxu1 }
 0x13f   : > { %v5564_v31 = vpop.f32.mrf.mxu0  ;;  %v5566_v32 = vpop.f32.mrf.mxu1 }
 0x140   : > { %6548 = vst [vmem:[#allocation4_spill] sm:$0xff] %v5566_v32  ;;  %v5067_v32 = vld [vmem:[%s5355_s6 + $0x58c] ss:$28 sps:$4 sm:$0xff]  }
 0x141   : > { %v2252_v37 = vpop.f32.mrf.mxu0  ;;  %v2444_v38 = vpop.f32.mrf.mxu1 }
 0x143   : > { %v5572_v2 = vpop.f32.mrf.mxu0  ;;  %v5574_v39 = vpop.f32.mrf.mxu1  ;;  %2671 = vmatmul.mubr.bf16.gmra.mxu1 %v4934_v33  ;;  %2832 = vmatmul.mubr.bf16.gmra.mxu0 %v4935_v34  ;;  %v4960_v33 = vld [vmem:[%s5355_s6 + $0x4d8] ss:$28 sps:$4 sm:$0xff]   ;;  %v4963_v34 = vld [vmem:[%s5355_s6 + $0x160] ss:$28 sps:$4 sm:$0xff]  }
 0x144   : > { %6549 = vst [vmem:[#allocation5_spill] sm:$0xff] %v5574_v39  ;;  %2678 = vmatprep.mubr.bf16.mxu1 %v4936_v35  ;;  %2839 = vmatprep.mubr.bf16.mxu0 %v4938_v36  ;;  %v4968_v35 = vld [vmem:[%s5355_s6 + $0x514] ss:$28 sps:$4 sm:$0xff]   ;;  %v4971_v36 = vld [vmem:[%s5355_s6 + $0x19c] ss:$28 sps:$4 sm:$0xff]  }
 0x145   : > { %v2257_v40 = vpop.f32.mrf.mxu0  ;;  %v2449_v41 = vpop.f32.mrf.mxu1 }
 0x147   : > { %v5576_v42 = vpop.f32.mrf.mxu0  ;;  %v5578_v43 = vpop.f32.mrf.mxu1 }
 0x148   : > { %6550 = vst [vmem:[#allocation6_spill] sm:$0xff] %v5578_v43  ;;  %v5069_v43 = vld [vmem:[%s5355_s6 + $0x440] ss:$28 sps:$4 sm:$0xff]  }
 0x149   : > { %v2260_v48 = vpop.f32.mrf.mxu0  ;;  %v2452_v49 = vpop.f32.mrf.mxu1 }
 0x14a   : > { %v4966_v48 = vld [vmem:[%s5355_s6 + $0x510] ss:$28 sps:$4 sm:$0xff]   ;;  %v4969_v49 = vld [vmem:[%s5355_s6 + $0x198] ss:$28 sps:$4 sm:$0xff]  }
 0x14b   : > { %v5584_v50 = vpop.f32.mrf.mxu0  ;;  %v5586_v51 = vpop.f32.mrf.mxu1  ;;  %2679 = vmatmul.mubr.bf16.gmra.mxu1 %v4940_v44  ;;  %2840 = vmatmul.mubr.bf16.gmra.mxu0 %v4941_v45 }
 0x14c   : > { %6551 = vst [vmem:[#allocation7_spill] sm:$0xff] %v5586_v51  ;;  %2686 = vmatprep.mubr.bf16.mxu1 %v4942_v46  ;;  %2847 = vmatprep.mubr.bf16.mxu0 %v4944_v47 }
 0x14d   : > { %v2265_v52 = vpop.f32.mrf.mxu0  ;;  %v2457_v53 = vpop.f32.mrf.mxu1 }
 0x14e   : > { %v4974_v52 = vld [vmem:[%s5355_s6 + $0x54c] ss:$28 sps:$4 sm:$0xff]   ;;  %v4977_v53 = vld [vmem:[%s5355_s6 + $0x1d4] ss:$28 sps:$4 sm:$0xff]  }
 0x14f   : > { %v5588_v54 = vpop.f32.mrf.mxu0  ;;  %v5590_v55 = vpop.f32.mrf.mxu1 }
 0x150   : > { %6552 = vst [vmem:[#allocation8_spill] sm:$0xff] %v5590_v55 }
 0x151   : > { %v2268_v60 = vpop.f32.mrf.mxu0  ;;  %v2460_v61 = vpop.f32.mrf.mxu1 }
 0x153   : > { %v5596_v62 = vpop.f32.mrf.mxu0  ;;  %v5598_v63 = vpop.f32.mrf.mxu1  ;;  %2687 = vmatmul.mubr.bf16.gmra.mxu1 %v4946_v56  ;;  %2848 = vmatmul.mubr.bf16.gmra.mxu0 %v4947_v57 }
 0x154   : > { %6553 = vst [vmem:[#allocation9_spill] sm:$0xff] %v5598_v63  ;;  %2694 = vmatprep.mubr.bf16.mxu1 %v4950_v58  ;;  %2855 = vmatprep.mubr.bf16.mxu0 %v4953_v59 }
 0x155   : > { %v2273_v0 = vpop.f32.mrf.mxu0  ;;  %v2465_v1 = vpop.f32.mrf.mxu1 }
 0x157   : > { %v5600_v3 = vpop.f32.mrf.mxu0  ;;  %v5602_v4 = vpop.f32.mrf.mxu1 }
 0x158   : > { %6554 = vst [vmem:[#allocation10_spill] sm:$0xff] %v5602_v4 }
 0x159   : > { %v2276_v9 = vpop.f32.mrf.mxu0  ;;  %v2468_v10 = vpop.f32.mrf.mxu1 }
 0x15b   : > { %v5608_v11 = vpop.f32.mrf.mxu0  ;;  %v5610_v12 = vpop.f32.mrf.mxu1  ;;  %2695 = vmatmul.mubr.bf16.gmra.mxu1 %v4948_v5  ;;  %2856 = vmatmul.mubr.bf16.gmra.mxu0 %v4951_v6  ;;  %v4972_v5 = vld [vmem:[%s5355_s6 + $0x548] ss:$28 sps:$4 sm:$0xff]   ;;  %v4975_v6 = vld [vmem:[%s5355_s6 + $0x1d0] ss:$28 sps:$4 sm:$0xff]  }
 0x15c   : > { %6555 = vst [vmem:[#allocation11_spill] sm:$0xff] %v5610_v12  ;;  %2702 = vmatprep.mubr.bf16.mxu1 %v4956_v7  ;;  %2863 = vmatprep.mubr.bf16.mxu0 %v4959_v8  ;;  %v4980_v7 = vld [vmem:[%s5355_s6 + $0x584] ss:$28 sps:$4 sm:$0xff]   ;;  %v4983_v8 = vld [vmem:[%s5355_s6 + $0x20c] ss:$28 sps:$4 sm:$0xff]  }
 0x15d   : > { %v2281_v13 = vpop.f32.mrf.mxu0  ;;  %v2473_v14 = vpop.f32.mrf.mxu1 }
 0x15f   : > { %v5612_v15 = vpop.f32.mrf.mxu0  ;;  %v5614_v16 = vpop.f32.mrf.mxu1 }
 0x160   : > { %6556 = vst [vmem:[#allocation12_spill] sm:$0xff] %v5614_v16 }
 0x161   : > { %v2284_v21 = vpop.f32.mrf.mxu0  ;;  %v2476_v22 = vpop.f32.mrf.mxu1 }
 0x162   : > { %v4978_v22 = vld [vmem:[%s5355_s6 + $0x580] ss:$28 sps:$4 sm:$0xff]  }
 0x163   : > { %v5620_v23 = vpop.f32.mrf.mxu0  ;;  %v5622_v24 = vpop.f32.mrf.mxu1  ;;  %2703 = vmatmul.mubr.bf16.gmra.mxu1 %v4954_v17  ;;  %2864 = vmatmul.mubr.bf16.gmra.mxu0 %v4957_v18 }
 0x164   : > { %6557 = vst [vmem:[#allocation13_spill] sm:$0xff] %v5622_v24  ;;  %2710 = vmatprep.mubr.bf16.mxu1 %v4962_v19  ;;  %2871 = vmatprep.mubr.bf16.mxu0 %v4965_v20 }
 0x165   : > { %v2289_v25 = vpop.f32.mrf.mxu0  ;;  %v2481_v26 = vpop.f32.mrf.mxu1 }
 0x166   : > { %v4981_v25 = vld [vmem:[%s5355_s6 + $0x208] ss:$28 sps:$4 sm:$0xff]  }
 0x167   : > { %v5624_v29 = vpop.f32.mrf.mxu0  ;;  %v5626_v30 = vpop.f32.mrf.mxu1 }
 0x168   : > { %6558 = vst [vmem:[#allocation14_spill] sm:$0xff] %v5626_v30 }
 0x169   : > { %v2292_v37 = vpop.f32.mrf.mxu0  ;;  %v2484_v38 = vpop.f32.mrf.mxu1 }
 0x16b   : > { %v5632_v40 = vpop.f32.mrf.mxu0  ;;  %v5634_v41 = vpop.f32.mrf.mxu1  ;;  %2711 = vmatmul.mubr.bf16.gmra.mxu1 %v4960_v33  ;;  %2872 = vmatmul.mubr.bf16.gmra.mxu0 %v4963_v34  ;;  %v4986_v33 = vld [vmem:[%s5355_s6 + $0x5bc] ss:$28 sps:$4 sm:$0xff]   ;;  %v4989_v34 = vld [vmem:[%s5355_s6 + $0x244] ss:$28 sps:$4 sm:$0xff]  }
 0x16c   : > { %6559 = vst [vmem:[#allocation15_spill] sm:$0xff] %v5634_v41  ;;  %2718 = vmatprep.mubr.bf16.mxu1 %v4968_v35  ;;  %2879 = vmatprep.mubr.bf16.mxu0 %v4971_v36 }
 0x16d   : > { %v2297_v44 = vpop.f32.mrf.mxu0  ;;  %v2489_v45 = vpop.f32.mrf.mxu1 }
 0x16f   : > { %v5636_v46 = vpop.f32.mrf.mxu0  ;;  %v5638_v47 = vpop.f32.mrf.mxu1 }
 0x170   : > { %6560 = vst [vmem:[#allocation16_spill] sm:$0xff] %v5638_v47 }
 0x171   : > { %v2300_v56 = vpop.f32.mrf.mxu0  ;;  %v2492_v57 = vpop.f32.mrf.mxu1 }
 0x172   : > { %v4992_v56 = vld [vmem:[%s5355_s6 + $0x5f4] ss:$28 sps:$4 sm:$0xff]   ;;  %v4995_v57 = vld [vmem:[%s5355_s6 + $0x27c] ss:$28 sps:$4 sm:$0xff]  }
 0x173   : > { %v5644_v58 = vpop.f32.mrf.mxu0  ;;  %v5646_v59 = vpop.f32.mrf.mxu1  ;;  %2719 = vmatmul.mubr.bf16.gmra.mxu1 %v4966_v48  ;;  %2880 = vmatmul.mubr.bf16.gmra.mxu0 %v4969_v49  ;;  %v4984_v49 = vld [vmem:[%s5355_s6 + $0x5b8] ss:$28 sps:$4 sm:$0xff]  }
 0x174   : > { %6561 = vst [vmem:[#allocation17_spill] sm:$0xff] %v5646_v59  ;;  %2726 = vmatprep.mubr.bf16.mxu1 %v4974_v52  ;;  %2887 = vmatprep.mubr.bf16.mxu0 %v4977_v53  ;;  %v4987_v52 = vld [vmem:[%s5355_s6 + $0x240] ss:$28 sps:$4 sm:$0xff]  }
 0x175   : > { %v2305_v60 = vpop.f32.mrf.mxu0  ;;  %v2497_v61 = vpop.f32.mrf.mxu1 }
 0x177   : > { %v5648_v0 = vpop.f32.mrf.mxu0  ;;  %v5650_v1 = vpop.f32.mrf.mxu1 }
 0x178   : > { %6562 = vst [vmem:[#allocation18_spill] sm:$0xff] %v5650_v1 }
 0x179   : > { %v2308_v9 = vpop.f32.mrf.mxu0  ;;  %v2500_v10 = vpop.f32.mrf.mxu1 }
 0x17a   : > { %v4990_v10 = vld [vmem:[%s5355_s6 + $0x5f0] ss:$28 sps:$4 sm:$0xff]  }
 0x17b   : > { %v5656_v13 = vpop.f32.mrf.mxu0  ;;  %v2536_v14 = vpop.f32.mrf.mxu1  ;;  %2727 = vmatmul.mubr.bf16.gmra.mxu1 %v4972_v5  ;;  %2888 = vmatmul.mubr.bf16.gmra.mxu0 %v4975_v6 }
 0x17c   : > { %v5659_v17 = vadd.f32 %v2536_v14, %v5560_v27  ;;  %2734 = vmatprep.mubr.bf16.mxu1 %v4980_v7  ;;  %2895 = vmatprep.mubr.bf16.mxu0 %v4983_v8  ;;  %v4993_v14 = vld [vmem:[%s5355_s6 + $0x278] ss:$28 sps:$4 sm:$0xff]  }
 0x17d   : > { %v2313_v18 = vpop.f32.mrf.mxu0  ;;  %v2538_v19 = vpop.f32.mrf.mxu1 }
 0x17e   : > { %v4998_v19 = vld [vmem:[%s5355_s6 + $0x62c] ss:$28 sps:$4 sm:$0xff]  }
 0x17f   : > { %v5661_v20 = vpop.f32.mrf.mxu0  ;;  %v2539_v21 = vpop.f32.mrf.mxu1 }
 0x180   : > { %v5666_v26 = vadd.f32 %v2539_v21, %v5564_v31  ;;  %v5001_v21 = vld [vmem:[%s5355_s6 + $0x2b4] ss:$28 sps:$4 sm:$0xff]  }
 0x181   : > { %v2316_v35 = vpop.f32.mrf.mxu0  ;;  %v2541_v27 = vpop.f32.mrf.mxu1 }
 0x183   : > { %v5670_v36 = vpop.f32.mrf.mxu0  ;;  %v2544_v37 = vpop.f32.mrf.mxu1  ;;  %2735 = vmatmul.mubr.bf16.gmra.mxu1 %v4978_v22  ;;  %2896 = vmatmul.mubr.bf16.gmra.mxu0 %v4981_v25 }
 0x184   : > { %v5673_v38 = vadd.f32 %v2544_v37, %v5572_v2  ;;  %2742 = vmatprep.mubr.bf16.mxu1 %v4986_v33  ;;  %2903 = vmatprep.mubr.bf16.mxu0 %v4989_v34 }
 0x185   : > { %v2321_v31 = vpop.f32.mrf.mxu0  ;;  %v2546_v44 = vpop.f32.mrf.mxu1 }
 0x186   : > { %v4996_v31 = vld [vmem:[%s5355_s6 + $0x628] ss:$28 sps:$4 sm:$0xff]   ;;  %v4999_v44 = vld [vmem:[%s5355_s6 + $0x2b0] ss:$28 sps:$4 sm:$0xff]  }
 0x187   : > { %v5675_v45 = vpop.f32.mrf.mxu0  ;;  %v2547_v48 = vpop.f32.mrf.mxu1 }
 0x188   : > { %v5680_v53 = vadd.f32 %v2547_v48, %v5576_v42 }
 0x189   : > { %v2324_v60 = vpop.f32.mrf.mxu0  ;;  %v2549_v2 = vpop.f32.mrf.mxu1 }
 0x18b   : > { %v5684_v61 = vpop.f32.mrf.mxu0  ;;  %v2552_v5 = vpop.f32.mrf.mxu1  ;;  %2743 = vmatmul.mubr.bf16.gmra.mxu1 %v4984_v49  ;;  %2904 = vmatmul.mubr.bf16.gmra.mxu0 %v4987_v52  ;;  %v5004_v49 = vld [vmem:[%s5355_s6 + $0x664] ss:$28 sps:$4 sm:$0xff]   ;;  %v5007_v52 = vld [vmem:[%s5355_s6 + $0x2ec] ss:$28 sps:$4 sm:$0xff]  }
 0x18c   : > { %v5687_v6 = vadd.f32 %v2552_v5, %v5584_v50  ;;  %2750 = vmatprep.mubr.bf16.mxu1 %v4992_v56  ;;  %2911 = vmatprep.mubr.bf16.mxu0 %v4995_v57 }
 0x18d   : > { %v2329_v42 = vpop.f32.mrf.mxu0  ;;  %v2554_v7 = vpop.f32.mrf.mxu1 }
 0x18f   : > { %v5689_v8 = vpop.f32.mrf.mxu0  ;;  %v2555_v9 = vpop.f32.mrf.mxu1 }
 0x190   : > { %v5694_v18 = vadd.f32 %v2555_v9, %v5588_v54  ;;  %v5002_v9 = vld [vmem:[%s5355_s6 + $0x660] ss:$28 sps:$4 sm:$0xff]  }
 0x191   : > { %v2332_v22 = vpop.f32.mrf.mxu0  ;;  %v2557_v50 = vpop.f32.mrf.mxu1 }
 0x193   : > { %v5698_v25 = vpop.f32.mrf.mxu0  ;;  %v2560_v33 = vpop.f32.mrf.mxu1  ;;  %2751 = vmatmul.mubr.bf16.gmra.mxu1 %v4990_v10  ;;  %2912 = vmatmul.mubr.bf16.gmra.mxu0 %v4993_v14  ;;  %v5005_v10 = vld [vmem:[%s5355_s6 + $0x2e8] ss:$28 sps:$4 sm:$0xff]  }
 0x194   : > { %v5701_v34 = vadd.f32 %v2560_v33, %v5596_v62  ;;  %2758 = vmatprep.mubr.bf16.mxu1 %v4998_v19  ;;  %2919 = vmatprep.mubr.bf16.mxu0 %v5001_v21  ;;  %v5010_v19 = vld [vmem:[%s5355_s6 + $0x69c] ss:$28 sps:$4 sm:$0xff]   ;;  %v5013_v21 = vld [vmem:[%s5355_s6 + $0x324] ss:$28 sps:$4 sm:$0xff]  }
 0x195   : > { %v2337_v54 = vpop.f32.mrf.mxu0  ;;  %v2562_v35 = vpop.f32.mrf.mxu1 }
 0x197   : > { %v5703_v27 = vpop.f32.mrf.mxu0  ;;  %v2563_v37 = vpop.f32.mrf.mxu1 }
 0x198   : > { %v5708_v48 = vadd.f32 %v2563_v37, %v5600_v3 }
 0x199   : > { %v2340_v56 = vpop.f32.mrf.mxu0  ;;  %v2565_v62 = vpop.f32.mrf.mxu1 }
 0x19a   : > { %v5016_v56 = vld [vmem:[%s5355_s6 + $0x6d4] ss:$28 sps:$4 sm:$0xff]   ;;  %v5019_v62 = vld [vmem:[%s5355_s6 + $0x35c] ss:$28 sps:$4 sm:$0xff]  }
 0x19b   : > { %v5712_v57 = vpop.f32.mrf.mxu0  ;;  %v2568_v60 = vpop.f32.mrf.mxu1  ;;  %2759 = vmatmul.mubr.bf16.gmra.mxu1 %v4996_v31  ;;  %2920 = vmatmul.mubr.bf16.gmra.mxu0 %v4999_v44  ;;  %v5008_v44 = vld [vmem:[%s5355_s6 + $0x698] ss:$28 sps:$4 sm:$0xff]  }
 0x19c   : > { %v5715_v2 = vadd.f32 %v2568_v60, %v5608_v11  ;;  %2766 = vmatprep.mubr.bf16.mxu1 %v5004_v49  ;;  %2927 = vmatprep.mubr.bf16.mxu0 %v5007_v52  ;;  %v5011_v49 = vld [vmem:[%s5355_s6 + $0x320] ss:$28 sps:$4 sm:$0xff]  }
 0x19d   : > { %v2345_v3 = vpop.f32.mrf.mxu0  ;;  %v2570_v5 = vpop.f32.mrf.mxu1 }
 0x19f   : > { %v5717_v42 = vpop.f32.mrf.mxu0  ;;  %v2571_v7 = vpop.f32.mrf.mxu1 }
 0x1a0   : > { %v5722_v14 = vadd.f32 %v2571_v7, %v5612_v15 }
 0x1a1   : > { %v2348_v22 = vpop.f32.mrf.mxu0  ;;  %v2573_v11 = vpop.f32.mrf.mxu1 }
 0x1a2   : > { %v5017_v22 = vld [vmem:[%s5355_s6 + $0x358] ss:$28 sps:$4 sm:$0xff]  }
 0x1a3   : > { %v5726_v50 = vpop.f32.mrf.mxu0  ;;  %v2576_v33 = vpop.f32.mrf.mxu1  ;;  %2767 = vmatmul.mubr.bf16.gmra.mxu1 %v5002_v9  ;;  %2928 = vmatmul.mubr.bf16.gmra.mxu0 %v5005_v10 }
 0x1a4   : > { %v5729_v54 = vadd.f32 %v2576_v33, %v5620_v23  ;;  %2774 = vmatprep.mubr.bf16.mxu1 %v5010_v19  ;;  %2935 = vmatprep.mubr.bf16.mxu0 %v5013_v21  ;;  %v5014_v21 = vld [vmem:[%s5355_s6 + $0x6d0] ss:$28 sps:$4 sm:$0xff]  }
 0x1a5   : > { %v2353_v15 = vpop.f32.mrf.mxu0  ;;  %v2578_v35 = vpop.f32.mrf.mxu1  ;;  %v5022_v33 = vld [vmem:[%s5355_s6 + $0x394] ss:$28 sps:$4 sm:$0xff]  }
 0x1a6   : > { %v5023_v15 = vld [vmem:[%s5355_s6 + $0x18] ss:$28 sps:$4 sm:$0xff]  }
 0x1a7   : > { %v5731_v37 = vpop.f32.mrf.mxu0  ;;  %v2579_v31 = vpop.f32.mrf.mxu1 }
 0x1a8   : > { %v5736_v52 = vadd.f32 %v2579_v31, %v5624_v29 }
 0x1a9   : > { %v2356_v60 = vpop.f32.mrf.mxu0  ;;  %v2581_v23 = vpop.f32.mrf.mxu1 }
 0x1aa   : > { %v5020_v23 = vld [vmem:[%s5355_s6 + $0x390] ss:$28 sps:$4 sm:$0xff]  }
 0x1ab   : > { %v5740_v3 = vpop.f32.mrf.mxu0  ;;  %v2584_v5 = vpop.f32.mrf.mxu1  ;;  %2775 = vmatmul.mubr.bf16.gmra.mxu1 %v5008_v44  ;;  %2936 = vmatmul.mubr.bf16.gmra.mxu0 %v5011_v49 }
 0x1ac   : > { %v5743_v7 = vadd.f32 %v2584_v5, %v5632_v40  ;;  %2782 = vmatprep.mubr.bf16.mxu1 %v5016_v56  ;;  %2943 = vmatprep.mubr.bf16.mxu0 %v5019_v62  ;;  %v5024_v5 = vld [vmem:[%s5355_s6 + $0x50] ss:$28 sps:$4 sm:$0xff]  }
 0x1ad   : > { %v2361_v29 = vpop.f32.mrf.mxu0  ;;  %v2586_v9 = vpop.f32.mrf.mxu1 }
 0x1ae   : > { %v5027_v9 = vld [vmem:[%s5355_s6 + $0x3cc] ss:$28 sps:$4 sm:$0xff]  }
 0x1af   : > { %v5745_v10 = vpop.f32.mrf.mxu0  ;;  %v2587_v19 = vpop.f32.mrf.mxu1 }
 0x1b0   : > { %v5750_v11 = vadd.f32 %v2587_v19, %v5636_v46  ;;  %v5028_v19 = vld [vmem:[%s5355_s6 + $0x88] ss:$28 sps:$4 sm:$0xff]  }
 0x1b1   : > { %v2364_v35 = vpop.f32.mrf.mxu0  ;;  %v2589_v31 = vpop.f32.mrf.mxu1 }
 0x1b3   : > { %v5754_v40 = vpop.f32.mrf.mxu0  ;;  %v2592_v44 = vpop.f32.mrf.mxu1  ;;  %2783 = vmatmul.mubr.bf16.gmra.mxu1 %v5014_v21  ;;  %2944 = vmatmul.mubr.bf16.gmra.mxu0 %v5017_v22 }
 0x1b4   : > { %v5757_v49 = vadd.f32 %v2592_v44, %v5644_v58  ;;  %2951 = vmatprep.mubr.bf16.mxu0 %v5022_v33  ;;  %4590 = vmatprep.mubr.msk.bf16.mxu1 %vm2116_vm1, %v5023_v15 }
 0x1b5   : > { %v2369_v46 = vpop.f32.mrf.mxu0  ;;  %v2594_v56 = vpop.f32.mrf.mxu1 }
 0x1b6   : > { %v5025_v46 = vld [vmem:[%s5355_s6 + $0x3c8] ss:$28 sps:$4 sm:$0xff]   ;;  %v5029_v56 = vld [vmem:[%s5355_s6 + $0xc0] ss:$28 sps:$4 sm:$0xff]  }
 0x1b7   : > { %v5760_v62 = vpop.f32.mrf.mxu0  ;;  %v2595_v60 = vpop.f32.mrf.mxu1 }
 0x1b8   : > { %v5765_v29 = vadd.f32 %v2595_v60, %v5648_v0 }
 0x1b9   : > { %v2372_v21 = vpop.f32.mrf.mxu0  ;;  %v2597_v58 = vpop.f32.mrf.mxu1 }
 0x1bb   : > { %v5769_v22 = vpop.f32.mrf.mxu0  ;;  %v2600_v33 = vpop.f32.mrf.mxu1  ;;  %2952 = vmatmul.mubr.bf16.gmra.mxu0 %v5020_v23  ;;  %4591 = vmatmul.mubr.msk.bf16.vlgmr.msra.gmra.mxu1 %vm2116_vm1, %v5024_v5  ;;  %v5032_v23 = vld [vmem:[%s5355_s6 + $0x404] ss:$28 sps:$4 sm:$0xff]   ;;  %v5033_v5 = vld [vmem:[%s5355_s6 + $0xf8] ss:$28 sps:$4 sm:$0xff]  }
 0x1bc   : > { %v5773_v15 = vadd.f32 %v2600_v33, %v5656_v13  ;;  %2959 = vmatprep.mubr.bf16.mxu0 %v5027_v9  ;;  %4594 = vmatprep.mubr.msk.bf16.mxu1 %vm2116_vm1, %v5028_v19 }
 0x1bd   : > { %v2377_v0 = vpop.f32.mrf.mxu0  ;;  %v2602_v35 = vpop.f32.mrf.mxu1 }
 0x1bf   : > { %v5776_v31 = vpop.f32.mrf.mxu0  ;;  %v2603_v44 = vpop.f32.mrf.mxu1 }
 0x1c0   : > { %v5781_v60 = vadd.f32 %v2603_v44, %v5661_v20  ;;  %v5030_v44 = vld [vmem:[%s5355_s6 + $0x400] ss:$28 sps:$4 sm:$0xff]  }
 0x1c1   : > { %v2380_v21 = vpop.f32.mrf.mxu0  ;;  %v2605_v13 = vpop.f32.mrf.mxu1 }
 0x1c2   : > { %v5034_v21 = vld [vmem:[%s5355_s6 + $0x130] ss:$28 sps:$4 sm:$0xff]  }
 0x1c3   : > { %v5785_v9 = vpop.f32.mrf.mxu0  ;;  %v2608_v19 = vpop.f32.mrf.mxu1  ;;  %2960 = vmatmul.mubr.bf16.gmra.mxu0 %v5025_v46  ;;  %4595 = vmatmul.mubr.msk.bf16.gmra.mxu1 %vm2116_vm1, %v5029_v56  ;;  %v5037_v46 = vld [vmem:[%s5355_s6 + $0x43c] ss:$28 sps:$4 sm:$0xff]   ;;  %v5038_v56 = vld [vmem:[%s5355_s6 + $0x168] ss:$28 sps:$4 sm:$0xff]  }
 0x1c4   : > { %v5789_v58 = vadd.f32 %v2608_v19, %v5670_v36  ;;  %2967 = vmatprep.mubr.bf16.mxu0 %v5032_v23  ;;  %4598 = vmatprep.mubr.msk.bf16.mxu1 %vm2116_vm1, %v5033_v5 }
 0x1c5   : > { %v2385_v20 = vpop.f32.mrf.mxu0  ;;  %v2610_v33 = vpop.f32.mrf.mxu1 }
 0x1c7   : > { %v5792_v0 = vpop.f32.mrf.mxu0  ;;  %v2611_v35 = vpop.f32.mrf.mxu1 }
 0x1c8   : > { %v5797_v13 = vadd.f32 %v2611_v35, %v5675_v45  ;;  %v5035_v35 = vld [vmem:[%s5355_s6 + $0x438] ss:$28 sps:$4 sm:$0xff]  }
 0x1c9   : > { %v2388_v1 = vpop.f32.mrf.mxu0  ;;  %v2613_v36 = vpop.f32.mrf.mxu1 }
 0x1ca   : > { %v5039_v36 = vld [vmem:[%s5355_s6 + $0x1a0] ss:$28 sps:$4 sm:$0xff]  }
 0x1cb   : > { %v5801_v23 = vpop.f32.mrf.mxu0  ;;  %v2616_v5 = vpop.f32.mrf.mxu1  ;;  %2968 = vmatmul.mubr.bf16.gmra.mxu0 %v5030_v44  ;;  %4599 = vmatmul.mubr.msk.bf16.gmra.mxu1 %vm2116_vm1, %v5034_v21  ;;  %v5042_v44 = vld [vmem:[%s5355_s6 + $0x474] ss:$28 sps:$4 sm:$0xff]  }
 0x1cc   : > { %v5805_v19 = vadd.f32 %v2616_v5, %v5684_v61  ;;  %2975 = vmatprep.mubr.bf16.mxu0 %v5037_v46  ;;  %4602 = vmatprep.mubr.msk.bf16.mxu1 %vm2116_vm1, %v5038_v56  ;;  %v5043_v21 = vld [vmem:[%s5355_s6 + $0x1d8] ss:$28 sps:$4 sm:$0xff]  }
 0x1cd   : > { %v2393_v45 = vpop.f32.mrf.mxu0  ;;  %v2618_v20 = vpop.f32.mrf.mxu1 }
 0x1cf   : > { %v5808_v33 = vpop.f32.mrf.mxu0  ;;  %v2619_v1 = vpop.f32.mrf.mxu1 }
 0x1d0   : > { %v5813_v47 = vadd.f32 %v2619_v1, %v5689_v8  ;;  %v5040_v1 = vld [vmem:[%s5355_s6 + $0x470] ss:$28 sps:$4 sm:$0xff]  }
 0x1d1   : > { %v2396_v59 = vpop.f32.mrf.mxu0  ;;  %v2621_v61 = vpop.f32.mrf.mxu1 }
 0x1d2   : > { %v5044_v61 = vld [vmem:[%s5355_s6 + $0x210] ss:$28 sps:$4 sm:$0xff]  }
 0x1d3   : > { %v5817_v46 = vpop.f32.mrf.mxu0  ;;  %v2624_v56 = vpop.f32.mrf.mxu1  ;;  %2976 = vmatmul.mubr.bf16.gmra.mxu0 %v5035_v35  ;;  %4603 = vmatmul.mubr.msk.bf16.gmra.mxu1 %vm2116_vm1, %v5039_v36  ;;  %v5047_v35 = vld [vmem:[%s5355_s6 + $0x4ac] ss:$28 sps:$4 sm:$0xff]  }
 0x1d4   : > { %v5821_v5 = vadd.f32 %v2624_v56, %v5698_v25  ;;  %2983 = vmatprep.mubr.bf16.mxu0 %v5042_v44  ;;  %4606 = vmatprep.mubr.msk.bf16.mxu1 %vm2116_vm1, %v5043_v21  ;;  %v5048_v36 = vld [vmem:[%s5355_s6 + $0x248] ss:$28 sps:$4 sm:$0xff]  }
 0x1d5   : > { %v2401_v8 = vpop.f32.mrf.mxu0  ;;  %v2626_v45 = vpop.f32.mrf.mxu1 }
 0x1d7   : > { %v5824_v20 = vpop.f32.mrf.mxu0  ;;  %v2627_v59 = vpop.f32.mrf.mxu1 }
 0x1d8   : > { %v5829_v41 = vadd.f32 %v2627_v59, %v5703_v27  ;;  %v5045_v59 = vld [vmem:[%s5355_s6 + $0x4a8] ss:$28 sps:$4 sm:$0xff]  }
 0x1d9   : > { %v2404_v16 = vpop.f32.mrf.mxu0  ;;  %v2629_v25 = vpop.f32.mrf.mxu1 }
 0x1da   : > { %v5049_v25 = vld [vmem:[%s5355_s6 + $0x280] ss:$28 sps:$4 sm:$0xff]  }
 0x1db   : > { %v5833_v44 = vpop.f32.mrf.mxu0  ;;  %v2632_v21 = vpop.f32.mrf.mxu1  ;;  %2984 = vmatmul.mubr.bf16.gmra.mxu0 %v5040_v1  ;;  %4607 = vmatmul.mubr.msk.bf16.gmra.mxu1 %vm2116_vm1, %v5044_v61  ;;  %v5052_v1 = vld [vmem:[%s5355_s6 + $0x4e4] ss:$28 sps:$4 sm:$0xff]   ;;  %v5053_v61 = vld [vmem:[%s5355_s6 + $0x2b8] ss:$28 sps:$4 sm:$0xff]  }
 0x1dc   : > { %v5837_v56 = vadd.f32 %v2632_v21, %v5712_v57  ;;  %2991 = vmatprep.mubr.bf16.mxu0 %v5047_v35  ;;  %4610 = vmatprep.mubr.msk.bf16.mxu1 %vm2116_vm1, %v5048_v36 }
 0x1dd   : > { %v2409_v27 = vpop.f32.mrf.mxu0  ;;  %v2634_v8 = vpop.f32.mrf.mxu1 }
 0x1df   : > { %v5840_v45 = vpop.f32.mrf.mxu0  ;;  %v2635_v16 = vpop.f32.mrf.mxu1 }
 0x1e0   : > { %v5845_v30 = vadd.f32 %v2635_v16, %v5717_v42  ;;  %v5050_v16 = vld [vmem:[%s5355_s6 + $0x4e0] ss:$28 sps:$4 sm:$0xff]  }
 0x1e1   : > { %v2412_v12 = vpop.f32.mrf.mxu0  ;;  %v2637_v57 = vpop.f32.mrf.mxu1 }
 0x1e2   : > { %v5054_v57 = vld [vmem:[%s5355_s6 + $0x2f0] ss:$28 sps:$4 sm:$0xff]  }
 0x1e3   : > { %v5849_v35 = vpop.f32.mrf.mxu0  ;;  %v2640_v36 = vpop.f32.mrf.mxu1  ;;  %2992 = vmatmul.mubr.bf16.gmra.mxu0 %v5045_v59  ;;  %4611 = vmatmul.mubr.msk.bf16.gmra.mxu1 %vm2116_vm1, %v5049_v25  ;;  %v5057_v59 = vld [vmem:[%s5355_s6 + $0x51c] ss:$28 sps:$4 sm:$0xff]   ;;  %v5058_v25 = vld [vmem:[%s5355_s6 + $0x328] ss:$28 sps:$4 sm:$0xff]  }
 0x1e4   : > { %v5853_v21 = vadd.f32 %v2640_v36, %v5726_v50  ;;  %2999 = vmatprep.mubr.bf16.mxu0 %v5052_v1  ;;  %4614 = vmatprep.mubr.msk.bf16.mxu1 %vm2116_vm1, %v5053_v61 }
 0x1e5   : > { %v2417_v42 = vpop.f32.mrf.mxu0  ;;  %v2642_v27 = vpop.f32.mrf.mxu1 }
 0x1e7   : > { %v5856_v8 = vpop.f32.mrf.mxu0  ;;  %v2643_v12 = vpop.f32.mrf.mxu1 }
 0x1e8   : > { %v5861_v24 = vadd.f32 %v2643_v12, %v5731_v37  ;;  %v5055_v12 = vld [vmem:[%s5355_s6 + $0x518] ss:$28 sps:$4 sm:$0xff]  }
 0x1e9   : > { %v2420_v55 = vpop.f32.mrf.mxu0  ;;  %v2645_v50 = vpop.f32.mrf.mxu1 }
 0x1ea   : > { %v5059_v50 = vld [vmem:[%s5355_s6 + $0x360] ss:$28 sps:$4 sm:$0xff]  }
 0x1eb   : > { %v5865_v1 = vpop.f32.mrf.mxu0  ;;  %v2648_v61 = vpop.f32.mrf.mxu1  ;;  %3000 = vmatmul.mubr.bf16.gmra.mxu0 %v5050_v16  ;;  %4615 = vmatmul.mubr.msk.bf16.gmra.mxu1 %vm2116_vm1, %v5054_v57  ;;  %v5062_v16 = vld [vmem:[%s5355_s6 + $0x554] ss:$28 sps:$4 sm:$0xff]  }
 0x1ec   : > { %v5869_v36 = vadd.f32 %v2648_v61, %v5740_v3  ;;  %3007 = vmatprep.mubr.bf16.mxu0 %v5057_v59  ;;  %4618 = vmatprep.mubr.msk.bf16.mxu1 %vm2116_vm1, %v5058_v25  ;;  %v5063_v57 = vld [vmem:[%s5355_s6 + $0x398] ss:$28 sps:$4 sm:$0xff]  }
 0x1ed   : > { %v2425_v37 = vpop.f32.mrf.mxu0  ;;  %v2650_v42 = vpop.f32.mrf.mxu1 }
 0x1ef   : > { %v5872_v27 = vpop.f32.mrf.mxu0  ;;  %v2651_v55 = vpop.f32.mrf.mxu1 }
 0x1f0   : > { %v5877_v4 = vadd.f32 %v2651_v55, %v5745_v10  ;;  %v5060_v55 = vld [vmem:[%s5355_s6 + $0x550] ss:$28 sps:$4 sm:$0xff]  }
 0x1f1   : > { %v2428_v51 = vpop.f32.mrf.mxu0  ;;  %v2653_v3 = vpop.f32.mrf.mxu1 }
 0x1f2   : > { %v5064_v3 = vld [vmem:[%s5355_s6 + $0x3d0] ss:$28 sps:$4 sm:$0xff]  }
 0x1f3   : > { %v5881_v59 = vpop.f32.mrf.mxu0  ;;  %v2656_v25 = vpop.f32.mrf.mxu1  ;;  %3008 = vmatmul.mubr.bf16.gmra.mxu0 %v5055_v12  ;;  %4619 = vmatmul.mubr.msk.bf16.gmra.mxu1 %vm2116_vm1, %v5059_v50  ;;  %v5068_v12 = vld [vmem:[%s5355_s6 + $0x408] ss:$28 sps:$4 sm:$0xff]  }
 0x1f4   : > { %v5885_v61 = vadd.f32 %v2656_v25, %v5754_v40  ;;  %3015 = vmatprep.mubr.bf16.mxu0 %v5062_v16  ;;  %4622 = vmatprep.mubr.msk.bf16.mxu1 %vm2116_vm1, %v5063_v57 }
 0x1f5   : > { %v2433_v10 = vpop.f32.mrf.mxu0  ;;  %v2658_v37 = vpop.f32.mrf.mxu1 }
 0x1f7   : > { %v5888_v42 = vpop.f32.mrf.mxu0  ;;  %v2659_v51 = vpop.f32.mrf.mxu1 }
 0x1f8   : > { %v5893_v63 = vadd.f32 %v2659_v51, %v5760_v62 }
 0x1f9   : > { %v2436_v50 = vpop.f32.mrf.mxu0  ;;  %v2661_v40 = vpop.f32.mrf.mxu1 }
 0x1fa   : > { %v5065_v40 = vld [vmem:[%s5355_s6 + $0x588] ss:$28 sps:$4 sm:$0xff]  }
 0x1fb   : > { %v2664_v25 = vpop.f32.mrf.mxu1  ;;  %v2825_v16 = vpop.f32.mrf.mxu0  ;;  %3016 = vmatmul.mubr.bf16.gmra.mxu0 %v5060_v55  ;;  %4623 = vmatmul.mubr.msk.bf16.gmra.mxu1 %vm2116_vm1, %v5064_v3  ;;  %v5073_v3 = vld [vmem:[%s5355_s6 + $0x478] ss:$28 sps:$4 sm:$0xff]  }
 0x1fc   : > { %v5899_v57 = vadd.f32 %v2664_v25, %v5769_v22  ;;  %v5902_v10 = vadd.f32 %v2825_v16, %v5659_v17  ;;  %3023 = vmatprep.mubr.bf16.mxu0 %v5067_v32  ;;  %4626 = vmatprep.mubr.msk.bf16.mxu1 %vm2116_vm1, %v5068_v12  ;;  %v5072_v22 = vld [vmem:[%s5355_s6 + $0x5c4] ss:$28 sps:$4 sm:$0xff]  }
 0x1fd   : > { %v2666_v62 = vpop.f32.mrf.mxu1  ;;  %v2827_v37 = vpop.f32.mrf.mxu0 }
 0x1ff   : > { %v2667_v51 = vpop.f32.mrf.mxu1  ;;  %v2828_v50 = vpop.f32.mrf.mxu0 }
 0x200   : > { %v5908_v28 = vadd.f32 %v2667_v51, %v5776_v31  ;;  %v5911_v55 = vadd.f32 %v2828_v50, %v5666_v26  ;;  %v5070_v50 = vld [vmem:[%s5355_s6 + $0x5c0] ss:$28 sps:$4 sm:$0xff]  }
 0x201   : > { %v2669_v17 = vpop.f32.mrf.mxu1  ;;  %v2830_v32 = vpop.f32.mrf.mxu0 }
 0x202   : > { %v5074_v17 = vld [vmem:[%s5355_s6 + $0x4b0] ss:$28 sps:$4 sm:$0xff]  }
 0x203   : > { %v2672_v25 = vpop.f32.mrf.mxu1  ;;  %v2833_v12 = vpop.f32.mrf.mxu0  ;;  %3024 = vmatmul.mubr.bf16.gmra.mxu0 %v5065_v40  ;;  %4627 = vmatmul.mubr.msk.bf16.gmra.mxu1 %vm2116_vm1, %v5069_v43  ;;  %v5078_v40 = vld [vmem:[%s5355_s6 + $0x4e8] ss:$28 sps:$4 sm:$0xff]  }
 0x204   : > { %v5917_v16 = vadd.f32 %v2672_v25, %v5785_v9  ;;  %v5920_v31 = vadd.f32 %v2833_v12, %v5673_v38  ;;  %3031 = vmatprep.mubr.bf16.mxu0 %v5072_v22  ;;  %4630 = vmatprep.mubr.msk.bf16.mxu1 %vm2116_vm1, %v5073_v3  ;;  %v5077_v9 = vld [vmem:[%s5355_s6 + $0x5fc] ss:$28 sps:$4 sm:$0xff]  }
 0x205   : > { %v2674_v26 = vpop.f32.mrf.mxu1  ;;  %v2835_v62 = vpop.f32.mrf.mxu0 }
 0x207   : > { %v2675_v37 = vpop.f32.mrf.mxu1  ;;  %v2836_v51 = vpop.f32.mrf.mxu0 }
 0x208   : > { %v5926_v32 = vadd.f32 %v2675_v37, %v5792_v0  ;;  %v5929_v43 = vadd.f32 %v2836_v51, %v5680_v53  ;;  %v5075_v51 = vld [vmem:[%s5355_s6 + $0x5f8] ss:$28 sps:$4 sm:$0xff]  }
 0x209   : > { %v2677_v38 = vpop.f32.mrf.mxu1  ;;  %v2838_v22 = vpop.f32.mrf.mxu0 }
 0x20a   : > { %v5079_v38 = vld [vmem:[%s5355_s6 + $0x520] ss:$28 sps:$4 sm:$0xff]  }
 0x20b   : > { %v2680_v25 = vpop.f32.mrf.mxu1  ;;  %v2841_v3 = vpop.f32.mrf.mxu0  ;;  %3032 = vmatmul.mubr.bf16.gmra.mxu0 %v5070_v50  ;;  %4631 = vmatmul.mubr.msk.bf16.gmra.mxu1 %vm2116_vm1, %v5074_v17  ;;  %v5083_v17 = vld [vmem:[%s5355_s6 + $0x558] ss:$28 sps:$4 sm:$0xff]  }
 0x20c   : > { %v5935_v12 = vadd.f32 %v2680_v25, %v5801_v23  ;;  %v5938_v0 = vadd.f32 %v2841_v3, %v5687_v6  ;;  %3039 = vmatprep.mubr.bf16.mxu0 %v5077_v9  ;;  %4634 = vmatprep.mubr.msk.bf16.mxu1 %vm2116_vm1, %v5078_v40  ;;  %v5082_v23 = vld [vmem:[%s5355_s6 + $0x634] ss:$28 sps:$4 sm:$0xff]  }
 0x20d   : > { %v2682_v53 = vpop.f32.mrf.mxu1  ;;  %v2843_v26 = vpop.f32.mrf.mxu0 }
 0x20f   : > { %v2683_v62 = vpop.f32.mrf.mxu1  ;;  %v2844_v37 = vpop.f32.mrf.mxu0 }
 0x210   : > { %v5944_v22 = vadd.f32 %v2683_v62, %v5808_v33  ;;  %v5947_v50 = vadd.f32 %v2844_v37, %v5694_v18  ;;  %v5080_v37 = vld [vmem:[%s5355_s6 + $0x630] ss:$28 sps:$4 sm:$0xff]  }
 0x211   : > { %v2685_v6 = vpop.f32.mrf.mxu1  ;;  %v2846_v9 = vpop.f32.mrf.mxu0 }
 0x212   : > { %v5084_v6 = vld [vmem:[%s5355_s6 + $0x590] ss:$28 sps:$4 sm:$0xff]  }
 0x213   : > { %v2688_v25 = vpop.f32.mrf.mxu1  ;;  %v2849_v40 = vpop.f32.mrf.mxu0  ;;  %3040 = vmatmul.mubr.bf16.gmra.mxu0 %v5075_v51  ;;  %4635 = vmatmul.mubr.msk.bf16.gmra.mxu1 %vm2116_vm1, %v5079_v38  ;;  %v5088_v38 = vld [vmem:[%s5355_s6 + $0x5c8] ss:$28 sps:$4 sm:$0xff]  }
 0x214   : > { %v5953_v3 = vadd.f32 %v2688_v25, %v5817_v46  ;;  %v5956_v33 = vadd.f32 %v2849_v40, %v5701_v34  ;;  %3047 = vmatprep.mubr.bf16.mxu0 %v5082_v23  ;;  %4638 = vmatprep.mubr.msk.bf16.mxu1 %vm2116_vm1, %v5083_v17  ;;  %v5087_v46 = vld [vmem:[%s5355_s6 + $0x66c] ss:$28 sps:$4 sm:$0xff]  }
 0x215   : > { %v2690_v18 = vpop.f32.mrf.mxu1  ;;  %v2851_v53 = vpop.f32.mrf.mxu0 }
 0x217   : > { %v2691_v26 = vpop.f32.mrf.mxu1  ;;  %v2852_v62 = vpop.f32.mrf.mxu0 }
 0x218   : > { %v5962_v9 = vadd.f32 %v2691_v26, %v5824_v20  ;;  %v5965_v51 = vadd.f32 %v2852_v62, %v5708_v48  ;;  %v5085_v62 = vld [vmem:[%s5355_s6 + $0x668] ss:$28 sps:$4 sm:$0xff]  }
 0x219   : > { %v2693_v34 = vpop.f32.mrf.mxu1  ;;  %v2854_v23 = vpop.f32.mrf.mxu0 }
 0x21a   : > { %v5089_v34 = vld [vmem:[%s5355_s6 + $0x600] ss:$28 sps:$4 sm:$0xff]  }
 0x21b   : > { %v2696_v25 = vpop.f32.mrf.mxu1  ;;  %v2857_v17 = vpop.f32.mrf.mxu0  ;;  %3048 = vmatmul.mubr.bf16.gmra.mxu0 %v5080_v37  ;;  %4639 = vmatmul.mubr.msk.bf16.gmra.mxu1 %vm2116_vm1, %v5084_v6  ;;  %v5093_v6 = vld [vmem:[%s5355_s6 + $0x638] ss:$28 sps:$4 sm:$0xff]  }
 0x21c   : > { %v5971_v40 = vadd.f32 %v2696_v25, %v5833_v44  ;;  %v5974_v20 = vadd.f32 %v2857_v17, %v5715_v2  ;;  %3055 = vmatprep.mubr.bf16.mxu0 %v5087_v46  ;;  %4642 = vmatprep.mubr.msk.bf16.mxu1 %vm2116_vm1, %v5088_v38  ;;  %v5092_v44 = vld [vmem:[%s5355_s6 + $0x6a4] ss:$28 sps:$4 sm:$0xff]  }
 0x21d   : > { %v2698_v48 = vpop.f32.mrf.mxu1  ;;  %v2859_v18 = vpop.f32.mrf.mxu0 }
 0x21f   : > { %v2699_v53 = vpop.f32.mrf.mxu1  ;;  %v2860_v26 = vpop.f32.mrf.mxu0 }
 0x220   : > { %v5980_v23 = vadd.f32 %v2699_v53, %v5840_v45  ;;  %v5983_v37 = vadd.f32 %v2860_v26, %v5722_v14  ;;  %v5090_v26 = vld [vmem:[%s5355_s6 + $0x6a0] ss:$28 sps:$4 sm:$0xff]  }
 0x221   : > { %v2701_v2 = vpop.f32.mrf.mxu1  ;;  %v2862_v46 = vpop.f32.mrf.mxu0 }
 0x222   : > { %v5094_v2 = vld [vmem:[%s5355_s6 + $0x670] ss:$28 sps:$4 sm:$0xff]  }
 0x223   : > { %v2704_v25 = vpop.f32.mrf.mxu1  ;;  %v2865_v38 = vpop.f32.mrf.mxu0  ;;  %3056 = vmatmul.mubr.bf16.gmra.mxu0 %v5085_v62  ;;  %4643 = vmatmul.mubr.msk.bf16.gmra.mxu1 %vm2116_vm1, %v5089_v34  ;;  %v5098_v34 = vld [vmem:[%s5355_s6 + $0x6a8] ss:$28 sps:$4 sm:$0xff]  }
 0x224   : > { %v5989_v17 = vadd.f32 %v2704_v25, %v5849_v35  ;;  %v5992_v45 = vadd.f32 %v2865_v38, %v5729_v54  ;;  %3063 = vmatprep.mubr.bf16.mxu0 %v5092_v44  ;;  %4646 = vmatprep.mubr.msk.bf16.mxu1 %vm2116_vm1, %v5093_v6  ;;  %v5097_v35 = vld [vmem:[%s5355_s6 + $0x6dc] ss:$28 sps:$4 sm:$0xff]  }
 0x225   : > { %v2706_v14 = vpop.f32.mrf.mxu1  ;;  %v2867_v48 = vpop.f32.mrf.mxu0 }
 0x227   : > { %v2707_v18 = vpop.f32.mrf.mxu1  ;;  %v2868_v53 = vpop.f32.mrf.mxu0 }
 0x228   : > { %v5998_v46 = vadd.f32 %v2707_v18, %v5856_v8  ;;  %v6001_v62 = vadd.f32 %v2868_v53, %v5736_v52  ;;  %v5095_v53 = vld [vmem:[%s5355_s6 + $0x6d8] ss:$28 sps:$4 sm:$0xff]  }
 0x229   : > { %v2709_v54 = vpop.f32.mrf.mxu1  ;;  %v2870_v44 = vpop.f32.mrf.mxu0 }
 0x22a   : > { %v5099_v54 = vld [vmem:[%s5355_s6 + $0x6e0] ss:$28 sps:$4 sm:$0xff]  }
 0x22b   : > { %v2712_v25 = vpop.f32.mrf.mxu1  ;;  %v2873_v6 = vpop.f32.mrf.mxu0  ;;  %3064 = vmatmul.mubr.bf16.gmra.mxu0 %v5090_v26  ;;  %4647 = vmatmul.mubr.msk.bf16.gmra.mxu1 %vm2116_vm1, %v5094_v2 }
 0x22c   : > { %v6007_v38 = vadd.f32 %v2712_v25, %v5865_v1  ;;  %v6010_v8 = vadd.f32 %v2873_v6, %v5743_v7  ;;  %3071 = vmatprep.mubr.bf16.mxu0 %v5097_v35  ;;  %4650 = vmatprep.mubr.msk.bf16.mxu1 %vm2116_vm1, %v5098_v34 }
 0x22d   : > { %v2714_v52 = vpop.f32.mrf.mxu1  ;;  %v2875_v14 = vpop.f32.mrf.mxu0 }
 0x22f   : > { %v2715_v48 = vpop.f32.mrf.mxu1  ;;  %v2876_v18 = vpop.f32.mrf.mxu0 }
 0x230   : > { %v6016_v44 = vadd.f32 %v2715_v48, %v5872_v27  ;;  %v6019_v26 = vadd.f32 %v2876_v18, %v5750_v11 }
 0x231   : > { %v2717_v1 = vpop.f32.mrf.mxu1  ;;  %v2878_v2 = vpop.f32.mrf.mxu0 }
 0x232   : > { %6563 = vst [vmem:[#allocation19_spill] sm:$0xff] %v6016_v44 }
 0x233   : > { %v2720_v25 = vpop.f32.mrf.mxu1  ;;  %v2881_v7 = vpop.f32.mrf.mxu0  ;;  %3072 = vmatmul.mubr.bf16.gmra.mxu0 %v5095_v53  ;;  %4651 = vmatmul.mubr.msk.bf16.gmra.mxu1 %vm2116_vm1, %v5099_v54 }
 0x234   : > { %v6023_v35 = vadd.f32 %v2720_v25, %v5881_v59  ;;  %v6026_v34 = vadd.f32 %v2881_v7, %v5757_v49 }
 0x235   : > { %v2722_v6 = vpop.f32.mrf.mxu1  ;;  %v2883_v52 = vpop.f32.mrf.mxu0 }
 0x237   : > { %v2723_v27 = vpop.f32.mrf.mxu1  ;;  %v2884_v14 = vpop.f32.mrf.mxu0 }
 0x238   : > { %v6029_v11 = vadd.f32 %v2723_v27, %v5888_v42  ;;  %v6032_v48 = vadd.f32 %v2884_v14, %v5765_v29 }
 0x239   : > { %v2725_v18 = vpop.f32.mrf.mxu1  ;;  %v2886_v53 = vpop.f32.mrf.mxu0 }
 0x23a   : > { %6564 = vst [vmem:[#allocation20_spill] sm:$0xff] %v6029_v11  ;;  %v533_v11 = vld [vmem:[#allocation2 + $0x8] sm:$0xff] }
 0x23b   : > { %v6034_v1 = vpop.f32.mrf.mxu1  ;;  %v2889_v54 = vpop.f32.mrf.mxu0 }
 0x23c   : > { %6565 = vst [vmem:[#allocation21_spill] sm:$0xff] %v6034_v1  ;;  %v6037_v59 = vadd.f32 %v2889_v54, %v5773_v15 }
 0x23d   : > { %v2730_v49 = vpop.f32.mrf.mxu1  ;;  %v2891_v2 = vpop.f32.mrf.mxu0 }
 0x23f   : > { %v6039_v25 = vpop.f32.mrf.mxu1  ;;  %v2892_v7 = vpop.f32.mrf.mxu0 }
 0x240   : > { %6566 = vst [vmem:[#allocation22_spill] sm:$0xff] %v6039_v25  ;;  %v6042_v6 = vadd.f32 %v2892_v7, %v5781_v60 }
 0x241   : > { %v2733_v42 = vpop.f32.mrf.mxu1  ;;  %v2894_v52 = vpop.f32.mrf.mxu0 }
 0x243   : > { %v6044_v29 = vpop.f32.mrf.mxu1  ;;  %v2897_v27 = vpop.f32.mrf.mxu0 }
 0x244   : > { %6567 = vst [vmem:[#allocation23_spill] sm:$0xff] %v6044_v29  ;;  %v6047_v14 = vadd.f32 %v2897_v27, %v5789_v58 }
 0x245   : > { %v2738_v18 = vpop.f32.mrf.mxu1  ;;  %v2899_v53 = vpop.f32.mrf.mxu0 }
 0x247   : > { %v6049_v15 = vpop.f32.mrf.mxu1  ;;  %v2900_v54 = vpop.f32.mrf.mxu0 }
 0x248   : > { %6568 = vst [vmem:[#allocation24_spill] sm:$0xff] %v6049_v15  ;;  %v6052_v49 = vadd.f32 %v2900_v54, %v5797_v13 }
 0x249   : > { %v2741_v2 = vpop.f32.mrf.mxu1  ;;  %v2902_v25 = vpop.f32.mrf.mxu0 }
 0x24b   : > { %v6054_v60 = vpop.f32.mrf.mxu1  ;;  %v2905_v7 = vpop.f32.mrf.mxu0 }
 0x24c   : > { %6569 = vst [vmem:[#allocation25_spill] sm:$0xff] %v6054_v60  ;;  %v6057_v42 = vadd.f32 %v2905_v7, %v5805_v19 }
 0x24d   : > { %v2746_v52 = vpop.f32.mrf.mxu1  ;;  %v2907_v1 = vpop.f32.mrf.mxu0 }
 0x24f   : > { %v6059_v58 = vpop.f32.mrf.mxu1  ;;  %v2908_v27 = vpop.f32.mrf.mxu0 }
 0x250   : > { %6570 = vst [vmem:[#allocation26_spill] sm:$0xff] %v6059_v58  ;;  %v6062_v18 = vadd.f32 %v2908_v27, %v5813_v47 }
 0x251   : > { %v2749_v53 = vpop.f32.mrf.mxu1  ;;  %v2910_v15 = vpop.f32.mrf.mxu0 }
 0x253   : > { %v6064_v13 = vpop.f32.mrf.mxu1  ;;  %v2913_v54 = vpop.f32.mrf.mxu0 }
 0x254   : > { %6571 = vst [vmem:[#allocation27_spill] sm:$0xff] %v6064_v13  ;;  %v6067_v25 = vadd.f32 %v2913_v54, %v5821_v5 }
 0x255   : > { %v2754_v2 = vpop.f32.mrf.mxu1  ;;  %v2915_v60 = vpop.f32.mrf.mxu0 }
 0x257   : > { %v6069_v19 = vpop.f32.mrf.mxu1  ;;  %v2916_v7 = vpop.f32.mrf.mxu0 }
 0x258   : > { %6572 = vst [vmem:[#allocation28_spill] sm:$0xff] %v6069_v19  ;;  %v6072_v1 = vadd.f32 %v2916_v7, %v5829_v41 }
 0x259   : > { %v2757_v52 = vpop.f32.mrf.mxu1  ;;  %v2918_v58 = vpop.f32.mrf.mxu0 }
 0x25b   : > { %v6074_v47 = vpop.f32.mrf.mxu1  ;;  %v2921_v27 = vpop.f32.mrf.mxu0 }
 0x25c   : > { %6573 = vst [vmem:[#allocation29_spill] sm:$0xff] %v6074_v47  ;;  %v6077_v15 = vadd.f32 %v2921_v27, %v5837_v56 }
 0x25d   : > { %v2762_v53 = vpop.f32.mrf.mxu1  ;;  %v2923_v13 = vpop.f32.mrf.mxu0 }
 0x25f   : > { %v6079_v5 = vpop.f32.mrf.mxu1  ;;  %v2924_v54 = vpop.f32.mrf.mxu0 }
 0x260   : > { %6574 = vst [vmem:[#allocation30_spill] sm:$0xff] %v6079_v5  ;;  %v6082_v60 = vadd.f32 %v2924_v54, %v5845_v30 }
 0x261   : > { %v2765_v2 = vpop.f32.mrf.mxu1  ;;  %v2926_v19 = vpop.f32.mrf.mxu0 }
 0x263   : > { %v6084_v41 = vpop.f32.mrf.mxu1  ;;  %v2929_v7 = vpop.f32.mrf.mxu0 }
 0x264   : > { %6575 = vst [vmem:[#allocation31_spill] sm:$0xff] %v6084_v41  ;;  %v6087_v58 = vadd.f32 %v2929_v7, %v5853_v21 }
 0x265   : > { %v2770_v52 = vpop.f32.mrf.mxu1  ;;  %v2931_v47 = vpop.f32.mrf.mxu0 }
 0x267   : > { %v6089_v56 = vpop.f32.mrf.mxu1  ;;  %v2932_v27 = vpop.f32.mrf.mxu0 }
 0x268   : > { %6576 = vst [vmem:[#allocation32_spill] sm:$0xff] %v6089_v56  ;;  %v6092_v13 = vadd.f32 %v2932_v27, %v5861_v24 }
 0x269   : > { %v2773_v53 = vpop.f32.mrf.mxu1  ;;  %v2934_v5 = vpop.f32.mrf.mxu0 }
 0x26b   : > { %v6094_v30 = vpop.f32.mrf.mxu1  ;;  %v2937_v54 = vpop.f32.mrf.mxu0 }
 0x26c   : > { %6577 = vst [vmem:[#allocation33_spill] sm:$0xff] %v6094_v30  ;;  %v6097_v19 = vadd.f32 %v2937_v54, %v5869_v36 }
 0x26d   : > { %v2778_v2 = vpop.f32.mrf.mxu1  ;;  %v2939_v41 = vpop.f32.mrf.mxu0 }
 0x26f   : > { %v6099_v21 = vpop.f32.mrf.mxu1  ;;  %v2940_v7 = vpop.f32.mrf.mxu0 }
 0x270   : > { %6578 = vst [vmem:[#allocation34_spill] sm:$0xff] %v6099_v21  ;;  %v6102_v47 = vadd.f32 %v2940_v7, %v5877_v4  ;;  %v534_v21 = vld [vmem:[#allocation2 + $0x10] sm:$0xff] }
 0x271   : > { %v2781_v52 = vpop.f32.mrf.mxu1  ;;  %v2942_v56 = vpop.f32.mrf.mxu0 }
 0x272   : > { %v532_v52 = vld [vmem:[#allocation2] sm:$0xff] }
 0x273   : > { %v6104_v24 = vpop.f32.mrf.mxu1  ;;  %v6106_v27 = vpop.f32.mrf.mxu0 }
 0x274   : > { %6579 = vst [vmem:[#allocation35_spill] sm:$0xff] %v6104_v24 }
 0x275   : > { %v2786_v5 = vpop.f32.mrf.mxu1  ;;  %v2947_v53 = vpop.f32.mrf.mxu0 }
 0x277   : > { %v6108_v30 = vpop.f32.mrf.mxu1  ;;  %v6110_v36 = vpop.f32.mrf.mxu0 }
 0x278   : > { %6580 = vst [vmem:[#allocation36_spill] sm:$0xff] %v6108_v30  ;;  %v535_v30 = vld [vmem:[#allocation2 + $0x18] sm:$0xff] }
 0x279   : > { %v2789_v54 = vpop.f32.mrf.mxu1  ;;  %v2950_v41 = vpop.f32.mrf.mxu0 }
 0x27b   : > { %v2953_v2 = vpop.f32.mrf.mxu0  ;;  %v4592_v44 = vpop.f32.mrf.mxu1 }
 0x27c   : > { %v6113_v4 = vadd.f32 %v2953_v2, %v5899_v57  ;;  %v3123_v56 = vadd.f32 %v4592_v44, %v5920_v31 }
 0x27d   : > { %v2955_v7 = vpop.f32.mrf.mxu0  ;;  %v3114_v24 = vpop.f32.mrf.mxu1 }
 0x27e   : > { %v3371_v29 = vadd.f32 %v3123_v56, %v534_v21  ;;  %v3115_v5 = vadd.f32 %v3114_v24, %v5902_v10  ;;  %v538_v24 = vld [vmem:[#allocation2 + $0x30] sm:$0xff] }
 0x27f   : > { %v2956_v53 = vpop.f32.mrf.mxu0  ;;  %v4593_v39 = vpop.f32.mrf.mxu1 }
 0x280   : > { %3435 = vst.msk [vmem:[#allocation2 + $0x10] sm:$0xff] %vm2116_vm1, %v3371_v29  ;;  %v3369_v54 = vadd.f32 %v3115_v5, %v532_v52  ;;  %v6119_v41 = vadd.f32 %v2956_v53, %v5908_v28  ;;  %v3126_v57 = vadd.f32 %v4593_v39, %v5929_v43  ;;  %v536_v52 = vld [vmem:[#allocation2 + $0x20] sm:$0xff] }
 0x281   : > { %v2958_v2 = vpop.f32.mrf.mxu0  ;;  %v3117_v31 = vpop.f32.mrf.mxu1 }
 0x282   : > { %3433 = vst.msk [vmem:[#allocation2] sm:$0xff] %vm2116_vm1, %v3369_v54  ;;  %v3372_v44 = vadd.f32 %v3126_v57, %v535_v30  ;;  %v3118_v21 = vadd.f32 %v3117_v31, %v5911_v55  ;;  %v539_v55 = vld [vmem:[#allocation2 + $0x38] sm:$0xff]  ;;  %v537_v2 = vld [vmem:[#allocation2 + $0x28] sm:$0xff] }
 0x283   : > { %v6124_v10 = vpop.f32.mrf.mxu0  ;;  %v4596_v56 = vpop.f32.mrf.mxu1 }
 0x284   : > { %3436 = vst.msk [vmem:[#allocation2 + $0x18] sm:$0xff] %vm2116_vm1, %v3372_v44  ;;  %v3370_v29 = vadd.f32 %v3118_v21, %v533_v11  ;;  %v3139_v28 = vadd.f32 %v4596_v56, %v5956_v33 }
 0x285   : > { %v2963_v7 = vpop.f32.mrf.mxu0  ;;  %v3130_v39 = vpop.f32.mrf.mxu1 }
 0x286   : > { %3434 = vst.msk [vmem:[#allocation2 + $0x8] sm:$0xff] %vm2116_vm1, %v3370_v29  ;;  %v3375_v43 = vadd.f32 %v3139_v28, %v538_v24  ;;  %v3131_v5 = vadd.f32 %v3130_v39, %v5938_v0  ;;  %v542_v0 = vld [vmem:[#allocation2 + $0x50] sm:$0xff]  ;;  %v540_v7 = vld [vmem:[#allocation2 + $0x40] sm:$0xff] }
 0x287   : > { %v6130_v30 = vpop.f32.mrf.mxu0  ;;  %v4597_v53 = vpop.f32.mrf.mxu1 }
 0x288   : > { %3439 = vst.msk [vmem:[#allocation2 + $0x30] sm:$0xff] %vm2116_vm1, %v3375_v43  ;;  %v3373_v54 = vadd.f32 %v3131_v5, %v536_v52  ;;  %v3142_v57 = vadd.f32 %v4597_v53, %v5965_v51 }
 0x289   : > { %v2966_v11 = vpop.f32.mrf.mxu0  ;;  %v3133_v33 = vpop.f32.mrf.mxu1 }
 0x28a   : > { %3437 = vst.msk [vmem:[#allocation2 + $0x20] sm:$0xff] %vm2116_vm1, %v3373_v54  ;;  %v3376_v31 = vadd.f32 %v3142_v57, %v539_v55  ;;  %v3134_v44 = vadd.f32 %v3133_v33, %v5947_v50  ;;  %v543_v50 = vld [vmem:[#allocation2 + $0x58] sm:$0xff]  ;;  %v541_v57 = vld [vmem:[#allocation2 + $0x48] sm:$0xff] }
 0x28b   : > { %v6136_v21 = vpop.f32.mrf.mxu0  ;;  %v4600_v24 = vpop.f32.mrf.mxu1 }
 0x28c   : > { %3440 = vst.msk [vmem:[#allocation2 + $0x38] sm:$0xff] %vm2116_vm1, %v3376_v31  ;;  %v3374_v56 = vadd.f32 %v3134_v44, %v537_v2  ;;  %v3155_v29 = vadd.f32 %v4600_v24, %v5992_v45 }
 0x28d   : > { %v2971_v28 = vpop.f32.mrf.mxu0  ;;  %v3146_v51 = vpop.f32.mrf.mxu1 }
 0x28e   : > { %3438 = vst.msk [vmem:[#allocation2 + $0x28] sm:$0xff] %vm2116_vm1, %v3374_v56  ;;  %v3379_v52 = vadd.f32 %v3155_v29, %v542_v0  ;;  %v3147_v39 = vadd.f32 %v3146_v51, %v5974_v20  ;;  %v546_v20 = vld [vmem:[#allocation2 + $0x70] sm:$0xff]  ;;  %v544_v56 = vld [vmem:[#allocation2 + $0x60] sm:$0xff] }
 0x28f   : > { %v6142_v43 = vpop.f32.mrf.mxu0  ;;  %v4601_v5 = vpop.f32.mrf.mxu1 }
 0x290   : > { %3443 = vst.msk [vmem:[#allocation2 + $0x50] sm:$0xff] %vm2116_vm1, %v3379_v52  ;;  %v3377_v55 = vadd.f32 %v3147_v39, %v540_v7  ;;  %v3158_v53 = vadd.f32 %v4601_v5, %v6001_v62  ;;  %v545_v5 = vld [vmem:[#allocation2 + $0x68] sm:$0xff] }
 0x291   : > { %v2974_v54 = vpop.f32.mrf.mxu0  ;;  %v3149_v45 = vpop.f32.mrf.mxu1 }
 0x292   : > { %3441 = vst.msk [vmem:[#allocation2 + $0x40] sm:$0xff] %vm2116_vm1, %v3377_v55  ;;  %v3380_v11 = vadd.f32 %v3158_v53, %v543_v50  ;;  %v3150_v2 = vadd.f32 %v3149_v45, %v5983_v37  ;;  %v547_v37 = vld [vmem:[#allocation2 + $0x78] sm:$0xff] }
 0x293   : > { %v6148_v33 = vpop.f32.mrf.mxu0  ;;  %v4604_v31 = vpop.f32.mrf.mxu1 }
 0x294   : > { %3444 = vst.msk [vmem:[#allocation2 + $0x58] sm:$0xff] %vm2116_vm1, %v3380_v11  ;;  %v3378_v44 = vadd.f32 %v3150_v2, %v541_v57  ;;  %v3171_v0 = vadd.f32 %v4604_v31, %v6026_v34 }
 0x295   : > { %v2979_v24 = vpop.f32.mrf.mxu0  ;;  %v3162_v62 = vpop.f32.mrf.mxu1 }
 0x296   : > { %3442 = vst.msk [vmem:[#allocation2 + $0x48] sm:$0xff] %vm2116_vm1, %v3378_v44  ;;  %v3383_v29 = vadd.f32 %v3171_v0, %v546_v20  ;;  %v3163_v28 = vadd.f32 %v3162_v62, %v6010_v8  ;;  %v550_v8 = vld [vmem:[#allocation2 + $0x90] sm:$0xff]  ;;  %v548_v20 = vld [vmem:[#allocation2 + $0x80] sm:$0xff] }
 0x297   : > { %v6154_v7 = vpop.f32.mrf.mxu0  ;;  %v4605_v51 = vpop.f32.mrf.mxu1 }
 0x298   : > { %3447 = vst.msk [vmem:[#allocation2 + $0x70] sm:$0xff] %vm2116_vm1, %v3383_v29  ;;  %v3381_v52 = vadd.f32 %v3163_v28, %v544_v56  ;;  %v3174_v39 = vadd.f32 %v4605_v51, %v6032_v48  ;;  %v549_v28 = vld [vmem:[#allocation2 + $0x88] sm:$0xff] }
 0x299   : > { %v2982_v50 = vpop.f32.mrf.mxu0  ;;  %v3165_v34 = vpop.f32.mrf.mxu1 }
 0x29a   : > { %3445 = vst.msk [vmem:[#allocation2 + $0x60] sm:$0xff] %vm2116_vm1, %v3381_v52  ;;  %v3384_v55 = vadd.f32 %v3174_v39, %v547_v37  ;;  %v3166_v53 = vadd.f32 %v3165_v34, %v6019_v26  ;;  %v551_v26 = vld [vmem:[#allocation2 + $0x98] sm:$0xff] }
 0x29b   : > { %v6160_v54 = vpop.f32.mrf.mxu0  ;;  %v4608_v57 = vpop.f32.mrf.mxu1 }
 0x29c   : > { %3448 = vst.msk [vmem:[#allocation2 + $0x78] sm:$0xff] %vm2116_vm1, %v3384_v55  ;;  %v3382_v45 = vadd.f32 %v3166_v53, %v545_v5  ;;  %v3187_v11 = vadd.f32 %v4608_v57, %v6047_v14  ;;  %v552_v55 = vld [vmem:[#allocation2 + $0xa0] sm:$0xff] }
 0x29d   : > { %v2987_v2 = vpop.f32.mrf.mxu0  ;;  %v3178_v48 = vpop.f32.mrf.mxu1 }
 0x29e   : > { %3446 = vst.msk [vmem:[#allocation2 + $0x68] sm:$0xff] %vm2116_vm1, %v3382_v45  ;;  %v3387_v31 = vadd.f32 %v3187_v11, %v550_v8  ;;  %v3179_v44 = vadd.f32 %v3178_v48, %v6037_v59  ;;  %v554_v59 = vld [vmem:[#allocation2 + $0xb0] sm:$0xff]  ;;  %v553_v48 = vld [vmem:[#allocation2 + $0xa8] sm:$0xff] }
 0x29f   : > { %v6166_v0 = vpop.f32.mrf.mxu0  ;;  %v4609_v24 = vpop.f32.mrf.mxu1 }
 0x2a0   : > { %3451 = vst.msk [vmem:[#allocation2 + $0x90] sm:$0xff] %vm2116_vm1, %v3387_v31  ;;  %v3385_v56 = vadd.f32 %v3179_v44, %v548_v20  ;;  %v3190_v62 = vadd.f32 %v4609_v24, %v6052_v49 }
 0x2a1   : > { %v2990_v29 = vpop.f32.mrf.mxu0  ;;  %v3181_v14 = vpop.f32.mrf.mxu1 }
 0x2a2   : > { %3449 = vst.msk [vmem:[#allocation2 + $0x80] sm:$0xff] %vm2116_vm1, %v3385_v56  ;;  %v3388_v37 = vadd.f32 %v3190_v62, %v551_v26  ;;  %v3182_v51 = vadd.f32 %v3181_v14, %v6042_v6  ;;  %v555_v6 = vld [vmem:[#allocation2 + $0xb8] sm:$0xff] }
 0x2a3   : > { %v6172_v52 = vpop.f32.mrf.mxu0  ;;  %v4612_v39 = vpop.f32.mrf.mxu1 }
 0x2a4   : > { %3452 = vst.msk [vmem:[#allocation2 + $0x98] sm:$0xff] %vm2116_vm1, %v3388_v37  ;;  %v3386_v50 = vadd.f32 %v3182_v51, %v549_v28  ;;  %v3203_v5 = vadd.f32 %v4612_v39, %v6067_v25  ;;  %v556_v28 = vld [vmem:[#allocation2 + $0xc0] sm:$0xff] }
 0x2a5   : > { %v2995_v34 = vpop.f32.mrf.mxu0  ;;  %v3194_v49 = vpop.f32.mrf.mxu1 }
 0x2a6   : > { %3450 = vst.msk [vmem:[#allocation2 + $0x88] sm:$0xff] %vm2116_vm1, %v3386_v50  ;;  %v3391_v53 = vadd.f32 %v3203_v5, %v554_v59  ;;  %v3195_v8 = vadd.f32 %v3194_v49, %v6057_v42  ;;  %v558_v42 = vld [vmem:[#allocation2 + $0xd0] sm:$0xff]  ;;  %v557_v34 = vld [vmem:[#allocation2 + $0xc8] sm:$0xff] }
 0x2a7   : > { %v6178_v57 = vpop.f32.mrf.mxu0  ;;  %v4613_v45 = vpop.f32.mrf.mxu1 }
 0x2a8   : > { %3455 = vst.msk [vmem:[#allocation2 + $0xb0] sm:$0xff] %vm2116_vm1, %v3391_v53  ;;  %v3389_v11 = vadd.f32 %v3195_v8, %v552_v55  ;;  %v3206_v2 = vadd.f32 %v4613_v45, %v6072_v1  ;;  %v2946_v55 = vadd.f32 %v6106_v27, %v5885_v61  ;;  %v562_v8 = vld [vmem:[#allocation2 + $0xf0] sm:$0xff] }
 0x2a9   : > { %v2998_v20 = vpop.f32.mrf.mxu0  ;;  %v3197_v25 = vpop.f32.mrf.mxu1 }
 0x2aa   : > { %3453 = vst.msk [vmem:[#allocation2 + $0xa0] sm:$0xff] %vm2116_vm1, %v3389_v11  ;;  %v3392_v31 = vadd.f32 %v3206_v2, %v555_v6  ;;  %v3198_v44 = vadd.f32 %v3197_v25, %v6062_v18  ;;  %v559_v18 = vld [vmem:[#allocation2 + $0xd8] sm:$0xff]  ;;  %v560_v2 = vld [vmem:[#allocation2 + $0xe0] sm:$0xff] }
 0x2ab   : > { %v6184_v26 = vpop.f32.mrf.mxu0  ;;  %v4616_v24 = vpop.f32.mrf.mxu1  ;;  %v563_v25 = vld [vmem:[#allocation2 + $0xf8] sm:$0xff] }
 0x2ac   : > { %3456 = vst.msk [vmem:[#allocation2 + $0xb8] sm:$0xff] %vm2116_vm1, %v3392_v31  ;;  %v3390_v56 = vadd.f32 %v3198_v44, %v553_v48  ;;  %v3219_v62 = vadd.f32 %v4616_v24, %v6087_v58  ;;  %v2949_v48 = vadd.f32 %v6110_v36, %v5893_v63 }
 0x2ad   : > { %v3003_v29 = vpop.f32.mrf.mxu0  ;;  %v3210_v1 = vpop.f32.mrf.mxu1 }
 0x2ae   : > { %3454 = vst.msk [vmem:[#allocation2 + $0xa8] sm:$0xff] %vm2116_vm1, %v3390_v56  ;;  %v3395_v14 = vadd.f32 %v3219_v62, %v558_v42  ;;  %v3211_v37 = vadd.f32 %v3210_v1, %v6077_v15  ;;  %v561_v56 = vld [vmem:[#allocation2 + $0xe8] sm:$0xff]  ;;  %v2962_v29 = vadd.f32 %v6124_v10, %v5917_v16 }
 0x2af   : > { %v6190_v51 = vpop.f32.mrf.mxu0  ;;  %v4617_v59 = vpop.f32.mrf.mxu1 }
 0x2b0   : > { %3459 = vst.msk [vmem:[#allocation2 + $0xd0] sm:$0xff] %vm2116_vm1, %v3395_v14  ;;  %v3393_v39 = vadd.f32 %v3211_v37, %v556_v28  ;;  %v3222_v50 = vadd.f32 %v4617_v59, %v6092_v13  ;;  %v566_v28 = vld [vmem:[#allocation2 + $0x110] sm:$0xff]  ;;  %v564_v59 = vld [vmem:[#allocation2 + $0x100] sm:$0xff] }
 0x2b1   : > { %v3006_v5 = vpop.f32.mrf.mxu0  ;;  %v3213_v58 = vpop.f32.mrf.mxu1 }
 0x2b2   : > { %3457 = vst.msk [vmem:[#allocation2 + $0xc0] sm:$0xff] %vm2116_vm1, %v3393_v39  ;;  %v3396_v49 = vadd.f32 %v3222_v50, %v559_v18  ;;  %v3214_v15 = vadd.f32 %v3213_v58, %v6082_v60  ;;  %v2965_v50 = vadd.f32 %v6130_v30, %v5926_v32  ;;  %v567_v5 = vld [vmem:[#allocation2 + $0x118] sm:$0xff] }
 0x2b3   : > { %v6198_v53 = vpop.f32.mrf.mxu0  ;;  %v4620_v6 = vpop.f32.mrf.mxu1 }
 0x2b4   : > { %3460 = vst.msk [vmem:[#allocation2 + $0xd8] sm:$0xff] %vm2116_vm1, %v3396_v49  ;;  %v3394_v45 = vadd.f32 %v3214_v15, %v557_v34  ;;  %v3235_v11 = vadd.f32 %v4620_v6, %v2946_v55  ;;  %v565_v15 = vld [vmem:[#allocation2 + $0x108] sm:$0xff]  ;;  %v2978_v6 = vadd.f32 %v6148_v33, %v5953_v3  ;;  %v2981_v3 = vadd.f32 %v6154_v7, %v5962_v9 }
 0x2b5   : > { %v3011_v13 = vpop.f32.mrf.mxu0  ;;  %v3226_v20 = vpop.f32.mrf.mxu1  ;;  %v2994_v9 = vadd.f32 %v6172_v52, %v5989_v17  ;;  %v2997_v17 = vadd.f32 %v6178_v57, %v5998_v46  ;;  %v3010_v46 = vadd.f32 %v6198_v53, %v6023_v35 }
 0x2b6   : > { %3458 = vst.msk [vmem:[#allocation2 + $0xc8] sm:$0xff] %vm2116_vm1, %v3394_v45  ;;  %v3399_v61 = vadd.f32 %v3235_v11, %v562_v8  ;;  %v3227_v27 = vadd.f32 %v3226_v20, %v6097_v19  ;;  %v570_v45 = vld [vmem:[#allocation2 + $0x130] sm:$0xff]  ;;  %v2970_v13 = vadd.f32 %v6136_v21, %v5935_v12  ;;  %v2973_v12 = vadd.f32 %v6142_v43, %v5944_v22 }
 0x2b7   : > { %v6205_v60 = vpop.f32.mrf.mxu0  ;;  %v4621_v31 = vpop.f32.mrf.mxu1  ;;  %v2986_v22 = vadd.f32 %v6160_v54, %v5971_v40  ;;  %v2989_v40 = vadd.f32 %v6166_v0, %v5980_v23  ;;  %v3002_v23 = vadd.f32 %v6184_v26, %v6007_v38  ;;  %v6584_v26 = vld [vmem:[#allocation19_spill] sm:$0xff] }
 0x2b8   : > { %3463 = vst.msk [vmem:[#allocation2 + $0xf0] sm:$0xff] %vm2116_vm1, %v3399_v61  ;;  %v3397_v44 = vadd.f32 %v3227_v27, %v560_v2  ;;  %v3238_v42 = vadd.f32 %v4621_v31, %v2949_v48  ;;  %v568_v61 = vld [vmem:[#allocation2 + $0x120] sm:$0xff]  ;;  %v571_v31 = vld [vmem:[#allocation2 + $0x138] sm:$0xff] }
 0x2b9   : > { %v3014_v24 = vpop.f32.mrf.mxu0  ;;  %v3229_v62 = vpop.f32.mrf.mxu1 }
 0x2ba   : > { %3461 = vst.msk [vmem:[#allocation2 + $0xe0] sm:$0xff] %vm2116_vm1, %v3397_v44  ;;  %v3400_v63 = vadd.f32 %v3238_v42, %v563_v25  ;;  %v3230_v36 = vadd.f32 %v3229_v62, %v6102_v47 }
 0x2bb   : > { %v6212_v19 = vpop.f32.mrf.mxu0  ;;  %v4624_v1 = vpop.f32.mrf.mxu1 }
 0x2bc   : > { %3464 = vst.msk [vmem:[#allocation2 + $0xf8] sm:$0xff] %vm2116_vm1, %v3400_v63  ;;  %v3398_v14 = vadd.f32 %v3230_v36, %v561_v56  ;;  %v3251_v37 = vadd.f32 %v4624_v1, %v2962_v29  ;;  %v569_v56 = vld [vmem:[#allocation2 + $0x128] sm:$0xff]  ;;  %v574_v36 = vld [vmem:[#allocation2 + $0x150] sm:$0xff] }
 0x2bd   : > { %v3019_v18 = vpop.f32.mrf.mxu0  ;;  %v3242_v39 = vpop.f32.mrf.mxu1 }
 0x2be   : > { %3462 = vst.msk [vmem:[#allocation2 + $0xe8] sm:$0xff] %vm2116_vm1, %v3398_v14  ;;  %v3403_v16 = vadd.f32 %v3251_v37, %v566_v28  ;;  %v3243_v10 = vadd.f32 %v3242_v39, %v6113_v4  ;;  %v572_v37 = vld [vmem:[#allocation2 + $0x140] sm:$0xff] }
 0x2bf   : > { %v6219_v47 = vpop.f32.mrf.mxu0  ;;  %v4625_v34 = vpop.f32.mrf.mxu1 }
 0x2c0   : > { %3467 = vst.msk [vmem:[#allocation2 + $0x110] sm:$0xff] %vm2116_vm1, %v3403_v16  ;;  %v3401_v58 = vadd.f32 %v3243_v10, %v564_v59  ;;  %v3254_v55 = vadd.f32 %v4625_v34, %v2965_v50  ;;  %v575_v50 = vld [vmem:[#allocation2 + $0x158] sm:$0xff]  ;;  %v573_v34 = vld [vmem:[#allocation2 + $0x148] sm:$0xff] }
 0x2c1   : > { %v3022_v49 = vpop.f32.mrf.mxu0  ;;  %v3245_v8 = vpop.f32.mrf.mxu1 }
 0x2c2   : > { %3465 = vst.msk [vmem:[#allocation2 + $0x100] sm:$0xff] %vm2116_vm1, %v3401_v58  ;;  %v3404_v32 = vadd.f32 %v3254_v55, %v567_v5  ;;  %v3246_v30 = vadd.f32 %v3245_v8, %v6119_v41 }
 0x2c3   : > { %v6226_v4 = vpop.f32.mrf.mxu0  ;;  %v4628_v11 = vpop.f32.mrf.mxu1 }
 0x2c4   : > { %3468 = vst.msk [vmem:[#allocation2 + $0x118] sm:$0xff] %vm2116_vm1, %v3404_v32  ;;  %v3402_v2 = vadd.f32 %v3246_v30, %v565_v15  ;;  %v3267_v20 = vadd.f32 %v4628_v11, %v2978_v6  ;;  %v578_v15 = vld [vmem:[#allocation2 + $0x170] sm:$0xff]  ;;  %v576_v30 = vld [vmem:[#allocation2 + $0x160] sm:$0xff]  ;;  %v6581_v11 = vld [vmem:[#allocation20_spill] sm:$0xff] }
 0x2c5   : > { %v3027_v48 = vpop.f32.mrf.mxu0  ;;  %v3258_v27 = vpop.f32.mrf.mxu1  ;;  %v3013_v35 = vadd.f32 %v6205_v60, %v6581_v11  ;;  %v586_v11 = vld [vmem:[#allocation2 + $0x1b0] sm:$0xff] }
 0x2c6   : > { %3466 = vst.msk [vmem:[#allocation2 + $0x108] sm:$0xff] %vm2116_vm1, %v3402_v2  ;;  %v3407_v41 = vadd.f32 %v3267_v20, %v570_v45  ;;  %v3259_v33 = vadd.f32 %v3258_v27, %v2970_v13  ;;  %v579_v20 = vld [vmem:[#allocation2 + $0x178] sm:$0xff]  ;;  %v6583_v27 = vld [vmem:[#allocation23_spill] sm:$0xff] }
 0x2c7   : > { %v6234_v25 = vpop.f32.mrf.mxu0  ;;  %v4629_v44 = vpop.f32.mrf.mxu1 }
 0x2c8   : > { %3471 = vst.msk [vmem:[#allocation2 + $0x130] sm:$0xff] %vm2116_vm1, %v3407_v41  ;;  %v3405_v21 = vadd.f32 %v3259_v33, %v568_v61  ;;  %v3270_v42 = vadd.f32 %v4629_v44, %v2981_v3  ;;  %v6582_v61 = vld [vmem:[#allocation5_spill] sm:$0xff]  ;;  %v3005_v3 = vadd.f32 %v6190_v51, %v6584_v26  ;;  %v577_v44 = vld [vmem:[#allocation2 + $0x168] sm:$0xff] }
 0x2c9   : > { %v3030_v24 = vpop.f32.mrf.mxu0  ;;  %v3261_v62 = vpop.f32.mrf.mxu1  ;;  %v2737_v38 = vadd.f32 %v6583_v27, %v6582_v61 }
 0x2ca   : > { %3469 = vst.msk [vmem:[#allocation2 + $0x120] sm:$0xff] %vm2116_vm1, %v3405_v21  ;;  %v3408_v7 = vadd.f32 %v3270_v42, %v571_v31  ;;  %v3262_v29 = vadd.f32 %v3261_v62, %v2973_v12  ;;  %v6585_v12 = vld [vmem:[#allocation3_spill] sm:$0xff]  ;;  %v6586_v21 = vld [vmem:[#allocation21_spill] sm:$0xff] }
 0x2cb   : > { %v6242_v63 = vpop.f32.mrf.mxu0  ;;  %v4632_v28 = vpop.f32.mrf.mxu1  ;;  %v2729_v42 = vadd.f32 %v6586_v21, %v6585_v12  ;;  %v3026_v24 = vadd.f32 %v6226_v4, %v2737_v38  ;;  %v584_v38 = vld [vmem:[#allocation2 + $0x1a0] sm:$0xff]  ;;  %v587_v12 = vld [vmem:[#allocation2 + $0x1b8] sm:$0xff] }
 0x2cc   : > { %3472 = vst.msk [vmem:[#allocation2 + $0x138] sm:$0xff] %vm2116_vm1, %v3408_v7  ;;  %v3406_v43 = vadd.f32 %v3262_v29, %v569_v56  ;;  %v3283_v1 = vadd.f32 %v4632_v28, %v2994_v9  ;;  %v582_v7 = vld [vmem:[#allocation2 + $0x190] sm:$0xff]  ;;  %v6587_v29 = vld [vmem:[#allocation6_spill] sm:$0xff] }
 0x2cd   : > { %v3035_v14 = vpop.f32.mrf.mxu0  ;;  %v3274_v18 = vpop.f32.mrf.mxu1 }
 0x2ce   : > { %3470 = vst.msk [vmem:[#allocation2 + $0x128] sm:$0xff] %vm2116_vm1, %v3406_v43  ;;  %v3411_v52 = vadd.f32 %v3283_v1, %v574_v36  ;;  %v3275_v59 = vadd.f32 %v3274_v18, %v2986_v22  ;;  %v6588_v36 = vld [vmem:[#allocation24_spill] sm:$0xff]  ;;  %v3018_v22 = vadd.f32 %v6212_v19, %v2729_v42  ;;  %v6599_v42 = vld [vmem:[#allocation13_spill] sm:$0xff] }
 0x2cf   : > { %v6250_v39 = vpop.f32.mrf.mxu0  ;;  %v4633_v16 = vpop.f32.mrf.mxu1  ;;  %v2740_v28 = vadd.f32 %v6588_v36, %v6587_v29  ;;  %v6589_v18 = vld [vmem:[#allocation4_spill] sm:$0xff] }
 0x2d0   : > { %3475 = vst.msk [vmem:[#allocation2 + $0x150] sm:$0xff] %vm2116_vm1, %v3411_v52  ;;  %v3409_v54 = vadd.f32 %v3275_v59, %v572_v37  ;;  %v3286_v10 = vadd.f32 %v4633_v16, %v2997_v17  ;;  %v580_v37 = vld [vmem:[#allocation2 + $0x180] sm:$0xff]  ;;  %v6590_v17 = vld [vmem:[#allocation22_spill] sm:$0xff]  ;;  %v585_v29 = vld [vmem:[#allocation2 + $0x1a8] sm:$0xff] }
 0x2d1   : > { %v3038_v5 = vpop.f32.mrf.mxu0  ;;  %v3277_v58 = vpop.f32.mrf.mxu1  ;;  %v2732_v52 = vadd.f32 %v6590_v17, %v6589_v18  ;;  %v3029_v59 = vadd.f32 %v6234_v25, %v2740_v28  ;;  %v6602_v28 = vld [vmem:[#allocation29_spill] sm:$0xff]  ;;  %v6603_v17 = vld [vmem:[#allocation14_spill] sm:$0xff] }
 0x2d2   : > { %3473 = vst.msk [vmem:[#allocation2 + $0x140] sm:$0xff] %vm2116_vm1, %v3409_v54  ;;  %v3412_v57 = vadd.f32 %v3286_v10, %v575_v50  ;;  %v3278_v55 = vadd.f32 %v3277_v58, %v2989_v40  ;;  %v583_v54 = vld [vmem:[#allocation2 + $0x198] sm:$0xff]  ;;  %v6591_v10 = vld [vmem:[#allocation9_spill] sm:$0xff]  ;;  %v6592_v5 = vld [vmem:[#allocation27_spill] sm:$0xff] }
 0x2d3   : > { %v3041_v49 = vpop.f32.mrf.mxu0  ;;  %v4636_v8 = vpop.f32.mrf.mxu1  ;;  %v3021_v58 = vadd.f32 %v6219_v47, %v2732_v52  ;;  %v6596_v47 = vld [vmem:[#allocation28_spill] sm:$0xff] }
 0x2d4   : > { %3476 = vst.msk [vmem:[#allocation2 + $0x158] sm:$0xff] %vm2116_vm1, %v3412_v57  ;;  %v3410_v0 = vadd.f32 %v3278_v55, %v573_v34  ;;  %v3299_v6 = vadd.f32 %v4636_v8, %v3010_v46  ;;  %v2753_v34 = vadd.f32 %v6592_v5, %v6591_v10  ;;  %v6593_v8 = vld [vmem:[#allocation7_spill] sm:$0xff]  ;;  %v6605_v5 = vld [vmem:[#allocation12_spill] sm:$0xff] }
 0x2d5   : > { %v3043_v32 = vpop.f32.mrf.mxu0  ;;  %v3290_v45 = vpop.f32.mrf.mxu1 }
 0x2d6   : > { %3474 = vst.msk [vmem:[#allocation2 + $0x148] sm:$0xff] %vm2116_vm1, %v3410_v0  ;;  %v3415_v53 = vadd.f32 %v3299_v6, %v578_v15  ;;  %v3291_v13 = vadd.f32 %v3290_v45, %v3002_v23  ;;  %v581_v15 = vld [vmem:[#allocation2 + $0x188] sm:$0xff]  ;;  %v6594_v23 = vld [vmem:[#allocation25_spill] sm:$0xff]  ;;  %v3042_v6 = vadd.f32 %v3041_v49, %v2753_v34  ;;  %v6606_v34 = vld [vmem:[#allocation30_spill] sm:$0xff] }
 0x2d7   : > { %v3044_v2 = vpop.f32.mrf.mxu0  ;;  %v4637_v48 = vpop.f32.mrf.mxu1  ;;  %v2745_v0 = vadd.f32 %v6594_v23, %v6593_v8  ;;  %v6597_v49 = vld [vmem:[#allocation8_spill] sm:$0xff] }
 0x2d8   : > { %3479 = vst.msk [vmem:[#allocation2 + $0x170] sm:$0xff] %vm2116_vm1, %v3415_v53  ;;  %v3413_v41 = vadd.f32 %v3291_v13, %v576_v30  ;;  %v3302_v33 = vadd.f32 %v4637_v48, %v3013_v35  ;;  %v6595_v53 = vld [vmem:[#allocation10_spill] sm:$0xff] }
 0x2d9   : > { %v3046_v31 = vpop.f32.mrf.mxu0  ;;  %v3293_v60 = vpop.f32.mrf.mxu1  ;;  %v2756_v13 = vadd.f32 %v6596_v47, %v6595_v53  ;;  %v6609_v53 = vld [vmem:[#allocation17_spill] sm:$0xff]  ;;  %v6610_v47 = vld [vmem:[#allocation35_spill] sm:$0xff] }
 0x2da   : > { %3477 = vst.msk [vmem:[#allocation2 + $0x160] sm:$0xff] %vm2116_vm1, %v3413_v41  ;;  %v3416_v56 = vadd.f32 %v3302_v33, %v579_v20  ;;  %v3294_v62 = vadd.f32 %v3293_v60, %v3005_v3  ;;  %v3034_v20 = vadd.f32 %v6242_v63, %v2745_v0  ;;  %v6598_v3 = vld [vmem:[#allocation26_spill] sm:$0xff]  ;;  %v6600_v63 = vld [vmem:[#allocation31_spill] sm:$0xff] }
 0x2db   : > { %v6273_v9 = vpop.f32.mrf.mxu0  ;;  %v4640_v51 = vpop.f32.mrf.mxu1  ;;  %v2748_v41 = vadd.f32 %v6598_v3, %v6597_v49  ;;  %v3045_v33 = vadd.f32 %v3044_v2, %v2756_v13  ;;  %v6601_v2 = vld [vmem:[#allocation11_spill] sm:$0xff]  ;;  %v2785_v13 = vadd.f32 %v6610_v47, %v6609_v53  ;;  %v594_v49 = vld [vmem:[#allocation2 + $0x1f0] sm:$0xff] }
 0x2dc   : > { %3480 = vst.msk [vmem:[#allocation2 + $0x178] sm:$0xff] %vm2116_vm1, %v3416_v56  ;;  %v3414_v43 = vadd.f32 %v3294_v62, %v577_v44  ;;  %v3315_v1 = vadd.f32 %v4640_v51, %v3026_v24  ;;  %v2769_v24 = vadd.f32 %v6600_v63, %v6599_v42 }
 0x2dd   : > { %v3051_v14 = vpop.f32.mrf.mxu0  ;;  %v3306_v4 = vpop.f32.mrf.mxu1  ;;  %v3037_v56 = vadd.f32 %v6250_v39, %v2748_v41  ;;  %v6604_v39 = vld [vmem:[#allocation32_spill] sm:$0xff]  ;;  %v592_v41 = vld [vmem:[#allocation2 + $0x1e0] sm:$0xff] }
 0x2de   : > { %3478 = vst.msk [vmem:[#allocation2 + $0x168] sm:$0xff] %vm2116_vm1, %v3414_v43  ;;  %v3419_v50 = vadd.f32 %v3315_v1, %v582_v7  ;;  %v3307_v16 = vadd.f32 %v3306_v4, %v3018_v22  ;;  %v2761_v22 = vadd.f32 %v6602_v28, %v6601_v2  ;;  %v590_v4 = vld [vmem:[#allocation2 + $0x1d0] sm:$0xff]  ;;  %v2772_v52 = vadd.f32 %v6604_v39, %v6603_v17  ;;  %v595_v2 = vld [vmem:[#allocation2 + $0x1f8] sm:$0xff] }
 0x2df   : > { %v6283_v40 = vpop.f32.mrf.mxu0  ;;  %v4641_v19 = vpop.f32.mrf.mxu1 }
 0x2e0   : > { %3483 = vst.msk [vmem:[#allocation2 + $0x190] sm:$0xff] %vm2116_vm1, %v3419_v50  ;;  %v3417_v46 = vadd.f32 %v3307_v16, %v580_v37  ;;  %v3318_v57 = vadd.f32 %v4641_v19, %v3029_v59  ;;  %v3050_v59 = vadd.f32 %v6273_v9, %v2761_v22  ;;  %v588_v19 = vld [vmem:[#allocation2 + $0x1c0] sm:$0xff]  ;;  %v593_v22 = vld [vmem:[#allocation2 + $0x1e8] sm:$0xff] }
 0x2e1   : > { %v3054_v55 = vpop.f32.mrf.mxu0  ;;  %v3309_v25 = vpop.f32.mrf.mxu1 }
 0x2e2   : > { %3481 = vst.msk [vmem:[#allocation2 + $0x180] sm:$0xff] %vm2116_vm1, %v3417_v46  ;;  %v3420_v32 = vadd.f32 %v3318_v57, %v583_v54  ;;  %v3310_v30 = vadd.f32 %v3309_v25, %v3021_v58  ;;  %v2764_v58 = vadd.f32 %v6606_v34, %v6605_v5  ;;  %v591_v25 = vld [vmem:[#allocation2 + $0x1d8] sm:$0xff] }
 0x2e3   : > { %v3057_v45 = vpop.f32.mrf.mxu0  ;;  %v4644_v35 = vpop.f32.mrf.mxu1 }
 0x2e4   : > { %3484 = vst.msk [vmem:[#allocation2 + $0x198] sm:$0xff] %vm2116_vm1, %v3420_v32  ;;  %v3418_v48 = vadd.f32 %v3310_v30, %v581_v15  ;;  %v3331_v61 = vadd.f32 %v4644_v35, %v3042_v6  ;;  %v3058_v43 = vadd.f32 %v3057_v45, %v2769_v24  ;;  %v3053_v9 = vadd.f32 %v6283_v40, %v2764_v58  ;;  %v589_v32 = vld [vmem:[#allocation2 + $0x1c8] sm:$0xff]  ;;  %v6607_v45 = vld [vmem:[#allocation15_spill] sm:$0xff] }
 0x2e5   : > { %v3059_v27 = vpop.f32.mrf.mxu0  ;;  %v3322_v26 = vpop.f32.mrf.mxu1 }
 0x2e6   : > { %3482 = vst.msk [vmem:[#allocation2 + $0x188] sm:$0xff] %vm2116_vm1, %v3418_v48  ;;  %v3423_v31 = vadd.f32 %v3331_v61, %v586_v11  ;;  %v3323_v44 = vadd.f32 %v3322_v26, %v3034_v20  ;;  %v6608_v11 = vld [vmem:[#allocation33_spill] sm:$0xff] }
 0x2e7   : > { %v3060_v60 = vpop.f32.mrf.mxu0  ;;  %v4645_v21 = vpop.f32.mrf.mxu1  ;;  %v2777_v35 = vadd.f32 %v6608_v11, %v6607_v45 }
 0x2e8   : > { %3487 = vst.msk [vmem:[#allocation2 + $0x1b0] sm:$0xff] %vm2116_vm1, %v3423_v31  ;;  %v3421_v62 = vadd.f32 %v3323_v44, %v584_v38  ;;  %v3334_v7 = vadd.f32 %v4645_v21, %v3045_v33  ;;  %v3061_v46 = vadd.f32 %v3060_v60, %v2772_v52  ;;  %v6611_v31 = vld [vmem:[#allocation16_spill] sm:$0xff]  ;;  %v6612_v44 = vld [vmem:[#allocation34_spill] sm:$0xff] }
 0x2e9   : > { %v3062_v51 = vpop.f32.mrf.mxu0  ;;  %v3325_v36 = vpop.f32.mrf.mxu1  ;;  %v2780_v60 = vadd.f32 %v6612_v44, %v6611_v31  ;;  %v6614_v21 = vld [vmem:[#allocation36_spill] sm:$0xff] }
 0x2ea   : > { %3485 = vst.msk [vmem:[#allocation2 + $0x1a0] sm:$0xff] %vm2116_vm1, %v3421_v62  ;;  %v3424_v1 = vadd.f32 %v3334_v7, %v587_v12  ;;  %v3326_v14 = vadd.f32 %v3325_v36, %v3037_v56  ;;  %v6613_v12 = vld [vmem:[#allocation18_spill] sm:$0xff] }
 0x2eb   : > { %v3065_v37 = vpop.f32.mrf.mxu0  ;;  %v4648_v18 = vpop.f32.mrf.mxu1  ;;  %v2788_v42 = vadd.f32 %v6614_v21, %v6613_v12 }
 0x2ec   : > { %3488 = vst.msk [vmem:[#allocation2 + $0x1b8] sm:$0xff] %vm2116_vm1, %v3424_v1  ;;  %v3422_v50 = vadd.f32 %v3326_v14, %v585_v29  ;;  %v3347_v16 = vadd.f32 %v4648_v18, %v3058_v43  ;;  %v3066_v40 = vadd.f32 %v3065_v37, %v2777_v35 }
 0x2ed   : > { %v3067_v54 = vpop.f32.mrf.mxu0  ;;  %v3338_v10 = vpop.f32.mrf.mxu1 }
 0x2ee   : > { %3486 = vst.msk [vmem:[#allocation2 + $0x1a8] sm:$0xff] %vm2116_vm1, %v3422_v50  ;;  %v3427_v57 = vadd.f32 %v3347_v16, %v590_v4  ;;  %v3339_v55 = vadd.f32 %v3338_v10, %v3050_v59 }
 0x2ef   : > { %v3068_v15 = vpop.f32.mrf.mxu0  ;;  %v4649_v8 = vpop.f32.mrf.mxu1 }
 0x2f0   : > { %3491 = vst.msk [vmem:[#allocation2 + $0x1d0] sm:$0xff] %vm2116_vm1, %v3427_v57  ;;  %v3425_v23 = vadd.f32 %v3339_v55, %v588_v19  ;;  %v3350_v0 = vadd.f32 %v4649_v8, %v3061_v46  ;;  %v3069_v7 = vadd.f32 %v3068_v15, %v2780_v60 }
 0x2f1   : > { %v3070_v6 = vpop.f32.mrf.mxu0  ;;  %v3341_v30 = vpop.f32.mrf.mxu1 }
 0x2f2   : > { %3489 = vst.msk [vmem:[#allocation2 + $0x1c0] sm:$0xff] %vm2116_vm1, %v3425_v23  ;;  %v3428_v20 = vadd.f32 %v3350_v0, %v591_v25  ;;  %v3342_v48 = vadd.f32 %v3341_v30, %v3053_v9 }
 0x2f3   : > { %v3073_v61 = vpop.f32.mrf.mxu0  ;;  %v4652_v27 = vpop.f32.mrf.mxu1 }
 0x2f4   : > { %3492 = vst.msk [vmem:[#allocation2 + $0x1d8] sm:$0xff] %vm2116_vm1, %v3428_v20  ;;  %v3426_v38 = vadd.f32 %v3342_v48, %v589_v32  ;;  %v3074_v26 = vadd.f32 %v3073_v61, %v2785_v13 }
 0x2f5   : > { %v3075_v3 = vpop.f32.mrf.mxu0  ;;  %v3354_v33 = vpop.f32.mrf.mxu1 }
 0x2f6   : > { %3490 = vst.msk [vmem:[#allocation2 + $0x1c8] sm:$0xff] %vm2116_vm1, %v3426_v38  ;;  %v3363_v63 = vadd.f32 %v4652_v27, %v3074_v26  ;;  %v3355_v24 = vadd.f32 %v3354_v33, %v3066_v40 }
 0x2f7   : > { %v3076_v56 = vpop.f32.mrf.mxu0  ;;  %v4653_v62 = vpop.f32.mrf.mxu1 }
 0x2f8   : > { %v3431_v51 = vadd.f32 %v3363_v63, %v594_v49  ;;  %v3429_v29 = vadd.f32 %v3355_v24, %v592_v41  ;;  %v3077_v36 = vadd.f32 %v3076_v56, %v2788_v42 }
 0x2f9   : > { %v3078_v28 = vpop.f32.mrf.mxu0  ;;  %v3357_v43 = vpop.f32.mrf.mxu1 }
 0x2fa   : > { %3495 = vst.msk [vmem:[#allocation2 + $0x1f0] sm:$0xff] %vm2116_vm1, %v3431_v51  ;;  %3493 = vst.msk [vmem:[#allocation2 + $0x1e0] sm:$0xff] %vm2116_vm1, %v3429_v29  ;;  %v3366_v1 = vadd.f32 %v4653_v62, %v3077_v36  ;;  %v3358_v14 = vadd.f32 %v3357_v43, %v3069_v7  ;;  %3500 = sbr.rel (%p4418_p8) target bundleno = 821 (0x335), region = 40 }
 0x2fc   : > { %v3432_v37 = vadd.f32 %v3366_v1, %v595_v2  ;;  %v3430_v4 = vadd.f32 %v3358_v14, %v593_v22 }
 0x2fe   : > { %3496 = vst.msk [vmem:[#allocation2 + $0x1f8] sm:$0xff] %vm2116_vm1, %v3432_v37  ;;  %3494 = vst.msk [vmem:[#allocation2 + $0x1e8] sm:$0xff] %vm2116_vm1, %v3430_v4 }
 0x2ff   : > { %v3501_v18 = vld [vmem:[#allocation2] sm:$0xff]  ;;  %v3502_v39 = vld [vmem:[#allocation2 + $0x8] sm:$0xff]  ;;  %v3503_v50 = vld [vmem:[#allocation2 + $0x10] sm:$0xff]  ;;  %vm3956_vm2 = vcmask 257024  }
 0x300   : > { %v6334_v17 = vld [vmem:[%s6545_s2] ss:$0 sm:$0xff]  ;;  %v3504_v16 = vld [vmem:[#allocation2 + $0x18] sm:$0xff]  ;;  %v3506_v34 = vld [vmem:[#allocation2 + $0x28] sm:$0xff] }
 0x301   : > { %v3572_v52 = vadd.f32 %v6334_v17, %v3501_v18  ;;  %v3573_v59 = vadd.f32 %v6334_v17, %v3502_v39  ;;  %v3505_v54 = vld [vmem:[#allocation2 + $0x20] sm:$0xff]  ;;  %v3574_v19 = vadd.f32 %v6334_v17, %v3503_v50  ;;  %v3575_v10 = vadd.f32 %v6334_v17, %v3504_v16  ;;  %v3507_v58 = vld [vmem:[#allocation2 + $0x30] sm:$0xff]  ;;  %v3508_v46 = vld [vmem:[#allocation2 + $0x38] sm:$0xff] }
 0x302   : > { %v3576_v5 = vadd.f32 %v6334_v17, %v3505_v54  ;;  %v3577_v15 = vadd.f32 %v6334_v17, %v3506_v34  ;;  %v3578_v25 = vadd.f32 %v6334_v17, %v3507_v58  ;;  %v3579_v0 = vadd.f32 %v6334_v17, %v3508_v46  ;;  %v3509_v6 = vld [vmem:[#allocation2 + $0x40] sm:$0xff]  ;;  %v3510_v32 = vld [vmem:[#allocation2 + $0x48] sm:$0xff]  ;;  %v3511_v53 = vld [vmem:[#allocation2 + $0x50] sm:$0xff] }
 0x303   : > { %v3636_v57 = vmax.f32 %v3572_v52, 0.0  ;;  %v3637_v55 = vmax.f32 %v3573_v59, 0.0  ;;  %v3638_v8 = vmax.f32 %v3574_v19, 0.0  ;;  %v3639_v9 = vmax.f32 %v3575_v10, 0.0  ;;  %v3512_v47 = vld [vmem:[#allocation2 + $0x58] sm:$0xff]  ;;  %v3513_v13 = vld [vmem:[#allocation2 + $0x60] sm:$0xff] }
 0x304   : > { %v3640_v23 = vmax.f32 %v3576_v5, 0.0  ;;  %v3641_v11 = vmax.f32 %v3577_v15, 0.0  ;;  %v3642_v35 = vmax.f32 %v3578_v25, 0.0  ;;  %v3643_v27 = vmax.f32 %v3579_v0, 0.0  ;;  %v3514_v40 = vld [vmem:[#allocation2 + $0x68] sm:$0xff]  ;;  %v3515_v38 = vld [vmem:[#allocation2 + $0x70] sm:$0xff] }
 0x305   : > { %v4488_v30 = vpack.c.bf16 %v3636_v57, %v3636_v57  ;;  %v4489_v45 = vpack.c.bf16 %v3637_v55, %v3637_v55  ;;  %v4490_v20 = vpack.c.bf16 %v3638_v8, %v3638_v8  ;;  %v4491_v48 = vpack.c.bf16 %v3639_v9, %v3639_v9  ;;  %v3516_v33 = vld [vmem:[#allocation2 + $0x78] sm:$0xff]  ;;  %v3517_v29 = vld [vmem:[#allocation2 + $0x80] sm:$0xff]  ;;  %v3518_v36 = vld [vmem:[#allocation2 + $0x88] sm:$0xff] }
 0x306   : > { %v4492_v61 = vpack.c.bf16 %v3640_v23, %v3640_v23  ;;  %v4493_v26 = vpack.c.bf16 %v3641_v11, %v3641_v11  ;;  %v4494_v49 = vpack.c.bf16 %v3642_v35, %v3642_v35  ;;  %v3580_v3 = vadd.f32 %v6334_v17, %v3509_v6  ;;  %v3519_v1 = vld [vmem:[#allocation2 + $0x90] sm:$0xff]  ;;  %v3520_v14 = vld [vmem:[#allocation2 + $0x98] sm:$0xff]  ;;  %v3521_v37 = vld [vmem:[#allocation2 + $0xa0] sm:$0xff] }
 0x307   : > { %3957 = vst.msk [vmem:[%s5199_s25] sm:$0xf] %vm3956_vm2, %v4488_v30  ;;  %3958 = vst.msk [vmem:[%s5199_s25 + $0x4] sm:$0xf] %vm3956_vm2, %v4489_v45  ;;  %v3581_v41 = vadd.f32 %v6334_v17, %v3510_v32  ;;  %v4495_v31 = vpack.c.bf16 %v3643_v27, %v3643_v27  ;;  %v3582_v44 = vadd.f32 %v6334_v17, %v3511_v53  ;;  %v3522_v59 = vld [vmem:[#allocation2 + $0xa8] sm:$0xff]  ;;  %v3523_v50 = vld [vmem:[#allocation2 + $0xb0] sm:$0xff] }
 0x308   : > { %3959 = vst.msk [vmem:[%s5199_s25 + $0x8] sm:$0xf] %vm3956_vm2, %v4490_v20  ;;  %3960 = vst.msk [vmem:[%s5199_s25 + $0xc] sm:$0xf] %vm3956_vm2, %v4491_v48  ;;  %v3583_v60 = vadd.f32 %v6334_v17, %v3512_v47  ;;  %v3584_v12 = vadd.f32 %v6334_v17, %v3513_v13  ;;  %v3644_v21 = vmax.f32 %v3580_v3, 0.0  ;;  %v3585_v63 = vadd.f32 %v6334_v17, %v3514_v40  ;;  %v3524_v5 = vld [vmem:[#allocation2 + $0xb8] sm:$0xff] }
 0x309   : > { %3961 = vst.msk [vmem:[%s5199_s25 + $0x10] sm:$0xf] %vm3956_vm2, %v4492_v61  ;;  %3962 = vst.msk [vmem:[%s5199_s25 + $0x14] sm:$0xf] %vm3956_vm2, %v4493_v26  ;;  %v3645_v42 = vmax.f32 %v3581_v41, 0.0  ;;  %v3586_v24 = vadd.f32 %v6334_v17, %v3515_v38  ;;  %v3646_v56 = vmax.f32 %v3582_v44, 0.0  ;;  %v3587_v51 = vadd.f32 %v6334_v17, %v3516_v33 }
 0x30a   : > { %3963 = vst.msk [vmem:[%s5199_s25 + $0x18] sm:$0xf] %vm3956_vm2, %v4494_v49  ;;  %3964 = vst.msk [vmem:[%s5199_s25 + $0x1c] sm:$0xf] %vm3956_vm2, %v4495_v31  ;;  %v3647_v62 = vmax.f32 %v3583_v60, 0.0  ;;  %v3648_v7 = vmax.f32 %v3584_v12, 0.0  ;;  %v4496_v2 = vpack.c.bf16 %v3644_v21, %v3644_v21  ;;  %v3588_v19 = vadd.f32 %v6334_v17, %v3517_v29 }
 0x30b   : > { %v4497_v28 = vpack.c.bf16 %v3645_v42, %v3645_v42  ;;  %v3649_v22 = vmax.f32 %v3585_v63, 0.0  ;;  %v3650_v43 = vmax.f32 %v3586_v24, 0.0  ;;  %v4498_v4 = vpack.c.bf16 %v3646_v56, %v3646_v56  ;;  %v3525_v32 = vld [vmem:[#allocation2 + $0xc0] sm:$0xff]  ;;  %v3526_v30 = vld [vmem:[#allocation2 + $0xc8] sm:$0xff]  ;;  %v3527_v47 = vld [vmem:[#allocation2 + $0xd0] sm:$0xff] }
 0x30c   : > { %v4499_v18 = vpack.c.bf16 %v3647_v62, %v3647_v62  ;;  %v4500_v39 = vpack.c.bf16 %v3648_v7, %v3648_v7  ;;  %v3651_v52 = vmax.f32 %v3587_v51, 0.0  ;;  %3965 = vst.msk [vmem:[%s5199_s25 + $0x20] sm:$0xf] %vm3956_vm2, %v4496_v2  ;;  %v3589_v10 = vadd.f32 %v6334_v17, %v3518_v36  ;;  %v3528_v13 = vld [vmem:[#allocation2 + $0xd8] sm:$0xff]  ;;  %v3529_v20 = vld [vmem:[#allocation2 + $0xe0] sm:$0xff]  ;;  %v3530_v38 = vld [vmem:[#allocation2 + $0xe8] sm:$0xff] }
 0x30d   : > { %3966 = vst.msk [vmem:[%s5199_s25 + $0x24] sm:$0xf] %vm3956_vm2, %v4497_v28  ;;  %v4501_v16 = vpack.c.bf16 %v3649_v22, %v3649_v22  ;;  %v4502_v54 = vpack.c.bf16 %v3650_v43, %v3650_v43  ;;  %3967 = vst.msk [vmem:[%s5199_s25 + $0x28] sm:$0xf] %vm3956_vm2, %v4498_v4  ;;  %v3590_v58 = vadd.f32 %v6334_v17, %v3519_v1  ;;  %v3652_v55 = vmax.f32 %v3588_v19, 0.0  ;;  %v3531_v26 = vld [vmem:[#allocation2 + $0xf0] sm:$0xff] }
 0x30e   : > { %3968 = vst.msk [vmem:[%s5199_s25 + $0x2c] sm:$0xf] %vm3956_vm2, %v4499_v18  ;;  %3969 = vst.msk [vmem:[%s5199_s25 + $0x30] sm:$0xf] %vm3956_vm2, %v4500_v39  ;;  %v4503_v34 = vpack.c.bf16 %v3651_v52, %v3651_v52  ;;  %v3591_v46 = vadd.f32 %v6334_v17, %v3520_v14  ;;  %v3592_v57 = vadd.f32 %v6334_v17, %v3521_v37  ;;  %v3653_v15 = vmax.f32 %v3589_v10, 0.0  ;;  %v3532_v31 = vld [vmem:[#allocation2 + $0xf8] sm:$0xff] }
 0x30f   : > { %3970 = vst.msk [vmem:[%s5199_s25 + $0x34] sm:$0xf] %vm3956_vm2, %v4501_v16  ;;  %3971 = vst.msk [vmem:[%s5199_s25 + $0x38] sm:$0xf] %vm3956_vm2, %v4502_v54  ;;  %v3593_v25 = vadd.f32 %v6334_v17, %v3522_v59  ;;  %v3594_v8 = vadd.f32 %v6334_v17, %v3523_v50  ;;  %v3654_v9 = vmax.f32 %v3590_v58, 0.0  ;;  %v3595_v6 = vadd.f32 %v6334_v17, %v3524_v5  ;;  %v3533_v36 = vld [vmem:[#allocation2 + $0x100] sm:$0xff] }
 0x310   : > { %3972 = vst.msk [vmem:[%s5199_s25 + $0x3c] sm:$0xf] %vm3956_vm2, %v4503_v34  ;;  %v3655_v23 = vmax.f32 %v3591_v46, 0.0  ;;  %v3656_v0 = vmax.f32 %v3592_v57, 0.0  ;;  %v4504_v45 = vpack.c.bf16 %v3652_v55, %v3652_v55  ;;  %v4505_v11 = vpack.c.bf16 %v3653_v15, %v3653_v15  ;;  %v3534_v2 = vld [vmem:[#allocation2 + $0x108] sm:$0xff]  ;;  %v3535_v14 = vld [vmem:[#allocation2 + $0x110] sm:$0xff] }
 0x311   : > { %v3657_v35 = vmax.f32 %v3593_v25, 0.0  ;;  %v3658_v53 = vmax.f32 %v3594_v8, 0.0  ;;  %v4506_v48 = vpack.c.bf16 %v3654_v9, %v3654_v9  ;;  %v3659_v40 = vmax.f32 %v3595_v6, 0.0  ;;  %v3536_v37 = vld [vmem:[#allocation2 + $0x118] sm:$0xff]  ;;  %v3537_v4 = vld [vmem:[#allocation2 + $0x120] sm:$0xff]  ;;  %v3538_v50 = vld [vmem:[#allocation2 + $0x128] sm:$0xff] }
 0x312   : > { %v4507_v61 = vpack.c.bf16 %v3655_v23, %v3655_v23  ;;  %v4508_v27 = vpack.c.bf16 %v3656_v0, %v3656_v0  ;;  %3973 = vst.msk [vmem:[%s5199_s25 + $0x40] sm:$0xf] %vm3956_vm2, %v4504_v45  ;;  %3974 = vst.msk [vmem:[%s5199_s25 + $0x44] sm:$0xf] %vm3956_vm2, %v4505_v11  ;;  %v3596_v41 = vadd.f32 %v6334_v17, %v3525_v32  ;;  %v3539_v16 = vld [vmem:[#allocation2 + $0x130] sm:$0xff]  ;;  %v3540_v34 = vld [vmem:[#allocation2 + $0x138] sm:$0xff] }
 0x313   : > { %v4509_v49 = vpack.c.bf16 %v3657_v35, %v3657_v35  ;;  %v4510_v3 = vpack.c.bf16 %v3658_v53, %v3658_v53  ;;  %v3597_v33 = vadd.f32 %v6334_v17, %v3526_v30  ;;  %3975 = vst.msk [vmem:[%s5199_s25 + $0x48] sm:$0xf] %vm3956_vm2, %v4506_v48  ;;  %v4511_v44 = vpack.c.bf16 %v3659_v40, %v3659_v40  ;;  %v3541_v30 = vld [vmem:[#allocation2 + $0x140] sm:$0xff]  ;;  %v3542_v45 = vld [vmem:[#allocation2 + $0x148] sm:$0xff] }
 0x314   : > { %3976 = vst.msk [vmem:[%s5199_s25 + $0x4c] sm:$0xf] %vm3956_vm2, %v4507_v61  ;;  %3977 = vst.msk [vmem:[%s5199_s25 + $0x50] sm:$0xf] %vm3956_vm2, %v4508_v27  ;;  %v3598_v60 = vadd.f32 %v6334_v17, %v3527_v47  ;;  %v3599_v12 = vadd.f32 %v6334_v17, %v3528_v13  ;;  %v3600_v21 = vadd.f32 %v6334_v17, %v3529_v20  ;;  %v3660_v42 = vmax.f32 %v3596_v41, 0.0  ;;  %v3543_v13 = vld [vmem:[#allocation2 + $0x150] sm:$0xff] }
 0x315   : > { %3978 = vst.msk [vmem:[%s5199_s25 + $0x54] sm:$0xf] %vm3956_vm2, %v4509_v49  ;;  %3979 = vst.msk [vmem:[%s5199_s25 + $0x58] sm:$0xf] %vm3956_vm2, %v4510_v3  ;;  %v3661_v63 = vmax.f32 %v3597_v33, 0.0  ;;  %v3601_v24 = vadd.f32 %v6334_v17, %v3530_v38  ;;  %v3602_v56 = vadd.f32 %v6334_v17, %v3531_v26  ;;  %v3603_v29 = vadd.f32 %v6334_v17, %v3532_v31  ;;  %v3544_v20 = vld [vmem:[#allocation2 + $0x158] sm:$0xff] }
 0x316   : > { %3980 = vst.msk [vmem:[%s5199_s25 + $0x5c] sm:$0xf] %vm3956_vm2, %v4511_v44  ;;  %v3662_v62 = vmax.f32 %v3598_v60, 0.0  ;;  %v3663_v7 = vmax.f32 %v3599_v12, 0.0  ;;  %v3664_v51 = vmax.f32 %v3600_v21, 0.0  ;;  %v4512_v28 = vpack.c.bf16 %v3660_v42, %v3660_v42  ;;  %v3545_v48 = vld [vmem:[#allocation2 + $0x160] sm:$0xff] }
 0x317   : > { %v4513_v22 = vpack.c.bf16 %v3661_v63, %v3661_v63  ;;  %v3665_v43 = vmax.f32 %v3601_v24, 0.0  ;;  %v3666_v1 = vmax.f32 %v3602_v56, 0.0  ;;  %v3667_v59 = vmax.f32 %v3603_v29, 0.0  ;;  %v3546_v26 = vld [vmem:[#allocation2 + $0x168] sm:$0xff]  ;;  %v3547_v49 = vld [vmem:[#allocation2 + $0x170] sm:$0xff]  ;;  %v3548_v44 = vld [vmem:[#allocation2 + $0x178] sm:$0xff] }
 0x318   : > { %v4514_v18 = vpack.c.bf16 %v3662_v62, %v3662_v62  ;;  %v4515_v39 = vpack.c.bf16 %v3663_v7, %v3663_v7  ;;  %v4516_v52 = vpack.c.bf16 %v3664_v51, %v3664_v51  ;;  %3981 = vst.msk [vmem:[%s5199_s25 + $0x60] sm:$0xf] %vm3956_vm2, %v4512_v28  ;;  %v3604_v10 = vadd.f32 %v6334_v17, %v3533_v36  ;;  %v3550_v28 = vld [vmem:[#allocation2 + $0x188] sm:$0xff] }
 0x319   : > { %3982 = vst.msk [vmem:[%s5199_s25 + $0x64] sm:$0xf] %vm3956_vm2, %v4513_v22  ;;  %v4517_v54 = vpack.c.bf16 %v3665_v43, %v3665_v43  ;;  %v4518_v19 = vpack.c.bf16 %v3666_v1, %v3666_v1  ;;  %v3605_v5 = vadd.f32 %v6334_v17, %v3534_v2  ;;  %v4519_v58 = vpack.c.bf16 %v3667_v59, %v3667_v59  ;;  %v3549_v2 = vld [vmem:[#allocation2 + $0x180] sm:$0xff] }
 0x31a   : > { %3983 = vst.msk [vmem:[%s5199_s25 + $0x68] sm:$0xf] %vm3956_vm2, %v4514_v18  ;;  %3984 = vst.msk [vmem:[%s5199_s25 + $0x6c] sm:$0xf] %vm3956_vm2, %v4515_v39  ;;  %v3606_v46 = vadd.f32 %v6334_v17, %v3535_v14  ;;  %v3607_v57 = vadd.f32 %v6334_v17, %v3536_v37  ;;  %v3608_v55 = vadd.f32 %v6334_v17, %v3537_v4  ;;  %v3668_v15 = vmax.f32 %v3604_v10, 0.0  ;;  %v3551_v37 = vld [vmem:[#allocation2 + $0x190] sm:$0xff] }
 0x31b   : > { %3985 = vst.msk [vmem:[%s5199_s25 + $0x70] sm:$0xf] %vm3956_vm2, %v4516_v52  ;;  %3986 = vst.msk [vmem:[%s5199_s25 + $0x74] sm:$0xf] %vm3956_vm2, %v4517_v54  ;;  %v3669_v25 = vmax.f32 %v3605_v5, 0.0  ;;  %v3609_v8 = vadd.f32 %v6334_v17, %v3538_v50  ;;  %v3610_v9 = vadd.f32 %v6334_v17, %v3539_v16  ;;  %v3611_v32 = vadd.f32 %v6334_v17, %v3540_v34  ;;  %v3552_v4 = vld [vmem:[#allocation2 + $0x198] sm:$0xff] }
 0x31c   : > { %3987 = vst.msk [vmem:[%s5199_s25 + $0x78] sm:$0xf] %vm3956_vm2, %v4518_v19  ;;  %3988 = vst.msk [vmem:[%s5199_s25 + $0x7c] sm:$0xf] %vm3956_vm2, %v4519_v58  ;;  %v3670_v23 = vmax.f32 %v3606_v46, 0.0  ;;  %v3671_v0 = vmax.f32 %v3607_v57, 0.0  ;;  %v4520_v11 = vpack.c.bf16 %v3668_v15, %v3668_v15  ;;  %v3612_v33 = vadd.f32 %v6334_v17, %v3541_v30 }
 0x31d   : > { %v3672_v6 = vmax.f32 %v3608_v55, 0.0  ;;  %v4521_v35 = vpack.c.bf16 %v3669_v25, %v3669_v25  ;;  %v3673_v53 = vmax.f32 %v3609_v8, 0.0  ;;  %v3674_v47 = vmax.f32 %v3610_v9, 0.0  ;;  %v3553_v18 = vld [vmem:[#allocation2 + $0x1a0] sm:$0xff]  ;;  %v3554_v16 = vld [vmem:[#allocation2 + $0x1a8] sm:$0xff]  ;;  %v3555_v54 = vld [vmem:[#allocation2 + $0x1b0] sm:$0xff] }
 0x31e   : > { %v4522_v61 = vpack.c.bf16 %v3670_v23, %v3670_v23  ;;  %v4523_v27 = vpack.c.bf16 %v3671_v0, %v3671_v0  ;;  %v3675_v38 = vmax.f32 %v3611_v32, 0.0  ;;  %3989 = vst.msk [vmem:[%s5199_s25 + $0x80] sm:$0xf] %vm3956_vm2, %v4520_v11  ;;  %v3613_v31 = vadd.f32 %v6334_v17, %v3542_v45  ;;  %v3556_v58 = vld [vmem:[#allocation2 + $0x1b8] sm:$0xff]  ;;  %v3557_v45 = vld [vmem:[#allocation2 + $0x1c0] sm:$0xff]  ;;  %v3558_v11 = vld [vmem:[#allocation2 + $0x1c8] sm:$0xff] }
 0x31f   : > { %v4524_v40 = vpack.c.bf16 %v3672_v6, %v3672_v6  ;;  %3990 = vst.msk [vmem:[%s5199_s25 + $0x84] sm:$0xf] %vm3956_vm2, %v4521_v35  ;;  %v4525_v3 = vpack.c.bf16 %v3673_v53, %v3673_v53  ;;  %v4526_v41 = vpack.c.bf16 %v3674_v47, %v3674_v47  ;;  %v3614_v12 = vadd.f32 %v6334_v17, %v3543_v13 }
 0x320   : > { %3991 = vst.msk [vmem:[%s5199_s25 + $0x88] sm:$0xf] %vm3956_vm2, %v4522_v61  ;;  %3992 = vst.msk [vmem:[%s5199_s25 + $0x8c] sm:$0xf] %vm3956_vm2, %v4523_v27  ;;  %v4527_v60 = vpack.c.bf16 %v3675_v38, %v3675_v38  ;;  %v3615_v21 = vadd.f32 %v6334_v17, %v3544_v20  ;;  %v3616_v42 = vadd.f32 %v6334_v17, %v3545_v48  ;;  %v3676_v63 = vmax.f32 %v3612_v33, 0.0  ;;  %v3559_v20 = vld [vmem:[#allocation2 + $0x1d0] sm:$0xff] }
 0x321   : > { %3993 = vst.msk [vmem:[%s5199_s25 + $0x90] sm:$0xf] %vm3956_vm2, %v4524_v40  ;;  %3994 = vst.msk [vmem:[%s5199_s25 + $0x94] sm:$0xf] %vm3956_vm2, %v4525_v3  ;;  %v3677_v24 = vmax.f32 %v3613_v31, 0.0  ;;  %v3617_v56 = vadd.f32 %v6334_v17, %v3546_v26  ;;  %v3618_v62 = vadd.f32 %v6334_v17, %v3547_v49  ;;  %v3678_v7 = vmax.f32 %v3614_v12, 0.0 }
 0x322   : > { %3995 = vst.msk [vmem:[%s5199_s25 + $0x98] sm:$0xf] %vm3956_vm2, %v4526_v41  ;;  %3996 = vst.msk [vmem:[%s5199_s25 + $0x9c] sm:$0xf] %vm3956_vm2, %v4527_v60  ;;  %v3679_v51 = vmax.f32 %v3615_v21, 0.0  ;;  %v3680_v29 = vmax.f32 %v3616_v42, 0.0  ;;  %v3619_v36 = vadd.f32 %v6334_v17, %v3548_v44  ;;  %v4528_v22 = vpack.c.bf16 %v3676_v63, %v3676_v63 }
 0x323   : > { %v4529_v43 = vpack.c.bf16 %v3677_v24, %v3677_v24  ;;  %v3681_v1 = vmax.f32 %v3617_v56, 0.0  ;;  %v3682_v14 = vmax.f32 %v3618_v62, 0.0  ;;  %v4530_v39 = vpack.c.bf16 %v3678_v7, %v3678_v7  ;;  %v3560_v48 = vld [vmem:[#allocation2 + $0x1d8] sm:$0xff]  ;;  %v3561_v61 = vld [vmem:[#allocation2 + $0x1e0] sm:$0xff]  ;;  %v3562_v49 = vld [vmem:[#allocation2 + $0x1e8] sm:$0xff] }
 0x324   : > { %v4531_v52 = vpack.c.bf16 %v3679_v51, %v3679_v51  ;;  %v4532_v59 = vpack.c.bf16 %v3680_v29, %v3680_v29  ;;  %v3683_v50 = vmax.f32 %v3619_v36, 0.0  ;;  %3997 = vst.msk [vmem:[%s5199_s25 + $0xa0] sm:$0xf] %vm3956_vm2, %v4528_v22  ;;  %v3620_v5 = vadd.f32 %v6334_v17, %v3549_v2  ;;  %v3563_v3 = vld [vmem:[#allocation2 + $0x1f0] sm:$0xff]  ;;  %v3564_v60 = vld [vmem:[#allocation2 + $0x1f8] sm:$0xff] }
 0x325   : > { %3998 = vst.msk [vmem:[%s5199_s25 + $0xa4] sm:$0xf] %vm3956_vm2, %v4529_v43  ;;  %v4533_v19 = vpack.c.bf16 %v3681_v1, %v3681_v1  ;;  %v4534_v10 = vpack.c.bf16 %v3682_v14, %v3682_v14  ;;  %v3621_v34 = vadd.f32 %v6334_v17, %v3550_v28  ;;  %3999 = vst.msk [vmem:[%s5199_s25 + $0xa8] sm:$0xf] %vm3956_vm2, %v4530_v39 }
 0x326   : > { %4000 = vst.msk [vmem:[%s5199_s25 + $0xac] sm:$0xf] %vm3956_vm2, %v4531_v52  ;;  %4001 = vst.msk [vmem:[%s5199_s25 + $0xb0] sm:$0xf] %vm3956_vm2, %v4532_v59  ;;  %v4535_v46 = vpack.c.bf16 %v3683_v50, %v3683_v50  ;;  %v3622_v57 = vadd.f32 %v6334_v17, %v3551_v37  ;;  %v3623_v55 = vadd.f32 %v6334_v17, %v3552_v4  ;;  %v3684_v25 = vmax.f32 %v3620_v5, 0.0 }
 0x327   : > { %v3624_v15 = vadd.f32 %v6334_v17, %v3553_v18  ;;  %4002 = vst.msk [vmem:[%s5199_s25 + $0xb4] sm:$0xf] %vm3956_vm2, %v4533_v19  ;;  %4003 = vst.msk [vmem:[%s5199_s25 + $0xb8] sm:$0xf] %vm3956_vm2, %v4534_v10  ;;  %v3685_v8 = vmax.f32 %v3621_v34, 0.0  ;;  %v3625_v9 = vadd.f32 %v6334_v17, %v3554_v16  ;;  %v3626_v23 = vadd.f32 %v6334_v17, %v3555_v54 }
 0x328   : > { %4004 = vst.msk [vmem:[%s5199_s25 + $0xbc] sm:$0xf] %vm3956_vm2, %v4535_v46  ;;  %v3686_v0 = vmax.f32 %v3622_v57, 0.0  ;;  %v3687_v6 = vmax.f32 %v3623_v55, 0.0  ;;  %v3627_v30 = vadd.f32 %v6334_v17, %v3556_v58  ;;  %v4536_v35 = vpack.c.bf16 %v3684_v25, %v3684_v25 }
 0x329   : > { %v3688_v32 = vmax.f32 %v3624_v15, 0.0  ;;  %v4537_v53 = vpack.c.bf16 %v3685_v8, %v3685_v8  ;;  %v3689_v47 = vmax.f32 %v3625_v9, 0.0  ;;  %v3690_v13 = vmax.f32 %v3626_v23, 0.0 }
 0x32a   : > { %v4538_v27 = vpack.c.bf16 %v3686_v0, %v3686_v0  ;;  %v4539_v40 = vpack.c.bf16 %v3687_v6, %v3687_v6  ;;  %v3691_v26 = vmax.f32 %v3627_v30, 0.0  ;;  %4005 = vst.msk [vmem:[%s5199_s25 + $0xc0] sm:$0xf] %vm3956_vm2, %v4536_v35  ;;  %v3628_v31 = vadd.f32 %v6334_v17, %v3557_v45 }
 0x32b   : > { %v4540_v38 = vpack.c.bf16 %v3688_v32, %v3688_v32  ;;  %4006 = vst.msk [vmem:[%s5199_s25 + $0xc4] sm:$0xf] %vm3956_vm2, %v4537_v53  ;;  %v4541_v41 = vpack.c.bf16 %v3689_v47, %v3689_v47  ;;  %v4542_v33 = vpack.c.bf16 %v3690_v13, %v3690_v13  ;;  %v3629_v44 = vadd.f32 %v6334_v17, %v3558_v11 }
 0x32c   : > { %4007 = vst.msk [vmem:[%s5199_s25 + $0xc8] sm:$0xf] %vm3956_vm2, %v4538_v27  ;;  %4008 = vst.msk [vmem:[%s5199_s25 + $0xcc] sm:$0xf] %vm3956_vm2, %v4539_v40  ;;  %v4543_v12 = vpack.c.bf16 %v3691_v26, %v3691_v26  ;;  %v3630_v21 = vadd.f32 %v6334_v17, %v3559_v20  ;;  %v3631_v42 = vadd.f32 %v6334_v17, %v3560_v48  ;;  %v3692_v24 = vmax.f32 %v3628_v31, 0.0 }
 0x32d   : > { %4009 = vst.msk [vmem:[%s5199_s25 + $0xd0] sm:$0xf] %vm3956_vm2, %v4540_v38  ;;  %v3632_v63 = vadd.f32 %v6334_v17, %v3561_v61  ;;  %4010 = vst.msk [vmem:[%s5199_s25 + $0xd4] sm:$0xf] %vm3956_vm2, %v4541_v41  ;;  %v3693_v56 = vmax.f32 %v3629_v44, 0.0  ;;  %v3633_v62 = vadd.f32 %v6334_v17, %v3562_v49  ;;  %v3634_v7 = vadd.f32 %v6334_v17, %v3563_v3 }
 0x32e   : > { %4011 = vst.msk [vmem:[%s5199_s25 + $0xd8] sm:$0xf] %vm3956_vm2, %v4542_v33  ;;  %4012 = vst.msk [vmem:[%s5199_s25 + $0xdc] sm:$0xf] %vm3956_vm2, %v4543_v12  ;;  %v3694_v51 = vmax.f32 %v3630_v21, 0.0  ;;  %v3695_v29 = vmax.f32 %v3631_v42, 0.0  ;;  %v3635_v2 = vadd.f32 %v6334_v17, %v3564_v60  ;;  %v4544_v28 = vpack.c.bf16 %v3692_v24, %v3692_v24 }
 0x32f   : > { %v3696_v36 = vmax.f32 %v3632_v63, 0.0  ;;  %v4545_v22 = vpack.c.bf16 %v3693_v56, %v3693_v56  ;;  %v3697_v43 = vmax.f32 %v3633_v62, 0.0  ;;  %v3698_v1 = vmax.f32 %v3634_v7, 0.0 }
 0x330   : > { %v4546_v14 = vpack.c.bf16 %v3694_v51, %v3694_v51  ;;  %v4547_v37 = vpack.c.bf16 %v3695_v29, %v3695_v29  ;;  %v3699_v18 = vmax.f32 %v3635_v2, 0.0  ;;  %4013 = vst.msk [vmem:[%s5199_s25 + $0xe0] sm:$0xf] %vm3956_vm2, %v4544_v28 }
 0x331   : > { %v4548_v4 = vpack.c.bf16 %v3696_v36, %v3696_v36  ;;  %4014 = vst.msk [vmem:[%s5199_s25 + $0xe4] sm:$0xf] %vm3956_vm2, %v4545_v22  ;;  %v4549_v39 = vpack.c.bf16 %v3697_v43, %v3697_v43  ;;  %v4550_v52 = vpack.c.bf16 %v3698_v1, %v3698_v1 }
 0x332   : > { %4015 = vst.msk [vmem:[%s5199_s25 + $0xe8] sm:$0xf] %vm3956_vm2, %v4546_v14  ;;  %4016 = vst.msk [vmem:[%s5199_s25 + $0xec] sm:$0xf] %vm3956_vm2, %v4547_v37  ;;  %v4551_v17 = vpack.c.bf16 %v3699_v18, %v3699_v18 }
 0x333   : > { %4017 = vst.msk [vmem:[%s5199_s25 + $0xf0] sm:$0xf] %vm3956_vm2, %v4548_v4  ;;  %4018 = vst.msk [vmem:[%s5199_s25 + $0xf4] sm:$0xf] %vm3956_vm2, %v4549_v39 }
 0x334   : > { %4019 = vst.msk [vmem:[%s5199_s25 + $0xf8] sm:$0xf] %vm3956_vm2, %v4550_v52  ;;  %4020 = vst.msk [vmem:[%s5199_s25 + $0xfc] sm:$0xf] %vm3956_vm2, %v4551_v17 }
 0x335 PF: > { %s13_s16 = sadd.s32 1, %s5138_s16   ;;  %s6615_s12 = smov %s5130_s14 }
 0x336   : > { %p10_p9 = scmp.ge.s32.totalorder %s13_s16, 12   ;;  %s6616_s13 = smov %s5134_s15 }
 0x337   : > { %s6617_s14 = smov %s6620_s17  ;;  %s6618_s15 = smov %s6624_s18 }
 0x338   :  { %12 = sbr.rel (!%p10_p9) target bundleno = 3 (0x3), region = 74 }

// kernel: baseline_net_forward.6
= control target key start
LH: loop header
LB: loop body
LE: loop exit
PB: predicated region body
PF: predicated region fallthrough
CT: control target
= control target key end

     0   :  { %s3177_s12 = smov 0   ;;  %s3179_s13 = smov 0   ;;  %s3943_s0 = inlined_call_operand.vmem [shape: bf16[2,10,8,8,288], index: 0, kind: input, shape index: {}]   ;;  %s3944_s1 = inlined_call_operand.vmem [shape: bf16[3,288,64], index: 1, kind: input, shape index: {}]   ;;  %s3945_s2 = inlined_call_operand.vmem [shape: f32[1,64], index: 2, kind: input, shape index: {}]   ;;  %s3946_s3 = inlined_call_operand.vmem [shape: bf16[2,512,64], index: 3, kind: output, shape index: {}]  }
   0x1   :  { %s3181_s14 = smov 0   ;;  %s3183_s15 = smov 0  }
   0x2   :  { %s3185_s16 = smov 0  }
   0x3 LB: > { %s22_s17 = sadd.s32 1, %s3145_s14  ;;  %s25_s18 = sadd.s32 1, %s3149_s15  ;;  %s3153_s16 = sphi %s3185_s16, %s13_s16   ;;  %s3149_s15 = sphi %s3183_s15, %s3950_s15   ;;  %s3145_s14 = sphi %s3181_s14, %s3949_s14   ;;  %s3141_s13 = sphi %s3179_s13, %s3948_s13   ;;  %s3137_s12 = sphi %s3177_s12, %s3947_s12  }
   0x4   : > { %p23_p0 = scmp.ge.s32.totalorder %s22_s17, 3  ;;  %p2504_p1 = scmp.ge.s32.totalorder %s3153_s16, 1 }
   0x5   : > { %p159_p2 = scmp.lt.s32.totalorder %s3153_s16, 7 }
   0x6   : > { %s3952_s17 = smov (%p23_p0, %s22_s17), 0  ;;  %s3954_s18 = smov (!%p23_p0, %s25_s18), %s3149_s15 }
   0x7   : > { %p160_p3 = pnand %p2504_p1, %p159_p2  ;;  %p27_p4 = scmp.ge.s32.totalorder %s3954_s18, 2 }
   0x8   : > { %p188_p5 = scmp.lt.s32.totalorder (!%p160_p3), %s3141_s13, 1  ;;  %p193_p6 = scmp.lt.s32.totalorder (!%p160_p3), %s3137_s12, 2 }
   0x9   : > { %s3956_s18 = smov (%p27_p4, %s3954_s18), 0  ;;  %163 = sbr.rel (%p160_p3) target bundleno = 563 (0x233), region = 32 }
   0xa   : > { %p2509_p7 = scmp.ne.s32.totalorder (!%p160_p3), %s3137_s12, 0 }
   0xe   : > { %s3958_s13 = smov (!%p188_p5, %s3141_s13), 1 }
   0xf   : > { %s194_s19 = scalar_select %p193_p6, %s3137_s12, 2 }
  0x10   : > { %s2925_s20 = smul.u32 960, %s3958_s13  ;;  %s2725_s21 = sshll.u32 %s3958_s13, 8 }
  0x11   : > { %s2926_s22 = smul.u32 144, %s194_s19  ;;  %s3214_s25 = scalar_lea.vmem %s3946_s3, %s2725_s21 }
  0x12   : > { %s3219_s28 = scalar_lea.vmem %s3943_s0, %s2925_s20  ;;  %207 = sbr.rel (%p2509_p7) target bundleno = 56 (0x38), region = 36 }
  0x13   : > { %s3224_s4 = scalar_lea.vmem %s3944_s1, %s2926_s22 }
  0x17   : > { %vm208_vm0 = vcmask 523264   ;;  %v3155_v0 = vmov 0.0  }
  0x18   : > { %209 = vst.msk [vmem:[#allocation2] sm:$0xff] %vm208_vm0, %v3155_v0  ;;  %210 = vst.msk [vmem:[#allocation2 + $0x8] sm:$0xff] %vm208_vm0, %v3155_v0 }
  0x19   : > { %211 = vst.msk [vmem:[#allocation2 + $0x10] sm:$0xff] %vm208_vm0, %v3155_v0  ;;  %212 = vst.msk [vmem:[#allocation2 + $0x18] sm:$0xff] %vm208_vm0, %v3155_v0 }
  0x1a   : > { %213 = vst.msk [vmem:[#allocation2 + $0x20] sm:$0xff] %vm208_vm0, %v3155_v0  ;;  %214 = vst.msk [vmem:[#allocation2 + $0x28] sm:$0xff] %vm208_vm0, %v3155_v0 }
  0x1b   : > { %215 = vst.msk [vmem:[#allocation2 + $0x30] sm:$0xff] %vm208_vm0, %v3155_v0  ;;  %216 = vst.msk [vmem:[#allocation2 + $0x38] sm:$0xff] %vm208_vm0, %v3155_v0 }
  0x1c   : > { %217 = vst.msk [vmem:[#allocation2 + $0x40] sm:$0xff] %vm208_vm0, %v3155_v0  ;;  %218 = vst.msk [vmem:[#allocation2 + $0x48] sm:$0xff] %vm208_vm0, %v3155_v0 }
  0x1d   : > { %219 = vst.msk [vmem:[#allocation2 + $0x50] sm:$0xff] %vm208_vm0, %v3155_v0  ;;  %220 = vst.msk [vmem:[#allocation2 + $0x58] sm:$0xff] %vm208_vm0, %v3155_v0 }
  0x1e   : > { %221 = vst.msk [vmem:[#allocation2 + $0x60] sm:$0xff] %vm208_vm0, %v3155_v0  ;;  %222 = vst.msk [vmem:[#allocation2 + $0x68] sm:$0xff] %vm208_vm0, %v3155_v0 }
  0x1f   : > { %223 = vst.msk [vmem:[#allocation2 + $0x70] sm:$0xff] %vm208_vm0, %v3155_v0  ;;  %224 = vst.msk [vmem:[#allocation2 + $0x78] sm:$0xff] %vm208_vm0, %v3155_v0 }
  0x20   : > { %225 = vst.msk [vmem:[#allocation2 + $0x80] sm:$0xff] %vm208_vm0, %v3155_v0  ;;  %226 = vst.msk [vmem:[#allocation2 + $0x88] sm:$0xff] %vm208_vm0, %v3155_v0 }
  0x21   : > { %227 = vst.msk [vmem:[#allocation2 + $0x90] sm:$0xff] %vm208_vm0, %v3155_v0  ;;  %228 = vst.msk [vmem:[#allocation2 + $0x98] sm:$0xff] %vm208_vm0, %v3155_v0 }
  0x22   : > { %229 = vst.msk [vmem:[#allocation2 + $0xa0] sm:$0xff] %vm208_vm0, %v3155_v0  ;;  %230 = vst.msk [vmem:[#allocation2 + $0xa8] sm:$0xff] %vm208_vm0, %v3155_v0 }
  0x23   : > { %231 = vst.msk [vmem:[#allocation2 + $0xb0] sm:$0xff] %vm208_vm0, %v3155_v0  ;;  %232 = vst.msk [vmem:[#allocation2 + $0xb8] sm:$0xff] %vm208_vm0, %v3155_v0 }
  0x24   : > { %233 = vst.msk [vmem:[#allocation2 + $0xc0] sm:$0xff] %vm208_vm0, %v3155_v0  ;;  %234 = vst.msk [vmem:[#allocation2 + $0xc8] sm:$0xff] %vm208_vm0, %v3155_v0 }
  0x25   : > { %235 = vst.msk [vmem:[#allocation2 + $0xd0] sm:$0xff] %vm208_vm0, %v3155_v0  ;;  %236 = vst.msk [vmem:[#allocation2 + $0xd8] sm:$0xff] %vm208_vm0, %v3155_v0 }
  0x26   : > { %237 = vst.msk [vmem:[#allocation2 + $0xe0] sm:$0xff] %vm208_vm0, %v3155_v0  ;;  %238 = vst.msk [vmem:[#allocation2 + $0xe8] sm:$0xff] %vm208_vm0, %v3155_v0 }
  0x27   : > { %239 = vst.msk [vmem:[#allocation2 + $0xf0] sm:$0xff] %vm208_vm0, %v3155_v0  ;;  %240 = vst.msk [vmem:[#allocation2 + $0xf8] sm:$0xff] %vm208_vm0, %v3155_v0 }
  0x28   : > { %241 = vst.msk [vmem:[#allocation2 + $0x100] sm:$0xff] %vm208_vm0, %v3155_v0  ;;  %242 = vst.msk [vmem:[#allocation2 + $0x108] sm:$0xff] %vm208_vm0, %v3155_v0 }
  0x29   : > { %243 = vst.msk [vmem:[#allocation2 + $0x110] sm:$0xff] %vm208_vm0, %v3155_v0  ;;  %244 = vst.msk [vmem:[#allocation2 + $0x118] sm:$0xff] %vm208_vm0, %v3155_v0 }
  0x2a   : > { %245 = vst.msk [vmem:[#allocation2 + $0x120] sm:$0xff] %vm208_vm0, %v3155_v0  ;;  %246 = vst.msk [vmem:[#allocation2 + $0x128] sm:$0xff] %vm208_vm0, %v3155_v0 }
  0x2b   : > { %247 = vst.msk [vmem:[#allocation2 + $0x130] sm:$0xff] %vm208_vm0, %v3155_v0  ;;  %248 = vst.msk [vmem:[#allocation2 + $0x138] sm:$0xff] %vm208_vm0, %v3155_v0 }
  0x2c   : > { %249 = vst.msk [vmem:[#allocation2 + $0x140] sm:$0xff] %vm208_vm0, %v3155_v0  ;;  %250 = vst.msk [vmem:[#allocation2 + $0x148] sm:$0xff] %vm208_vm0, %v3155_v0 }
  0x2d   : > { %251 = vst.msk [vmem:[#allocation2 + $0x150] sm:$0xff] %vm208_vm0, %v3155_v0  ;;  %252 = vst.msk [vmem:[#allocation2 + $0x158] sm:$0xff] %vm208_vm0, %v3155_v0 }
  0x2e   : > { %253 = vst.msk [vmem:[#allocation2 + $0x160] sm:$0xff] %vm208_vm0, %v3155_v0  ;;  %254 = vst.msk [vmem:[#allocation2 + $0x168] sm:$0xff] %vm208_vm0, %v3155_v0 }
  0x2f   : > { %255 = vst.msk [vmem:[#allocation2 + $0x170] sm:$0xff] %vm208_vm0, %v3155_v0  ;;  %256 = vst.msk [vmem:[#allocation2 + $0x178] sm:$0xff] %vm208_vm0, %v3155_v0 }
  0x30   : > { %257 = vst.msk [vmem:[#allocation2 + $0x180] sm:$0xff] %vm208_vm0, %v3155_v0  ;;  %258 = vst.msk [vmem:[#allocation2 + $0x188] sm:$0xff] %vm208_vm0, %v3155_v0 }
  0x31   : > { %259 = vst.msk [vmem:[#allocation2 + $0x190] sm:$0xff] %vm208_vm0, %v3155_v0  ;;  %260 = vst.msk [vmem:[#allocation2 + $0x198] sm:$0xff] %vm208_vm0, %v3155_v0 }
  0x32   : > { %261 = vst.msk [vmem:[#allocation2 + $0x1a0] sm:$0xff] %vm208_vm0, %v3155_v0  ;;  %262 = vst.msk [vmem:[#allocation2 + $0x1a8] sm:$0xff] %vm208_vm0, %v3155_v0 }
  0x33   : > { %263 = vst.msk [vmem:[#allocation2 + $0x1b0] sm:$0xff] %vm208_vm0, %v3155_v0  ;;  %264 = vst.msk [vmem:[#allocation2 + $0x1b8] sm:$0xff] %vm208_vm0, %v3155_v0 }
  0x34   : > { %265 = vst.msk [vmem:[#allocation2 + $0x1c0] sm:$0xff] %vm208_vm0, %v3155_v0  ;;  %266 = vst.msk [vmem:[#allocation2 + $0x1c8] sm:$0xff] %vm208_vm0, %v3155_v0 }
  0x35   : > { %267 = vst.msk [vmem:[#allocation2 + $0x1d0] sm:$0xff] %vm208_vm0, %v3155_v0  ;;  %268 = vst.msk [vmem:[#allocation2 + $0x1d8] sm:$0xff] %vm208_vm0, %v3155_v0 }
  0x36   : > { %269 = vst.msk [vmem:[#allocation2 + $0x1e0] sm:$0xff] %vm208_vm0, %v3155_v0  ;;  %270 = vst.msk [vmem:[#allocation2 + $0x1e8] sm:$0xff] %vm208_vm0, %v3155_v0 }
  0x37   : > { %271 = vst.msk [vmem:[#allocation2 + $0x1f0] sm:$0xff] %vm208_vm0, %v3155_v0  ;;  %272 = vst.msk [vmem:[#allocation2 + $0x1f8] sm:$0xff] %vm208_vm0, %v3155_v0 }
  0x38 PF: > { %v2969_v1 = vld [vmem:[%s3224_s4 + $0x38] sm:$0xff]   ;;  %v3156_v2 = vmov 0   ;;  %v2970_v3 = vld [vmem:[%s3224_s4 + $0x30] sm:$0xff]   ;;  %v2971_v4 = vld [vmem:[%s3224_s4 + $0x28] sm:$0xff]   ;;  %s2726_s5 = smul.u32 96, %s3137_s12  ;;  %vm1092_vm1 = vcmask 261120  }
  0x39   : > { %1189 = vmatprep.subr.bf16.mxu0 %v3156_v2  ;;  %2893 = vmatprep.subr.bf16.mxu1 %v3156_v2  ;;  %v2972_v5 = vld [vmem:[%s3224_s4 + $0x20] sm:$0xff]   ;;  %v2973_v6 = vld [vmem:[%s3224_s4 + $0x18] sm:$0xff]   ;;  %v2974_v8 = vld [vmem:[%s3224_s4 + $0x10] sm:$0xff]   ;;  %vm1831_vm2 = vcmask 523264   ;;  %p2657_p8 = scmp.ne.s32.totalorder %s3137_s12, 2 }
  0x3a   : > { %1190 = vmatpush1.bf16.msra.mxu0 %v2969_v1  ;;  %2909 = vmatpush1.bf16.msra.mxu1 %v2969_v1  ;;  %s3370_s6 = scalar_lea.vmem %s3219_s28, %s2726_s5  ;;  %v2975_v10 = vld [vmem:[%s3224_s4 + $0x8] sm:$0xff]   ;;  %v2976_v11 = vld [vmem:[%s3224_s4] sm:$0xff]   ;;  %v2977_v12 = vld [vmem:[%s3224_s4 + $0x78] sm:$0xff]  }
  0x3b   : > { %1191 = vmatprep.subr.bf16.mxu0 %v3156_v2  ;;  %2894 = vmatprep.subr.bf16.mxu1 %v3156_v2  ;;  %v2987_v7 = vld [vmem:[%s3370_s6 + $0x4] ss:$12 sps:$4 sm:$0xff]   ;;  %v2979_v14 = vld [vmem:[%s3224_s4 + $0x68] sm:$0xff]   ;;  %v2981_v16 = vld [vmem:[%s3224_s4 + $0x58] sm:$0xff]  }
  0x3c   : > { %v2990_v9 = vld [vmem:[%s3370_s6 + $0x244] ss:$12 sps:$4 sm:$0xff]   ;;  %1221 = vmatprep.mubr.bf16.mxu0 %v2987_v7  ;;  %v2983_v18 = vld [vmem:[%s3224_s4 + $0x48] sm:$0xff]   ;;  %v2998_v28 = vld [vmem:[%s3370_s6 + $0x34] ss:$12 sps:$4 sm:$0xff]  }
  0x3d   : > { %1413 = vmatprep.mubr.bf16.mxu1 %v2990_v9  ;;  %v2978_v13 = vld [vmem:[%s3224_s4 + $0x70] sm:$0xff]   ;;  %v2980_v15 = vld [vmem:[%s3224_s4 + $0x60] sm:$0xff]   ;;  %v2991_v20 = vld [vmem:[%s3224_s4 + $0x88] sm:$0xff]  }
  0x3e   : > { %1192 = vmatpush1.bf16.msra.mxu0 %v2970_v3  ;;  %2910 = vmatpush1.bf16.msra.mxu1 %v2970_v3  ;;  %v2982_v17 = vld [vmem:[%s3224_s4 + $0x50] sm:$0xff]   ;;  %v2984_v19 = vld [vmem:[%s3224_s4 + $0x40] sm:$0xff]   ;;  %v2992_v23 = vld [vmem:[%s3370_s6 + $0x1c] ss:$12 sps:$4 sm:$0xff]  }
  0x3f   : > { %1193 = vmatprep.subr.bf16.mxu0 %v3156_v2  ;;  %2895 = vmatprep.subr.bf16.mxu1 %v3156_v2  ;;  %v2985_v21 = vld [vmem:[%s3370_s6] ss:$12 sps:$4 sm:$0xff]   ;;  %v2994_v24 = vld [vmem:[%s3370_s6 + $0x25c] ss:$12 sps:$4 sm:$0xff]   ;;  %v2996_v26 = vld [vmem:[%s3370_s6 + $0x18] ss:$12 sps:$4 sm:$0xff]  }
  0x40   : > { %v2988_v22 = vld [vmem:[%s3370_s6 + $0x240] ss:$12 sps:$4 sm:$0xff]   ;;  %v2997_v27 = vld [vmem:[%s3370_s6 + $0x258] ss:$12 sps:$4 sm:$0xff]   ;;  %v3002_v30 = vld [vmem:[%s3370_s6 + $0x30] ss:$12 sps:$4 sm:$0xff]  }
  0x41   : > { %v3016_v25 = vld [vmem:[%s3224_s4 + $0x80] sm:$0xff]   ;;  %v3003_v31 = vld [vmem:[%s3370_s6 + $0x270] ss:$12 sps:$4 sm:$0xff]   ;;  %v3004_v32 = vld [vmem:[%s3370_s6 + $0x4c] ss:$12 sps:$4 sm:$0xff]  }
  0x42   : > { %1194 = vmatpush1.bf16.msra.mxu0 %v2971_v4  ;;  %2911 = vmatpush1.bf16.msra.mxu1 %v2971_v4  ;;  %v3000_v29 = vld [vmem:[%s3370_s6 + $0x274] ss:$12 sps:$4 sm:$0xff]   ;;  %v3006_v33 = vld [vmem:[%s3370_s6 + $0x28c] ss:$12 sps:$4 sm:$0xff]   ;;  %v3010_v36 = vld [vmem:[%s3370_s6 + $0x64] ss:$12 sps:$4 sm:$0xff]  }
  0x43   : > { %1195 = vmatprep.subr.bf16.mxu0 %v3156_v2  ;;  %2896 = vmatprep.subr.bf16.mxu1 %v3156_v2  ;;  %v3008_v34 = vld [vmem:[%s3370_s6 + $0x48] ss:$12 sps:$4 sm:$0xff]   ;;  %v3012_v37 = vld [vmem:[%s3370_s6 + $0x2a4] ss:$12 sps:$4 sm:$0xff]   ;;  %v3014_v38 = vld [vmem:[%s3370_s6 + $0x60] ss:$12 sps:$4 sm:$0xff]  }
  0x44   : > { %v3009_v35 = vld [vmem:[%s3370_s6 + $0x288] ss:$12 sps:$4 sm:$0xff]   ;;  %v3015_v39 = vld [vmem:[%s3370_s6 + $0x2a0] ss:$12 sps:$4 sm:$0xff]   ;;  %v3021_v42 = vld [vmem:[%s3370_s6 + $0x78] ss:$12 sps:$4 sm:$0xff]  }
  0x45   : > { %v3017_v40 = vld [vmem:[%s3370_s6 + $0x7c] ss:$12 sps:$4 sm:$0xff]   ;;  %v3022_v43 = vld [vmem:[%s3370_s6 + $0x2b8] ss:$12 sps:$4 sm:$0xff]   ;;  %v3023_v44 = vld [vmem:[%s3370_s6 + $0x94] ss:$12 sps:$4 sm:$0xff]  }
  0x46   : > { %1196 = vmatpush1.bf16.msra.mxu0 %v2972_v5  ;;  %2912 = vmatpush1.bf16.msra.mxu1 %v2972_v5  ;;  %v3019_v41 = vld [vmem:[%s3370_s6 + $0x2bc] ss:$12 sps:$4 sm:$0xff]   ;;  %v3025_v45 = vld [vmem:[%s3370_s6 + $0x2d4] ss:$12 sps:$4 sm:$0xff]   ;;  %v3029_v48 = vld [vmem:[%s3370_s6 + $0xac] ss:$12 sps:$4 sm:$0xff]  }
  0x47   : > { %1197 = vmatprep.subr.bf16.mxu0 %v3156_v2  ;;  %2897 = vmatprep.subr.bf16.mxu1 %v3156_v2  ;;  %v3027_v46 = vld [vmem:[%s3370_s6 + $0x90] ss:$12 sps:$4 sm:$0xff]   ;;  %v3031_v49 = vld [vmem:[%s3370_s6 + $0x2ec] ss:$12 sps:$4 sm:$0xff]   ;;  %v3033_v50 = vld [vmem:[%s3370_s6 + $0xa8] ss:$12 sps:$4 sm:$0xff]  }
  0x48   : > { %v3028_v47 = vld [vmem:[%s3370_s6 + $0x2d0] ss:$12 sps:$4 sm:$0xff]   ;;  %v3034_v51 = vld [vmem:[%s3370_s6 + $0x2e8] ss:$12 sps:$4 sm:$0xff]   ;;  %v3038_v54 = vld [vmem:[%s3370_s6 + $0xc0] ss:$12 sps:$4 sm:$0xff]  }
  0x49   : > { %v3035_v52 = vld [vmem:[%s3370_s6 + $0xc4] ss:$12 sps:$4 sm:$0xff]   ;;  %v3037_v53 = vld [vmem:[%s3370_s6 + $0x8] ss:$12 sps:$4 sm:$0xff]   ;;  %v3039_v55 = vld [vmem:[%s3370_s6 + $0x20] ss:$12 sps:$4 sm:$0xff]  }
  0x4a   : > { %1198 = vmatpush1.bf16.msra.mxu0 %v2973_v6  ;;  %2913 = vmatpush1.bf16.msra.mxu1 %v2973_v6  ;;  %v3040_v56 = vld [vmem:[%s3370_s6 + $0xdc] ss:$12 sps:$4 sm:$0xff]   ;;  %v3042_v57 = vld [vmem:[%s3370_s6 + $0x38] ss:$12 sps:$4 sm:$0xff]   ;;  %v3045_v60 = vld [vmem:[%s3370_s6 + $0xf4] ss:$12 sps:$4 sm:$0xff]  }
  0x4b   : > { %1199 = vmatprep.subr.bf16.mxu0 %v3156_v2  ;;  %2898 = vmatprep.subr.bf16.mxu1 %v3156_v2  ;;  %v3043_v58 = vld [vmem:[%s3370_s6 + $0xd8] ss:$12 sps:$4 sm:$0xff]   ;;  %v3044_v59 = vld [vmem:[%s3370_s6 + $0x50] ss:$12 sps:$4 sm:$0xff]   ;;  %v3047_v61 = vld [vmem:[%s3370_s6 + $0x68] ss:$12 sps:$4 sm:$0xff]  }
  0x4c   : > { %v3048_v62 = vld [vmem:[%s3370_s6 + $0xf0] ss:$12 sps:$4 sm:$0xff]   ;;  %v3049_v63 = vld [vmem:[%s3370_s6 + $0x80] ss:$12 sps:$4 sm:$0xff]   ;;  %v3052_v1 = vld [vmem:[%s3370_s6 + $0x98] ss:$12 sps:$4 sm:$0xff]  }
  0x4d   : > { %v3050_v0 = vld [vmem:[%s3370_s6 + $0x10c] ss:$12 sps:$4 sm:$0xff]   ;;  %v3054_v3 = vld [vmem:[%s3370_s6 + $0xb0] ss:$12 sps:$4 sm:$0xff]   ;;  %v3057_v5 = vld [vmem:[%s3370_s6 + $0xc8] ss:$12 sps:$4 sm:$0xff]  }
  0x4e   : > { %1200 = vmatpush1.bf16.msra.mxu0 %v2974_v8  ;;  %2914 = vmatpush1.bf16.msra.mxu1 %v2974_v8  ;;  %v3055_v4 = vld [vmem:[%s3370_s6 + $0x124] ss:$12 sps:$4 sm:$0xff]   ;;  %v3058_v6 = vld [vmem:[%s3370_s6 + $0x120] ss:$12 sps:$4 sm:$0xff]   ;;  %v3060_v8 = vld [vmem:[%s3370_s6 + $0x13c] ss:$12 sps:$4 sm:$0xff]  }
  0x4f   : > { %1201 = vmatprep.subr.bf16.mxu0 %v3156_v2  ;;  %2899 = vmatprep.subr.bf16.mxu1 %v3156_v2  ;;  %v3059_v7 = vld [vmem:[%s3370_s6 + $0xe0] ss:$12 sps:$4 sm:$0xff]   ;;  %v3062_v9 = vld [vmem:[%s3370_s6 + $0xf8] ss:$12 sps:$4 sm:$0xff]  }
  0x52   : > { %1202 = vmatpush1.bf16.msra.mxu0 %v2975_v10  ;;  %2915 = vmatpush1.bf16.msra.mxu1 %v2975_v10  ;;  %v3063_v10 = vld [vmem:[%s3370_s6 + $0x138] ss:$12 sps:$4 sm:$0xff]  }
  0x53   : > { %1203 = vmatprep.subr.bf16.mxu0 %v3156_v2  ;;  %2900 = vmatprep.subr.bf16.mxu1 %v3156_v2 }
  0x56   : > { %1204 = vmatpush1.bf16.msra.mxu0 %v2976_v11  ;;  %2916 = vmatpush1.bf16.msra.mxu1 %v2976_v11  ;;  %v3064_v11 = vld [vmem:[%s3370_s6 + $0x110] ss:$12 sps:$4 sm:$0xff]  }
  0x57   : > { %1205 = vmatprep.subr.bf16.mxu0 %v3156_v2  ;;  %2901 = vmatprep.subr.bf16.mxu1 %v3156_v2 }
  0x5a   : > { %1206 = vmatpush2.bf16.msra.mxu0 %v2977_v12  ;;  %2917 = vmatpush2.bf16.msra.mxu1 %v2977_v12  ;;  %v3065_v12 = vld [vmem:[%s3370_s6 + $0x154] ss:$12 sps:$4 sm:$0xff]  }
  0x5b   : > { %1207 = vmatprep.subr.bf16.mxu0 %v3156_v2  ;;  %2902 = vmatprep.subr.bf16.mxu1 %v3156_v2 }
  0x5e   : > { %1208 = vmatpush2.bf16.msra.mxu0 %v2978_v13  ;;  %2918 = vmatpush2.bf16.msra.mxu1 %v2978_v13  ;;  %v3067_v13 = vld [vmem:[%s3370_s6 + $0x128] ss:$12 sps:$4 sm:$0xff]  }
  0x5f   : > { %1209 = vmatprep.subr.bf16.mxu0 %v3156_v2  ;;  %2903 = vmatprep.subr.bf16.mxu1 %v3156_v2 }
  0x62   : > { %1210 = vmatpush2.bf16.msra.mxu0 %v2979_v14  ;;  %2919 = vmatpush2.bf16.msra.mxu1 %v2979_v14  ;;  %v3068_v14 = vld [vmem:[%s3370_s6 + $0x150] ss:$12 sps:$4 sm:$0xff]  }
  0x63   : > { %1211 = vmatprep.subr.bf16.mxu0 %v3156_v2  ;;  %2904 = vmatprep.subr.bf16.mxu1 %v3156_v2 }
  0x66   : > { %1212 = vmatpush2.bf16.msra.mxu0 %v2980_v15  ;;  %2920 = vmatpush2.bf16.msra.mxu1 %v2980_v15  ;;  %v3069_v15 = vld [vmem:[%s3370_s6 + $0x140] ss:$12 sps:$4 sm:$0xff]  }
  0x67   : > { %1213 = vmatprep.subr.bf16.mxu0 %v3156_v2  ;;  %2905 = vmatprep.subr.bf16.mxu1 %v3156_v2 }
  0x6a   : > { %1214 = vmatpush2.bf16.msra.mxu0 %v2981_v16  ;;  %2921 = vmatpush2.bf16.msra.mxu1 %v2981_v16  ;;  %v3070_v16 = vld [vmem:[%s3370_s6 + $0x16c] ss:$12 sps:$4 sm:$0xff]  }
  0x6b   : > { %1215 = vmatprep.subr.bf16.mxu0 %v3156_v2  ;;  %2906 = vmatprep.subr.bf16.mxu1 %v3156_v2 }
  0x6e   : > { %1216 = vmatpush2.bf16.msra.mxu0 %v2982_v17  ;;  %2922 = vmatpush2.bf16.msra.mxu1 %v2982_v17  ;;  %v3072_v17 = vld [vmem:[%s3370_s6 + $0x158] ss:$12 sps:$4 sm:$0xff]  }
  0x6f   : > { %1217 = vmatprep.subr.bf16.mxu0 %v3156_v2  ;;  %2907 = vmatprep.subr.bf16.mxu1 %v3156_v2 }
  0x72   : > { %1218 = vmatpush2.bf16.msra.mxu0 %v2983_v18  ;;  %2923 = vmatpush2.bf16.msra.mxu1 %v2983_v18  ;;  %v3073_v18 = vld [vmem:[%s3370_s6 + $0x168] ss:$12 sps:$4 sm:$0xff]  }
  0x73   : > { %1219 = vmatprep.subr.bf16.mxu0 %v3156_v2  ;;  %2908 = vmatprep.subr.bf16.mxu1 %v3156_v2  ;;  %v3053_v2 = vld [vmem:[%s3370_s6 + $0x108] ss:$12 sps:$4 sm:$0xff]  }
  0x76   : > { %1220 = vmatpush2.bf16.msra.mxu0 %v2984_v19  ;;  %2924 = vmatpush2.bf16.msra.mxu1 %v2984_v19  ;;  %v3074_v19 = vld [vmem:[%s3370_s6 + $0x170] ss:$12 sps:$4 sm:$0xff]  }
  0x77   : > { %2825 = vmatprep.subr.bf16.mxu1 %v2991_v20 }
  0x79   : > { %1222 = vmatmul.mubr.bf16.vlgmr.msra.gmra.mxu0 %v2985_v21  ;;  %1414 = vmatmul.mubr.bf16.vlgmr.msra.gmra.mxu1 %v2988_v22  ;;  %v3077_v21 = vld [vmem:[%s3370_s6 + $0x188] ss:$12 sps:$4 sm:$0xff]   ;;  %v3078_v22 = vld [vmem:[%s3370_s6 + $0x180] ss:$12 sps:$4 sm:$0xff]  }
  0x7a   : > { %2826 = vmatpush3.bf16.msra.mxu1 %v2991_v20  ;;  %1229 = vmatprep.mubr.bf16.mxu0 %v2992_v23  ;;  %v3075_v20 = vld [vmem:[%s3370_s6 + $0x184] ss:$12 sps:$4 sm:$0xff]   ;;  %v3079_v23 = vld [vmem:[%s3370_s6 + $0x1a0] ss:$12 sps:$4 sm:$0xff]  }
  0x7b   : > { %1421 = vmatprep.mubr.bf16.mxu1 %v2994_v24  ;;  %2827 = vmatprep.subr.bf16.mxu1 %v3016_v25  ;;  %v3080_v24 = vld [vmem:[%s3370_s6 + $0x19c] ss:$12 sps:$4 sm:$0xff]  }
  0x7e   : > { %2828 = vmatpush3.bf16.msra.mxu1 %v3016_v25  ;;  %v3082_v25 = vld [vmem:[%s3370_s6 + $0x1b8] ss:$12 sps:$4 sm:$0xff]  }
  0x81   : > { %1230 = vmatmul.mubr.bf16.gmra.mxu0 %v2996_v26  ;;  %1422 = vmatmul.mubr.bf16.gmra.mxu1 %v2997_v27  ;;  %v3083_v26 = vld [vmem:[%s3370_s6 + $0x198] ss:$12 sps:$4 sm:$0xff]   ;;  %v3084_v27 = vld [vmem:[%s3370_s6 + $0x1d0] ss:$12 sps:$4 sm:$0xff]  }
  0x82   : > { %1237 = vmatprep.mubr.bf16.mxu0 %v2998_v28  ;;  %1429 = vmatprep.mubr.bf16.mxu1 %v3000_v29  ;;  %v3085_v28 = vld [vmem:[%s3370_s6 + $0x1b4] ss:$12 sps:$4 sm:$0xff]  }
  0x83   : > { %v3087_v29 = vld [vmem:[%s3370_s6 + $0x1e8] ss:$12 sps:$4 sm:$0xff]  }
  0x89   : > { %1238 = vmatmul.mubr.bf16.gmra.mxu0 %v3002_v30  ;;  %1430 = vmatmul.mubr.bf16.gmra.mxu1 %v3003_v31  ;;  %v3088_v30 = vld [vmem:[%s3370_s6 + $0x1b0] ss:$12 sps:$4 sm:$0xff]   ;;  %v3089_v31 = vld [vmem:[%s3370_s6 + $0x200] ss:$12 sps:$4 sm:$0xff]  }
  0x8a   : > { %1245 = vmatprep.mubr.bf16.mxu0 %v3004_v32  ;;  %1437 = vmatprep.mubr.bf16.mxu1 %v3006_v33  ;;  %v3090_v32 = vld [vmem:[%s3370_s6 + $0x1cc] ss:$12 sps:$4 sm:$0xff]  }
  0x8b   : > { %v3092_v33 = vld [vmem:[%s3370_s6 + $0x218] ss:$12 sps:$4 sm:$0xff]  }
  0x91   : > { %1246 = vmatmul.mubr.bf16.gmra.mxu0 %v3008_v34  ;;  %1438 = vmatmul.mubr.bf16.gmra.mxu1 %v3009_v35  ;;  %v3093_v34 = vld [vmem:[%s3370_s6 + $0x1c8] ss:$12 sps:$4 sm:$0xff]   ;;  %v3094_v35 = vld [vmem:[%s3370_s6 + $0x230] ss:$12 sps:$4 sm:$0xff]  }
  0x92   : > { %1253 = vmatprep.mubr.bf16.mxu0 %v3010_v36  ;;  %1445 = vmatprep.mubr.bf16.mxu1 %v3012_v37  ;;  %v3095_v36 = vld [vmem:[%s3370_s6 + $0x1e4] ss:$12 sps:$4 sm:$0xff]   ;;  %v3097_v37 = vld [vmem:[%s3370_s6 + $0x248] ss:$12 sps:$4 sm:$0xff]  }
  0x99   : > { %1254 = vmatmul.mubr.bf16.gmra.mxu0 %v3014_v38  ;;  %1446 = vmatmul.mubr.bf16.gmra.mxu1 %v3015_v39  ;;  %v3098_v38 = vld [vmem:[%s3370_s6 + $0x1e0] ss:$12 sps:$4 sm:$0xff]  }
  0x9a   : > { %1261 = vmatprep.mubr.bf16.mxu0 %v3017_v40  ;;  %1453 = vmatprep.mubr.bf16.mxu1 %v3019_v41  ;;  %v3099_v39 = vld [vmem:[%s3370_s6 + $0x260] ss:$12 sps:$4 sm:$0xff]   ;;  %v3100_v40 = vld [vmem:[%s3370_s6 + $0x1fc] ss:$12 sps:$4 sm:$0xff]   ;;  %v3102_v41 = vld [vmem:[%s3370_s6 + $0x278] ss:$12 sps:$4 sm:$0xff]  }
  0xa1   : > { %1262 = vmatmul.mubr.bf16.gmra.mxu0 %v3021_v42  ;;  %1454 = vmatmul.mubr.bf16.gmra.mxu1 %v3022_v43  ;;  %v3103_v42 = vld [vmem:[%s3370_s6 + $0x1f8] ss:$12 sps:$4 sm:$0xff]   ;;  %v3104_v43 = vld [vmem:[%s3370_s6 + $0x290] ss:$12 sps:$4 sm:$0xff]  }
  0xa2   : > { %1269 = vmatprep.mubr.bf16.mxu0 %v3023_v44  ;;  %1461 = vmatprep.mubr.bf16.mxu1 %v3025_v45  ;;  %v3105_v44 = vld [vmem:[%s3370_s6 + $0x214] ss:$12 sps:$4 sm:$0xff]  }
  0xa3   : > { %v3107_v45 = vld [vmem:[%s3370_s6 + $0x2a8] ss:$12 sps:$4 sm:$0xff]  }
  0xa9   : > { %1270 = vmatmul.mubr.bf16.gmra.mxu0 %v3027_v46  ;;  %1462 = vmatmul.mubr.bf16.gmra.mxu1 %v3028_v47  ;;  %v3108_v46 = vld [vmem:[%s3370_s6 + $0x210] ss:$12 sps:$4 sm:$0xff]   ;;  %v3109_v47 = vld [vmem:[%s3370_s6 + $0x2c0] ss:$12 sps:$4 sm:$0xff]  }
  0xaa   : > { %1277 = vmatprep.mubr.bf16.mxu0 %v3029_v48  ;;  %1469 = vmatprep.mubr.bf16.mxu1 %v3031_v49  ;;  %v3110_v48 = vld [vmem:[%s3370_s6 + $0x22c] ss:$12 sps:$4 sm:$0xff]  }
  0xab   : > { %v3112_v49 = vld [vmem:[%s3370_s6 + $0x2d8] ss:$12 sps:$4 sm:$0xff]  }
  0xb1   : > { %1278 = vmatmul.mubr.bf16.gmra.mxu0 %v3033_v50  ;;  %1470 = vmatmul.mubr.bf16.gmra.mxu1 %v3034_v51  ;;  %v3113_v50 = vld [vmem:[%s3370_s6 + $0x228] ss:$12 sps:$4 sm:$0xff]   ;;  %v3114_v51 = vld [vmem:[%s3370_s6 + $0x2f0] ss:$12 sps:$4 sm:$0xff]  }
  0xb2   : > { %1285 = vmatprep.mubr.bf16.mxu0 %v3035_v52  ;;  %2829 = vmatprep.mubr.msk.bf16.mxu1 %vm1092_vm1, %v3037_v53 }
  0xb9   : > { %1286 = vmatmul.mubr.bf16.gmra.mxu0 %v3038_v54  ;;  %2830 = vmatmul.mubr.msk.bf16.vlgmr.msra.gmra.mxu1 %vm1092_vm1, %v3039_v55 }
  0xba   : > { %1293 = vmatprep.mubr.bf16.mxu0 %v3040_v56  ;;  %2833 = vmatprep.mubr.msk.bf16.mxu1 %vm1092_vm1, %v3042_v57 }
  0xc1   : > { %1294 = vmatmul.mubr.bf16.gmra.mxu0 %v3043_v58  ;;  %2834 = vmatmul.mubr.msk.bf16.gmra.mxu1 %vm1092_vm1, %v3044_v59 }
  0xc2   : > { %1301 = vmatprep.mubr.bf16.mxu0 %v3045_v60  ;;  %2837 = vmatprep.mubr.msk.bf16.mxu1 %vm1092_vm1, %v3047_v61 }
  0xc9   : > { %1302 = vmatmul.mubr.bf16.gmra.mxu0 %v3048_v62  ;;  %2838 = vmatmul.mubr.msk.bf16.gmra.mxu1 %vm1092_vm1, %v3049_v63 }
  0xca   : > { %1309 = vmatprep.mubr.bf16.mxu0 %v3050_v0  ;;  %2841 = vmatprep.mubr.msk.bf16.mxu1 %vm1092_vm1, %v3052_v1 }
  0xd1   : > { %1310 = vmatmul.mubr.bf16.gmra.mxu0 %v3053_v2  ;;  %2842 = vmatmul.mubr.msk.bf16.gmra.mxu1 %vm1092_vm1, %v3054_v3 }
  0xd2   : > { %1317 = vmatprep.mubr.bf16.mxu0 %v3055_v4  ;;  %2845 = vmatprep.mubr.msk.bf16.mxu1 %vm1092_vm1, %v3057_v5 }
  0xd9   : > { %1318 = vmatmul.mubr.bf16.gmra.mxu0 %v3058_v6  ;;  %2846 = vmatmul.mubr.msk.bf16.gmra.mxu1 %vm1092_vm1, %v3059_v7 }
  0xda   : > { %1325 = vmatprep.mubr.bf16.mxu0 %v3060_v8  ;;  %2849 = vmatprep.mubr.msk.bf16.mxu1 %vm1092_vm1, %v3062_v9 }
  0xe1   : > { %1326 = vmatmul.mubr.bf16.gmra.mxu0 %v3063_v10  ;;  %2850 = vmatmul.mubr.msk.bf16.gmra.mxu1 %vm1092_vm1, %v3064_v11 }
  0xe2   : > { %1333 = vmatprep.mubr.bf16.mxu0 %v3065_v12  ;;  %2853 = vmatprep.mubr.msk.bf16.mxu1 %vm1092_vm1, %v3067_v13 }
  0xe9   : > { %1334 = vmatmul.mubr.bf16.gmra.mxu0 %v3068_v14  ;;  %2854 = vmatmul.mubr.msk.bf16.gmra.mxu1 %vm1092_vm1, %v3069_v15 }
  0xea   : > { %1341 = vmatprep.mubr.bf16.mxu0 %v3070_v16  ;;  %2857 = vmatprep.mubr.msk.bf16.mxu1 %vm1092_vm1, %v3072_v17 }
  0xf1   : > { %1342 = vmatmul.mubr.bf16.gmra.mxu0 %v3073_v18  ;;  %2858 = vmatmul.mubr.msk.bf16.gmra.mxu1 %vm1092_vm1, %v3074_v19 }
  0xf2   : > { %1349 = vmatprep.mubr.bf16.mxu0 %v3075_v20  ;;  %2861 = vmatprep.mubr.msk.bf16.mxu1 %vm1092_vm1, %v3077_v21 }
  0xf9   : > { %1350 = vmatmul.mubr.bf16.gmra.mxu0 %v3078_v22  ;;  %2862 = vmatmul.mubr.msk.bf16.gmra.mxu1 %vm1092_vm1, %v3079_v23 }
  0xfa   : > { %1357 = vmatprep.mubr.bf16.mxu0 %v3080_v24  ;;  %2865 = vmatprep.mubr.msk.bf16.mxu1 %vm1092_vm1, %v3082_v25 }
 0x101   : > { %1358 = vmatmul.mubr.bf16.gmra.mxu0 %v3083_v26  ;;  %2866 = vmatmul.mubr.msk.bf16.gmra.mxu1 %vm1092_vm1, %v3084_v27 }
 0x102   : > { %1365 = vmatprep.mubr.bf16.mxu0 %v3085_v28  ;;  %2869 = vmatprep.mubr.msk.bf16.mxu1 %vm1092_vm1, %v3087_v29 }
 0x109   : > { %1366 = vmatmul.mubr.bf16.gmra.mxu0 %v3088_v30  ;;  %2870 = vmatmul.mubr.msk.bf16.gmra.mxu1 %vm1092_vm1, %v3089_v31 }
 0x10a   : > { %1373 = vmatprep.mubr.bf16.mxu0 %v3090_v32  ;;  %2873 = vmatprep.mubr.msk.bf16.mxu1 %vm1092_vm1, %v3092_v33 }
 0x111   : > { %1374 = vmatmul.mubr.bf16.gmra.mxu0 %v3093_v34  ;;  %2874 = vmatmul.mubr.msk.bf16.gmra.mxu1 %vm1092_vm1, %v3094_v35 }
 0x112   : > { %1381 = vmatprep.mubr.bf16.mxu0 %v3095_v36  ;;  %2877 = vmatprep.mubr.msk.bf16.mxu1 %vm1092_vm1, %v3097_v37 }
 0x119   : > { %1382 = vmatmul.mubr.bf16.gmra.mxu0 %v3098_v38  ;;  %2878 = vmatmul.mubr.msk.bf16.gmra.mxu1 %vm1092_vm1, %v3099_v39 }
 0x11a   : > { %1389 = vmatprep.mubr.bf16.mxu0 %v3100_v40  ;;  %2881 = vmatprep.mubr.msk.bf16.mxu1 %vm1092_vm1, %v3102_v41 }
 0x121   : > { %1390 = vmatmul.mubr.bf16.gmra.mxu0 %v3103_v42  ;;  %2882 = vmatmul.mubr.msk.bf16.gmra.mxu1 %vm1092_vm1, %v3104_v43 }
 0x122   : > { %1397 = vmatprep.mubr.bf16.mxu0 %v3105_v44  ;;  %2885 = vmatprep.mubr.msk.bf16.mxu1 %vm1092_vm1, %v3107_v45 }
 0x129   : > { %1398 = vmatmul.mubr.bf16.gmra.mxu0 %v3108_v46  ;;  %2886 = vmatmul.mubr.msk.bf16.gmra.mxu1 %vm1092_vm1, %v3109_v47 }
 0x12a   : > { %1405 = vmatprep.mubr.bf16.mxu0 %v3110_v48  ;;  %2889 = vmatprep.mubr.msk.bf16.mxu1 %vm1092_vm1, %v3112_v49 }
 0x131   : > { %1406 = vmatmul.mubr.bf16.gmra.mxu0 %v3113_v50  ;;  %2890 = vmatmul.mubr.msk.bf16.gmra.mxu1 %vm1092_vm1, %v3114_v51 }
 0x139   : > { %v3537_v52 = vpop.f32.mrf.mxu0  ;;  %v3539_v53 = vpop.f32.mrf.mxu1 }
 0x13b   : > { %v1225_v54 = vpop.f32.mrf.mxu0  ;;  %v1417_v55 = vpop.f32.mrf.mxu1 }
 0x13c   : > { %v406_v55 = vld [vmem:[#allocation2 + $0x10] sm:$0xff] }
 0x13d   : > { %v3541_v56 = vpop.f32.mrf.mxu0  ;;  %v3543_v57 = vpop.f32.mrf.mxu1 }
 0x13f   : > { %v1228_v58 = vpop.f32.mrf.mxu0  ;;  %v1420_v59 = vpop.f32.mrf.mxu1 }
 0x141   : > { %v1231_v60 = vpop.f32.mrf.mxu0  ;;  %v3545_v61 = vpop.f32.mrf.mxu1 }
 0x143   : > { %v1233_v62 = vpop.f32.mrf.mxu0  ;;  %v1425_v63 = vpop.f32.mrf.mxu1 }
 0x144   : > { %v404_v63 = vld [vmem:[#allocation2] sm:$0xff] }
 0x145   : > { %v3547_v0 = vpop.f32.mrf.mxu0  ;;  %v3549_v1 = vpop.f32.mrf.mxu1 }
 0x147   : > { %v1236_v2 = vpop.f32.mrf.mxu0  ;;  %v1428_v3 = vpop.f32.mrf.mxu1 }
 0x149   : > { %v3551_v4 = vpop.f32.mrf.mxu0  ;;  %v3553_v5 = vpop.f32.mrf.mxu1 }
 0x14b   : > { %v1241_v6 = vpop.f32.mrf.mxu0  ;;  %v1433_v7 = vpop.f32.mrf.mxu1 }
 0x14d   : > { %v3555_v8 = vpop.f32.mrf.mxu0  ;;  %v3557_v9 = vpop.f32.mrf.mxu1 }
 0x14f   : > { %v1244_v10 = vpop.f32.mrf.mxu0  ;;  %v1436_v11 = vpop.f32.mrf.mxu1 }
 0x150   : > { %v407_v10 = vld [vmem:[#allocation2 + $0x18] sm:$0xff] }
 0x151   : > { %v3559_v12 = vpop.f32.mrf.mxu0  ;;  %v3561_v13 = vpop.f32.mrf.mxu1 }
 0x153   : > { %v1249_v14 = vpop.f32.mrf.mxu0  ;;  %v1441_v15 = vpop.f32.mrf.mxu1 }
 0x155   : > { %v3563_v16 = vpop.f32.mrf.mxu0  ;;  %v3565_v17 = vpop.f32.mrf.mxu1 }
 0x157   : > { %v1252_v18 = vpop.f32.mrf.mxu0  ;;  %v1444_v19 = vpop.f32.mrf.mxu1 }
 0x158   : > { %v405_v19 = vld [vmem:[#allocation2 + $0x8] sm:$0xff] }
 0x159   : > { %v3567_v20 = vpop.f32.mrf.mxu0  ;;  %v3569_v21 = vpop.f32.mrf.mxu1 }
 0x15b   : > { %v1257_v22 = vpop.f32.mrf.mxu0  ;;  %v1449_v23 = vpop.f32.mrf.mxu1 }
 0x15d   : > { %v3571_v24 = vpop.f32.mrf.mxu0  ;;  %v3573_v25 = vpop.f32.mrf.mxu1 }
 0x15f   : > { %v1260_v26 = vpop.f32.mrf.mxu0  ;;  %v1452_v27 = vpop.f32.mrf.mxu1 }
 0x161   : > { %v3575_v28 = vpop.f32.mrf.mxu0  ;;  %v3577_v29 = vpop.f32.mrf.mxu1 }
 0x163   : > { %v1265_v30 = vpop.f32.mrf.mxu0  ;;  %v1457_v31 = vpop.f32.mrf.mxu1 }
 0x165   : > { %v3579_v32 = vpop.f32.mrf.mxu0  ;;  %v3581_v33 = vpop.f32.mrf.mxu1 }
 0x167   : > { %v1268_v34 = vpop.f32.mrf.mxu0  ;;  %v1460_v35 = vpop.f32.mrf.mxu1 }
 0x168   : > { %v408_v35 = vld [vmem:[#allocation2 + $0x20] sm:$0xff] }
 0x169   : > { %v3583_v36 = vpop.f32.mrf.mxu0  ;;  %v3585_v37 = vpop.f32.mrf.mxu1 }
 0x16b   : > { %v1273_v38 = vpop.f32.mrf.mxu0  ;;  %v1465_v39 = vpop.f32.mrf.mxu1 }
 0x16d   : > { %v3587_v40 = vpop.f32.mrf.mxu0  ;;  %v3589_v41 = vpop.f32.mrf.mxu1 }
 0x16f   : > { %v1276_v42 = vpop.f32.mrf.mxu0  ;;  %v1468_v43 = vpop.f32.mrf.mxu1 }
 0x171   : > { %v3591_v44 = vpop.f32.mrf.mxu0  ;;  %v3593_v45 = vpop.f32.mrf.mxu1 }
 0x173   : > { %v1281_v46 = vpop.f32.mrf.mxu0  ;;  %v1473_v47 = vpop.f32.mrf.mxu1 }
 0x175   : > { %v3595_v48 = vpop.f32.mrf.mxu0  ;;  %v3597_v49 = vpop.f32.mrf.mxu1 }
 0x177   : > { %v1284_v50 = vpop.f32.mrf.mxu0  ;;  %v1476_v51 = vpop.f32.mrf.mxu1 }
 0x178   : > { %v409_v51 = vld [vmem:[#allocation2 + $0x28] sm:$0xff] }
 0x179   : > { %v3599_v54 = vpop.f32.mrf.mxu0  ;;  %v2831_v58 = vpop.f32.mrf.mxu1 }
 0x17a   : > { %v1521_v59 = vadd.f32 %v2831_v58, %v1231_v60 }
 0x17b   : > { %v1289_v62 = vpop.f32.mrf.mxu0  ;;  %v1512_v2 = vpop.f32.mrf.mxu1 }
 0x17c   : > { %v1769_v3 = vadd.f32 %v1521_v59, %v406_v55  ;;  %v1513_v6 = vadd.f32 %v1512_v2, %v3537_v52  ;;  %v410_v52 = vld [vmem:[#allocation2 + $0x30] sm:$0xff] }
 0x17d   : > { %v3602_v7 = vpop.f32.mrf.mxu0  ;;  %v2832_v11 = vpop.f32.mrf.mxu1 }
 0x17e   : > { %1834 = vst.msk [vmem:[#allocation2 + $0x10] sm:$0xff] %vm1831_vm2, %v1769_v3  ;;  %v1767_v14 = vadd.f32 %v1513_v6, %v404_v63  ;;  %v1524_v15 = vadd.f32 %v2832_v11, %v3547_v0  ;;  %v412_v6 = vld [vmem:[#allocation2 + $0x40] sm:$0xff] }
 0x17f   : > { %v1292_v18 = vpop.f32.mrf.mxu0  ;;  %v1515_v22 = vpop.f32.mrf.mxu1 }
 0x180   : > { %1832 = vst.msk [vmem:[#allocation2] sm:$0xff] %vm1831_vm2, %v1767_v14  ;;  %v1770_v60 = vadd.f32 %v1524_v15, %v407_v10  ;;  %v1516_v23 = vadd.f32 %v1515_v22, %v3541_v56  ;;  %v411_v56 = vld [vmem:[#allocation2 + $0x38] sm:$0xff] }
 0x181   : > { %v3608_v26 = vpop.f32.mrf.mxu0  ;;  %v2835_v27 = vpop.f32.mrf.mxu1 }
 0x182   : > { %1835 = vst.msk [vmem:[#allocation2 + $0x18] sm:$0xff] %vm1831_vm2, %v1770_v60  ;;  %v1768_v30 = vadd.f32 %v1516_v23, %v405_v19  ;;  %v1537_v31 = vadd.f32 %v2835_v27, %v3559_v12  ;;  %v413_v60 = vld [vmem:[#allocation2 + $0x48] sm:$0xff] }
 0x183   : > { %v1297_v34 = vpop.f32.mrf.mxu0  ;;  %v1528_v0 = vpop.f32.mrf.mxu1 }
 0x184   : > { %1833 = vst.msk [vmem:[#allocation2 + $0x8] sm:$0xff] %vm1831_vm2, %v1768_v30  ;;  %v1773_v38 = vadd.f32 %v1537_v31, %v410_v52  ;;  %v1529_v39 = vadd.f32 %v1528_v0, %v3551_v4  ;;  %v414_v4 = vld [vmem:[#allocation2 + $0x50] sm:$0xff]  ;;  %v416_v0 = vld [vmem:[#allocation2 + $0x60] sm:$0xff] }
 0x185   : > { %v3614_v42 = vpop.f32.mrf.mxu0  ;;  %v2836_v43 = vpop.f32.mrf.mxu1  ;;  %v418_v30 = vld [vmem:[#allocation2 + $0x70] sm:$0xff] }
 0x186   : > { %1838 = vst.msk [vmem:[#allocation2 + $0x30] sm:$0xff] %vm1831_vm2, %v1773_v38  ;;  %v1771_v46 = vadd.f32 %v1529_v39, %v408_v35  ;;  %v1540_v47 = vadd.f32 %v2836_v43, %v3563_v16  ;;  %v419_v43 = vld [vmem:[#allocation2 + $0x78] sm:$0xff] }
 0x187   : > { %v1300_v50 = vpop.f32.mrf.mxu0  ;;  %v1531_v12 = vpop.f32.mrf.mxu1 }
 0x188   : > { %1836 = vst.msk [vmem:[#allocation2 + $0x20] sm:$0xff] %vm1831_vm2, %v1771_v46  ;;  %v1774_v55 = vadd.f32 %v1540_v47, %v411_v56  ;;  %v1532_v58 = vadd.f32 %v1531_v12, %v3555_v8  ;;  %v415_v8 = vld [vmem:[#allocation2 + $0x58] sm:$0xff] }
 0x189   : > { %v3620_v59 = vpop.f32.mrf.mxu0  ;;  %v2839_v62 = vpop.f32.mrf.mxu1 }
 0x18a   : > { %1839 = vst.msk [vmem:[#allocation2 + $0x38] sm:$0xff] %vm1831_vm2, %v1774_v55  ;;  %v1772_v63 = vadd.f32 %v1532_v58, %v409_v51  ;;  %v1553_v2 = vadd.f32 %v2839_v62, %v3575_v28  ;;  %v417_v51 = vld [vmem:[#allocation2 + $0x68] sm:$0xff] }
 0x18b   : > { %v1305_v3 = vpop.f32.mrf.mxu0  ;;  %v1544_v16 = vpop.f32.mrf.mxu1 }
 0x18c   : > { %1837 = vst.msk [vmem:[#allocation2 + $0x28] sm:$0xff] %vm1831_vm2, %v1772_v63  ;;  %v1777_v10 = vadd.f32 %v1553_v2, %v414_v4  ;;  %v1545_v11 = vadd.f32 %v1544_v16, %v3567_v20  ;;  %v422_v4 = vld [vmem:[#allocation2 + $0x90] sm:$0xff]  ;;  %v420_v3 = vld [vmem:[#allocation2 + $0x80] sm:$0xff] }
 0x18d   : > { %v3626_v14 = vpop.f32.mrf.mxu0  ;;  %v2840_v15 = vpop.f32.mrf.mxu1 }
 0x18e   : > { %1842 = vst.msk [vmem:[#allocation2 + $0x50] sm:$0xff] %vm1831_vm2, %v1777_v10  ;;  %v1775_v18 = vadd.f32 %v1545_v11, %v412_v6  ;;  %v1556_v19 = vadd.f32 %v2840_v15, %v3579_v32  ;;  %v423_v11 = vld [vmem:[#allocation2 + $0x98] sm:$0xff] }
 0x18f   : > { %v1308_v22 = vpop.f32.mrf.mxu0  ;;  %v1547_v28 = vpop.f32.mrf.mxu1 }
 0x190   : > { %1840 = vst.msk [vmem:[#allocation2 + $0x40] sm:$0xff] %vm1831_vm2, %v1775_v18  ;;  %v1778_v23 = vadd.f32 %v1556_v19, %v415_v8  ;;  %v1548_v52 = vadd.f32 %v1547_v28, %v3571_v24  ;;  %v421_v19 = vld [vmem:[#allocation2 + $0x88] sm:$0xff] }
 0x191   : > { %v1311_v27 = vpop.f32.mrf.mxu0  ;;  %v2843_v20 = vpop.f32.mrf.mxu1 }
 0x192   : > { %1843 = vst.msk [vmem:[#allocation2 + $0x58] sm:$0xff] %vm1831_vm2, %v1778_v23  ;;  %v1776_v31 = vadd.f32 %v1548_v52, %v413_v60  ;;  %v1569_v34 = vadd.f32 %v2843_v20, %v3591_v44  ;;  %v426_v23 = vld [vmem:[#allocation2 + $0xb0] sm:$0xff] }
 0x193   : > { %v1313_v35 = vpop.f32.mrf.mxu0  ;;  %v1560_v38 = vpop.f32.mrf.mxu1 }
 0x194   : > { %1841 = vst.msk [vmem:[#allocation2 + $0x48] sm:$0xff] %vm1831_vm2, %v1776_v31  ;;  %v1781_v32 = vadd.f32 %v1569_v34, %v418_v30  ;;  %v1561_v39 = vadd.f32 %v1560_v38, %v3583_v36  ;;  %v424_v31 = vld [vmem:[#allocation2 + $0xa0] sm:$0xff]  ;;  %v427_v38 = vld [vmem:[#allocation2 + $0xb8] sm:$0xff] }
 0x195   : > { %v1314_v56 = vpop.f32.mrf.mxu0  ;;  %v2844_v46 = vpop.f32.mrf.mxu1 }
 0x196   : > { %1846 = vst.msk [vmem:[#allocation2 + $0x70] sm:$0xff] %vm1831_vm2, %v1781_v32  ;;  %v1779_v24 = vadd.f32 %v1561_v39, %v416_v0  ;;  %v1572_v47 = vadd.f32 %v2844_v46, %v3595_v48  ;;  %v425_v46 = vld [vmem:[#allocation2 + $0xa8] sm:$0xff] }
 0x197   : > { %v1316_v50 = vpop.f32.mrf.mxu0  ;;  %v1563_v12 = vpop.f32.mrf.mxu1 }
 0x198   : > { %1844 = vst.msk [vmem:[#allocation2 + $0x60] sm:$0xff] %vm1831_vm2, %v1779_v24  ;;  %v1782_v44 = vadd.f32 %v1572_v47, %v419_v43  ;;  %v1564_v55 = vadd.f32 %v1563_v12, %v3587_v40 }
 0x199   : > { %v1319_v58 = vpop.f32.mrf.mxu0  ;;  %v2847_v62 = vpop.f32.mrf.mxu1 }
 0x19a   : > { %1847 = vst.msk [vmem:[#allocation2 + $0x78] sm:$0xff] %vm1831_vm2, %v1782_v44  ;;  %v1780_v36 = vadd.f32 %v1564_v55, %v417_v51  ;;  %v1585_v63 = vadd.f32 %v2847_v62, %v3608_v26  ;;  %v430_v51 = vld [vmem:[#allocation2 + $0xd0] sm:$0xff] }
 0x19b   : > { %v1321_v2 = vpop.f32.mrf.mxu0  ;;  %v1576_v6 = vpop.f32.mrf.mxu1 }
 0x19c   : > { %1845 = vst.msk [vmem:[#allocation2 + $0x68] sm:$0xff] %vm1831_vm2, %v1780_v36  ;;  %v1785_v48 = vadd.f32 %v1585_v63, %v422_v4  ;;  %v1577_v16 = vadd.f32 %v1576_v6, %v3599_v54  ;;  %v428_v4 = vld [vmem:[#allocation2 + $0xc0] sm:$0xff]  ;;  %v431_v2 = vld [vmem:[#allocation2 + $0xd8] sm:$0xff] }
 0x19d   : > { %v1322_v10 = vpop.f32.mrf.mxu0  ;;  %v2848_v8 = vpop.f32.mrf.mxu1 }
 0x19e   : > { %1850 = vst.msk [vmem:[#allocation2 + $0x90] sm:$0xff] %vm1831_vm2, %v1785_v48  ;;  %v1783_v40 = vadd.f32 %v1577_v16, %v420_v3  ;;  %v1588_v15 = vadd.f32 %v2848_v8, %v3614_v42  ;;  %v429_v16 = vld [vmem:[#allocation2 + $0xc8] sm:$0xff] }
 0x19f   : > { %v1324_v18 = vpop.f32.mrf.mxu0  ;;  %v1579_v22 = vpop.f32.mrf.mxu1 }
 0x1a0   : > { %1848 = vst.msk [vmem:[#allocation2 + $0x80] sm:$0xff] %vm1831_vm2, %v1783_v40  ;;  %v1786_v26 = vadd.f32 %v1588_v15, %v423_v11  ;;  %v1580_v60 = vadd.f32 %v1579_v22, %v3602_v7  ;;  %v434_v18 = vld [vmem:[#allocation2 + $0xf0] sm:$0xff] }
 0x1a1   : > { %v1327_v28 = vpop.f32.mrf.mxu0  ;;  %v2851_v52 = vpop.f32.mrf.mxu1 }
 0x1a2   : > { %1851 = vst.msk [vmem:[#allocation2 + $0x98] sm:$0xff] %vm1831_vm2, %v1786_v26  ;;  %v1784_v54 = vadd.f32 %v1580_v60, %v421_v19  ;;  %v1601_v30 = vadd.f32 %v2851_v52, %v1311_v27  ;;  %v432_v60 = vld [vmem:[#allocation2 + $0xe0] sm:$0xff] }
 0x1a3   : > { %v1329_v20 = vpop.f32.mrf.mxu0  ;;  %v1592_v34 = vpop.f32.mrf.mxu1 }
 0x1a4   : > { %1849 = vst.msk [vmem:[#allocation2 + $0x88] sm:$0xff] %vm1831_vm2, %v1784_v54  ;;  %v1789_v42 = vadd.f32 %v1601_v30, %v426_v23  ;;  %v1593_v35 = vadd.f32 %v1592_v34, %v3620_v59  ;;  %v435_v30 = vld [vmem:[#allocation2 + $0xf8] sm:$0xff] }
 0x1a5   : > { %v1330_v0 = vpop.f32.mrf.mxu0  ;;  %v2852_v32 = vpop.f32.mrf.mxu1 }
 0x1a6   : > { %1854 = vst.msk [vmem:[#allocation2 + $0xb0] sm:$0xff] %vm1831_vm2, %v1789_v42  ;;  %v1787_v7 = vadd.f32 %v1593_v35, %v424_v31  ;;  %v1604_v39 = vadd.f32 %v2852_v32, %v1314_v56  ;;  %v433_v42 = vld [vmem:[#allocation2 + $0xe8] sm:$0xff] }
 0x1a7   : > { %v1332_v43 = vpop.f32.mrf.mxu0  ;;  %v1595_v24 = vpop.f32.mrf.mxu1 }
 0x1a8   : > { %1852 = vst.msk [vmem:[#allocation2 + $0xa0] sm:$0xff] %vm1831_vm2, %v1787_v7  ;;  %v1790_v27 = vadd.f32 %v1604_v39, %v427_v38  ;;  %v1596_v47 = vadd.f32 %v1595_v24, %v3626_v14 }
 0x1a9   : > { %v1335_v50 = vpop.f32.mrf.mxu0  ;;  %v2855_v12 = vpop.f32.mrf.mxu1 }
 0x1aa   : > { %1855 = vst.msk [vmem:[#allocation2 + $0xb8] sm:$0xff] %vm1831_vm2, %v1790_v27  ;;  %v1788_v59 = vadd.f32 %v1596_v47, %v425_v46  ;;  %v1617_v44 = vadd.f32 %v2855_v12, %v1327_v28  ;;  %v436_v46 = vld [vmem:[#allocation2 + $0x100] sm:$0xff] }
 0x1ab   : > { %v1337_v55 = vpop.f32.mrf.mxu0  ;;  %v1608_v62 = vpop.f32.mrf.mxu1 }
 0x1ac   : > { %1853 = vst.msk [vmem:[#allocation2 + $0xa8] sm:$0xff] %vm1831_vm2, %v1788_v59  ;;  %v1793_v56 = vadd.f32 %v1617_v44, %v430_v51  ;;  %v1609_v36 = vadd.f32 %v1608_v62, %v1319_v58  ;;  %v437_v59 = vld [vmem:[#allocation2 + $0x108] sm:$0xff] }
 0x1ad   : > { %v1338_v63 = vpop.f32.mrf.mxu0  ;;  %v2856_v3 = vpop.f32.mrf.mxu1 }
 0x1ae   : > { %1858 = vst.msk [vmem:[#allocation2 + $0xd0] sm:$0xff] %vm1831_vm2, %v1793_v56  ;;  %v1791_v14 = vadd.f32 %v1609_v36, %v428_v4  ;;  %v1620_v6 = vadd.f32 %v2856_v3, %v1330_v0  ;;  %v438_v4 = vld [vmem:[#allocation2 + $0x110] sm:$0xff] }
 0x1af   : > { %v1340_v48 = vpop.f32.mrf.mxu0  ;;  %v1611_v11 = vpop.f32.mrf.mxu1 }
 0x1b0   : > { %1856 = vst.msk [vmem:[#allocation2 + $0xc0] sm:$0xff] %vm1831_vm2, %v1791_v14  ;;  %v1794_v8 = vadd.f32 %v1620_v6, %v431_v2  ;;  %v1612_v40 = vadd.f32 %v1611_v11, %v1322_v10  ;;  %v439_v6 = vld [vmem:[#allocation2 + $0x118] sm:$0xff] }
 0x1b1   : > { %v1343_v15 = vpop.f32.mrf.mxu0  ;;  %v2859_v19 = vpop.f32.mrf.mxu1 }
 0x1b2   : > { %1859 = vst.msk [vmem:[#allocation2 + $0xd8] sm:$0xff] %vm1831_vm2, %v1794_v8  ;;  %v1792_v58 = vadd.f32 %v1612_v40, %v429_v16  ;;  %v1633_v22 = vadd.f32 %v2859_v19, %v1343_v15 }
 0x1b3   : > { %v1345_v26 = vpop.f32.mrf.mxu0  ;;  %v1624_v28 = vpop.f32.mrf.mxu1 }
 0x1b4   : > { %1857 = vst.msk [vmem:[#allocation2 + $0xc8] sm:$0xff] %vm1831_vm2, %v1792_v58  ;;  %v1797_v23 = vadd.f32 %v1633_v22, %v434_v18  ;;  %v1625_v52 = vadd.f32 %v1624_v28, %v1335_v50  ;;  %v440_v18 = vld [vmem:[#allocation2 + $0x120] sm:$0xff] }
 0x1b5   : > { %v1346_v54 = vpop.f32.mrf.mxu0  ;;  %v2860_v20 = vpop.f32.mrf.mxu1 }
 0x1b6   : > { %1862 = vst.msk [vmem:[#allocation2 + $0xf0] sm:$0xff] %vm1831_vm2, %v1797_v23  ;;  %v1795_v10 = vadd.f32 %v1625_v52, %v432_v60  ;;  %v1636_v31 = vadd.f32 %v2860_v20, %v1346_v54  ;;  %v441_v23 = vld [vmem:[#allocation2 + $0x128] sm:$0xff] }
 0x1b7   : > { %v1348_v34 = vpop.f32.mrf.mxu0  ;;  %v1627_v35 = vpop.f32.mrf.mxu1 }
 0x1b8   : > { %1860 = vst.msk [vmem:[#allocation2 + $0xe0] sm:$0xff] %vm1831_vm2, %v1795_v10  ;;  %v1798_v0 = vadd.f32 %v1636_v31, %v435_v30  ;;  %v1628_v38 = vadd.f32 %v1627_v35, %v1338_v63  ;;  %v442_v34 = vld [vmem:[#allocation2 + $0x130] sm:$0xff] }
 0x1b9   : > { %v1351_v32 = vpop.f32.mrf.mxu0  ;;  %v2863_v7 = vpop.f32.mrf.mxu1 }
 0x1ba   : > { %1863 = vst.msk [vmem:[#allocation2 + $0xf8] sm:$0xff] %vm1831_vm2, %v1798_v0  ;;  %v1796_v39 = vadd.f32 %v1628_v38, %v433_v42 }
 0x1bb   : > { %v1353_v43 = vpop.f32.mrf.mxu0  ;;  %v1640_v24 = vpop.f32.mrf.mxu1 }
 0x1bc   : > { %1861 = vst.msk [vmem:[#allocation2 + $0xe8] sm:$0xff] %vm1831_vm2, %v1796_v39  ;;  %v1641_v27 = vadd.f32 %v1640_v24, %v1351_v32  ;;  %v443_v39 = vld [vmem:[#allocation2 + $0x138] sm:$0xff] }
 0x1bd   : > { %v1354_v47 = vpop.f32.mrf.mxu0  ;;  %v2864_v50 = vpop.f32.mrf.mxu1 }
 0x1be   : > { %v1799_v51 = vadd.f32 %v1641_v27, %v436_v46 }
 0x1bf   : > { %v1356_v12 = vpop.f32.mrf.mxu0  ;;  %v1643_v44 = vpop.f32.mrf.mxu1 }
 0x1c0   : > { %1864 = vst.msk [vmem:[#allocation2 + $0x100] sm:$0xff] %vm1831_vm2, %v1799_v51  ;;  %v1644_v55 = vadd.f32 %v1643_v44, %v1354_v47  ;;  %v444_v51 = vld [vmem:[#allocation2 + $0x140] sm:$0xff] }
 0x1c1   : > { %v1359_v62 = vpop.f32.mrf.mxu0  ;;  %v2867_v56 = vpop.f32.mrf.mxu1 }
 0x1c2   : > { %v1800_v36 = vadd.f32 %v1644_v55, %v437_v59  ;;  %v1649_v63 = vadd.f32 %v2863_v7, %v1359_v62  ;;  %v454_v59 = vld [vmem:[#allocation2 + $0x190] sm:$0xff] }
 0x1c3   : > { %v1361_v2 = vpop.f32.mrf.mxu0  ;;  %v1656_v3 = vpop.f32.mrf.mxu1 }
 0x1c4   : > { %1865 = vst.msk [vmem:[#allocation2 + $0x108] sm:$0xff] %vm1831_vm2, %v1800_v36  ;;  %v1801_v14 = vadd.f32 %v1649_v63, %v438_v4 }
 0x1c5   : > { %v1362_v48 = vpop.f32.mrf.mxu0  ;;  %v2868_v16 = vpop.f32.mrf.mxu1 }
 0x1c6   : > { %1866 = vst.msk [vmem:[#allocation2 + $0x110] sm:$0xff] %vm1831_vm2, %v1801_v14  ;;  %v1652_v11 = vadd.f32 %v2864_v50, %v1362_v48  ;;  %v445_v14 = vld [vmem:[#allocation2 + $0x148] sm:$0xff]  ;;  %v455_v48 = vld [vmem:[#allocation2 + $0x198] sm:$0xff] }
 0x1c7   : > { %v1364_v8 = vpop.f32.mrf.mxu0  ;;  %v1659_v40 = vpop.f32.mrf.mxu1 }
 0x1c8   : > { %v1802_v15 = vadd.f32 %v1652_v11, %v439_v6 }
 0x1c9   : > { %v1367_v19 = vpop.f32.mrf.mxu0  ;;  %v3667_v58 = vpop.f32.mrf.mxu1 }
 0x1ca   : > { %1867 = vst.msk [vmem:[#allocation2 + $0x118] sm:$0xff] %vm1831_vm2, %v1802_v15  ;;  %v1657_v22 = vadd.f32 %v1656_v3, %v1367_v19  ;;  %v453_v15 = vld [vmem:[#allocation2 + $0x188] sm:$0xff] }
 0x1cb   : > { %v1369_v26 = vpop.f32.mrf.mxu0  ;;  %v1672_v60 = vpop.f32.mrf.mxu1 }
 0x1cc   : > { %v1803_v28 = vadd.f32 %v1657_v22, %v440_v18  ;;  %v446_v26 = vld [vmem:[#allocation2 + $0x150] sm:$0xff] }
 0x1cd   : > { %v1370_v52 = vpop.f32.mrf.mxu0  ;;  %v3670_v54 = vpop.f32.mrf.mxu1 }
 0x1ce   : > { %1868 = vst.msk [vmem:[#allocation2 + $0x120] sm:$0xff] %vm1831_vm2, %v1803_v28  ;;  %v1660_v30 = vadd.f32 %v1659_v40, %v1370_v52  ;;  %v458_v28 = vld [vmem:[#allocation2 + $0x1b0] sm:$0xff] }
 0x1cf   : > { %v1372_v20 = vpop.f32.mrf.mxu0  ;;  %v1675_v10 = vpop.f32.mrf.mxu1 }
 0x1d0   : > { %v1804_v31 = vadd.f32 %v1660_v30, %v441_v23 }
 0x1d1   : > { %v1375_v42 = vpop.f32.mrf.mxu0  ;;  %v3673_v35 = vpop.f32.mrf.mxu1 }
 0x1d2   : > { %1869 = vst.msk [vmem:[#allocation2 + $0x128] sm:$0xff] %vm1831_vm2, %v1804_v31  ;;  %v1665_v0 = vadd.f32 %v2867_v56, %v1375_v42  ;;  %v452_v56 = vld [vmem:[#allocation2 + $0x180] sm:$0xff] }
 0x1d3   : > { %v1377_v38 = vpop.f32.mrf.mxu0  ;;  %v3676_v32 = vpop.f32.mrf.mxu1 }
 0x1d4   : > { %v1805_v7 = vadd.f32 %v1665_v0, %v442_v34  ;;  %v447_v0 = vld [vmem:[#allocation2 + $0x158] sm:$0xff] }
 0x1d5   : > { %v1378_v43 = vpop.f32.mrf.mxu0  ;;  %v3678_v46 = vpop.f32.mrf.mxu1 }
 0x1d6   : > { %1870 = vst.msk [vmem:[#allocation2 + $0x130] sm:$0xff] %vm1831_vm2, %v1805_v7  ;;  %v1668_v24 = vadd.f32 %v2868_v16, %v1378_v43  ;;  %v459_v7 = vld [vmem:[#allocation2 + $0x1b8] sm:$0xff] }
 0x1d7   : > { %v1380_v27 = vpop.f32.mrf.mxu0  ;;  %v3681_v47 = vpop.f32.mrf.mxu1 }
 0x1d8   : > { %v1806_v50 = vadd.f32 %v1668_v24, %v443_v39  ;;  %v457_v27 = vld [vmem:[#allocation2 + $0x1a8] sm:$0xff] }
 0x1d9   : > { %v1383_v12 = vpop.f32.mrf.mxu0  ;;  %v2879_v44 = vpop.f32.mrf.mxu1 }
 0x1da   : > { %1871 = vst.msk [vmem:[#allocation2 + $0x138] sm:$0xff] %vm1831_vm2, %v1806_v50  ;;  %v1673_v55 = vadd.f32 %v1672_v60, %v1383_v12  ;;  %v1713_v4 = vadd.f32 %v2879_v44, %v3545_v61 }
 0x1db   : > { %v1385_v62 = vpop.f32.mrf.mxu0  ;;  %v1704_v36 = vpop.f32.mrf.mxu1 }
 0x1dc   : > { %v1807_v63 = vadd.f32 %v1673_v55, %v444_v51  ;;  %v1817_v2 = vadd.f32 %v1713_v4, %v454_v59  ;;  %v1705_v3 = vadd.f32 %v1704_v36, %v3539_v53  ;;  %v448_v59 = vld [vmem:[#allocation2 + $0x160] sm:$0xff]  ;;  %v462_v55 = vld [vmem:[#allocation2 + $0x1d0] sm:$0xff] }
 0x1dd   : > { %v1386_v6 = vpop.f32.mrf.mxu0  ;;  %v2880_v16 = vpop.f32.mrf.mxu1  ;;  %v460_v36 = vld [vmem:[#allocation2 + $0x1c0] sm:$0xff] }
 0x1de   : > { %1872 = vst.msk [vmem:[#allocation2 + $0x140] sm:$0xff] %vm1831_vm2, %v1807_v63  ;;  %1882 = vst.msk [vmem:[#allocation2 + $0x190] sm:$0xff] %vm1831_vm2, %v1817_v2  ;;  %v1815_v11 = vadd.f32 %v1705_v3, %v452_v56  ;;  %v1676_v8 = vadd.f32 %v1675_v10, %v1386_v6  ;;  %v1716_v40 = vadd.f32 %v2880_v16, %v3549_v1  ;;  %v456_v10 = vld [vmem:[#allocation2 + $0x1a0] sm:$0xff] }
 0x1df   : > { %v1388_v61 = vpop.f32.mrf.mxu0  ;;  %v1707_v18 = vpop.f32.mrf.mxu1 }
 0x1e0   : > { %1880 = vst.msk [vmem:[#allocation2 + $0x180] sm:$0xff] %vm1831_vm2, %v1815_v11  ;;  %v1808_v19 = vadd.f32 %v1676_v8, %v445_v14  ;;  %v1818_v22 = vadd.f32 %v1716_v40, %v455_v48  ;;  %v1708_v53 = vadd.f32 %v1707_v18, %v3543_v57  ;;  %v449_v14 = vld [vmem:[#allocation2 + $0x168] sm:$0xff]  ;;  %v463_v48 = vld [vmem:[#allocation2 + $0x1d8] sm:$0xff] }
 0x1e1   : > { %v1391_v60 = vpop.f32.mrf.mxu0  ;;  %v2883_v23 = vpop.f32.mrf.mxu1  ;;  %v461_v40 = vld [vmem:[#allocation2 + $0x1c8] sm:$0xff] }
 0x1e2   : > { %1873 = vst.msk [vmem:[#allocation2 + $0x148] sm:$0xff] %vm1831_vm2, %v1808_v19  ;;  %1883 = vst.msk [vmem:[#allocation2 + $0x198] sm:$0xff] %vm1831_vm2, %v1818_v22  ;;  %v1816_v52 = vadd.f32 %v1708_v53, %v453_v15  ;;  %v1681_v1 = vadd.f32 %v3667_v58, %v1391_v60  ;;  %v1729_v30 = vadd.f32 %v2883_v23, %v3561_v13  ;;  %v450_v19 = vld [vmem:[#allocation2 + $0x170] sm:$0xff]  ;;  %v464_v23 = vld [vmem:[#allocation2 + $0x1e0] sm:$0xff] }
 0x1e3   : > { %v1393_v20 = vpop.f32.mrf.mxu0  ;;  %v1720_v31 = vpop.f32.mrf.mxu1  ;;  %v466_v53 = vld [vmem:[#allocation2 + $0x1f0] sm:$0xff] }
 0x1e4   : > { %1881 = vst.msk [vmem:[#allocation2 + $0x188] sm:$0xff] %vm1831_vm2, %v1816_v52  ;;  %v1809_v34 = vadd.f32 %v1681_v1, %v446_v26  ;;  %v1821_v57 = vadd.f32 %v1729_v30, %v458_v28  ;;  %v1721_v42 = vadd.f32 %v1720_v31, %v3553_v5  ;;  %v451_v20 = vld [vmem:[#allocation2 + $0x178] sm:$0xff] }
 0x1e5   : > { %v1394_v38 = vpop.f32.mrf.mxu0  ;;  %v2884_v39 = vpop.f32.mrf.mxu1  ;;  %v467_v31 = vld [vmem:[#allocation2 + $0x1f8] sm:$0xff] }
 0x1e6   : > { %1874 = vst.msk [vmem:[#allocation2 + $0x150] sm:$0xff] %vm1831_vm2, %v1809_v34  ;;  %1886 = vst.msk [vmem:[#allocation2 + $0x1b0] sm:$0xff] %vm1831_vm2, %v1821_v57  ;;  %v1819_v58 = vadd.f32 %v1721_v42, %v456_v10  ;;  %v1684_v13 = vadd.f32 %v3670_v54, %v1394_v38  ;;  %v1732_v43 = vadd.f32 %v2884_v39, %v3565_v17 }
 0x1e7   : > { %v1396_v24 = vpop.f32.mrf.mxu0  ;;  %v1723_v50 = vpop.f32.mrf.mxu1 }
 0x1e8   : > { %1884 = vst.msk [vmem:[#allocation2 + $0x1a0] sm:$0xff] %vm1831_vm2, %v1819_v58  ;;  %v1810_v51 = vadd.f32 %v1684_v13, %v447_v0  ;;  %v1822_v5 = vadd.f32 %v1732_v43, %v459_v7  ;;  %v1724_v12 = vadd.f32 %v1723_v50, %v3557_v9  ;;  %v465_v0 = vld [vmem:[#allocation2 + $0x1e8] sm:$0xff] }
 0x1e9   : > { %v1399_v44 = vpop.f32.mrf.mxu0  ;;  %v2887_v4 = vpop.f32.mrf.mxu1 }
 0x1ea   : > { %1875 = vst.msk [vmem:[#allocation2 + $0x158] sm:$0xff] %vm1831_vm2, %v1810_v51  ;;  %1887 = vst.msk [vmem:[#allocation2 + $0x1b8] sm:$0xff] %vm1831_vm2, %v1822_v5  ;;  %v1820_v54 = vadd.f32 %v1724_v12, %v457_v27  ;;  %v1689_v17 = vadd.f32 %v3676_v32, %v1399_v44  ;;  %v1745_v62 = vadd.f32 %v2887_v4, %v3577_v29 }
 0x1eb   : > { %v1401_v56 = vpop.f32.mrf.mxu0  ;;  %v1736_v63 = vpop.f32.mrf.mxu1 }
 0x1ec   : > { %1885 = vst.msk [vmem:[#allocation2 + $0x1a8] sm:$0xff] %vm1831_vm2, %v1820_v54  ;;  %v1811_v2 = vadd.f32 %v1689_v17, %v448_v59  ;;  %v1825_v9 = vadd.f32 %v1745_v62, %v462_v55  ;;  %v1737_v3 = vadd.f32 %v1736_v63, %v3569_v21 }
 0x1ed   : > { %v1402_v6 = vpop.f32.mrf.mxu0  ;;  %v2888_v16 = vpop.f32.mrf.mxu1 }
 0x1ee   : > { %1876 = vst.msk [vmem:[#allocation2 + $0x160] sm:$0xff] %vm1831_vm2, %v1811_v2  ;;  %1890 = vst.msk [vmem:[#allocation2 + $0x1d0] sm:$0xff] %vm1831_vm2, %v1825_v9  ;;  %v1823_v32 = vadd.f32 %v1737_v3, %v460_v36  ;;  %v1692_v29 = vadd.f32 %v3681_v47, %v1402_v6  ;;  %v1748_v11 = vadd.f32 %v2888_v16, %v3581_v33 }
 0x1ef   : > { %v1404_v8 = vpop.f32.mrf.mxu0  ;;  %v1739_v61 = vpop.f32.mrf.mxu1 }
 0x1f0   : > { %1888 = vst.msk [vmem:[#allocation2 + $0x1c0] sm:$0xff] %vm1831_vm2, %v1823_v32  ;;  %v1812_v15 = vadd.f32 %v1692_v29, %v449_v14  ;;  %v1826_v21 = vadd.f32 %v1748_v11, %v463_v48  ;;  %v1740_v18 = vadd.f32 %v1739_v61, %v3573_v25 }
 0x1f1   : > { %v1407_v22 = vpop.f32.mrf.mxu0  ;;  %v2891_v26 = vpop.f32.mrf.mxu1 }
 0x1f2   : > { %1877 = vst.msk [vmem:[#allocation2 + $0x168] sm:$0xff] %vm1831_vm2, %v1812_v15  ;;  %1891 = vst.msk [vmem:[#allocation2 + $0x1d8] sm:$0xff] %vm1831_vm2, %v1826_v21  ;;  %v1824_v47 = vadd.f32 %v1740_v18, %v461_v40  ;;  %v1697_v33 = vadd.f32 %v3673_v35, %v1407_v22  ;;  %v1761_v60 = vadd.f32 %v2891_v26, %v3593_v45 }
 0x1f3   : > { %v1409_v28 = vpop.f32.mrf.mxu0  ;;  %v1752_v52 = vpop.f32.mrf.mxu1 }
 0x1f4   : > { %1889 = vst.msk [vmem:[#allocation2 + $0x1c8] sm:$0xff] %vm1831_vm2, %v1824_v47  ;;  %v1813_v1 = vadd.f32 %v1697_v33, %v450_v19  ;;  %v1829_v25 = vadd.f32 %v1761_v60, %v466_v53  ;;  %v1753_v30 = vadd.f32 %v1752_v52, %v3585_v37 }
 0x1f5   : > { %v1410_v10 = vpop.f32.mrf.mxu0  ;;  %v2892_v34 = vpop.f32.mrf.mxu1 }
 0x1f6   : > { %1878 = vst.msk [vmem:[#allocation2 + $0x170] sm:$0xff] %vm1831_vm2, %v1813_v1  ;;  %1894 = vst.msk [vmem:[#allocation2 + $0x1f0] sm:$0xff] %vm1831_vm2, %v1829_v25  ;;  %v1827_v35 = vadd.f32 %v1753_v30, %v464_v23  ;;  %v1700_v45 = vadd.f32 %v3678_v46, %v1410_v10  ;;  %v1764_v57 = vadd.f32 %v2892_v34, %v3597_v49 }
 0x1f7   : > { %v1412_v42 = vpop.f32.mrf.mxu0  ;;  %v1755_v38 = vpop.f32.mrf.mxu1 }
 0x1f8   : > { %1892 = vst.msk [vmem:[#allocation2 + $0x1e0] sm:$0xff] %vm1831_vm2, %v1827_v35  ;;  %v1814_v7 = vadd.f32 %v1700_v45, %v451_v20  ;;  %v1830_v37 = vadd.f32 %v1764_v57, %v467_v31  ;;  %v1756_v39 = vadd.f32 %v1755_v38, %v3589_v41  ;;  %1899 = sbr.rel (%p2657_p8) target bundleno = 563 (0x233), region = 40 }
 0x1fa   : > { %1879 = vst.msk [vmem:[#allocation2 + $0x178] sm:$0xff] %vm1831_vm2, %v1814_v7  ;;  %1895 = vst.msk [vmem:[#allocation2 + $0x1f8] sm:$0xff] %vm1831_vm2, %v1830_v37  ;;  %v1828_v58 = vadd.f32 %v1756_v39, %v465_v0 }
 0x1fc   : > { %1893 = vst.msk [vmem:[#allocation2 + $0x1e8] sm:$0xff] %vm1831_vm2, %v1828_v58 }
 0x1fd   : > { %v1900_v49 = vld [vmem:[#allocation2] sm:$0xff]  ;;  %v1901_v13 = vld [vmem:[#allocation2 + $0x8] sm:$0xff]  ;;  %v1902_v24 = vld [vmem:[#allocation2 + $0x10] sm:$0xff]  ;;  %vm2355_vm3 = vcmask 519168  }
 0x1fe   : > { %v3734_v46 = vld [vmem:[%s3945_s2] ss:$0 sm:$0xff]  ;;  %v1903_v27 = vld [vmem:[#allocation2 + $0x18] sm:$0xff]  ;;  %v1905_v59 = vld [vmem:[#allocation2 + $0x28] sm:$0xff] }
 0x1ff   : > { %v1971_v43 = vadd.f32 %v3734_v46, %v1900_v49  ;;  %v1972_v41 = vadd.f32 %v3734_v46, %v1901_v13  ;;  %v1904_v50 = vld [vmem:[#allocation2 + $0x20] sm:$0xff]  ;;  %v1973_v51 = vadd.f32 %v3734_v46, %v1902_v24  ;;  %v1974_v5 = vadd.f32 %v3734_v46, %v1903_v27  ;;  %v1906_v44 = vld [vmem:[#allocation2 + $0x30] sm:$0xff]  ;;  %v1907_v55 = vld [vmem:[#allocation2 + $0x38] sm:$0xff] }
 0x200   : > { %v1975_v12 = vadd.f32 %v3734_v46, %v1904_v50  ;;  %v1976_v17 = vadd.f32 %v3734_v46, %v1905_v59  ;;  %v1977_v62 = vadd.f32 %v3734_v46, %v1906_v44  ;;  %v1978_v2 = vadd.f32 %v3734_v46, %v1907_v55  ;;  %v1908_v9 = vld [vmem:[#allocation2 + $0x40] sm:$0xff]  ;;  %v1909_v3 = vld [vmem:[#allocation2 + $0x48] sm:$0xff]  ;;  %v1910_v32 = vld [vmem:[#allocation2 + $0x50] sm:$0xff] }
 0x201   : > { %v2035_v4 = vmax.f32 %v1971_v43, 0.0  ;;  %v2036_v54 = vmax.f32 %v1972_v41, 0.0  ;;  %v2037_v56 = vmax.f32 %v1973_v51, 0.0  ;;  %v2038_v36 = vmax.f32 %v1974_v5, 0.0  ;;  %v1911_v29 = vld [vmem:[#allocation2 + $0x58] sm:$0xff]  ;;  %v1912_v11 = vld [vmem:[#allocation2 + $0x60] sm:$0xff] }
 0x202   : > { %v2039_v63 = vmax.f32 %v1975_v12, 0.0  ;;  %v2040_v48 = vmax.f32 %v1976_v17, 0.0  ;;  %v2041_v16 = vmax.f32 %v1977_v62, 0.0  ;;  %v2042_v15 = vmax.f32 %v1978_v2, 0.0  ;;  %v1913_v21 = vld [vmem:[#allocation2 + $0x68] sm:$0xff]  ;;  %v1914_v18 = vld [vmem:[#allocation2 + $0x70] sm:$0xff] }
 0x203   : > { %v2727_v14 = vpack.c.bf16 %v2035_v4, %v2035_v4  ;;  %v2728_v6 = vpack.c.bf16 %v2036_v54, %v2036_v54  ;;  %v2729_v8 = vpack.c.bf16 %v2037_v56, %v2037_v56  ;;  %v2730_v40 = vpack.c.bf16 %v2038_v36, %v2038_v36  ;;  %v1915_v47 = vld [vmem:[#allocation2 + $0x78] sm:$0xff]  ;;  %v1916_v35 = vld [vmem:[#allocation2 + $0x80] sm:$0xff]  ;;  %v1917_v45 = vld [vmem:[#allocation2 + $0x88] sm:$0xff] }
 0x204   : > { %v2731_v61 = vpack.c.bf16 %v2039_v63, %v2039_v63  ;;  %v2732_v19 = vpack.c.bf16 %v2040_v48, %v2040_v48  ;;  %v2733_v22 = vpack.c.bf16 %v2041_v16, %v2041_v16  ;;  %v1979_v53 = vadd.f32 %v3734_v46, %v1908_v9  ;;  %v1918_v7 = vld [vmem:[#allocation2 + $0x90] sm:$0xff]  ;;  %v1919_v37 = vld [vmem:[#allocation2 + $0x98] sm:$0xff]  ;;  %v1920_v39 = vld [vmem:[#allocation2 + $0xa0] sm:$0xff] }
 0x205   : > { %2356 = vst.msk [vmem:[%s3214_s25] sm:$0xf] %vm2355_vm3, %v2727_v14  ;;  %2357 = vst.msk [vmem:[%s3214_s25 + $0x4] sm:$0xf] %vm2355_vm3, %v2728_v6  ;;  %v1980_v26 = vadd.f32 %v3734_v46, %v1909_v3  ;;  %v2734_v33 = vpack.c.bf16 %v2042_v15, %v2042_v15  ;;  %v1981_v60 = vadd.f32 %v3734_v46, %v1910_v32  ;;  %v1921_v41 = vld [vmem:[#allocation2 + $0xa8] sm:$0xff]  ;;  %v1922_v24 = vld [vmem:[#allocation2 + $0xb0] sm:$0xff] }
 0x206   : > { %2358 = vst.msk [vmem:[%s3214_s25 + $0x8] sm:$0xf] %vm2355_vm3, %v2729_v8  ;;  %2359 = vst.msk [vmem:[%s3214_s25 + $0xc] sm:$0xf] %vm2355_vm3, %v2730_v40  ;;  %v1982_v28 = vadd.f32 %v3734_v46, %v1911_v29  ;;  %v1983_v23 = vadd.f32 %v3734_v46, %v1912_v11  ;;  %v2043_v52 = vmax.f32 %v1979_v53, 0.0  ;;  %v1984_v25 = vadd.f32 %v3734_v46, %v1913_v21  ;;  %v1923_v12 = vld [vmem:[#allocation2 + $0xb8] sm:$0xff] }
 0x207   : > { %2360 = vst.msk [vmem:[%s3214_s25 + $0x10] sm:$0xf] %vm2355_vm3, %v2731_v61  ;;  %2361 = vst.msk [vmem:[%s3214_s25 + $0x14] sm:$0xf] %vm2355_vm3, %v2732_v19  ;;  %v2044_v1 = vmax.f32 %v1980_v26, 0.0  ;;  %v1985_v30 = vadd.f32 %v3734_v46, %v1914_v18  ;;  %v2045_v20 = vmax.f32 %v1981_v60, 0.0  ;;  %v1986_v34 = vadd.f32 %v3734_v46, %v1915_v47 }
 0x208   : > { %2362 = vst.msk [vmem:[%s3214_s25 + $0x18] sm:$0xf] %vm2355_vm3, %v2733_v22  ;;  %2363 = vst.msk [vmem:[%s3214_s25 + $0x1c] sm:$0xf] %vm2355_vm3, %v2734_v33  ;;  %v2046_v10 = vmax.f32 %v1982_v28, 0.0  ;;  %v2047_v31 = vmax.f32 %v1983_v23, 0.0  ;;  %v2735_v57 = vpack.c.bf16 %v2043_v52, %v2043_v52  ;;  %v1987_v51 = vadd.f32 %v3734_v46, %v1916_v35 }
 0x209   : > { %v2736_v42 = vpack.c.bf16 %v2044_v1, %v2044_v1  ;;  %v2048_v0 = vmax.f32 %v1984_v25, 0.0  ;;  %v2049_v38 = vmax.f32 %v1985_v30, 0.0  ;;  %v2737_v58 = vpack.c.bf16 %v2045_v20, %v2045_v20  ;;  %v1924_v3 = vld [vmem:[#allocation2 + $0xc0] sm:$0xff]  ;;  %v1925_v14 = vld [vmem:[#allocation2 + $0xc8] sm:$0xff]  ;;  %v1926_v29 = vld [vmem:[#allocation2 + $0xd0] sm:$0xff] }
 0x20a   : > { %v2738_v49 = vpack.c.bf16 %v2046_v10, %v2046_v10  ;;  %v2739_v13 = vpack.c.bf16 %v2047_v31, %v2047_v31  ;;  %v2050_v43 = vmax.f32 %v1986_v34, 0.0  ;;  %2364 = vst.msk [vmem:[%s3214_s25 + $0x20] sm:$0xf] %vm2355_vm3, %v2735_v57  ;;  %v1988_v5 = vadd.f32 %v3734_v46, %v1917_v45  ;;  %v1927_v11 = vld [vmem:[#allocation2 + $0xd8] sm:$0xff]  ;;  %v1928_v8 = vld [vmem:[#allocation2 + $0xe0] sm:$0xff]  ;;  %v1929_v18 = vld [vmem:[#allocation2 + $0xe8] sm:$0xff] }
 0x20b   : > { %2365 = vst.msk [vmem:[%s3214_s25 + $0x24] sm:$0xf] %vm2355_vm3, %v2736_v42  ;;  %v2740_v27 = vpack.c.bf16 %v2048_v0, %v2048_v0  ;;  %v2741_v50 = vpack.c.bf16 %v2049_v38, %v2049_v38  ;;  %2366 = vst.msk [vmem:[%s3214_s25 + $0x28] sm:$0xf] %vm2355_vm3, %v2737_v58  ;;  %v1989_v44 = vadd.f32 %v3734_v46, %v1918_v7  ;;  %v2051_v54 = vmax.f32 %v1987_v51, 0.0  ;;  %v1930_v19 = vld [vmem:[#allocation2 + $0xf0] sm:$0xff] }
 0x20c   : > { %2367 = vst.msk [vmem:[%s3214_s25 + $0x2c] sm:$0xf] %vm2355_vm3, %v2738_v49  ;;  %2368 = vst.msk [vmem:[%s3214_s25 + $0x30] sm:$0xf] %vm2355_vm3, %v2739_v13  ;;  %v2742_v59 = vpack.c.bf16 %v2050_v43, %v2050_v43  ;;  %v1990_v55 = vadd.f32 %v3734_v46, %v1919_v37  ;;  %v1991_v4 = vadd.f32 %v3734_v46, %v1920_v39  ;;  %v2052_v17 = vmax.f32 %v1988_v5, 0.0  ;;  %v1931_v33 = vld [vmem:[#allocation2 + $0xf8] sm:$0xff] }
 0x20d   : > { %2369 = vst.msk [vmem:[%s3214_s25 + $0x34] sm:$0xf] %vm2355_vm3, %v2740_v27  ;;  %2370 = vst.msk [vmem:[%s3214_s25 + $0x38] sm:$0xf] %vm2355_vm3, %v2741_v50  ;;  %v1992_v62 = vadd.f32 %v3734_v46, %v1921_v41  ;;  %v1993_v56 = vadd.f32 %v3734_v46, %v1922_v24  ;;  %v2053_v36 = vmax.f32 %v1989_v44, 0.0  ;;  %v1994_v9 = vadd.f32 %v3734_v46, %v1923_v12  ;;  %v1932_v45 = vld [vmem:[#allocation2 + $0x100] sm:$0xff] }
 0x20e   : > { %2371 = vst.msk [vmem:[%s3214_s25 + $0x3c] sm:$0xf] %vm2355_vm3, %v2742_v59  ;;  %v2054_v63 = vmax.f32 %v1990_v55, 0.0  ;;  %v2055_v2 = vmax.f32 %v1991_v4, 0.0  ;;  %v2743_v6 = vpack.c.bf16 %v2051_v54, %v2051_v54  ;;  %v2744_v48 = vpack.c.bf16 %v2052_v17, %v2052_v17  ;;  %v1933_v57 = vld [vmem:[#allocation2 + $0x108] sm:$0xff]  ;;  %v1934_v37 = vld [vmem:[#allocation2 + $0x110] sm:$0xff] }
 0x20f   : > { %v2056_v16 = vmax.f32 %v1992_v62, 0.0  ;;  %v2057_v32 = vmax.f32 %v1993_v56, 0.0  ;;  %v2745_v40 = vpack.c.bf16 %v2053_v36, %v2053_v36  ;;  %v2058_v21 = vmax.f32 %v1994_v9, 0.0  ;;  %v1935_v39 = vld [vmem:[#allocation2 + $0x118] sm:$0xff]  ;;  %v1936_v58 = vld [vmem:[#allocation2 + $0x120] sm:$0xff]  ;;  %v1937_v24 = vld [vmem:[#allocation2 + $0x128] sm:$0xff] }
 0x210   : > { %v2746_v61 = vpack.c.bf16 %v2054_v63, %v2054_v63  ;;  %v2747_v15 = vpack.c.bf16 %v2055_v2, %v2055_v2  ;;  %2372 = vst.msk [vmem:[%s3214_s25 + $0x40] sm:$0xf] %vm2355_vm3, %v2743_v6  ;;  %2373 = vst.msk [vmem:[%s3214_s25 + $0x44] sm:$0xf] %vm2355_vm3, %v2744_v48  ;;  %v1995_v26 = vadd.f32 %v3734_v46, %v1924_v3  ;;  %v1938_v27 = vld [vmem:[#allocation2 + $0x130] sm:$0xff]  ;;  %v1939_v59 = vld [vmem:[#allocation2 + $0x138] sm:$0xff] }
 0x211   : > { %v2748_v22 = vpack.c.bf16 %v2056_v16, %v2056_v16  ;;  %v2749_v53 = vpack.c.bf16 %v2057_v32, %v2057_v32  ;;  %v1996_v47 = vadd.f32 %v3734_v46, %v1925_v14  ;;  %2374 = vst.msk [vmem:[%s3214_s25 + $0x48] sm:$0xf] %vm2355_vm3, %v2745_v40  ;;  %v2750_v60 = vpack.c.bf16 %v2058_v21, %v2058_v21  ;;  %v1940_v14 = vld [vmem:[#allocation2 + $0x140] sm:$0xff]  ;;  %v1941_v6 = vld [vmem:[#allocation2 + $0x148] sm:$0xff] }
 0x212   : > { %2375 = vst.msk [vmem:[%s3214_s25 + $0x4c] sm:$0xf] %vm2355_vm3, %v2746_v61  ;;  %2376 = vst.msk [vmem:[%s3214_s25 + $0x50] sm:$0xf] %vm2355_vm3, %v2747_v15  ;;  %v1997_v28 = vadd.f32 %v3734_v46, %v1926_v29  ;;  %v1998_v23 = vadd.f32 %v3734_v46, %v1927_v11  ;;  %v1999_v52 = vadd.f32 %v3734_v46, %v1928_v8  ;;  %v2059_v1 = vmax.f32 %v1995_v26, 0.0  ;;  %v1942_v11 = vld [vmem:[#allocation2 + $0x150] sm:$0xff] }
 0x213   : > { %2377 = vst.msk [vmem:[%s3214_s25 + $0x54] sm:$0xf] %vm2355_vm3, %v2748_v22  ;;  %2378 = vst.msk [vmem:[%s3214_s25 + $0x58] sm:$0xf] %vm2355_vm3, %v2749_v53  ;;  %v2060_v25 = vmax.f32 %v1996_v47, 0.0  ;;  %v2000_v30 = vadd.f32 %v3734_v46, %v1929_v18  ;;  %v2001_v20 = vadd.f32 %v3734_v46, %v1930_v19  ;;  %v2002_v35 = vadd.f32 %v3734_v46, %v1931_v33  ;;  %v1943_v8 = vld [vmem:[#allocation2 + $0x158] sm:$0xff] }
 0x214   : > { %2379 = vst.msk [vmem:[%s3214_s25 + $0x5c] sm:$0xf] %vm2355_vm3, %v2750_v60  ;;  %v2061_v10 = vmax.f32 %v1997_v28, 0.0  ;;  %v2062_v31 = vmax.f32 %v1998_v23, 0.0  ;;  %v2063_v34 = vmax.f32 %v1999_v52, 0.0  ;;  %v2751_v42 = vpack.c.bf16 %v2059_v1, %v2059_v1  ;;  %v1944_v40 = vld [vmem:[#allocation2 + $0x160] sm:$0xff] }
 0x215   : > { %v2752_v0 = vpack.c.bf16 %v2060_v25, %v2060_v25  ;;  %v2064_v38 = vmax.f32 %v2000_v30, 0.0  ;;  %v2065_v7 = vmax.f32 %v2001_v20, 0.0  ;;  %v2066_v41 = vmax.f32 %v2002_v35, 0.0  ;;  %v1945_v19 = vld [vmem:[#allocation2 + $0x168] sm:$0xff]  ;;  %v1946_v22 = vld [vmem:[#allocation2 + $0x170] sm:$0xff]  ;;  %v1947_v60 = vld [vmem:[#allocation2 + $0x178] sm:$0xff] }
 0x216   : > { %v2753_v49 = vpack.c.bf16 %v2061_v10, %v2061_v10  ;;  %v2754_v13 = vpack.c.bf16 %v2062_v31, %v2062_v31  ;;  %v2755_v43 = vpack.c.bf16 %v2063_v34, %v2063_v34  ;;  %2380 = vst.msk [vmem:[%s3214_s25 + $0x60] sm:$0xf] %vm2355_vm3, %v2751_v42  ;;  %v2003_v5 = vadd.f32 %v3734_v46, %v1932_v45  ;;  %v1949_v42 = vld [vmem:[#allocation2 + $0x188] sm:$0xff] }
 0x217   : > { %2381 = vst.msk [vmem:[%s3214_s25 + $0x64] sm:$0xf] %vm2355_vm3, %v2752_v0  ;;  %v2756_v50 = vpack.c.bf16 %v2064_v38, %v2064_v38  ;;  %v2757_v51 = vpack.c.bf16 %v2065_v7, %v2065_v7  ;;  %v2004_v12 = vadd.f32 %v3734_v46, %v1933_v57  ;;  %v2758_v44 = vpack.c.bf16 %v2066_v41, %v2066_v41  ;;  %v1948_v57 = vld [vmem:[#allocation2 + $0x180] sm:$0xff] }
 0x218   : > { %2382 = vst.msk [vmem:[%s3214_s25 + $0x68] sm:$0xf] %vm2355_vm3, %v2753_v49  ;;  %2383 = vst.msk [vmem:[%s3214_s25 + $0x6c] sm:$0xf] %vm2355_vm3, %v2754_v13  ;;  %v2005_v55 = vadd.f32 %v3734_v46, %v1934_v37  ;;  %v2006_v4 = vadd.f32 %v3734_v46, %v1935_v39  ;;  %v2007_v54 = vadd.f32 %v3734_v46, %v1936_v58  ;;  %v2067_v17 = vmax.f32 %v2003_v5, 0.0  ;;  %v1950_v39 = vld [vmem:[#allocation2 + $0x190] sm:$0xff] }
 0x219   : > { %2384 = vst.msk [vmem:[%s3214_s25 + $0x70] sm:$0xf] %vm2355_vm3, %v2755_v43  ;;  %2385 = vst.msk [vmem:[%s3214_s25 + $0x74] sm:$0xf] %vm2355_vm3, %v2756_v50  ;;  %v2068_v62 = vmax.f32 %v2004_v12, 0.0  ;;  %v2008_v56 = vadd.f32 %v3734_v46, %v1937_v24  ;;  %v2009_v36 = vadd.f32 %v3734_v46, %v1938_v27  ;;  %v2010_v3 = vadd.f32 %v3734_v46, %v1939_v59  ;;  %v1951_v58 = vld [vmem:[#allocation2 + $0x198] sm:$0xff] }
 0x21a   : > { %2386 = vst.msk [vmem:[%s3214_s25 + $0x78] sm:$0xf] %vm2355_vm3, %v2757_v51  ;;  %2387 = vst.msk [vmem:[%s3214_s25 + $0x7c] sm:$0xf] %vm2355_vm3, %v2758_v44  ;;  %v2069_v63 = vmax.f32 %v2005_v55, 0.0  ;;  %v2070_v2 = vmax.f32 %v2006_v4, 0.0  ;;  %v2759_v48 = vpack.c.bf16 %v2067_v17, %v2067_v17  ;;  %v2011_v47 = vadd.f32 %v3734_v46, %v1940_v14 }
 0x21b   : > { %v2071_v9 = vmax.f32 %v2007_v54, 0.0  ;;  %v2760_v16 = vpack.c.bf16 %v2068_v62, %v2068_v62  ;;  %v2072_v32 = vmax.f32 %v2008_v56, 0.0  ;;  %v2073_v29 = vmax.f32 %v2009_v36, 0.0  ;;  %v1952_v49 = vld [vmem:[#allocation2 + $0x1a0] sm:$0xff]  ;;  %v1953_v27 = vld [vmem:[#allocation2 + $0x1a8] sm:$0xff]  ;;  %v1954_v50 = vld [vmem:[#allocation2 + $0x1b0] sm:$0xff] }
 0x21c   : > { %v2761_v61 = vpack.c.bf16 %v2069_v63, %v2069_v63  ;;  %v2762_v15 = vpack.c.bf16 %v2070_v2, %v2070_v2  ;;  %v2074_v18 = vmax.f32 %v2010_v3, 0.0  ;;  %2388 = vst.msk [vmem:[%s3214_s25 + $0x80] sm:$0xf] %vm2355_vm3, %v2759_v48  ;;  %v2012_v33 = vadd.f32 %v3734_v46, %v1941_v6  ;;  %v1955_v44 = vld [vmem:[#allocation2 + $0x1b8] sm:$0xff]  ;;  %v1956_v6 = vld [vmem:[#allocation2 + $0x1c0] sm:$0xff]  ;;  %v1957_v48 = vld [vmem:[#allocation2 + $0x1c8] sm:$0xff] }
 0x21d   : > { %v2763_v21 = vpack.c.bf16 %v2071_v9, %v2071_v9  ;;  %2389 = vst.msk [vmem:[%s3214_s25 + $0x84] sm:$0xf] %vm2355_vm3, %v2760_v16  ;;  %v2764_v53 = vpack.c.bf16 %v2072_v32, %v2072_v32  ;;  %v2765_v26 = vpack.c.bf16 %v2073_v29, %v2073_v29  ;;  %v2013_v23 = vadd.f32 %v3734_v46, %v1942_v11 }
 0x21e   : > { %2390 = vst.msk [vmem:[%s3214_s25 + $0x88] sm:$0xf] %vm2355_vm3, %v2761_v61  ;;  %2391 = vst.msk [vmem:[%s3214_s25 + $0x8c] sm:$0xf] %vm2355_vm3, %v2762_v15  ;;  %v2766_v28 = vpack.c.bf16 %v2074_v18, %v2074_v18  ;;  %v2014_v52 = vadd.f32 %v3734_v46, %v1943_v8  ;;  %v2015_v1 = vadd.f32 %v3734_v46, %v1944_v40  ;;  %v2075_v25 = vmax.f32 %v2011_v47, 0.0  ;;  %v1958_v8 = vld [vmem:[#allocation2 + $0x1d0] sm:$0xff] }
 0x21f   : > { %2392 = vst.msk [vmem:[%s3214_s25 + $0x90] sm:$0xf] %vm2355_vm3, %v2763_v21  ;;  %2393 = vst.msk [vmem:[%s3214_s25 + $0x94] sm:$0xf] %vm2355_vm3, %v2764_v53  ;;  %v2076_v30 = vmax.f32 %v2012_v33, 0.0  ;;  %v2016_v20 = vadd.f32 %v3734_v46, %v1945_v19  ;;  %v2017_v10 = vadd.f32 %v3734_v46, %v1946_v22  ;;  %v2077_v31 = vmax.f32 %v2013_v23, 0.0 }
 0x220   : > { %2394 = vst.msk [vmem:[%s3214_s25 + $0x98] sm:$0xf] %vm2355_vm3, %v2765_v26  ;;  %2395 = vst.msk [vmem:[%s3214_s25 + $0x9c] sm:$0xf] %vm2355_vm3, %v2766_v28  ;;  %v2078_v34 = vmax.f32 %v2014_v52, 0.0  ;;  %v2079_v35 = vmax.f32 %v2015_v1, 0.0  ;;  %v2018_v45 = vadd.f32 %v3734_v46, %v1947_v60  ;;  %v2767_v0 = vpack.c.bf16 %v2075_v25, %v2075_v25 }
 0x221   : > { %v2768_v38 = vpack.c.bf16 %v2076_v30, %v2076_v30  ;;  %v2080_v7 = vmax.f32 %v2016_v20, 0.0  ;;  %v2081_v37 = vmax.f32 %v2017_v10, 0.0  ;;  %v2769_v13 = vpack.c.bf16 %v2077_v31, %v2077_v31  ;;  %v1959_v40 = vld [vmem:[#allocation2 + $0x1d8] sm:$0xff]  ;;  %v1960_v61 = vld [vmem:[#allocation2 + $0x1e0] sm:$0xff]  ;;  %v1961_v22 = vld [vmem:[#allocation2 + $0x1e8] sm:$0xff] }
 0x222   : > { %v2770_v43 = vpack.c.bf16 %v2078_v34, %v2078_v34  ;;  %v2771_v41 = vpack.c.bf16 %v2079_v35, %v2079_v35  ;;  %v2082_v24 = vmax.f32 %v2018_v45, 0.0  ;;  %2396 = vst.msk [vmem:[%s3214_s25 + $0xa0] sm:$0xf] %vm2355_vm3, %v2767_v0  ;;  %v2019_v12 = vadd.f32 %v3734_v46, %v1948_v57  ;;  %v1962_v53 = vld [vmem:[#allocation2 + $0x1f0] sm:$0xff]  ;;  %v1963_v28 = vld [vmem:[#allocation2 + $0x1f8] sm:$0xff] }
 0x223   : > { %2397 = vst.msk [vmem:[%s3214_s25 + $0xa4] sm:$0xf] %vm2355_vm3, %v2768_v38  ;;  %v2772_v51 = vpack.c.bf16 %v2080_v7, %v2080_v7  ;;  %v2773_v5 = vpack.c.bf16 %v2081_v37, %v2081_v37  ;;  %v2020_v59 = vadd.f32 %v3734_v46, %v1949_v42  ;;  %2398 = vst.msk [vmem:[%s3214_s25 + $0xa8] sm:$0xf] %vm2355_vm3, %v2769_v13 }
 0x224   : > { %2399 = vst.msk [vmem:[%s3214_s25 + $0xac] sm:$0xf] %vm2355_vm3, %v2770_v43  ;;  %2400 = vst.msk [vmem:[%s3214_s25 + $0xb0] sm:$0xf] %vm2355_vm3, %v2771_v41  ;;  %v2774_v55 = vpack.c.bf16 %v2082_v24, %v2082_v24  ;;  %v2021_v4 = vadd.f32 %v3734_v46, %v1950_v39  ;;  %v2022_v54 = vadd.f32 %v3734_v46, %v1951_v58  ;;  %v2083_v62 = vmax.f32 %v2019_v12, 0.0 }
 0x225   : > { %v2023_v17 = vadd.f32 %v3734_v46, %v1952_v49  ;;  %2401 = vst.msk [vmem:[%s3214_s25 + $0xb4] sm:$0xf] %vm2355_vm3, %v2772_v51  ;;  %2402 = vst.msk [vmem:[%s3214_s25 + $0xb8] sm:$0xf] %vm2355_vm3, %v2773_v5  ;;  %v2084_v56 = vmax.f32 %v2020_v59, 0.0  ;;  %v2024_v36 = vadd.f32 %v3734_v46, %v1953_v27  ;;  %v2025_v63 = vadd.f32 %v3734_v46, %v1954_v50 }
 0x226   : > { %2403 = vst.msk [vmem:[%s3214_s25 + $0xbc] sm:$0xf] %vm2355_vm3, %v2774_v55  ;;  %v2085_v2 = vmax.f32 %v2021_v4, 0.0  ;;  %v2086_v9 = vmax.f32 %v2022_v54, 0.0  ;;  %v2026_v14 = vadd.f32 %v3734_v46, %v1955_v44  ;;  %v2775_v16 = vpack.c.bf16 %v2083_v62, %v2083_v62 }
 0x227   : > { %v2087_v3 = vmax.f32 %v2023_v17, 0.0  ;;  %v2776_v32 = vpack.c.bf16 %v2084_v56, %v2084_v56  ;;  %v2088_v29 = vmax.f32 %v2024_v36, 0.0  ;;  %v2089_v11 = vmax.f32 %v2025_v63, 0.0 }
 0x228   : > { %v2777_v15 = vpack.c.bf16 %v2085_v2, %v2085_v2  ;;  %v2778_v21 = vpack.c.bf16 %v2086_v9, %v2086_v9  ;;  %v2090_v19 = vmax.f32 %v2026_v14, 0.0  ;;  %2404 = vst.msk [vmem:[%s3214_s25 + $0xc0] sm:$0xf] %vm2355_vm3, %v2775_v16  ;;  %v2027_v33 = vadd.f32 %v3734_v46, %v1956_v6 }
 0x229   : > { %v2779_v18 = vpack.c.bf16 %v2087_v3, %v2087_v3  ;;  %2405 = vst.msk [vmem:[%s3214_s25 + $0xc4] sm:$0xf] %vm2355_vm3, %v2776_v32  ;;  %v2780_v26 = vpack.c.bf16 %v2088_v29, %v2088_v29  ;;  %v2781_v47 = vpack.c.bf16 %v2089_v11, %v2089_v11  ;;  %v2028_v60 = vadd.f32 %v3734_v46, %v1957_v48 }
 0x22a   : > { %2406 = vst.msk [vmem:[%s3214_s25 + $0xc8] sm:$0xf] %vm2355_vm3, %v2777_v15  ;;  %2407 = vst.msk [vmem:[%s3214_s25 + $0xcc] sm:$0xf] %vm2355_vm3, %v2778_v21  ;;  %v2782_v23 = vpack.c.bf16 %v2090_v19, %v2090_v19  ;;  %v2029_v52 = vadd.f32 %v3734_v46, %v1958_v8  ;;  %v2030_v1 = vadd.f32 %v3734_v46, %v1959_v40  ;;  %v2091_v30 = vmax.f32 %v2027_v33, 0.0 }
 0x22b   : > { %2408 = vst.msk [vmem:[%s3214_s25 + $0xd0] sm:$0xf] %vm2355_vm3, %v2779_v18  ;;  %v2031_v25 = vadd.f32 %v3734_v46, %v1960_v61  ;;  %2409 = vst.msk [vmem:[%s3214_s25 + $0xd4] sm:$0xf] %vm2355_vm3, %v2780_v26  ;;  %v2092_v20 = vmax.f32 %v2028_v60, 0.0  ;;  %v2032_v10 = vadd.f32 %v3734_v46, %v1961_v22  ;;  %v2033_v31 = vadd.f32 %v3734_v46, %v1962_v53 }
 0x22c   : > { %2410 = vst.msk [vmem:[%s3214_s25 + $0xd8] sm:$0xf] %vm2355_vm3, %v2781_v47  ;;  %2411 = vst.msk [vmem:[%s3214_s25 + $0xdc] sm:$0xf] %vm2355_vm3, %v2782_v23  ;;  %v2093_v34 = vmax.f32 %v2029_v52, 0.0  ;;  %v2094_v35 = vmax.f32 %v2030_v1, 0.0  ;;  %v2034_v57 = vadd.f32 %v3734_v46, %v1963_v28  ;;  %v2783_v42 = vpack.c.bf16 %v2091_v30, %v2091_v30 }
 0x22d   : > { %v2095_v45 = vmax.f32 %v2031_v25, 0.0  ;;  %v2784_v0 = vpack.c.bf16 %v2092_v20, %v2092_v20  ;;  %v2096_v38 = vmax.f32 %v2032_v10, 0.0  ;;  %v2097_v7 = vmax.f32 %v2033_v31, 0.0 }
 0x22e   : > { %v2785_v37 = vpack.c.bf16 %v2093_v34, %v2093_v34  ;;  %v2786_v39 = vpack.c.bf16 %v2094_v35, %v2094_v35  ;;  %v2098_v49 = vmax.f32 %v2034_v57, 0.0  ;;  %2412 = vst.msk [vmem:[%s3214_s25 + $0xe0] sm:$0xf] %vm2355_vm3, %v2783_v42 }
 0x22f   : > { %v2787_v58 = vpack.c.bf16 %v2095_v45, %v2095_v45  ;;  %2413 = vst.msk [vmem:[%s3214_s25 + $0xe4] sm:$0xf] %vm2355_vm3, %v2784_v0  ;;  %v2788_v13 = vpack.c.bf16 %v2096_v38, %v2096_v38  ;;  %v2789_v43 = vpack.c.bf16 %v2097_v7, %v2097_v7 }
 0x230   : > { %2414 = vst.msk [vmem:[%s3214_s25 + $0xe8] sm:$0xf] %vm2355_vm3, %v2785_v37  ;;  %2415 = vst.msk [vmem:[%s3214_s25 + $0xec] sm:$0xf] %vm2355_vm3, %v2786_v39  ;;  %v2790_v46 = vpack.c.bf16 %v2098_v49, %v2098_v49 }
 0x231   : > { %2416 = vst.msk [vmem:[%s3214_s25 + $0xf0] sm:$0xf] %vm2355_vm3, %v2787_v58  ;;  %2417 = vst.msk [vmem:[%s3214_s25 + $0xf4] sm:$0xf] %vm2355_vm3, %v2788_v13 }
 0x232   : > { %2418 = vst.msk [vmem:[%s3214_s25 + $0xf8] sm:$0xf] %vm2355_vm3, %v2789_v43  ;;  %2419 = vst.msk [vmem:[%s3214_s25 + $0xfc] sm:$0xf] %vm2355_vm3, %v2790_v46 }
 0x233 PF: > { %s13_s16 = sadd.s32 1, %s3153_s16   ;;  %s3947_s12 = smov %s3145_s14 }
 0x234   : > { %p10_p9 = scmp.ge.s32.totalorder %s13_s16, 8   ;;  %s3948_s13 = smov %s3149_s15 }
 0x235   : > { %s3949_s14 = smov %s3952_s17  ;;  %s3950_s15 = smov %s3956_s18 }
 0x236   :  { %12 = sbr.rel (!%p10_p9) target bundleno = 3 (0x3), region = 74 }

// kernel: baseline_net_forward.7
= control target key start
LH: loop header
LB: loop body
LE: loop exit
PB: predicated region body
PF: predicated region fallthrough
CT: control target
= control target key end

     0   :  { %v553_v28 = vlaneseq  ;;  %v4023_v36 = vmov 1966171168   ;;  %s4916_s0 = inlined_call_operand.vmem [shape: bf16[2,4096], index: 0, kind: input, shape index: {}]   ;;  %s4917_s1 = inlined_call_operand.vmem [shape: bf16[4096,128], index: 1, kind: input, shape index: {}]   ;;  %s4918_s2 = inlined_call_operand.vmem [shape: f32[1,128], index: 2, kind: input, shape index: {}]   ;;  %s4919_s3 = inlined_call_operand.vmem [shape: bf16[128,24], index: 3, kind: input, shape index: {}]   ;;  %s4920_s4 = inlined_call_operand.vmem [shape: f32[1,24], index: 4, kind: input, shape index: {}]   ;;  %s4921_s5 = inlined_call_operand.hbm [shape: f32[2,24], index: 5, kind: output, shape index: {}]  }
   0x1   :  { %v3733_v0 = vld [vmem:[%s4917_s1 + $0x78] sm:$0xff]   ;;  %v3737_v4 = vld [vmem:[%s4917_s1 + $0x70] sm:$0xff]   ;;  %v3741_v8 = vld [vmem:[%s4917_s1 + $0x68] sm:$0xff]   ;;  %v551_v37 = vunpack.c.l.s4 %v4023_v36 }
   0x2   :  { %v3734_v1 = vld [vmem:[%s4917_s1 + $0xf8] sm:$0xff]   ;;  %3348 = vmatprep.subr.bf16.mxu0 %v3733_v0  ;;  %v3738_v5 = vld [vmem:[%s4917_s1 + $0xf0] sm:$0xff]   ;;  %v3742_v9 = vld [vmem:[%s4917_s1 + $0xe8] sm:$0xff]   ;;  %v554_v33 = vshrl.u32 %v553_v28, 7 }
   0x3   :  { %v3735_v2 = vld [vmem:[%s4917_s1 + $0x38] sm:$0xff]   ;;  %3370 = vmatprep.subr.bf16.mxu1 %v3734_v1  ;;  %v3739_v6 = vld [vmem:[%s4917_s1 + $0x30] sm:$0xff]   ;;  %v3743_v10 = vld [vmem:[%s4917_s1 + $0x28] sm:$0xff]   ;;  %v552_v40 = vunpack.c.0.s8 %v551_v37 }
   0x4   :  { %v3736_v3 = vld [vmem:[%s4917_s1 + $0xb8] sm:$0xff]   ;;  %3349 = vmatpush3.bf16.msra.mxu0 %v3735_v2  ;;  %v3740_v7 = vld [vmem:[%s4917_s1 + $0xb0] sm:$0xff]   ;;  %v3744_v11 = vld [vmem:[%s4917_s1 + $0xa8] sm:$0xff]  }
   0x5   :  { %3371 = vmatpush3.bf16.msra.mxu1 %v3736_v3  ;;  %3350 = vmatprep.subr.bf16.mxu0 %v3737_v4  ;;  %v3745_v12 = vld [vmem:[%s4917_s1 + $0x60] sm:$0xff]   ;;  %v3749_v16 = vld [vmem:[%s4917_s1 + $0x58] sm:$0xff]   ;;  %v3753_v20 = vld [vmem:[%s4917_s1 + $0x50] sm:$0xff]   ;;  %v4162_v41 = vsub.s32 %v552_v40, %v554_v33 }
   0x6   :  { %3372 = vmatprep.subr.bf16.mxu1 %v3738_v5  ;;  %v3746_v13 = vld [vmem:[%s4917_s1 + $0xe0] sm:$0xff]   ;;  %v3750_v17 = vld [vmem:[%s4917_s1 + $0xd8] sm:$0xff]   ;;  %v3754_v21 = vld [vmem:[%s4917_s1 + $0xd0] sm:$0xff]  }
   0x7   :  { %v3747_v14 = vld [vmem:[%s4917_s1 + $0x20] sm:$0xff]   ;;  %v3751_v18 = vld [vmem:[%s4917_s1 + $0x18] sm:$0xff]   ;;  %v3755_v22 = vld [vmem:[%s4917_s1 + $0x10] sm:$0xff]  }
   0x8   :  { %3351 = vmatpush3.bf16.msra.mxu0 %v3739_v6  ;;  %v3748_v15 = vld [vmem:[%s4917_s1 + $0xa0] sm:$0xff]   ;;  %v3752_v19 = vld [vmem:[%s4917_s1 + $0x98] sm:$0xff]   ;;  %v3756_v23 = vld [vmem:[%s4917_s1 + $0x90] sm:$0xff]  }
   0x9   :  { %3373 = vmatpush3.bf16.msra.mxu1 %v3740_v7  ;;  %3352 = vmatprep.subr.bf16.mxu0 %v3741_v8  ;;  %v3757_v24 = vld [vmem:[%s4917_s1 + $0x48] sm:$0xff]   ;;  %v3761_v29 = vld [vmem:[%s4917_s1 + $0x40] sm:$0xff]   ;;  %v3766_v35 = vld [vmem:[%s4917_s1 + $0x178] sm:$0xff]  }
   0xa   :  { %3374 = vmatprep.subr.bf16.mxu1 %v3742_v9  ;;  %v3758_v25 = vld [vmem:[%s4917_s1 + $0xc8] sm:$0xff]   ;;  %v3762_v30 = vld [vmem:[%s4917_s1 + $0xc0] sm:$0xff]   ;;  %v3767_v38 = vld [vmem:[%s4917_s1 + $0x1f8] sm:$0xff]  }
   0xb   :  { %v3759_v26 = vld [vmem:[%s4917_s1 + $0x8] sm:$0xff]   ;;  %v3763_v31 = vld [vmem:[%s4917_s1] sm:$0xff]   ;;  %v3768_v47 = vld [vmem:[%s4917_s1 + $0x138] sm:$0xff]  }
   0xc   :  { %3353 = vmatpush3.bf16.msra.mxu0 %v3743_v10  ;;  %v3760_v27 = vld [vmem:[%s4917_s1 + $0x88] sm:$0xff]   ;;  %v3764_v32 = vld [vmem:[%s4917_s1 + $0x80] sm:$0xff]   ;;  %v3769_v49 = vld [vmem:[%s4917_s1 + $0x1b8] sm:$0xff]  }
   0xd   :  { %3375 = vmatpush3.bf16.msra.mxu1 %v3744_v11  ;;  %3354 = vmatprep.subr.bf16.mxu0 %v3745_v12  ;;  %v22_v34 = vld [vmem:[%s4916_s0] sm:$0xff]  ;;  %v3770_v52 = vld [vmem:[%s4917_s1 + $0x170] sm:$0xff]   ;;  %v3774_v58 = vld [vmem:[%s4917_s1 + $0x168] sm:$0xff]  }
   0xe   :  { %3376 = vmatprep.subr.bf16.mxu1 %v3746_v13  ;;  %v549_v39 = vcombine.high %v22_v34, %v22_v34  ;;  %v556_v42 = vrot.slane %v22_v34, %v4162_v41  ;;  %v3771_v54 = vld [vmem:[%s4917_s1 + $0x1f0] sm:$0xff]   ;;  %v3775_v59 = vld [vmem:[%s4917_s1 + $0x1e8] sm:$0xff]   ;;  %v3778_v62 = vld [vmem:[%s4917_s1 + $0x160] sm:$0xff]  }
   0xf   :  { %v3772_v55 = vld [vmem:[%s4917_s1 + $0x130] sm:$0xff]   ;;  %v3776_v60 = vld [vmem:[%s4917_s1 + $0x128] sm:$0xff]   ;;  %v3779_v63 = vld [vmem:[%s4917_s1 + $0x1e0] sm:$0xff]  }
  0x10   :  { %3355 = vmatpush3.bf16.msra.mxu0 %v3747_v14  ;;  %v4166_v43 = vrot.slane %v549_v39, %v4162_v41  ;;  %v564_v44 = vcombine.high %v556_v42, %v556_v42  ;;  %v572_v45 = vrot.slane %v556_v42, %v4162_v41  ;;  %v3773_v57 = vld [vmem:[%s4917_s1 + $0x1b0] sm:$0xff]   ;;  %v3777_v61 = vld [vmem:[%s4917_s1 + $0x1a8] sm:$0xff]   ;;  %v3780_v0 = vld [vmem:[%s4917_s1 + $0x120] sm:$0xff]  }
  0x11   :  { %3377 = vmatpush3.bf16.msra.mxu1 %v3748_v15  ;;  %3356 = vmatprep.subr.bf16.mxu0 %v3749_v16  ;;  %v3781_v1 = vld [vmem:[%s4917_s1 + $0x1a0] sm:$0xff]   ;;  %v3782_v2 = vld [vmem:[%s4917_s1 + $0x158] sm:$0xff]   ;;  %v3786_v6 = vld [vmem:[%s4917_s1 + $0x150] sm:$0xff]  }
  0x12   :  { %3378 = vmatprep.subr.bf16.mxu1 %v3750_v17  ;;  %v565_v46 = vcombine.high %v4166_v43, %v4166_v43  ;;  %v586_v48 = vrot.slane %v564_v44, %v4162_v41  ;;  %v594_v51 = vcombine.high %v572_v45, %v572_v45  ;;  %v3783_v3 = vld [vmem:[%s4917_s1 + $0x1d8] sm:$0xff]   ;;  %v3787_v7 = vld [vmem:[%s4917_s1 + $0x1d0] sm:$0xff]   ;;  %v3790_v10 = vld [vmem:[%s4917_s1 + $0x148] sm:$0xff]  }
  0x13   :  { %v3784_v4 = vld [vmem:[%s4917_s1 + $0x118] sm:$0xff]   ;;  %v3788_v8 = vld [vmem:[%s4917_s1 + $0x110] sm:$0xff]   ;;  %v3791_v11 = vld [vmem:[%s4917_s1 + $0x1c8] sm:$0xff]  }
  0x14   :  { %3357 = vmatpush3.bf16.msra.mxu0 %v3751_v18  ;;  %v593_v50 = vrot.slane %v565_v46, %v4162_v41  ;;  %2345 = vmatprep.mubr.bf16.mxu0 %v586_v48  ;;  %v596_v53 = vcombine.high %v586_v48, %v586_v48  ;;  %v3785_v5 = vld [vmem:[%s4917_s1 + $0x198] sm:$0xff]   ;;  %v3789_v9 = vld [vmem:[%s4917_s1 + $0x190] sm:$0xff]   ;;  %v3792_v12 = vld [vmem:[%s4917_s1 + $0x108] sm:$0xff]   ;;  %v579_v18 = vrot.slane %v4166_v43, %v4162_v41 }
  0x15   :  { %3379 = vmatpush3.bf16.msra.mxu1 %v3752_v19  ;;  %3358 = vmatprep.subr.bf16.mxu0 %v3753_v20  ;;  %v3793_v13 = vld [vmem:[%s4917_s1 + $0x188] sm:$0xff]   ;;  %v3794_v14 = vld [vmem:[%s4917_s1 + $0x140] sm:$0xff]   ;;  %v3798_v19 = vld [vmem:[%s4917_s1 + $0x278] sm:$0xff]  }
  0x16   :  { %3380 = vmatprep.subr.bf16.mxu1 %v3754_v21  ;;  %v597_v56 = vcombine.high %v593_v50, %v593_v50  ;;  %2385 = vmatprep.mubr.bf16.mxu1 %v596_v53  ;;  %v3795_v15 = vld [vmem:[%s4917_s1 + $0x1c0] sm:$0xff]   ;;  %v3799_v20 = vld [vmem:[%s4917_s1 + $0x2f8] sm:$0xff]   ;;  %v3806_v28 = vld [vmem:[%s4917_s1 + $0x268] sm:$0xff]  }
  0x17   :  { %v3796_v16 = vld [vmem:[%s4917_s1 + $0x100] sm:$0xff]   ;;  %v3800_v21 = vld [vmem:[%s4917_s1 + $0x238] sm:$0xff]   ;;  %v3818_v40 = vld [vmem:[%s4917_s1 + $0x250] sm:$0xff]  }
  0x18   :  { %3359 = vmatpush3.bf16.msra.mxu0 %v3755_v22  ;;  %v3797_v17 = vld [vmem:[%s4917_s1 + $0x180] sm:$0xff]   ;;  %v3801_v22 = vld [vmem:[%s4917_s1 + $0x2b8] sm:$0xff]   ;;  %v3819_v42 = vld [vmem:[%s4917_s1 + $0x2d0] sm:$0xff]  }
  0x19   :  { %3381 = vmatpush3.bf16.msra.mxu1 %v3756_v23  ;;  %3360 = vmatprep.subr.bf16.mxu0 %v3757_v24  ;;  %v595_v23 = vcombine.high %v579_v18, %v579_v18  ;;  %v3802_v24 = vld [vmem:[%s4917_s1 + $0x270] sm:$0xff]   ;;  %v3811_v33 = vld [vmem:[%s4917_s1 + $0x2e0] sm:$0xff]   ;;  %v3814_v36 = vld [vmem:[%s4917_s1 + $0x258] sm:$0xff]  }
  0x1a   :  { %3382 = vmatprep.subr.bf16.mxu1 %v3758_v25  ;;  %v3803_v25 = vld [vmem:[%s4917_s1 + $0x2f0] sm:$0xff]   ;;  %v3812_v34 = vld [vmem:[%s4917_s1 + $0x220] sm:$0xff]   ;;  %v3815_v37 = vld [vmem:[%s4917_s1 + $0x2d8] sm:$0xff]  }
  0x1b   :  { %v3817_v39 = vld [vmem:[%s4917_s1 + $0x298] sm:$0xff]   ;;  %v3820_v43 = vld [vmem:[%s4917_s1 + $0x210] sm:$0xff]   ;;  %v23_v46 = vld [vmem:[%s4916_s0 + $0x8] sm:$0xff] }
  0x1c   :  { %3361 = vmatpush3.bf16.msra.mxu0 %v3759_v26  ;;  %v3804_v26 = vld [vmem:[%s4917_s1 + $0x230] sm:$0xff]   ;;  %v605_v48 = vrot.slane %v23_v46, %v4162_v41 }
  0x1d   :  { %3383 = vmatpush3.bf16.msra.mxu1 %v3760_v27  ;;  %3362 = vmatprep.subr.bf16.mxu0 %v3761_v29  ;;  %v3805_v27 = vld [vmem:[%s4917_s1 + $0x2b0] sm:$0xff]   ;;  %v3807_v29 = vld [vmem:[%s4917_s1 + $0x2e8] sm:$0xff]  }
  0x1e   :  { %3384 = vmatprep.subr.bf16.mxu1 %v3762_v30  ;;  %v3808_v30 = vld [vmem:[%s4917_s1 + $0x228] sm:$0xff]   ;;  %v3821_v44 = vld [vmem:[%s4917_s1 + $0x290] sm:$0xff]  }
  0x20   :  { %3363 = vmatpush3.bf16.msra.mxu0 %v3763_v31  ;;  %v3809_v31 = vld [vmem:[%s4917_s1 + $0x2a8] sm:$0xff]  }
  0x21   :  { %3385 = vmatpush3.bf16.msra.mxu1 %v3764_v32  ;;  %3392 = vmatprep.subr.bf16.mxu0 %v3766_v35  ;;  %v3810_v32 = vld [vmem:[%s4917_s1 + $0x260] sm:$0xff]  }
  0x22   :  { %3414 = vmatprep.subr.bf16.mxu1 %v3767_v38  ;;  %v3813_v35 = vld [vmem:[%s4917_s1 + $0x2a0] sm:$0xff]   ;;  %v3816_v38 = vld [vmem:[%s4917_s1 + $0x218] sm:$0xff]  }
  0x23   :  { %2346 = vmatmul.mubr.bf16.vlgmr.msra.gmra.mxu0 %v572_v45  ;;  %v3822_v45 = vld [vmem:[%s4917_s1 + $0x248] sm:$0xff]  }
  0x24   :  { %3393 = vmatpush3.bf16.msra.mxu0 %v3768_v47  ;;  %2386 = vmatmul.mubr.bf16.vlgmr.msra.gmra.mxu1 %v594_v51  ;;  %v3823_v47 = vld [vmem:[%s4917_s1 + $0x2c8] sm:$0xff]  }
  0x25   :  { %3394 = vmatprep.subr.bf16.mxu0 %v3770_v52  ;;  %3415 = vmatpush3.bf16.msra.mxu1 %v3769_v49  ;;  %v598_v49 = vcombine.high %v23_v46, %v23_v46  ;;  %v3825_v51 = vld [vmem:[%s4917_s1 + $0x288] sm:$0xff]   ;;  %v613_v52 = vcombine.high %v605_v48, %v605_v48 }
  0x26   :  { %2425 = vmatprep.mubr.bf16.mxu0 %v593_v50  ;;  %3416 = vmatprep.subr.bf16.mxu1 %v3771_v54  ;;  %v3824_v50 = vld [vmem:[%s4917_s1 + $0x208] sm:$0xff]   ;;  %v3826_v54 = vld [vmem:[%s4917_s1 + $0x240] sm:$0xff]  }
  0x27   :  { %2465 = vmatprep.mubr.bf16.mxu1 %v597_v56  ;;  %v4354_v53 = vrot.slane %v598_v49, %v4162_v41  ;;  %v635_v56 = vrot.slane %v613_v52, %v4162_v41  ;;  %v3873_v46 = vld [vmem:[%s4917_s1 + $0x428] sm:$0xff]   ;;  %v3876_v49 = vld [vmem:[%s4917_s1 + $0x4e0] sm:$0xff]   ;;  %v3879_v52 = vld [vmem:[%s4917_s1 + $0x458] sm:$0xff]  }
  0x28   :  { %3395 = vmatpush3.bf16.msra.mxu0 %v3772_v55  ;;  %v3827_v55 = vld [vmem:[%s4917_s1 + $0x2c0] sm:$0xff]  }
  0x29   :  { %3396 = vmatprep.subr.bf16.mxu0 %v3774_v58  ;;  %3417 = vmatpush3.bf16.msra.mxu1 %v3773_v57  ;;  %v614_v57 = vcombine.high %v4354_v53, %v4354_v53  ;;  %v3828_v58 = vld [vmem:[%s4917_s1 + $0x200] sm:$0xff]  }
  0x2a   :  { %3418 = vmatprep.subr.bf16.mxu1 %v3775_v59  ;;  %v3829_v59 = vld [vmem:[%s4917_s1 + $0x280] sm:$0xff]  }
  0x2c   :  { %3397 = vmatpush3.bf16.msra.mxu0 %v3776_v60  ;;  %v645_v60 = vcombine.high %v635_v56, %v635_v56 }
  0x2d   :  { %3398 = vmatprep.subr.bf16.mxu0 %v3778_v62  ;;  %3419 = vmatpush3.bf16.msra.mxu1 %v3777_v61  ;;  %v621_v61 = vrot.slane %v605_v48, %v4162_v41  ;;  %v3830_v62 = vld [vmem:[%s4917_s1 + $0x378] sm:$0xff]   ;;  %v3875_v48 = vld [vmem:[%s4917_s1 + $0x460] sm:$0xff]  }
  0x2e   :  { %3420 = vmatprep.subr.bf16.mxu1 %v3779_v63  ;;  %v3831_v63 = vld [vmem:[%s4917_s1 + $0x3f8] sm:$0xff]  }
  0x30   :  { %3399 = vmatpush3.bf16.msra.mxu0 %v3780_v0  ;;  %v642_v0 = vrot.slane %v614_v57, %v4162_v41  ;;  %v3884_v57 = vld [vmem:[%s4917_s1 + $0x4d0] sm:$0xff]  }
  0x31   :  { %3400 = vmatprep.subr.bf16.mxu0 %v3782_v2  ;;  %3421 = vmatpush3.bf16.msra.mxu1 %v3781_v1  ;;  %v3832_v1 = vld [vmem:[%s4917_s1 + $0x338] sm:$0xff]  }
  0x32   :  { %3422 = vmatprep.subr.bf16.mxu1 %v3783_v3  ;;  %v3833_v2 = vld [vmem:[%s4917_s1 + $0x3b8] sm:$0xff]   ;;  %v643_v3 = vcombine.high %v621_v61, %v621_v61 }
  0x34   :  { %3401 = vmatpush3.bf16.msra.mxu0 %v3784_v4  ;;  %v3834_v4 = vld [vmem:[%s4917_s1 + $0x370] sm:$0xff]  }
  0x35   :  { %3402 = vmatprep.subr.bf16.mxu0 %v3786_v6  ;;  %3423 = vmatpush3.bf16.msra.mxu1 %v3785_v5  ;;  %v3835_v5 = vld [vmem:[%s4917_s1 + $0x3f0] sm:$0xff]   ;;  %v646_v6 = vcombine.high %v642_v0, %v642_v0 }
  0x36   :  { %3424 = vmatprep.subr.bf16.mxu1 %v3787_v7  ;;  %v3836_v7 = vld [vmem:[%s4917_s1 + $0x330] sm:$0xff]  }
  0x38   :  { %3403 = vmatpush3.bf16.msra.mxu0 %v3788_v8  ;;  %v3837_v8 = vld [vmem:[%s4917_s1 + $0x3b0] sm:$0xff]  }
  0x39   :  { %3404 = vmatprep.subr.bf16.mxu0 %v3790_v10  ;;  %3425 = vmatpush3.bf16.msra.mxu1 %v3789_v9  ;;  %v3838_v9 = vld [vmem:[%s4917_s1 + $0x368] sm:$0xff]  }
  0x3a   :  { %3426 = vmatprep.subr.bf16.mxu1 %v3791_v11  ;;  %v3839_v10 = vld [vmem:[%s4917_s1 + $0x3e8] sm:$0xff]  }
  0x3b   :  { %v3840_v11 = vld [vmem:[%s4917_s1 + $0x328] sm:$0xff]  }
  0x3c   :  { %3405 = vmatpush3.bf16.msra.mxu0 %v3792_v12  ;;  %v3841_v12 = vld [vmem:[%s4917_s1 + $0x3a8] sm:$0xff]  }
  0x3d   :  { %3406 = vmatprep.subr.bf16.mxu0 %v3794_v14  ;;  %3427 = vmatpush3.bf16.msra.mxu1 %v3793_v13  ;;  %v3842_v13 = vld [vmem:[%s4917_s1 + $0x360] sm:$0xff]  }
  0x3e   :  { %3428 = vmatprep.subr.bf16.mxu1 %v3795_v15  ;;  %v3843_v14 = vld [vmem:[%s4917_s1 + $0x3e0] sm:$0xff]  }
  0x3f   :  { %v3844_v15 = vld [vmem:[%s4917_s1 + $0x320] sm:$0xff]  }
  0x40   :  { %3407 = vmatpush3.bf16.msra.mxu0 %v3796_v16  ;;  %v3845_v16 = vld [vmem:[%s4917_s1 + $0x3a0] sm:$0xff]  }
  0x41   :  { %3436 = vmatprep.subr.bf16.mxu0 %v3798_v19  ;;  %3429 = vmatpush3.bf16.msra.mxu1 %v3797_v17  ;;  %v3846_v17 = vld [vmem:[%s4917_s1 + $0x358] sm:$0xff]  }
  0x42   :  { %3458 = vmatprep.subr.bf16.mxu1 %v3799_v20  ;;  %v3848_v19 = vld [vmem:[%s4917_s1 + $0x318] sm:$0xff]  }
  0x43   :  { %2426 = vmatmul.mubr.bf16.vlgmr.msra.gmra.mxu0 %v579_v18  ;;  %v3847_v18 = vld [vmem:[%s4917_s1 + $0x3d8] sm:$0xff]  }
  0x44   :  { %3437 = vmatpush3.bf16.msra.mxu0 %v3800_v21  ;;  %2466 = vmatmul.mubr.bf16.vlgmr.msra.gmra.mxu1 %v595_v23  ;;  %v3849_v20 = vld [vmem:[%s4917_s1 + $0x398] sm:$0xff]   ;;  %v3850_v21 = vld [vmem:[%s4917_s1 + $0x350] sm:$0xff]  }
  0x45   :  { %3438 = vmatprep.subr.bf16.mxu0 %v3802_v24  ;;  %3459 = vmatpush3.bf16.msra.mxu1 %v3801_v22  ;;  %v3851_v22 = vld [vmem:[%s4917_s1 + $0x3d0] sm:$0xff]  }
  0x46   :  { %3460 = vmatprep.subr.bf16.mxu1 %v3803_v25  ;;  %2505 = vmatprep.mubr.bf16.mxu0 %v635_v56  ;;  %v3852_v23 = vld [vmem:[%s4917_s1 + $0x310] sm:$0xff]   ;;  %v3854_v25 = vld [vmem:[%s4917_s1 + $0x348] sm:$0xff]  }
  0x47   :  { %2545 = vmatprep.mubr.bf16.mxu1 %v645_v60  ;;  %v3853_v24 = vld [vmem:[%s4917_s1 + $0x390] sm:$0xff]   ;;  %v3887_v60 = vld [vmem:[%s4917_s1 + $0x448] sm:$0xff]  }
  0x48   :  { %3439 = vmatpush3.bf16.msra.mxu0 %v3804_v26  ;;  %v3855_v26 = vld [vmem:[%s4917_s1 + $0x3c8] sm:$0xff]   ;;  %v3883_v56 = vld [vmem:[%s4917_s1 + $0x450] sm:$0xff]  }
  0x49   :  { %3440 = vmatprep.subr.bf16.mxu0 %v3806_v28  ;;  %3461 = vmatpush3.bf16.msra.mxu1 %v3805_v27  ;;  %v3856_v27 = vld [vmem:[%s4917_s1 + $0x308] sm:$0xff]  }
  0x4a   :  { %3462 = vmatprep.subr.bf16.mxu1 %v3807_v29  ;;  %v3857_v28 = vld [vmem:[%s4917_s1 + $0x388] sm:$0xff]   ;;  %v3858_v29 = vld [vmem:[%s4917_s1 + $0x340] sm:$0xff]  }
  0x4c   :  { %3441 = vmatpush3.bf16.msra.mxu0 %v3808_v30  ;;  %v3859_v30 = vld [vmem:[%s4917_s1 + $0x3c0] sm:$0xff]  }
  0x4d   :  { %3442 = vmatprep.subr.bf16.mxu0 %v3810_v32  ;;  %3463 = vmatpush3.bf16.msra.mxu1 %v3809_v31  ;;  %v3860_v31 = vld [vmem:[%s4917_s1 + $0x300] sm:$0xff]  }
  0x4e   :  { %3464 = vmatprep.subr.bf16.mxu1 %v3811_v33  ;;  %v3861_v32 = vld [vmem:[%s4917_s1 + $0x380] sm:$0xff]   ;;  %v628_v33 = vrot.slane %v4354_v53, %v4162_v41  ;;  %v3880_v53 = vld [vmem:[%s4917_s1 + $0x4d8] sm:$0xff]  }
  0x50   :  { %3443 = vmatpush3.bf16.msra.mxu0 %v3812_v34  ;;  %v3863_v34 = vld [vmem:[%s4917_s1 + $0x478] sm:$0xff]  }
  0x51   :  { %3444 = vmatprep.subr.bf16.mxu0 %v3814_v36  ;;  %3465 = vmatpush3.bf16.msra.mxu1 %v3813_v35  ;;  %v3864_v35 = vld [vmem:[%s4917_s1 + $0x4f8] sm:$0xff]  }
  0x52   :  { %3466 = vmatprep.subr.bf16.mxu1 %v3815_v37  ;;  %v3865_v36 = vld [vmem:[%s4917_s1 + $0x438] sm:$0xff]  }
  0x53   :  { %v3866_v37 = vld [vmem:[%s4917_s1 + $0x4b8] sm:$0xff]  }
  0x54   :  { %3445 = vmatpush3.bf16.msra.mxu0 %v3816_v38  ;;  %v644_v38 = vcombine.high %v628_v33, %v628_v33 }
  0x55   :  { %3446 = vmatprep.subr.bf16.mxu0 %v3818_v40  ;;  %3467 = vmatpush3.bf16.msra.mxu1 %v3817_v39  ;;  %v3867_v39 = vld [vmem:[%s4917_s1 + $0x470] sm:$0xff]  }
  0x56   :  { %3468 = vmatprep.subr.bf16.mxu1 %v3819_v42  ;;  %v3868_v40 = vld [vmem:[%s4917_s1 + $0x4f0] sm:$0xff]  }
  0x57   :  { %v3869_v42 = vld [vmem:[%s4917_s1 + $0x430] sm:$0xff]  }
  0x58   :  { %3447 = vmatpush3.bf16.msra.mxu0 %v3820_v43  ;;  %v3870_v43 = vld [vmem:[%s4917_s1 + $0x4b0] sm:$0xff]  }
  0x59   :  { %3448 = vmatprep.subr.bf16.mxu0 %v3822_v45  ;;  %3469 = vmatpush3.bf16.msra.mxu1 %v3821_v44  ;;  %v3871_v44 = vld [vmem:[%s4917_s1 + $0x468] sm:$0xff]  }
  0x5a   :  { %3470 = vmatprep.subr.bf16.mxu1 %v3823_v47  ;;  %v3872_v45 = vld [vmem:[%s4917_s1 + $0x4e8] sm:$0xff]  }
  0x5b   :  { %v3874_v47 = vld [vmem:[%s4917_s1 + $0x4a8] sm:$0xff]  }
  0x5c   :  { %3449 = vmatpush3.bf16.msra.mxu0 %v3824_v50  ;;  %v3877_v50 = vld [vmem:[%s4917_s1 + $0x420] sm:$0xff]  }
  0x5d   :  { %3450 = vmatprep.subr.bf16.mxu0 %v3826_v54  ;;  %3471 = vmatpush3.bf16.msra.mxu1 %v3825_v51  ;;  %v3878_v51 = vld [vmem:[%s4917_s1 + $0x4a0] sm:$0xff]   ;;  %v3881_v54 = vld [vmem:[%s4917_s1 + $0x418] sm:$0xff]  }
  0x5e   :  { %3472 = vmatprep.subr.bf16.mxu1 %v3827_v55  ;;  %v3882_v55 = vld [vmem:[%s4917_s1 + $0x498] sm:$0xff]  }
  0x60   :  { %3451 = vmatpush3.bf16.msra.mxu0 %v3828_v58  ;;  %v3885_v58 = vld [vmem:[%s4917_s1 + $0x410] sm:$0xff]  }
  0x61   :  { %3480 = vmatprep.subr.bf16.mxu0 %v3830_v62  ;;  %3473 = vmatpush3.bf16.msra.mxu1 %v3829_v59  ;;  %v3886_v59 = vld [vmem:[%s4917_s1 + $0x490] sm:$0xff]   ;;  %v3888_v62 = vld [vmem:[%s4917_s1 + $0x4c8] sm:$0xff]  }
  0x62   :  { %3502 = vmatprep.subr.bf16.mxu1 %v3831_v63 }
  0x63   :  { %2506 = vmatmul.mubr.bf16.vlgmr.msra.gmra.mxu0 %v621_v61  ;;  %v24_v61 = vld [vmem:[%s4916_s0 + $0x10] sm:$0xff] }
  0x64   :  { %3481 = vmatpush3.bf16.msra.mxu0 %v3832_v1  ;;  %2585 = vmatprep.mubr.bf16.mxu0 %v642_v0  ;;  %v654_v63 = vrot.slane %v24_v61, %v4162_v41  ;;  %v647_v0 = vcombine.high %v24_v61, %v24_v61  ;;  %v3889_v1 = vld [vmem:[%s4917_s1 + $0x408] sm:$0xff]  }
  0x65   :  { %2546 = vmatmul.mubr.bf16.vlgmr.msra.gmra.mxu1 %v643_v3  ;;  %3482 = vmatprep.subr.bf16.mxu0 %v3834_v4  ;;  %v3938_v61 = vld [vmem:[%s4917_s1 + $0x628] sm:$0xff]  }
  0x66   :  { %3503 = vmatpush3.bf16.msra.mxu1 %v3833_v2  ;;  %2625 = vmatprep.mubr.bf16.mxu1 %v646_v6  ;;  %v3890_v2 = vld [vmem:[%s4917_s1 + $0x488] sm:$0xff]   ;;  %v662_v3 = vcombine.high %v654_v63, %v654_v63  ;;  %v4560_v4 = vrot.slane %v647_v0, %v4162_v41  ;;  %v3892_v6 = vld [vmem:[%s4917_s1 + $0x4c0] sm:$0xff]  }
  0x67   :  { %3504 = vmatprep.subr.bf16.mxu1 %v3835_v5  ;;  %v3891_v5 = vld [vmem:[%s4917_s1 + $0x440] sm:$0xff]  }
  0x68   :  { %3483 = vmatpush3.bf16.msra.mxu0 %v3836_v7  ;;  %v684_v7 = vrot.slane %v662_v3, %v4162_v41  ;;  %v3941_v0 = vld [vmem:[%s4917_s1 + $0x6e0] sm:$0xff]   ;;  %v3944_v3 = vld [vmem:[%s4917_s1 + $0x658] sm:$0xff]  }
  0x69   :  { %3484 = vmatprep.subr.bf16.mxu0 %v3838_v9  ;;  %v3893_v9 = vld [vmem:[%s4917_s1 + $0x400] sm:$0xff]  }
  0x6a   :  { %3505 = vmatpush3.bf16.msra.mxu1 %v3837_v8  ;;  %v663_v8 = vcombine.high %v4560_v4, %v4560_v4 }
  0x6b   :  { %3506 = vmatprep.subr.bf16.mxu1 %v3839_v10  ;;  %v3894_v10 = vld [vmem:[%s4917_s1 + $0x480] sm:$0xff]  }
  0x6c   :  { %3485 = vmatpush3.bf16.msra.mxu0 %v3840_v11  ;;  %v694_v11 = vcombine.high %v684_v7, %v684_v7 }
  0x6d   :  { %3486 = vmatprep.subr.bf16.mxu0 %v3842_v13  ;;  %v3895_v13 = vld [vmem:[%s4917_s1 + $0x578] sm:$0xff]  }
  0x6e   :  { %3507 = vmatpush3.bf16.msra.mxu1 %v3841_v12  ;;  %v670_v12 = vrot.slane %v654_v63, %v4162_v41  ;;  %v3940_v63 = vld [vmem:[%s4917_s1 + $0x660] sm:$0xff]  }
  0x6f   :  { %3508 = vmatprep.subr.bf16.mxu1 %v3843_v14  ;;  %v3896_v14 = vld [vmem:[%s4917_s1 + $0x5f8] sm:$0xff]  }
  0x70   :  { %3487 = vmatpush3.bf16.msra.mxu0 %v3844_v15  ;;  %v691_v15 = vrot.slane %v663_v8, %v4162_v41  ;;  %v3949_v8 = vld [vmem:[%s4917_s1 + $0x6d0] sm:$0xff]  }
  0x71   :  { %3488 = vmatprep.subr.bf16.mxu0 %v3846_v17  ;;  %v3898_v17 = vld [vmem:[%s4917_s1 + $0x5b8] sm:$0xff]  }
  0x72   :  { %3509 = vmatpush3.bf16.msra.mxu1 %v3845_v16  ;;  %v3897_v16 = vld [vmem:[%s4917_s1 + $0x538] sm:$0xff]  }
  0x73   :  { %3510 = vmatprep.subr.bf16.mxu1 %v3847_v18  ;;  %v692_v18 = vcombine.high %v670_v12, %v670_v12 }
  0x74   :  { %3489 = vmatpush3.bf16.msra.mxu0 %v3848_v19  ;;  %v3899_v19 = vld [vmem:[%s4917_s1 + $0x570] sm:$0xff]  }
  0x75   :  { %3490 = vmatprep.subr.bf16.mxu0 %v3850_v21  ;;  %v695_v21 = vcombine.high %v691_v15, %v691_v15 }
  0x76   :  { %3511 = vmatpush3.bf16.msra.mxu1 %v3849_v20  ;;  %v3900_v20 = vld [vmem:[%s4917_s1 + $0x5f0] sm:$0xff]  }
  0x77   :  { %3512 = vmatprep.subr.bf16.mxu1 %v3851_v22  ;;  %v3901_v22 = vld [vmem:[%s4917_s1 + $0x530] sm:$0xff]  }
  0x78   :  { %3491 = vmatpush3.bf16.msra.mxu0 %v3852_v23  ;;  %v3902_v23 = vld [vmem:[%s4917_s1 + $0x5b0] sm:$0xff]  }
  0x79   :  { %3492 = vmatprep.subr.bf16.mxu0 %v3854_v25  ;;  %v3904_v25 = vld [vmem:[%s4917_s1 + $0x5e8] sm:$0xff]  }
  0x7a   :  { %3513 = vmatpush3.bf16.msra.mxu1 %v3853_v24  ;;  %v3903_v24 = vld [vmem:[%s4917_s1 + $0x568] sm:$0xff]  }
  0x7b   :  { %3514 = vmatprep.subr.bf16.mxu1 %v3855_v26  ;;  %v3905_v26 = vld [vmem:[%s4917_s1 + $0x528] sm:$0xff]  }
  0x7c   :  { %3493 = vmatpush3.bf16.msra.mxu0 %v3856_v27  ;;  %v3906_v27 = vld [vmem:[%s4917_s1 + $0x5a8] sm:$0xff]  }
  0x7d   :  { %3494 = vmatprep.subr.bf16.mxu0 %v3858_v29  ;;  %v3908_v29 = vld [vmem:[%s4917_s1 + $0x5e0] sm:$0xff]  }
  0x7e   :  { %3515 = vmatpush3.bf16.msra.mxu1 %v3857_v28  ;;  %v3907_v28 = vld [vmem:[%s4917_s1 + $0x560] sm:$0xff]  }
  0x7f   :  { %3516 = vmatprep.subr.bf16.mxu1 %v3859_v30  ;;  %v3909_v30 = vld [vmem:[%s4917_s1 + $0x520] sm:$0xff]  }
  0x80   :  { %3495 = vmatpush3.bf16.msra.mxu0 %v3860_v31  ;;  %v3910_v31 = vld [vmem:[%s4917_s1 + $0x5a0] sm:$0xff]  }
  0x81   :  { %3524 = vmatprep.subr.bf16.mxu0 %v3863_v34  ;;  %v3913_v34 = vld [vmem:[%s4917_s1 + $0x518] sm:$0xff]  }
  0x82   :  { %3517 = vmatpush3.bf16.msra.mxu1 %v3861_v32  ;;  %v3911_v32 = vld [vmem:[%s4917_s1 + $0x558] sm:$0xff]  }
  0x83   :  { %2586 = vmatmul.mubr.bf16.vlgmr.msra.gmra.mxu0 %v628_v33  ;;  %3546 = vmatprep.subr.bf16.mxu1 %v3864_v35  ;;  %v3912_v33 = vld [vmem:[%s4917_s1 + $0x5d8] sm:$0xff]  }
  0x84   :  { %3525 = vmatpush3.bf16.msra.mxu0 %v3865_v36  ;;  %2665 = vmatprep.mubr.bf16.mxu0 %v684_v7  ;;  %v3914_v35 = vld [vmem:[%s4917_s1 + $0x598] sm:$0xff]   ;;  %v3915_v36 = vld [vmem:[%s4917_s1 + $0x550] sm:$0xff]  }
  0x85   :  { %2626 = vmatmul.mubr.bf16.vlgmr.msra.gmra.mxu1 %v644_v38  ;;  %3526 = vmatprep.subr.bf16.mxu0 %v3867_v39  ;;  %v3917_v38 = vld [vmem:[%s4917_s1 + $0x510] sm:$0xff]  }
  0x86   :  { %3547 = vmatpush3.bf16.msra.mxu1 %v3866_v37  ;;  %2705 = vmatprep.mubr.bf16.mxu1 %v694_v11  ;;  %v3916_v37 = vld [vmem:[%s4917_s1 + $0x5d0] sm:$0xff]   ;;  %v3952_v11 = vld [vmem:[%s4917_s1 + $0x648] sm:$0xff]  }
  0x87   :  { %3548 = vmatprep.subr.bf16.mxu1 %v3868_v40  ;;  %v3918_v39 = vld [vmem:[%s4917_s1 + $0x590] sm:$0xff]   ;;  %v3919_v40 = vld [vmem:[%s4917_s1 + $0x548] sm:$0xff]  }
  0x88   :  { %3527 = vmatpush3.bf16.msra.mxu0 %v3869_v42  ;;  %v3920_v42 = vld [vmem:[%s4917_s1 + $0x5c8] sm:$0xff]   ;;  %v3948_v7 = vld [vmem:[%s4917_s1 + $0x650] sm:$0xff]  }
  0x89   :  { %3528 = vmatprep.subr.bf16.mxu0 %v3871_v44  ;;  %v3922_v44 = vld [vmem:[%s4917_s1 + $0x588] sm:$0xff]  }
  0x8a   :  { %3549 = vmatpush3.bf16.msra.mxu1 %v3870_v43  ;;  %v3921_v43 = vld [vmem:[%s4917_s1 + $0x508] sm:$0xff]  }
  0x8b   :  { %3550 = vmatprep.subr.bf16.mxu1 %v3872_v45  ;;  %v3923_v45 = vld [vmem:[%s4917_s1 + $0x540] sm:$0xff]  }
  0x8c   :  { %3529 = vmatpush3.bf16.msra.mxu0 %v3873_v46  ;;  %v3924_v46 = vld [vmem:[%s4917_s1 + $0x5c0] sm:$0xff]  }
  0x8d   :  { %3530 = vmatprep.subr.bf16.mxu0 %v3875_v48  ;;  %v3926_v48 = vld [vmem:[%s4917_s1 + $0x580] sm:$0xff]  }
  0x8e   :  { %3551 = vmatpush3.bf16.msra.mxu1 %v3874_v47  ;;  %v3925_v47 = vld [vmem:[%s4917_s1 + $0x500] sm:$0xff]  }
  0x8f   :  { %3552 = vmatprep.subr.bf16.mxu1 %v3876_v49  ;;  %v677_v49 = vrot.slane %v4560_v4, %v4162_v41  ;;  %v3945_v4 = vld [vmem:[%s4917_s1 + $0x6d8] sm:$0xff]  }
  0x90   :  { %3531 = vmatpush3.bf16.msra.mxu0 %v3877_v50  ;;  %v3928_v50 = vld [vmem:[%s4917_s1 + $0x678] sm:$0xff]  }
  0x91   :  { %3532 = vmatprep.subr.bf16.mxu0 %v3879_v52  ;;  %v3930_v52 = vld [vmem:[%s4917_s1 + $0x638] sm:$0xff]  }
  0x92   :  { %3553 = vmatpush3.bf16.msra.mxu1 %v3878_v51  ;;  %v3929_v51 = vld [vmem:[%s4917_s1 + $0x6f8] sm:$0xff]  }
  0x93   :  { %3554 = vmatprep.subr.bf16.mxu1 %v3880_v53  ;;  %v3931_v53 = vld [vmem:[%s4917_s1 + $0x6b8] sm:$0xff]  }
  0x94   :  { %3533 = vmatpush3.bf16.msra.mxu0 %v3881_v54  ;;  %v693_v54 = vcombine.high %v677_v49, %v677_v49 }
  0x95   :  { %3534 = vmatprep.subr.bf16.mxu0 %v3883_v56  ;;  %v3933_v56 = vld [vmem:[%s4917_s1 + $0x6f0] sm:$0xff]  }
  0x96   :  { %3555 = vmatpush3.bf16.msra.mxu1 %v3882_v55  ;;  %v3932_v55 = vld [vmem:[%s4917_s1 + $0x670] sm:$0xff]  }
  0x97   :  { %3556 = vmatprep.subr.bf16.mxu1 %v3884_v57  ;;  %v3934_v57 = vld [vmem:[%s4917_s1 + $0x630] sm:$0xff]  }
  0x98   :  { %3535 = vmatpush3.bf16.msra.mxu0 %v3885_v58  ;;  %v3935_v58 = vld [vmem:[%s4917_s1 + $0x6b0] sm:$0xff]  }
  0x99   :  { %3536 = vmatprep.subr.bf16.mxu0 %v3887_v60  ;;  %v3937_v60 = vld [vmem:[%s4917_s1 + $0x6e8] sm:$0xff]  }
  0x9a   :  { %3557 = vmatpush3.bf16.msra.mxu1 %v3886_v59  ;;  %v3936_v59 = vld [vmem:[%s4917_s1 + $0x668] sm:$0xff]  }
  0x9b   :  { %3558 = vmatprep.subr.bf16.mxu1 %v3888_v62  ;;  %v3939_v62 = vld [vmem:[%s4917_s1 + $0x6a8] sm:$0xff]  }
  0x9c   :  { %3537 = vmatpush3.bf16.msra.mxu0 %v3889_v1  ;;  %v3942_v1 = vld [vmem:[%s4917_s1 + $0x620] sm:$0xff]  }
  0x9d   :  { %3538 = vmatprep.subr.bf16.mxu0 %v3891_v5  ;;  %v3946_v5 = vld [vmem:[%s4917_s1 + $0x618] sm:$0xff]  }
  0x9e   :  { %3559 = vmatpush3.bf16.msra.mxu1 %v3890_v2  ;;  %v3943_v2 = vld [vmem:[%s4917_s1 + $0x6a0] sm:$0xff]  }
  0x9f   :  { %3560 = vmatprep.subr.bf16.mxu1 %v3892_v6  ;;  %v3947_v6 = vld [vmem:[%s4917_s1 + $0x698] sm:$0xff]  }
  0xa0   :  { %3539 = vmatpush3.bf16.msra.mxu0 %v3893_v9  ;;  %v3950_v9 = vld [vmem:[%s4917_s1 + $0x610] sm:$0xff]  }
  0xa1   :  { %3568 = vmatprep.subr.bf16.mxu0 %v3895_v13  ;;  %v3953_v13 = vld [vmem:[%s4917_s1 + $0x6c8] sm:$0xff]  }
  0xa2   :  { %3561 = vmatpush3.bf16.msra.mxu1 %v3894_v10  ;;  %v3951_v10 = vld [vmem:[%s4917_s1 + $0x690] sm:$0xff]  }
  0xa3   :  { %2666 = vmatmul.mubr.bf16.vlgmr.msra.gmra.mxu0 %v670_v12  ;;  %3590 = vmatprep.subr.bf16.mxu1 %v3896_v14  ;;  %v25_v12 = vld [vmem:[%s4916_s0 + $0x18] sm:$0xff] }
  0xa4   :  { %3569 = vmatpush3.bf16.msra.mxu0 %v3897_v16  ;;  %2745 = vmatprep.mubr.bf16.mxu0 %v691_v15  ;;  %v703_v14 = vrot.slane %v25_v12, %v4162_v41  ;;  %v696_v15 = vcombine.high %v25_v12, %v25_v12  ;;  %v3954_v16 = vld [vmem:[%s4917_s1 + $0x608] sm:$0xff]  }
  0xa5   :  { %2706 = vmatmul.mubr.bf16.vlgmr.msra.gmra.mxu1 %v692_v18  ;;  %3570 = vmatprep.subr.bf16.mxu0 %v3899_v19 }
  0xa6   :  { %3591 = vmatpush3.bf16.msra.mxu1 %v3898_v17  ;;  %2785 = vmatprep.mubr.bf16.mxu1 %v695_v21  ;;  %v3956_v17 = vld [vmem:[%s4917_s1 + $0x640] sm:$0xff]   ;;  %v711_v18 = vcombine.high %v703_v14, %v703_v14  ;;  %v4766_v19 = vrot.slane %v696_v15, %v4162_v41 }
  0xa7   :  { %3592 = vmatprep.subr.bf16.mxu1 %v3900_v20  ;;  %v3955_v20 = vld [vmem:[%s4917_s1 + $0x688] sm:$0xff]   ;;  %v3957_v21 = vld [vmem:[%s4917_s1 + $0x6c0] sm:$0xff]  }
  0xa8   :  { %3571 = vmatpush3.bf16.msra.mxu0 %v3901_v22  ;;  %v3958_v22 = vld [vmem:[%s4917_s1 + $0x600] sm:$0xff]  }
  0xa9   :  { %3572 = vmatprep.subr.bf16.mxu0 %v3903_v24  ;;  %v712_v24 = vcombine.high %v4766_v19, %v4766_v19 }
  0xaa   :  { %3593 = vmatpush3.bf16.msra.mxu1 %v3902_v23  ;;  %v733_v23 = vrot.slane %v711_v18, %v4162_v41 }
  0xab   :  { %3594 = vmatprep.subr.bf16.mxu1 %v3904_v25  ;;  %v3959_v25 = vld [vmem:[%s4917_s1 + $0x680] sm:$0xff]  }
  0xac   :  { %3573 = vmatpush3.bf16.msra.mxu0 %v3905_v26  ;;  %v743_v26 = vcombine.high %v733_v23, %v733_v23 }
  0xad   :  { %3574 = vmatprep.subr.bf16.mxu0 %v3907_v28  ;;  %v3960_v28 = vld [vmem:[%s4917_s1 + $0x778] sm:$0xff]  }
  0xae   :  { %3595 = vmatpush3.bf16.msra.mxu1 %v3906_v27  ;;  %v719_v27 = vrot.slane %v703_v14, %v4162_v41 }
  0xaf   :  { %3596 = vmatprep.subr.bf16.mxu1 %v3908_v29  ;;  %v3961_v29 = vld [vmem:[%s4917_s1 + $0x7f8] sm:$0xff]  }
  0xb0   :  { %3575 = vmatpush3.bf16.msra.mxu0 %v3909_v30  ;;  %v740_v30 = vrot.slane %v712_v24, %v4162_v41 }
  0xb1   :  { %3576 = vmatprep.subr.bf16.mxu0 %v3911_v32  ;;  %v3963_v32 = vld [vmem:[%s4917_s1 + $0x7b8] sm:$0xff]  }
  0xb2   :  { %3597 = vmatpush3.bf16.msra.mxu1 %v3910_v31  ;;  %v3962_v31 = vld [vmem:[%s4917_s1 + $0x738] sm:$0xff]  }
  0xb3   :  { %3598 = vmatprep.subr.bf16.mxu1 %v3912_v33  ;;  %v741_v33 = vcombine.high %v719_v27, %v719_v27 }
  0xb4   :  { %3577 = vmatpush3.bf16.msra.mxu0 %v3913_v34  ;;  %v3964_v34 = vld [vmem:[%s4917_s1 + $0x770] sm:$0xff]  }
  0xb5   :  { %3578 = vmatprep.subr.bf16.mxu0 %v3915_v36  ;;  %v744_v36 = vcombine.high %v740_v30, %v740_v30 }
  0xb6   :  { %3599 = vmatpush3.bf16.msra.mxu1 %v3914_v35  ;;  %v3965_v35 = vld [vmem:[%s4917_s1 + $0x7f0] sm:$0xff]  }
  0xb7   :  { %3600 = vmatprep.subr.bf16.mxu1 %v3916_v37 }
  0xb8   :  { %3579 = vmatpush3.bf16.msra.mxu0 %v3917_v38  ;;  %v3082_v38 = vld [vmem:[%s4918_s2] ss:$0 sm:$0xff] }
  0xb9   :  { %3580 = vmatprep.subr.bf16.mxu0 %v3919_v40  ;;  %v3967_v40 = vld [vmem:[%s4917_s1 + $0x7b0] sm:$0xff]  }
  0xba   :  { %3601 = vmatpush3.bf16.msra.mxu1 %v3918_v39  ;;  %v3966_v39 = vld [vmem:[%s4917_s1 + $0x730] sm:$0xff]  }
  0xbb   :  { %3602 = vmatprep.subr.bf16.mxu1 %v3920_v42 }
  0xbc   :  { %3581 = vmatpush3.bf16.msra.mxu0 %v3921_v43 }
  0xbd   :  { %3582 = vmatprep.subr.bf16.mxu0 %v3923_v45 }
  0xbe   :  { %3603 = vmatpush3.bf16.msra.mxu1 %v3922_v44  ;;  %v3968_v44 = vld [vmem:[%s4917_s1 + $0x768] sm:$0xff]  }
  0xbf   :  { %3604 = vmatprep.subr.bf16.mxu1 %v3924_v46  ;;  %v3969_v46 = vld [vmem:[%s4917_s1 + $0x7e8] sm:$0xff]  }
  0xc0   :  { %3583 = vmatpush3.bf16.msra.mxu0 %v3925_v47 }
  0xc1   :  { %3612 = vmatprep.subr.bf16.mxu0 %v3928_v50 }
  0xc2   :  { %3605 = vmatpush3.bf16.msra.mxu1 %v3926_v48 }
  0xc3   :  { %2746 = vmatmul.mubr.bf16.vlgmr.msra.gmra.mxu0 %v677_v49  ;;  %3634 = vmatprep.subr.bf16.mxu1 %v3929_v51  ;;  %v3970_v49 = vld [vmem:[%s4917_s1 + $0x728] sm:$0xff]  }
  0xc4   :  { %3613 = vmatpush3.bf16.msra.mxu0 %v3930_v52  ;;  %2825 = vmatprep.mubr.bf16.mxu0 %v733_v23  ;;  %v3971_v52 = vld [vmem:[%s4917_s1 + $0x7a8] sm:$0xff]  }
  0xc5   :  { %2786 = vmatmul.mubr.bf16.vlgmr.msra.gmra.mxu1 %v693_v54  ;;  %3614 = vmatprep.subr.bf16.mxu0 %v3932_v55  ;;  %v3972_v55 = vld [vmem:[%s4917_s1 + $0x760] sm:$0xff]  }
  0xc6   :  { %3635 = vmatpush3.bf16.msra.mxu1 %v3931_v53  ;;  %2865 = vmatprep.mubr.bf16.mxu1 %v743_v26 }
  0xc7   :  { %3636 = vmatprep.subr.bf16.mxu1 %v3933_v56 }
  0xc8   :  { %3615 = vmatpush3.bf16.msra.mxu0 %v3934_v57  ;;  %v3973_v57 = vld [vmem:[%s4917_s1 + $0x7e0] sm:$0xff]  }
  0xc9   :  { %3616 = vmatprep.subr.bf16.mxu0 %v3936_v59  ;;  %v3974_v59 = vld [vmem:[%s4917_s1 + $0x720] sm:$0xff]  }
  0xca   :  { %3637 = vmatpush3.bf16.msra.mxu1 %v3935_v58 }
  0xcb   :  { %3638 = vmatprep.subr.bf16.mxu1 %v3937_v60  ;;  %v3975_v60 = vld [vmem:[%s4917_s1 + $0x7a0] sm:$0xff]  }
  0xcc   :  { %3617 = vmatpush3.bf16.msra.mxu0 %v3938_v61  ;;  %v3976_v61 = vld [vmem:[%s4917_s1 + $0x758] sm:$0xff]  }
  0xcd   :  { %3618 = vmatprep.subr.bf16.mxu0 %v3940_v63  ;;  %v3978_v63 = vld [vmem:[%s4917_s1 + $0x718] sm:$0xff]  }
  0xce   :  { %3639 = vmatpush3.bf16.msra.mxu1 %v3939_v62  ;;  %v3977_v62 = vld [vmem:[%s4917_s1 + $0x7d8] sm:$0xff]  }
  0xcf   :  { %3640 = vmatprep.subr.bf16.mxu1 %v3941_v0  ;;  %v3979_v0 = vld [vmem:[%s4917_s1 + $0x798] sm:$0xff]  }
  0xd0   :  { %3619 = vmatpush3.bf16.msra.mxu0 %v3942_v1  ;;  %v3980_v1 = vld [vmem:[%s4917_s1 + $0x750] sm:$0xff]  }
  0xd1   :  { %3620 = vmatprep.subr.bf16.mxu0 %v3944_v3  ;;  %v3982_v3 = vld [vmem:[%s4917_s1 + $0x710] sm:$0xff]  }
  0xd2   :  { %3641 = vmatpush3.bf16.msra.mxu1 %v3943_v2  ;;  %v3981_v2 = vld [vmem:[%s4917_s1 + $0x7d0] sm:$0xff]  }
  0xd3   :  { %3642 = vmatprep.subr.bf16.mxu1 %v3945_v4  ;;  %v3983_v4 = vld [vmem:[%s4917_s1 + $0x790] sm:$0xff]  }
  0xd4   :  { %3621 = vmatpush3.bf16.msra.mxu0 %v3946_v5  ;;  %v3984_v5 = vld [vmem:[%s4917_s1 + $0x748] sm:$0xff]  }
  0xd5   :  { %3622 = vmatprep.subr.bf16.mxu0 %v3948_v7  ;;  %v3986_v7 = vld [vmem:[%s4917_s1 + $0x708] sm:$0xff]  }
  0xd6   :  { %3643 = vmatpush3.bf16.msra.mxu1 %v3947_v6  ;;  %v3985_v6 = vld [vmem:[%s4917_s1 + $0x7c8] sm:$0xff]  }
  0xd7   :  { %3644 = vmatprep.subr.bf16.mxu1 %v3949_v8  ;;  %v3988_v8 = vld [vmem:[%s4917_s1 + $0x740] sm:$0xff]  }
  0xd8   :  { %3623 = vmatpush3.bf16.msra.mxu0 %v3950_v9  ;;  %v3987_v9 = vld [vmem:[%s4917_s1 + $0x788] sm:$0xff]  }
  0xd9   :  { %3624 = vmatprep.subr.bf16.mxu0 %v3952_v11  ;;  %v3990_v11 = vld [vmem:[%s4917_s1 + $0x700] sm:$0xff]  }
  0xda   :  { %3645 = vmatpush3.bf16.msra.mxu1 %v3951_v10  ;;  %v3989_v10 = vld [vmem:[%s4917_s1 + $0x7c0] sm:$0xff]  }
  0xdb   :  { %3646 = vmatprep.subr.bf16.mxu1 %v3953_v13 }
  0xdc   :  { %3625 = vmatpush3.bf16.msra.mxu0 %v3954_v16 }
  0xdd   :  { %3626 = vmatprep.subr.bf16.mxu0 %v3956_v17 }
  0xde   :  { %3647 = vmatpush3.bf16.msra.mxu1 %v3955_v20 }
  0xdf   :  { %3648 = vmatprep.subr.bf16.mxu1 %v3957_v21 }
  0xe0   :  { %3627 = vmatpush3.bf16.msra.mxu0 %v3958_v22 }
  0xe1   :  { %3656 = vmatprep.subr.bf16.mxu0 %v3960_v28 }
  0xe2   :  { %3649 = vmatpush3.bf16.msra.mxu1 %v3959_v25 }
  0xe3   :  { %v3364_v37 = vpop.f32.mrf.mxu0  ;;  %2826 = vmatmul.mubr.bf16.vlgmr.msra.gmra.mxu0 %v719_v27  ;;  %3678 = vmatprep.subr.bf16.mxu1 %v3961_v29 }
  0xe4   :  { %3657 = vmatpush3.bf16.msra.mxu0 %v3962_v31  ;;  %2905 = vmatprep.mubr.bf16.mxu0 %v740_v30  ;;  %v3386_v42 = vpop.f32.mrf.mxu1 }
  0xe5   :  { %2866 = vmatmul.mubr.bf16.vlgmr.msra.gmra.mxu1 %v741_v33  ;;  %v3365_v43 = vpop.f32.mrf.mxu0  ;;  %3658 = vmatprep.subr.bf16.mxu0 %v3964_v34 }
  0xe6   :  { %3679 = vmatpush3.bf16.msra.mxu1 %v3963_v32  ;;  %v3366_v45 = vadd.f32 %v3365_v43, %v3364_v37  ;;  %2945 = vmatprep.mubr.bf16.mxu1 %v744_v36  ;;  %v3387_v47 = vpop.f32.mrf.mxu1 }
  0xe7   :  { %v3367_v48 = vpop.f32.mrf.mxu0  ;;  %3680 = vmatprep.subr.bf16.mxu1 %v3965_v35  ;;  %v3388_v51 = vadd.f32 %v3387_v47, %v3386_v42 }
  0xe8   :  { %v2348_v50 = vadd.f32 %v3366_v45, %v3082_v38  ;;  %3659 = vmatpush3.bf16.msra.mxu0 %v3966_v39  ;;  %v3389_v53 = vpop.f32.mrf.mxu1 }
  0xe9   :  { %v3368_v54 = vpop.f32.mrf.mxu0  ;;  %3660 = vmatprep.subr.bf16.mxu0 %v3968_v44 }
  0xea   :  { %v2388_v56 = vadd.f32 %v3388_v51, %v2348_v50  ;;  %3681 = vmatpush3.bf16.msra.mxu1 %v3967_v40  ;;  %v3390_v58 = vpop.f32.mrf.mxu1 }
  0xeb   :  { %3682 = vmatprep.subr.bf16.mxu1 %v3969_v46 }
  0xec   :  { %3661 = vmatpush3.bf16.msra.mxu0 %v3970_v49 }
  0xed   :  { %3662 = vmatprep.subr.bf16.mxu0 %v3972_v55 }
  0xee   :  { %3683 = vmatpush3.bf16.msra.mxu1 %v3971_v52 }
  0xef   :  { %3684 = vmatprep.subr.bf16.mxu1 %v3973_v57 }
  0xf0   :  { %3663 = vmatpush3.bf16.msra.mxu0 %v3974_v59 }
  0xf1   :  { %3664 = vmatprep.subr.bf16.mxu0 %v3976_v61 }
  0xf2   :  { %3685 = vmatpush3.bf16.msra.mxu1 %v3975_v60 }
  0xf3   :  { %3686 = vmatprep.subr.bf16.mxu1 %v3977_v62 }
  0xf4   :  { %3665 = vmatpush3.bf16.msra.mxu0 %v3978_v63 }
  0xf5   :  { %3666 = vmatprep.subr.bf16.mxu0 %v3980_v1 }
  0xf6   :  { %3687 = vmatpush3.bf16.msra.mxu1 %v3979_v0 }
  0xf7   :  { %3688 = vmatprep.subr.bf16.mxu1 %v3981_v2 }
  0xf8   :  { %3667 = vmatpush3.bf16.msra.mxu0 %v3982_v3 }
  0xf9   :  { %3668 = vmatprep.subr.bf16.mxu0 %v3984_v5 }
  0xfa   :  { %3689 = vmatpush3.bf16.msra.mxu1 %v3983_v4 }
  0xfb   :  { %3690 = vmatprep.subr.bf16.mxu1 %v3985_v6 }
  0xfc   :  { %3669 = vmatpush3.bf16.msra.mxu0 %v3986_v7 }
  0xfd   :  { %10 = vsyncpa [#allocation3], 0  ;;  %3670 = vmatprep.subr.bf16.mxu0 %v3988_v8  ;;  %v726_v12 = vrot.slane %v4766_v19, %v4162_v41  ;;  %v3991_v13 = vld [vmem:[%s4917_s1 + $0x780] sm:$0xff]   ;;  %v3993_v38 = vld [vmem:[%s4919_s3 + $0x38] sm:$0xff]   ;;  %v4024_v39 = vmov 0.0   ;;  %vm4025_vm0 = vmmov 0  }
  0xfe   :  { %3691 = vmatpush3.bf16.msra.mxu1 %v3987_v9  ;;  %v3994_v40 = vld [vmem:[%s4919_s3 + $0x30] sm:$0xff]   ;;  %v3995_v42 = vld [vmem:[%s4919_s3 + $0x28] sm:$0xff]   ;;  %v3996_v43 = vld [vmem:[%s4919_s3 + $0x20] sm:$0xff]   ;;  %s4026_s24 = smov [#allocation2]   ;;  %vm3066_vm1 = vcmask 189440  }
  0xff   :  { %3692 = vmatprep.subr.bf16.mxu1 %v3989_v10  ;;  %v742_v14 = vcombine.high %v726_v12, %v726_v12  ;;  %v3997_v44 = vld [vmem:[%s4919_s3 + $0x18] sm:$0xff]   ;;  %v3998_v48 = vld [vmem:[%s4919_s3 + $0x10] sm:$0xff]   ;;  %v4000_v59 = vld [vmem:[%s4919_s3] sm:$0xff]   ;;  %s3074_s25 = sshll.u32 %s4026_s24, 4  ;;  %s3075_s25 = int_to_ptr.vmem [resolvable:$true] %s3074_s25 }
 0x100   :  { %3671 = vmatpush3.bf16.msra.mxu0 %v3990_v11  ;;  %s4001_s26 = scalar_lea.vmem %s3075_s25, 32  ;;  %p4006_p1 = scmp.lt.s32.totalorder %s3075_s25, %s3075_s25 }
 0x101   :  { %3709 = vmatprep.subr.bf16.mxu0 %v4024_v39  ;;  %p4002_p0 = scmp.ne.s32.totalorder %s3075_s25, %s4001_s26  ;;  %p4007_p2 = scmp.lt.s32.totalorder %s4001_s26, %s4001_s26 }
 0x102   :  { %3693 = vmatpush3.bf16.msra.mxu1 %v3991_v13 }
 0x103   :  { %v3408_v15 = vpop.f32.mrf.mxu0  ;;  %2906 = vmatmul.mubr.bf16.vlgmr.msra.gmra.mxu0 %v726_v12  ;;  %p4008_p3 = por %p4007_p2, %p4006_p1 }
 0x104   :  { %v3430_v16 = vpop.f32.mrf.mxu1  ;;  %3710 = vmatpush3.bf16.msra.mxu0 %v3993_v38  ;;  %3725 = vmatprep.mubr.msk.bf16.mxu0 %vm4025_vm0, %v4024_v39 }
 0x105   :  { %2946 = vmatmul.mubr.bf16.vlgmr.msra.gmra.mxu1 %v742_v14  ;;  %v3409_v17 = vpop.f32.mrf.mxu0  ;;  %3711 = vmatprep.subr.bf16.mxu0 %v4024_v39  ;;  %p4009_p4 = pnand %p4008_p3, %p4002_p0 }
 0x106   :  { %v3410_v18 = vadd.f32 %v3409_v17, %v3408_v15  ;;  %v3431_v20 = vpop.f32.mrf.mxu1 }
 0x107   :  { %v3411_v21 = vpop.f32.mrf.mxu0  ;;  %v3432_v23 = vadd.f32 %v3431_v20, %v3430_v16 }
 0x108   :  { %v2428_v22 = vadd.f32 %v3410_v18, %v2388_v56  ;;  %v3433_v41 = vpop.f32.mrf.mxu1  ;;  %3712 = vmatpush3.bf16.msra.mxu0 %v3994_v40  ;;  %v3999_v56 = vld [vmem:[%s4919_s3 + $0x8] sm:$0xff]  }
 0x109   :  { %v3412_v19 = vpop.f32.mrf.mxu0  ;;  %3713 = vmatprep.subr.bf16.mxu0 %v4024_v39 }
 0x10a   :  { %v2468_v24 = vadd.f32 %v3432_v23, %v2428_v22  ;;  %v3434_v25 = vpop.f32.mrf.mxu1 }
 0x10c   :  { %3714 = vmatpush3.bf16.msra.mxu0 %v3995_v42 }
 0x10d   :  { %3715 = vmatprep.subr.bf16.mxu0 %v4024_v39 }
 0x110   :  { %3716 = vmatpush3.bf16.msra.mxu0 %v3996_v43 }
 0x111   :  { %3717 = vmatprep.subr.bf16.mxu0 %v4024_v39 }
 0x114   :  { %3718 = vmatpush3.bf16.msra.mxu0 %v3997_v44 }
 0x115   :  { %3719 = vmatprep.subr.bf16.mxu0 %v4024_v39 }
 0x118   :  { %3720 = vmatpush3.bf16.msra.mxu0 %v3998_v48 }
 0x119   :  { %3721 = vmatprep.subr.bf16.mxu0 %v4024_v39 }
 0x11c   :  { %3722 = vmatpush3.bf16.msra.mxu0 %v3999_v56 }
 0x11d   :  { %3723 = vmatprep.subr.bf16.mxu0 %v4024_v39 }
 0x120   :  { %3724 = vmatpush3.bf16.msra.mxu0 %v4000_v59 }
 0x123   :  { %v3452_v26 = vpop.f32.mrf.mxu0 }
 0x125   :  { %v3474_v27 = vpop.f32.mrf.mxu1  ;;  %v3453_v28 = vpop.f32.mrf.mxu0 }
 0x126   :  { %v3454_v29 = vadd.f32 %v3453_v28, %v3452_v26 }
 0x127   :  { %v3475_v30 = vpop.f32.mrf.mxu1  ;;  %v3455_v31 = vpop.f32.mrf.mxu0 }
 0x128   :  { %v2508_v32 = vadd.f32 %v3454_v29, %v2468_v24  ;;  %v3476_v33 = vadd.f32 %v3475_v30, %v3474_v27 }
 0x129   :  { %v3477_v34 = vpop.f32.mrf.mxu1  ;;  %v3456_v35 = vpop.f32.mrf.mxu0 }
 0x12a   :  { %v2548_v36 = vadd.f32 %v3476_v33, %v2508_v32 }
 0x12b   :  { %v3478_v37 = vpop.f32.mrf.mxu1 }
 0x143   :  { %v3496_v45 = vpop.f32.mrf.mxu0 }
 0x145   :  { %v3518_v46 = vpop.f32.mrf.mxu1  ;;  %v3497_v47 = vpop.f32.mrf.mxu0 }
 0x146   :  { %v3498_v49 = vadd.f32 %v3497_v47, %v3496_v45 }
 0x147   :  { %v3519_v50 = vpop.f32.mrf.mxu1  ;;  %v3499_v51 = vpop.f32.mrf.mxu0 }
 0x148   :  { %v2588_v52 = vadd.f32 %v3498_v49, %v2548_v36  ;;  %v3520_v53 = vadd.f32 %v3519_v50, %v3518_v46  ;;  %v3339_v46 = vld [vmem:[%s4920_s4] ss:$0 sm:$0xff] }
 0x149   :  { %v3521_v54 = vpop.f32.mrf.mxu1  ;;  %v3500_v55 = vpop.f32.mrf.mxu0 }
 0x14a   :  { %v2628_v57 = vadd.f32 %v3520_v53, %v2588_v52 }
 0x14b   :  { %v3522_v58 = vpop.f32.mrf.mxu1 }
 0x163   :  { %v3540_v60 = vpop.f32.mrf.mxu0 }
 0x165   :  { %v3562_v61 = vpop.f32.mrf.mxu1  ;;  %v3541_v62 = vpop.f32.mrf.mxu0 }
 0x166   :  { %v3542_v63 = vadd.f32 %v3541_v62, %v3540_v60 }
 0x167   :  { %v3563_v0 = vpop.f32.mrf.mxu1  ;;  %v3543_v1 = vpop.f32.mrf.mxu0 }
 0x168   :  { %v2668_v2 = vadd.f32 %v3542_v63, %v2628_v57  ;;  %v3564_v3 = vadd.f32 %v3563_v0, %v3562_v61 }
 0x169   :  { %v3565_v4 = vpop.f32.mrf.mxu1  ;;  %v3544_v5 = vpop.f32.mrf.mxu0 }
 0x16a   :  { %v2708_v6 = vadd.f32 %v3564_v3, %v2668_v2 }
 0x16b   :  { %v3566_v7 = vpop.f32.mrf.mxu1 }
 0x183   :  { %v3584_v8 = vpop.f32.mrf.mxu0 }
 0x185   :  { %v3606_v9 = vpop.f32.mrf.mxu1  ;;  %v3585_v10 = vpop.f32.mrf.mxu0 }
 0x186   :  { %v3586_v19 = vadd.f32 %v3585_v10, %v3584_v8 }
 0x187   :  { %v3607_v11 = vpop.f32.mrf.mxu1  ;;  %v3587_v12 = vpop.f32.mrf.mxu0 }
 0x188   :  { %v2748_v24 = vadd.f32 %v3586_v19, %v2708_v6  ;;  %v3608_v25 = vadd.f32 %v3607_v11, %v3606_v9 }
 0x189   :  { %v3609_v13 = vpop.f32.mrf.mxu1  ;;  %v3588_v14 = vpop.f32.mrf.mxu0 }
 0x18a   :  { %v2788_v27 = vadd.f32 %v3608_v25, %v2748_v24 }
 0x18b   :  { %v3610_v15 = vpop.f32.mrf.mxu1 }
 0x1a3   :  { %v3628_v16 = vpop.f32.mrf.mxu0 }
 0x1a5   :  { %v3650_v17 = vpop.f32.mrf.mxu1  ;;  %v3629_v18 = vpop.f32.mrf.mxu0 }
 0x1a6   :  { %v3630_v26 = vadd.f32 %v3629_v18, %v3628_v16 }
 0x1a7   :  { %v3651_v20 = vpop.f32.mrf.mxu1  ;;  %v3631_v21 = vpop.f32.mrf.mxu0 }
 0x1a8   :  { %v2828_v28 = vadd.f32 %v3630_v26, %v2788_v27  ;;  %v3652_v29 = vadd.f32 %v3651_v20, %v3650_v17 }
 0x1a9   :  { %v3653_v22 = vpop.f32.mrf.mxu1  ;;  %v3632_v23 = vpop.f32.mrf.mxu0 }
 0x1aa   :  { %v2868_v33 = vadd.f32 %v3652_v29, %v2828_v28 }
 0x1ab   :  { %v3654_v41 = vpop.f32.mrf.mxu1 }
 0x1c3   :  { %v3672_v30 = vpop.f32.mrf.mxu0 }
 0x1c5   :  { %v3694_v31 = vpop.f32.mrf.mxu1  ;;  %v3673_v32 = vpop.f32.mrf.mxu0 }
 0x1c6   :  { %v3674_v34 = vadd.f32 %v3673_v32, %v3672_v30 }
 0x1c7   :  { %v3695_v35 = vpop.f32.mrf.mxu1  ;;  %v3675_v36 = vpop.f32.mrf.mxu0 }
 0x1c8   :  { %v2908_v37 = vadd.f32 %v3674_v34, %v2868_v33  ;;  %v3696_v38 = vadd.f32 %v3695_v35, %v3694_v31 }
 0x1c9   :  { %v3697_v39 = vpop.f32.mrf.mxu1  ;;  %v3676_v40 = vpop.f32.mrf.mxu0 }
 0x1ca   :  { %v2948_v42 = vadd.f32 %v3696_v38, %v2908_v37 }
 0x1cb   :  { %v3698_v43 = vpop.f32.mrf.mxu1 }
 0x1cc   :  { %v2953_v44 = vmax.f32 %v2948_v42, 0.0 }
 0x1ce   :  { %v2954_v45 = vpack.c.bf16 %v2953_v44, %v2953_v44 }
 0x1d0   :  { %3726 = vmatmul.mubr.bf16.vlgmr.msra.gmra.mxu0 %v2954_v45 }
 0x290   :  { %v3060_v47 = vpop.f32.mrf.mxu0 }
 0x291   :  { %v3061_v48 = vadd.f32 %v3339_v46, %v3060_v47 }
 0x292   :  { %v3727_v49 = vpop.f32.mrf.mxu0 }
 0x293   :  { %3067 = vst.msk [vmem:[#allocation2] sm:$0x3] %vm3066_vm1, %v3061_v48 }
 0x294   :  { %v3063_v50 = vpop.f32.mrf.mxu0 }
 0x295   :  { %4012 = shalt.err (!%p4009_p4)
}
 0x296   :  { %3077 = dma.vmem_to_hbm [thread:$0]  %s3075_s25, 32, %s4921_s5, [#allocation3]   ;;  %v3728_v51 = vpop.f32.mrf.mxu0 }
 0x297   :  { %4021 = dma.done.wait [#allocation3], 32  }
 0x298   :  { %4022 = vsyncadd [#allocation3], 4294967264 }
 0x299   :  { %3081 = vsyncpa [#allocation3], 1 }

</bundles_post_ra>
